<compile_context>
chip_gen: v5e
topology: v5e:2x2
jax: 0.10.0
libtpu: 0.0.40
codegen_flags: <defaults>
</compile_context>

<pallas_src>
import functools

import numpy as np
import jax
import jax.numpy as jnp
from jax import lax
from jax.experimental import pallas as pl
from jax.experimental.pallas import tpu as pltpu

# ----- synthetic "dataset module" constants (cfg-driven in the PyTorch code) -----
NFFT = 64
HOP = 16
NMEL = 32
SR = 16000
N_STFT = NFFT // 2 + 1  # 33

# OUTPUT_DENORM is dataset-specific; modeled as exp() (log-mel -> mel magnitude),
# applied inside the inverse-mel Pallas kernel.

INVMEL_ITERS = 300      # TODO(synk): torchaudio uses max_iter=5000 with tolerance_loss=1e-5
                        #             early stop (data-dependent trip count); fixed count here.
GL_ITERS = 32           # torchaudio GriffinLim default n_iter
GL_MOMENTUM = 0.99      # torchaudio GriffinLim default momentum
EPS = 1e-16

LANE = 128
T_TILE = 128            # lane tile of the time axis in the inverse-mel stage


def _round_up(x, m):
    return ((x + m - 1) // m) * m


# ----------------------------- deterministic parameters -----------------------------
def _hz_to_mel(f):
    return 2595.0 * np.log10(1.0 + f / 700.0)


def _mel_to_hz(m):
    return 700.0 * (10.0 ** (m / 2595.0) - 1.0)


def mel_filterbank(n_stft, n_mels, sr):
    """HTK-style triangular mel filterbank, shape (n_stft, n_mels) like torchaudio."""
    all_freqs = np.linspace(0.0, sr / 2.0, n_stft)
    m_pts = np.linspace(_hz_to_mel(0.0), _hz_to_mel(sr / 2.0), n_mels + 2)
    f_pts = _mel_to_hz(m_pts)
    f_diff = f_pts[1:] - f_pts[:-1]
    slopes = f_pts[None, :] - all_freqs[:, None]          # (n_stft, n_mels + 2)
    down = -slopes[:, :-2] / f_diff[:-1]
    up = slopes[:, 2:] / f_diff[1:]
    fb = np.maximum(0.0, np.minimum(down, up))
    return fb.astype(np.float32)


def dft_bases_windowed(n_fft, n_stft, win):
    """Forward / inverse real-DFT bases with the Hann window pre-folded in."""
    n = np.arange(n_fft)[:, None]
    k = np.arange(n_stft)[None, :]
    ang = 2.0 * np.pi * n * k / n_fft                      # (n_fft, n_stft)
    cos_w = win[:, None] * np.cos(ang)                     # STFT:  Re =  frames @ cos_w
    sin_w = win[:, None] * np.sin(ang)                     #        Im = -frames @ sin_w
    w = np.full((n_stft,), 2.0)
    w[0] = 1.0
    w[-1] = 1.0
    icos_w = (w[:, None] * np.cos(ang.T) / n_fft) * win[None, :]     # (n_stft, n_fft)
    isin_w = (-w[:, None] * np.sin(ang.T) / n_fft) * win[None, :]    # (n_stft, n_fft)
    return cos_w, sin_w, icos_w, isin_w


def build_gl_operators(f_frames, n_fft, hop, n_stft, win):
    """Fold windowed-ISTFT / OLA / env-normalize / trim / reflect-pad / reframe /
    windowed-STFT into four (F*n_stft, F*n_stft) operators acting on row-major flattened
    (F, n_stft) spectra (row vectors, right multiplication), plus two (F*n_stft, out_len)
    operators for the final ISTFT -> waveform.  Exact linear algebra, built in float64."""
    out_len = (f_frames - 1) * hop
    l_pad = n_fft + (f_frames - 1) * hop
    half = n_fft // 2
    cos_w, sin_w, icos_w, isin_w = dft_bases_windowed(n_fft, n_stft, win)

    # overlap-add + window^2 envelope normalize + center trim: frames_vec -> y
    ola = np.zeros((l_pad, f_frames * n_fft))
    env = np.zeros((l_pad,))
    for f in range(f_frames):
        for j in range(n_fft):
            ola[f * hop + j, f * n_fft + j] += 1.0
            env[f * hop + j] += win[j] ** 2
    env = np.where(env > 1e-11, env, 1.0)
    y_op = ola[half: half + out_len, :] / env[half: half + out_len, None]   # (out_len, F*n_fft)

    # reflect pad + re-frame: y -> frames_vec (center=True torch.stft framing)
    refl = np.zeros((f_frames * n_fft, out_len))
    for f in range(f_frames):
        for j in range(n_fft):
            m = f * hop + j - half
            if m < 0:
                m = -m
            elif m >= out_len:
                m = 2 * (out_len - 1) - m
            refl[f * n_fft + j, m] = 1.0
    m_op = refl @ y_op                         # frames_out_vec -> frames_in_vec (F*n_fft)^2

    eye = np.eye(f_frames)
    ic = np.kron(eye, icos_w)                  # (F*n_stft, F*n_fft):  vec(Re) -> vec(frames)
    iss = np.kron(eye, isin_w)
    cwk = np.kron(eye, cos_w)                  # (F*n_fft, F*n_stft):  vec(frames) -> vec(Re)
    swk = np.kron(eye, sin_w)

    mtc = m_op.T @ cwk
    mts = m_op.T @ swk
    a_rr = ic @ mtc                            # sre -> reb_re
    a_ir = iss @ mtc                           # sim -> reb_re
    a_ri = -(ic @ mts)                         # sre -> reb_im
    a_ii = -(iss @ mts)                        # sim -> reb_im
    y_re = ic @ y_op.T                         # sre -> waveform
    y_im = iss @ y_op.T                        # sim -> waveform

    p = _round_up(f_frames * n_stft, LANE)     # lane-padded state width
    q = _round_up(out_len, LANE)               # lane-padded waveform width

    def pad2(m, r, c):
        out = np.zeros((r, c), np.float32)
        out[: m.shape[0], : m.shape[1]] = m
        return out

    return (pad2(a_rr, p, p), pad2(a_ir, p, p), pad2(a_ri, p, p), pad2(a_ii, p, p),
            pad2(y_re, p, q), pad2(y_im, p, q), p, q, out_len)


# ----------------------------------- Pallas kernels -----------------------------------
def _inverse_mel_kernel(mel_log_ref, a_ref, fb_ref, spec_ref, *, lr, n_iters):
    # mel_log: (n_mels, Tt) log-mel tile; a = fb @ fb.T (n_stft, n_stft); fb (n_stft, n_mels)
    mel = jnp.exp(mel_log_ref[...])                                   # OUTPUT_DENORM (EUP)
    b = jnp.dot(fb_ref[...], mel, preferred_element_type=jnp.float32)  # (n_stft, Tt), once
    a = a_ref[...]

    def body(_, spec):
        grad = jnp.dot(a, spec, preferred_element_type=jnp.float32) - b   # single matmul / iter
        return jnp.maximum(spec - lr * grad, 0.0)                          # project spec >= 0

    spec_ref[...] = lax.fori_loop(0, n_iters, body,
                                  jnp.zeros(spec_ref.shape, jnp.float32))


def _gl_fused_kernel(mag_ref, a_rr_ref, a_ir_ref, a_ri_ref, a_ii_ref,
                     y_re_ref, y_im_ref, y_ref, *, n_iters, momentum):
    # mag: (8, P) lane/sublane-padded flattened magnitudes (row 0 real, rest zero).
    # a_**: (P, P) fused ISTFT->OLA->reframe->STFT operators.  y_**: (P, Q) final-ISTFT ops.
    mag = mag_ref[...]
    zeros = jnp.zeros_like(mag)
    alpha = momentum / (1.0 + momentum)

    def body(_, carry):
        s_re, s_im, t_re_prev, t_im_prev = carry
        # rebuilt = stft(istft(mag * angles))  -- one fused matvec pair on the MXU
        reb_re = (jnp.dot(s_re, a_rr_ref[...], preferred_element_type=jnp.float32)
                  + jnp.dot(s_im, a_ir_ref[...], preferred_element_type=jnp.float32))
        reb_im = (jnp.dot(s_re, a_ri_ref[...], preferred_element_type=jnp.float32)
                  + jnp.dot(s_im, a_ii_ref[...], preferred_element_type=jnp.float32))
        t_re = reb_re - alpha * t_re_prev
        t_im = reb_im - alpha * t_im_prev
        inv = lax.rsqrt(t_re * t_re + t_im * t_im + EPS * EPS)       # EUP rsqrt (free slot)
        return (mag * t_re * inv, mag * t_im * inv, reb_re, reb_im)

    # TODO(synk): torchaudio GriffinLim uses random initial phase (rand_init=True);
    #             deterministic zero-phase init (angles = 1 + 0j) is used here.
    s_re, s_im, _, _ = lax.fori_loop(0, n_iters, body, (mag, zeros, zeros, zeros))

    # final ISTFT -> waveform (window / OLA / env / trim all folded into y_re / y_im)
    y_ref[...] = (jnp.dot(s_re, y_re_ref[...], preferred_element_type=jnp.float32)
                  + jnp.dot(s_im, y_im_ref[...], preferred_element_type=jnp.float32))


_VMEM = pl.BlockSpec(memory_space=pltpu.MemorySpace.VMEM)


def inverse_mel_call(mel_log_pad, a_pgd, fb, lr):
    n_stft, n_mels = fb.shape
    t_pad = mel_log_pad.shape[1]
    return pl.pallas_call(
        functools.partial(_inverse_mel_kernel, lr=lr, n_iters=INVMEL_ITERS),
        grid=(t_pad // T_TILE,),
        out_shape=jax.ShapeDtypeStruct((n_stft, t_pad), jnp.float32),
        in_specs=[pl.BlockSpec((n_mels, T_TILE), lambda i: (0, i)),
                  pl.BlockSpec((n_stft, n_stft), lambda i: (0, 0)),
                  pl.BlockSpec((n_stft, n_mels), lambda i: (0, 0))],
        out_specs=pl.BlockSpec((n_stft, T_TILE), lambda i: (0, i)),
        compiler_params=pltpu.CompilerParams(
            dimension_semantics=("parallel",)),   # columns are independent -> megacore-able
    )(mel_log_pad, a_pgd, fb)


def gl_fused_call(mag8, a_rr, a_ir, a_ri, a_ii, y_re, y_im):
    q = y_re.shape[1]
    return pl.pallas_call(
        functools.partial(_gl_fused_kernel, n_iters=GL_ITERS, momentum=GL_MOMENTUM),
        out_shape=jax.ShapeDtypeStruct((8, q), jnp.float32),
        in_specs=[_VMEM] * 7,
        out_specs=_VMEM,
        compiler_params=pltpu.CompilerParams(vmem_limit_bytes=48 * 1024 * 1024),
    )(mag8, a_rr, a_ir, a_ri, a_ii, y_re, y_im)


# ------------------------------------- module glue -------------------------------------
def build_gfl_from_mel(t_frames):
    fb = mel_filterbank(N_STFT, NMEL, SR)                   # (n_stft, n_mels)
    sigma = np.linalg.norm(fb, 2)
    lr = float(0.95 / (sigma * sigma))                      # safe step for projected GD
    a_pgd = (fb @ fb.T).astype(np.float32)                  # fold the two PGD matmuls into one

    n = np.arange(NFFT)
    win = 0.5 - 0.5 * np.cos(2.0 * np.pi * n / NFFT)        # periodic hann (torch default)

    (a_rr, a_ir, a_ri, a_ii, y_re, y_im, p_pad, _q_pad, out_len) = \
        build_gl_operators(t_frames, NFFT, HOP, N_STFT, win)

    t_pad = _round_up(t_frames, T_TILE)
    n_flat = t_frames * N_STFT

    params = dict(
        fb=jnp.asarray(fb), a_pgd=jnp.asarray(a_pgd),
        a_rr=jnp.asarray(a_rr), a_ir=jnp.asarray(a_ir),
        a_ri=jnp.asarray(a_ri), a_ii=jnp.asarray(a_ii),
        y_re=jnp.asarray(y_re), y_im=jnp.asarray(y_im),
    )

    @jax.jit
    def forward(x):
        # x: (B=1, T_frames, n_mels) float32 log-mel; denorm (exp) is applied in-kernel.
        mel_log = jnp.transpose(x[0])                                # (n_mels, T)
        mel_log = jnp.pad(mel_log, ((0, 0), (0, t_pad - t_frames)))  # lane-pad time axis
        spec = inverse_mel_call(mel_log, params["a_pgd"], params["fb"], lr)
        spec = spec[:, :t_frames]                                    # (n_stft, T) magnitudes

        # row-major flatten of (F, n_stft) == the layout the fused GL operators act on
        mag_flat = jnp.reshape(jnp.transpose(spec), (1, n_flat))
        mag8 = jnp.pad(mag_flat, ((0, 7), (0, p_pad - n_flat)))      # sublane/lane padded

        y8 = gl_fused_call(mag8, params["a_rr"], params["a_ir"], params["a_ri"],
                           params["a_ii"], params["y_re"], params["y_im"])
        return y8[0, :out_len]                                       # == .squeeze(0) for B=1

    return forward


if __name__ == "__main__":
    T_FRAMES = 16
    forward = build_gfl_from_mel(T_FRAMES)
    key = jax.random.PRNGKey(0)
    # log-mel-like deterministic input (small values so exp() denorm is well-behaved)
    x = 0.5 * jax.random.normal(key, (1, T_FRAMES, NMEL), dtype=jnp.float32) - 1.0
    y = forward(x)
    jax.block_until_ready(y)
    assert y.shape == ((T_FRAMES - 1) * HOP,)
    assert bool(jnp.all(jnp.isfinite(y)))
    print("KERNEL_OK")
</pallas_src>

<mosaic_0001>
module attributes {stable_mosaic.version = 11 : i64} {
  func.func @_inverse_mel_kernel(%arg0: i32, %arg1: memref<32x128xf32, #tpu.memory_space<vmem>>, %arg2: memref<33x33xf32, #tpu.memory_space<vmem>>, %arg3: memref<33x32xf32, #tpu.memory_space<vmem>>, %arg4: memref<33x128xf32, #tpu.memory_space<vmem>>) attributes {dimension_semantics = [#tpu.dimension_semantics<parallel>], iteration_bounds = array<i64: 1>, scalar_prefetch = 0 : i64, scratch_operands = 0 : i64, tpu.core_type = #tpu.core_type<tc>, window_params = [{transform_indices = @transform_0, window_bounds = array<i64: 32, 128>}, {pipeline_mode = #tpu.pipeline_mode<synchronous>, transform_indices = @transform_1, window_bounds = array<i64: 33, 33>}, {pipeline_mode = #tpu.pipeline_mode<synchronous>, transform_indices = @transform_2, window_bounds = array<i64: 33, 32>}, {transform_indices = @transform_3, window_bounds = array<i64: 33, 128>}]} {
    %c0 = arith.constant 0 : index
    %c0_0 = arith.constant 0 : index
    %0 = vector.load %arg1[%c0, %c0_0] : memref<32x128xf32, #tpu.memory_space<vmem>>, vector<32x128xf32>
    %1 = math.exp %0 : vector<32x128xf32>
    %c0_1 = arith.constant 0 : index
    %c0_2 = arith.constant 0 : index
    %2 = vector.load %arg3[%c0_1, %c0_2] : memref<33x32xf32, #tpu.memory_space<vmem>>, vector<33x32xf32>
    %cst = arith.constant dense<0.000000e+00> : vector<33x128xf32>
    %3 = tpu.matmul %2, %1, %cst {dimension_numbers = #tpu.dot_dimension_numbers<[1], [0], [0], [1], [0, 0, 1, 1], [], []>} : vector<33x32xf32>, vector<32x128xf32>, vector<33x128xf32> -> vector<33x128xf32>
    %c0_3 = arith.constant 0 : index
    %c0_4 = arith.constant 0 : index
    %4 = vector.load %arg2[%c0_3, %c0_4] : memref<33x33xf32, #tpu.memory_space<vmem>>, vector<33x33xf32>
    %cst_5 = arith.constant 0.000000e+00 : f32
    %5 = vector.broadcast %cst_5 : f32 to vector<33x128xf32>
    %c0_i32 = arith.constant 0 : i32
    %c300_i32 = arith.constant 300 : i32
    %6 = arith.addi %c0_i32, %c300_i32 : i32
    %c1_i32 = arith.constant 1 : i32
    %7 = scf.for %arg5 = %c0_i32 to %6 step %c1_i32 iter_args(%arg6 = %5) -> (vector<33x128xf32>)  : i32 {
      %cst_8 = arith.constant dense<0.000000e+00> : vector<33x128xf32>
      %9 = tpu.matmul %4, %arg6, %cst_8 {dimension_numbers = #tpu.dot_dimension_numbers<[1], [0], [0], [1], [0, 0, 1, 1], [], []>} : vector<33x33xf32>, vector<33x128xf32>, vector<33x128xf32> -> vector<33x128xf32>
      %10 = arith.subf %9, %3 : vector<33x128xf32>
      %cst_9 = arith.constant 0.44941777 : f32
      %11 = vector.broadcast %cst_9 : f32 to vector<33x128xf32>
      %12 = arith.mulf %11, %10 : vector<33x128xf32>
      %13 = arith.subf %arg6, %12 : vector<33x128xf32>
      %cst_10 = arith.constant 0.000000e+00 : f32
      %14 = vector.broadcast %cst_10 : f32 to vector<33x128xf32>
      %15 = arith.maximumf %13, %14 : vector<33x128xf32>
      scf.yield %15 : vector<33x128xf32>
    }
    %c0_6 = arith.constant 0 : index
    %c0_7 = arith.constant 0 : index
    %8 = vector.load %arg4[%c0_6, %c0_7] : memref<33x128xf32, #tpu.memory_space<vmem>>, vector<33x128xf32>
    tpu.vector_store %arg4[%c0_6, %c0_7], %7 {strides = array<i32>} : memref<33x128xf32, #tpu.memory_space<vmem>>, vector<33x128xf32>,
    return
  }
  func.func @transform_0(%arg0: i32) -> (i32, i32) {
    %c0_i32 = arith.constant 0 : i32
    %c0_i32_0 = arith.constant 0 : i32
    return %c0_i32, %arg0 : i32, i32
  }
  func.func @transform_1(%arg0: i32) -> (i32, i32) {
    %c0_i32 = arith.constant 0 : i32
    %c0_i32_0 = arith.constant 0 : i32
    %c0_i32_1 = arith.constant 0 : i32
    return %c0_i32, %c0_i32_0 : i32, i32
  }
  func.func @transform_2(%arg0: i32) -> (i32, i32) {
    %c0_i32 = arith.constant 0 : i32
    %c0_i32_0 = arith.constant 0 : i32
    %c0_i32_1 = arith.constant 0 : i32
    return %c0_i32, %c0_i32_0 : i32, i32
  }
  func.func @transform_3(%arg0: i32) -> (i32, i32) {
    %c0_i32 = arith.constant 0 : i32
    %c0_i32_0 = arith.constant 0 : i32
    return %c0_i32, %arg0 : i32, i32
  }
}

module attributes {stable_mosaic.version = 11 : i64} {
  func.func @_gl_fused_kernel(%arg0: memref<8x640xf32, #tpu.memory_space<vmem>>, %arg1: memref<640x640xf32, #tpu.memory_space<vmem>>, %arg2: memref<640x640xf32, #tpu.memory_space<vmem>>, %arg3: memref<640x640xf32, #tpu.memory_space<vmem>>, %arg4: memref<640x640xf32, #tpu.memory_space<vmem>>, %arg5: memref<640x256xf32, #tpu.memory_space<vmem>>, %arg6: memref<640x256xf32, #tpu.memory_space<vmem>>, %arg7: memref<8x256xf32, #tpu.memory_space<vmem>>) attributes {dimension_semantics = [], scalar_prefetch = 0 : i64, scratch_operands = 0 : i64, tpu.core_type = #tpu.core_type<tc>} {
    %c0 = arith.constant 0 : index
    %c0_0 = arith.constant 0 : index
    %0 = vector.load %arg0[%c0, %c0_0] : memref<8x640xf32, #tpu.memory_space<vmem>>, vector<8x640xf32>
    %cst = arith.constant 0.000000e+00 : f32
    %1 = vector.broadcast %cst : f32 to vector<8x640xf32>
    %c0_i32 = arith.constant 0 : i32
    %c32_i32 = arith.constant 32 : i32
    %2 = arith.addi %c0_i32, %c32_i32 : i32
    %c1_i32 = arith.constant 1 : i32
    %3:4 = scf.for %arg8 = %c0_i32 to %2 step %c1_i32 iter_args(%arg9 = %0, %arg10 = %1, %arg11 = %1, %arg12 = %1) -> (vector<8x640xf32>, vector<8x640xf32>, vector<8x640xf32>, vector<8x640xf32>)  : i32 {
      %c0_9 = arith.constant 0 : index
      %c0_10 = arith.constant 0 : index
      %10 = vector.load %arg1[%c0_9, %c0_10] : memref<640x640xf32, #tpu.memory_space<vmem>>, vector<640x640xf32>
      %cst_11 = arith.constant dense<0.000000e+00> : vector<8x640xf32>
      %11 = tpu.matmul %arg9, %10, %cst_11 {dimension_numbers = #tpu.dot_dimension_numbers<[1], [0], [0], [1], [0, 0, 1, 1], [], []>} : vector<8x640xf32>, vector<640x640xf32>, vector<8x640xf32> -> vector<8x640xf32>
      %c0_12 = arith.constant 0 : index
      %c0_13 = arith.constant 0 : index
      %12 = vector.load %arg2[%c0_12, %c0_13] : memref<640x640xf32, #tpu.memory_space<vmem>>, vector<640x640xf32>
      %cst_14 = arith.constant dense<0.000000e+00> : vector<8x640xf32>
      %13 = tpu.matmul %arg10, %12, %cst_14 {dimension_numbers = #tpu.dot_dimension_numbers<[1], [0], [0], [1], [0, 0, 1, 1], [], []>} : vector<8x640xf32>, vector<640x640xf32>, vector<8x640xf32> -> vector<8x640xf32>
      %14 = arith.addf %11, %13 : vector<8x640xf32>
      %c0_15 = arith.constant 0 : index
      %c0_16 = arith.constant 0 : index
      %15 = vector.load %arg3[%c0_15, %c0_16] : memref<640x640xf32, #tpu.memory_space<vmem>>, vector<640x640xf32>
      %cst_17 = arith.constant dense<0.000000e+00> : vector<8x640xf32>
      %16 = tpu.matmul %arg9, %15, %cst_17 {dimension_numbers = #tpu.dot_dimension_numbers<[1], [0], [0], [1], [0, 0, 1, 1], [], []>} : vector<8x640xf32>, vector<640x640xf32>, vector<8x640xf32> -> vector<8x640xf32>
      %c0_18 = arith.constant 0 : index
      %c0_19 = arith.constant 0 : index
      %17 = vector.load %arg4[%c0_18, %c0_19] : memref<640x640xf32, #tpu.memory_space<vmem>>, vector<640x640xf32>
      %cst_20 = arith.constant dense<0.000000e+00> : vector<8x640xf32>
      %18 = tpu.matmul %arg10, %17, %cst_20 {dimension_numbers = #tpu.dot_dimension_numbers<[1], [0], [0], [1], [0, 0, 1, 1], [], []>} : vector<8x640xf32>, vector<640x640xf32>, vector<8x640xf32> -> vector<8x640xf32>
      %19 = arith.addf %16, %18 : vector<8x640xf32>
      %cst_21 = arith.constant 0.497487426 : f32
      %20 = vector.broadcast %cst_21 : f32 to vector<8x640xf32>
      %21 = arith.mulf %20, %arg11 : vector<8x640xf32>
      %22 = arith.subf %14, %21 : vector<8x640xf32>
      %cst_22 = arith.constant 0.497487426 : f32
      %23 = vector.broadcast %cst_22 : f32 to vector<8x640xf32>
      %24 = arith.mulf %23, %arg12 : vector<8x640xf32>
      %25 = arith.subf %19, %24 : vector<8x640xf32>
      %26 = arith.mulf %22, %22 : vector<8x640xf32>
      %27 = arith.mulf %25, %25 : vector<8x640xf32>
      %28 = arith.addf %26, %27 : vector<8x640xf32>
      %cst_23 = arith.constant 1.000000e-32 : f32
      %29 = vector.broadcast %cst_23 : f32 to vector<8x640xf32>
      %30 = arith.addf %28, %29 : vector<8x640xf32>
      %31 = math.rsqrt %30 : vector<8x640xf32>
      %32 = arith.mulf %0, %22 : vector<8x640xf32>
      %33 = arith.mulf %32, %31 : vector<8x640xf32>
      %34 = arith.mulf %0, %25 : vector<8x640xf32>
      %35 = arith.mulf %34, %31 : vector<8x640xf32>
      scf.yield %33, %35, %14, %19 : vector<8x640xf32>, vector<8x640xf32>, vector<8x640xf32>, vector<8x640xf32>
    }
    %c0_1 = arith.constant 0 : index
    %c0_2 = arith.constant 0 : index
    %4 = vector.load %arg5[%c0_1, %c0_2] : memref<640x256xf32, #tpu.memory_space<vmem>>, vector<640x256xf32>
    %cst_3 = arith.constant dense<0.000000e+00> : vector<8x256xf32>
    %5 = tpu.matmul %3#0, %4, %cst_3 {dimension_numbers = #tpu.dot_dimension_numbers<[1], [0], [0], [1], [0, 0, 1, 1], [], []>} : vector<8x640xf32>, vector<640x256xf32>, vector<8x256xf32> -> vector<8x256xf32>
    %c0_4 = arith.constant 0 : index
    %c0_5 = arith.constant 0 : index
    %6 = vector.load %arg6[%c0_4, %c0_5] : memref<640x256xf32, #tpu.memory_space<vmem>>, vector<640x256xf32>
    %cst_6 = arith.constant dense<0.000000e+00> : vector<8x256xf32>
    %7 = tpu.matmul %3#1, %6, %cst_6 {dimension_numbers = #tpu.dot_dimension_numbers<[1], [0], [0], [1], [0, 0, 1, 1], [], []>} : vector<8x640xf32>, vector<640x256xf32>, vector<8x256xf32> -> vector<8x256xf32>
    %8 = arith.addf %5, %7 : vector<8x256xf32>
    %c0_7 = arith.constant 0 : index
    %c0_8 = arith.constant 0 : index
    %9 = vector.load %arg7[%c0_7, %c0_8] : memref<8x256xf32, #tpu.memory_space<vmem>>, vector<8x256xf32>
    tpu.vector_store %arg7[%c0_7, %c0_8], %8 {strides = array<i32>} : memref<8x256xf32, #tpu.memory_space<vmem>>, vector<8x256xf32>,
    return
  }
}

</mosaic_0001>

<bundles_post_ra>
// kernel: forward.2
= control target key start
LH: loop header
LB: loop body
LE: loop exit
PB: predicated region body
PF: predicated region fallthrough
CT: control target
= control target key end

     0   :  { %8 = vsyncpa [#allocation3], 0  ;;  %s553_s0 = inlined_call_operand.vmem [shape: f32[32,128], index: 0, kind: input, shape index: {}]   ;;  %s554_s1 = inlined_call_operand.hbm [shape: f32[33,33], index: 1, kind: input, shape index: {}]   ;;  %s555_s2 = inlined_call_operand.hbm [shape: f32[33,32], index: 2, kind: input, shape index: {}]   ;;  %s556_s3 = inlined_call_operand.vmem [shape: f32[33,128], index: 3, kind: output, shape index: {}]  }
   0x1   :  { %s16_s14 = sshll.u32 %s554_s1, 4  ;;  %s17_s14 = int_to_ptr.hbm [resolvable:$true] %s16_s14 }
   0x2   :  { %9 = vsyncpa [#allocation5], 0  ;;  %s428_s15 = smov [#allocation2]   ;;  %s29_s19 = sshll.u32 %s555_s2, 4  ;;  %s30_s19 = int_to_ptr.hbm [resolvable:$true] %s29_s19 }
   0x3   :  { %s18_s16 = sshll.u32 %s428_s15, 4  ;;  %s429_s20 = smov 128   ;;  %s19_s16 = int_to_ptr.vmem [resolvable:$true] %s18_s16 }
   0x4   :  { %s430_s21 = smov 8   ;;  %s431_s22 = smov [#allocation4]  }
   0x5   :  { %24 = dma.hbm_to_vmem [thread:$0]  %s17_s14, 640, %s19_s16, [#allocation3], %s429_s20, %s429_s20, %s430_s21  }
   0x6   :  { %s31_s23 = sshll.u32 %s431_s22, 4  ;;  %s32_s23 = int_to_ptr.vmem [resolvable:$true] %s31_s23 }
   0x7   :  { %37 = dma.hbm_to_vmem [thread:$0]  %s30_s19, 640, %s32_s23, [#allocation5], %s429_s20, %s429_s20, %s430_s21  }
   0x8   :  { %400 = dma.done.wait [#allocation3], 640  }
   0x9   :  { %401 = vsyncadd [#allocation3], 4294966656 }
   0xa   :  { %402 = dma.done.wait [#allocation5], 640  }
   0xb   :  { %403 = vsyncadd [#allocation5], 4294966656  ;;  %v458_v0 = vld [vmem:[#allocation2] sm:$0xff]  ;;  %v460_v1 = vld [vmem:[#allocation2 + $0x8] sm:$0xff]  ;;  %vm63_vm0 = vcmask 261120   ;;  %v495_v27 = vmov 0.0  }
   0xc   :  { %v462_v2 = vld [vmem:[#allocation2 + $0x10] sm:$0xff]  ;;  %v464_v3 = vld [vmem:[#allocation2 + $0x18] sm:$0xff]  ;;  %v466_v4 = vld [vmem:[#allocation2 + $0x20] sm:$0x1]  ;;  %v497_v28 = vmov 0.0   ;;  %v499_v29 = vmov 0.0  }
   0xd   :  { %v49_v5 = vld [vmem:[%s553_s0 + $0x18] sm:$0xff]  ;;  %v48_v7 = vld [vmem:[%s553_s0 + $0x10] sm:$0xff]  ;;  %v47_v8 = vld [vmem:[%s553_s0 + $0x8] sm:$0xff]  ;;  %v501_v30 = vmov 0.0   ;;  %v503_v31 = vmov 0.0  }
   0xe   :  { %v56_v6 = vmul.f32 1.442695, %v49_v5  ;;  %v46_v9 = vld [vmem:[%s553_s0] sm:$0xff]  ;;  %v54_v10 = vmul.f32 1.442695, %v48_v7  ;;  %v60_v18 = vld [vmem:[#allocation4 + $0x10] sm:$0xff] }
   0xf   :  { %v52_v11 = vmul.f32 1.442695, %v47_v8  ;;  %v50_v12 = vmul.f32 1.442695, %v46_v9  ;;  %v61_v17 = vld [vmem:[#allocation4 + $0x18] sm:$0xff]  ;;  %v58_v19 = vld [vmem:[#allocation4] sm:$0xff] }
  0x10   :  { %320 = vpow2.f32 %v56_v6  ;;  %v59_v20 = vld [vmem:[#allocation4 + $0x8] sm:$0xff]  ;;  %v62_v21 = vld [vmem:[#allocation4 + $0x20] sm:$0x1]  ;;  %s505_s0 = smov 0  }
  0x11   :  { %322 = vpow2.f32 %v54_v10 }
  0x12   :  { %324 = vpow2.f32 %v52_v11 }
  0x13   :  { %326 = vpow2.f32 %v50_v12 }
  0x16   :  { %v321_v13 = vpop.eup %320 }
  0x17   :  { %v323_v14 = vpop.eup %322  ;;  %243 = vmatpush.msra.mxu3 %v321_v13  ;;  %242 = vmatpush.msra.mxu2 %v321_v13 }
  0x18   :  { %v325_v15 = vpop.eup %324  ;;  %91 = vmatpush.msra.mxu0 %v321_v13  ;;  %241 = vmatpush.msra.mxu1 %v321_v13 }
  0x19   :  { %246 = vmatpush.msra.mxu3 %v323_v14  ;;  %245 = vmatpush.msra.mxu2 %v323_v14  ;;  %v327_v16 = vpop.eup %326 }
  0x1a   :  { %92 = vmatpush.msra.mxu0 %v323_v14  ;;  %244 = vmatpush.msra.mxu1 %v323_v14 }
  0x1b   :  { %249 = vmatpush.msra.mxu3 %v325_v15  ;;  %248 = vmatpush.msra.mxu2 %v325_v15 }
  0x1c   :  { %93 = vmatpush.msra.mxu0 %v325_v15  ;;  %247 = vmatpush.msra.mxu1 %v325_v15 }
  0x1d   :  { %252 = vmatpush.msra.mxu3 %v327_v16  ;;  %251 = vmatpush.msra.mxu2 %v327_v16 }
  0x1e   :  { %233 = vmatmul.msk.f32.vlgmr.msra.gmra.mxu3 %vm63_vm0, %v61_v17  ;;  %232 = vmatmul.msk.f32.vlgmr.msra.gmra.mxu2 %vm63_vm0, %v60_v18 }
  0x1f   :  { %94 = vmatpush.msra.mxu0 %v327_v16  ;;  %250 = vmatpush.msra.mxu1 %v327_v16 }
  0x20   :  { %230 = vmatmul.msk.f32.vlgmr.msra.gmra.mxu0 %vm63_vm0, %v58_v19  ;;  %231 = vmatmul.msk.f32.vlgmr.msra.gmra.mxu1 %vm63_vm0, %v59_v20 }
  0x26   :  { %234 = vmatmul.msk.f32.gmra.mxu3 %vm63_vm0, %v62_v21 }
  0x9d   :  { %v485_v22 = vpop.f32.mrf.mxu0  ;;  %v487_v23 = vpop.f32.mrf.mxu1 }
  0xa1   :  { %v489_v24 = vpop.f32.mrf.mxu3  ;;  %v491_v25 = vpop.f32.mrf.mxu2 }
  0xa9   :  { %v493_v26 = vpop.f32.mrf.mxu3 }
  0xaa LB: > { %vm143_vm1 = vcmask 1040384   ;;  %vm127_vm2 = vcmask 269312   ;;  %s121_s0 = sadd.s32 1, %s426_s0   ;;  %s426_s0 = sphi %s505_s0, %s121_s0   ;;  %v422_v31 = vphi %v503_v31, %v561_v31   ;;  %v418_v30 = vphi %v501_v30, %v560_v30   ;;  %v414_v29 = vphi %v499_v29, %v559_v29   ;;  %v410_v28 = vphi %v497_v28, %v558_v28   ;;  %v406_v27 = vphi %v495_v27, %v557_v27  }
  0xab   : > { %255 = vmatpush.msk.msra.mxu3 %vm143_vm1, %v406_v27  ;;  %254 = vmatpush.msk.msra.mxu2 %vm143_vm1, %v406_v27  ;;  %p118_p0 = scmp.ge.s32.totalorder %s121_s0, 300  }
  0xac   : > { %235 = vmatpush.msk.msra.mxu0 %vm143_vm1, %v406_v27  ;;  %253 = vmatpush.msk.msra.mxu1 %vm143_vm1, %v406_v27 }
  0xad   : > { %258 = vmatpush.msra.mxu3 %v410_v28  ;;  %257 = vmatpush.msra.mxu2 %v410_v28 }
  0xae   : > { %159 = vmatpush.msra.mxu0 %v410_v28  ;;  %256 = vmatpush.msra.mxu1 %v410_v28 }
  0xaf   : > { %261 = vmatpush.msra.mxu3 %v414_v29  ;;  %260 = vmatpush.msra.mxu2 %v414_v29 }
  0xb0   : > { %160 = vmatpush.msra.mxu0 %v414_v29  ;;  %259 = vmatpush.msra.mxu1 %v414_v29 }
  0xb1   : > { %264 = vmatpush.msra.mxu3 %v418_v30  ;;  %263 = vmatpush.msra.mxu2 %v418_v30 }
  0xb2   : > { %161 = vmatpush.msra.mxu0 %v418_v30  ;;  %262 = vmatpush.msra.mxu1 %v418_v30 }
  0xb3   : > { %267 = vmatpush.msra.mxu3 %v422_v31  ;;  %266 = vmatpush.msra.mxu2 %v422_v31 }
  0xb4   : > { %239 = vmatmul.msk.f32.vlgmr.msra.gmra.mxu3 %vm127_vm2, %v464_v3  ;;  %238 = vmatmul.msk.f32.vlgmr.msra.gmra.mxu2 %vm127_vm2, %v462_v2 }
  0xb5   : > { %162 = vmatpush.msra.mxu0 %v422_v31  ;;  %265 = vmatpush.msra.mxu1 %v422_v31 }
  0xb6   : > { %236 = vmatmul.msk.f32.vlgmr.msra.gmra.mxu0 %vm127_vm2, %v458_v0  ;;  %237 = vmatmul.msk.f32.vlgmr.msra.gmra.mxu1 %vm127_vm2, %v460_v1 }
  0xbc   : > { %240 = vmatmul.msk.f32.gmra.mxu3 %vm127_vm2, %v466_v4 }
 0x133   : > { %v164_v32 = vpop.f32.mrf.mxu0  ;;  %v167_v33 = vpop.f32.mrf.mxu1 }
 0x134   : > { %v179_v34 = vsub.f32 %v164_v32, %v485_v22  ;;  %v180_v35 = vsub.f32 %v167_v33, %v487_v23 }
 0x136   : > { %v184_v36 = vmul.f32 0.44941777, %v179_v34  ;;  %v185_v37 = vmul.f32 0.44941777, %v180_v35 }
 0x137   : > { %v173_v38 = vpop.f32.mrf.mxu3  ;;  %v170_v39 = vpop.f32.mrf.mxu2 }
 0x138   : > { %v182_v40 = vsub.f32 %v173_v38, %v489_v24  ;;  %v189_v41 = vsub.f32 %v422_v31, %v184_v36  ;;  %v190_v42 = vsub.f32 %v418_v30, %v185_v37  ;;  %v181_v43 = vsub.f32 %v170_v39, %v491_v25 }
 0x13a   : > { %v187_v44 = vmul.f32 0.44941777, %v182_v40  ;;  %v194_v45 = vmax.f32 %v189_v41, 0.0   ;;  %v195_v46 = vmax.f32 %v190_v42, 0.0   ;;  %v186_v47 = vmul.f32 0.44941777, %v181_v43 }
 0x13c   : > { %v192_v48 = vsub.f32 %v410_v28, %v187_v44  ;;  %v191_v49 = vsub.f32 %v414_v29, %v186_v47  ;;  %v560_v30 = vmov %v195_v46  ;;  %v561_v31 = vmov %v194_v45  ;;  %199 = vst [vmem:[%s556_s3] sm:$0xff] (%p118_p0), %v194_v45 }
 0x13d   :  { %200 = vst [vmem:[%s556_s3 + $0x8] sm:$0xff] (%p118_p0), %v195_v46 }
 0x13e   : > { %v197_v50 = vmax.f32 %v192_v48, 0.0   ;;  %v196_v51 = vmax.f32 %v191_v49, 0.0  }
 0x13f   : > { %v176_v52 = vpop.f32.mrf.mxu3 }
 0x140   : > { %v183_v53 = vsub.f32 %v176_v52, %v493_v26  ;;  %v558_v28 = vmov %v197_v50  ;;  %v559_v29 = vmov %v196_v51  ;;  %201 = vst [vmem:[%s556_s3 + $0x10] sm:$0xff] (%p118_p0), %v196_v51 }
 0x141   :  { %202 = vst [vmem:[%s556_s3 + $0x18] sm:$0xff] (%p118_p0), %v197_v50 }
 0x142   : > { %v188_v54 = vmul.f32 0.44941777, %v183_v53 }
 0x144   : > { %v193_v55 = vsub.f32 %v406_v27, %v188_v54  ;;  %120 = sbr.rel (!%p118_p0) target bundleno = 170 (0xaa), region = 47 }
 0x146   : > { %v198_v56 = vmax.f32 %v193_v55, 0.0  }
 0x148   : > { %v557_v27 = vmov %v198_v56  ;;  %203 = vst [vmem:[%s556_s3 + $0x20] sm:$0x1] (%p118_p0), %v198_v56 }
 0x149   :  { %208 = vsyncpa [#allocation3], 1 }
 0x14a   :  { %209 = vsyncpa [#allocation5], 1 }

// kernel: forward.3
= control target key start
LH: loop header
LB: loop body
LE: loop exit
PB: predicated region body
PF: predicated region fallthrough
CT: control target
= control target key end

     0   :  { %12 = vsyncpa [#allocation3], 0  ;;  %s5733_s0 = inlined_call_operand.vmem [shape: f32[8,640], index: 0, kind: input, shape index: {}]   ;;  %s5734_s1 = inlined_call_operand.hbm [shape: f32[640,640], index: 1, kind: input, shape index: {}]   ;;  %s5735_s2 = inlined_call_operand.hbm [shape: f32[640,640], index: 2, kind: input, shape index: {}]   ;;  %s5736_s3 = inlined_call_operand.hbm [shape: f32[640,640], index: 3, kind: input, shape index: {}]   ;;  %s5737_s4 = inlined_call_operand.hbm [shape: f32[640,640], index: 4, kind: input, shape index: {}]   ;;  %s5738_s5 = inlined_call_operand.hbm [shape: f32[640,256], index: 5, kind: input, shape index: {}]   ;;  %s5739_s6 = inlined_call_operand.hbm [shape: f32[640,256], index: 6, kind: input, shape index: {}]   ;;  %s5740_s7 = inlined_call_operand.vmem [shape: f32[8,256], index: 7, kind: output, shape index: {}]  }
   0x1   :  { %13 = vsyncpa [#allocation5], 0 }
   0x2   :  { %14 = vsyncpa [#allocation8], 0 }
   0x3   :  { %15 = vsyncpa [#allocation11], 0  ;;  %s35_s26 = sshll.u32 %s5735_s2, 4  ;;  %s5164_s27 = smov [#allocation4]   ;;  %s36_s26 = int_to_ptr.hbm [resolvable:$true] %s35_s26 }
   0x4   :  { %s37_s28 = sshll.u32 %s5164_s27, 4  ;;  %s61_s8 = sshll.u32 %s5737_s4, 4  ;;  %s38_s28 = int_to_ptr.vmem [resolvable:$true] %s37_s28  ;;  %s62_s8 = int_to_ptr.hbm [resolvable:$true] %s61_s8 }
   0x5   :  { %s5165_s9 = smov 640   ;;  %s5166_s10 = smov 40  }
   0x6   :  { %43 = dma.hbm_to_vmem [thread:$0]  %s36_s26, 51200, %s38_s28, [#allocation5], %s5165_s9, %s5165_s9, %s5166_s10  }
   0x7   :  { %s5167_s11 = smov [#allocation7]   ;;  %s22_s15 = sshll.u32 %s5734_s1, 4  ;;  %s23_s15 = int_to_ptr.hbm [resolvable:$true] %s22_s15 }
   0x8   :  { %s63_s12 = sshll.u32 %s5167_s11, 4  ;;  %s48_s17 = sshll.u32 %s5736_s3, 4  ;;  %s64_s12 = int_to_ptr.vmem [resolvable:$true] %s63_s12  ;;  %s49_s17 = int_to_ptr.hbm [resolvable:$true] %s48_s17 }
   0x9   :  { %69 = dma.hbm_to_vmem [thread:$0]  %s62_s8, 51200, %s64_s12, [#allocation8], %s5165_s9, %s5165_s9, %s5166_s10  }
   0xa   :  { %s5168_s18 = smov [#allocation2]   ;;  %s5169_s4 = smov [#allocation6]  }
   0xb   :  { %s24_s19 = sshll.u32 %s5168_s18, 4  ;;  %s50_s20 = sshll.u32 %s5169_s4, 4  ;;  %s25_s19 = int_to_ptr.vmem [resolvable:$true] %s24_s19  ;;  %s51_s20 = int_to_ptr.vmem [resolvable:$true] %s50_s20 }
   0xc   :  { %30 = dma.hbm_to_vmem [thread:$0]  %s23_s15, 51200, %s25_s19, [#allocation3], %s5165_s9, %s5165_s9, %s5166_s10  }
   0xd   :  { %s74_s23 = sshll.u32 %s5738_s5, 4  ;;  %s5170_s1 = smov [#allocation9]   ;;  %s75_s23 = int_to_ptr.hbm [resolvable:$true] %s74_s23 }
   0xe   :  { %56 = dma.hbm_to_vmem [thread:$0]  %s49_s17, 51200, %s51_s20, [#allocation5], %s5165_s9, %s5165_s9, %s5166_s10  }
   0xf   :  { %s76_s24 = sshll.u32 %s5170_s1, 4  ;;  %s87_s3 = sshll.u32 %s5739_s6, 4  ;;  %s77_s24 = int_to_ptr.vmem [resolvable:$true] %s76_s24  ;;  %s88_s3 = int_to_ptr.hbm [resolvable:$true] %s87_s3 }
  0x10   :  { %s5171_s27 = smov 256   ;;  %s5172_s28 = smov 16  }
  0x11   :  { %82 = dma.hbm_to_vmem [thread:$0]  %s75_s23, 20480, %s77_s24, [#allocation8], %s5171_s27, %s5171_s27, %s5172_s28  }
  0x12   :  { %s5173_s29 = smov [#allocation10]  }
  0x13   :  { %s89_s30 = sshll.u32 %s5173_s29, 4  ;;  %s90_s30 = int_to_ptr.vmem [resolvable:$true] %s89_s30 }
  0x14   :  { %95 = dma.hbm_to_vmem [thread:$0]  %s88_s3, 20480, %s90_s30, [#allocation11], %s5171_s27, %s5171_s27, %s5172_s28  }
  0x15   :  { %5072 = dma.done.wait [#allocation3], 51200  }
  0x16   :  { %5073 = vsyncadd [#allocation3], 4294916096 }
  0x17   :  { %5074 = dma.done.wait [#allocation5], 102400  }
  0x18   :  { %5075 = vsyncadd [#allocation5], 4294864896 }
  0x19   :  { %5076 = dma.done.wait [#allocation8], 71680  }
  0x1a   :  { %5077 = vsyncadd [#allocation8], 4294895616 }
  0x1b   :  { %5078 = dma.done.wait [#allocation11], 20480  }
  0x1c   :  { %5079 = vsyncadd [#allocation11], 4294946816  ;;  %v5235_v0 = vld [vmem:[%s5733_s0] sm:$0xff]   ;;  %v5240_v1 = vld [vmem:[%s5733_s0 + $0x8] sm:$0xff]   ;;  %v5257_v5 = vmov 0.0   ;;  %v5259_v6 = vmov 0.0  }
  0x1d   :  { %v5245_v2 = vld [vmem:[%s5733_s0 + $0x10] sm:$0xff]   ;;  %v5250_v3 = vld [vmem:[%s5733_s0 + $0x18] sm:$0xff]   ;;  %v5255_v4 = vld [vmem:[%s5733_s0 + $0x20] sm:$0xff]   ;;  %v5261_v7 = vmov 0.0   ;;  %v5263_v8 = vmov 0.0   ;;  %v5265_v9 = vmov 0.0   ;;  %v5744_v23 = vmov %v5240_v1 }
  0x1e   :  { %v5267_v10 = vmov 0.0   ;;  %v5269_v11 = vmov 0.0   ;;  %v5271_v12 = vmov 0.0   ;;  %v5273_v13 = vmov 0.0   ;;  %s5302_s0 = smov 0  }
  0x1f   :  { %v5275_v14 = vmov 0.0   ;;  %v5277_v15 = vmov 0.0   ;;  %v5279_v16 = vmov 0.0   ;;  %v5281_v17 = vmov 0.0  }
  0x20   :  { %v5283_v18 = vmov 0.0   ;;  %v5285_v19 = vmov 0.0   ;;  %v5741_v20 = vmov %v5255_v4  ;;  %v5742_v21 = vmov %v5250_v3 }
  0x21   :  { %v5743_v22 = vmov %v5245_v2  ;;  %v5745_v24 = vmov %v5235_v0 }
  0x22 LB: > { %v626_v25 = vld [vmem:[#allocation4 + $0x258] sm:$0xff]  ;;  %v621_v29 = vld [vmem:[#allocation4 + $0x230] sm:$0xff]  ;;  %v616_v33 = vld [vmem:[#allocation4 + $0x208] sm:$0xff]  ;;  %s130_s0 = sadd.s32 1, %s5162_s0   ;;  %s5162_s0 = sphi %s5302_s0, %s130_s0   ;;  %v5158_v24 = vphi %v5745_v24, %v5769_v24   ;;  %v5154_v23 = vphi %v5744_v23, %v5768_v23   ;;  %v5150_v22 = vphi %v5743_v22, %v5767_v22   ;;  %v5146_v21 = vphi %v5742_v21, %v5766_v21   ;;  %v5142_v20 = vphi %v5741_v20, %v5765_v20   ;;  %v5138_v19 = vphi %v5285_v19, %v5764_v19   ;;  %v5134_v18 = vphi %v5283_v18, %v5763_v18   ;;  %v5130_v17 = vphi %v5281_v17, %v5762_v17   ;;  %v5126_v16 = vphi %v5279_v16, %v5761_v16   ;;  %v5122_v15 = vphi %v5277_v15, %v5760_v15   ;;  %v5118_v14 = vphi %v5275_v14, %v5759_v14   ;;  %v5114_v13 = vphi %v5273_v13, %v5758_v13   ;;  %v5110_v12 = vphi %v5271_v12, %v5757_v12   ;;  %v5106_v11 = vphi %v5269_v11, %v5756_v11   ;;  %v5102_v10 = vphi %v5267_v10, %v5755_v10   ;;  %v5098_v9 = vphi %v5265_v9, %v5552_v9   ;;  %v5094_v8 = vphi %v5263_v8, %v5586_v8   ;;  %v5090_v7 = vphi %v5261_v7, %v5603_v7   ;;  %v5086_v6 = vphi %v5259_v6, %v3649_v6   ;;  %v5082_v5 = vphi %v5257_v5, %v3749_v5  }
  0x23   : > { %v706_v26 = vld [vmem:[#allocation4 + $0x4d8] sm:$0xff]  ;;  %951 = vmatpush.msra.mxu0 %v626_v25  ;;  %v701_v30 = vld [vmem:[#allocation4 + $0x4b0] sm:$0xff]  ;;  %v696_v34 = vld [vmem:[#allocation4 + $0x488] sm:$0xff]  ;;  %p5641_p0 = scmp.ge.s32.totalorder %s130_s0, 32  }
  0x24   : > { %v786_v27 = vld [vmem:[#allocation4 + $0x758] sm:$0xff]  ;;  %971 = vmatpush.msra.mxu1 %v706_v26  ;;  %v781_v31 = vld [vmem:[#allocation4 + $0x730] sm:$0xff]  ;;  %v776_v35 = vld [vmem:[#allocation4 + $0x708] sm:$0xff] }
  0x25   : > { %v866_v28 = vld [vmem:[#allocation4 + $0x9d8] sm:$0xff]  ;;  %991 = vmatpush.msra.mxu2 %v786_v27  ;;  %v861_v32 = vld [vmem:[#allocation4 + $0x9b0] sm:$0xff]  ;;  %952 = vmatpush.msra.mxu0 %v621_v29  ;;  %v856_v36 = vld [vmem:[#allocation4 + $0x988] sm:$0xff] }
  0x26   : > { %1011 = vmatpush.msra.mxu3 %v866_v28  ;;  %972 = vmatpush.msra.mxu1 %v701_v30  ;;  %v611_v37 = vld [vmem:[#allocation4 + $0x1e0] sm:$0xff]  ;;  %v606_v41 = vld [vmem:[#allocation4 + $0x1b8] sm:$0xff]  ;;  %v601_v45 = vld [vmem:[#allocation4 + $0x190] sm:$0xff] }
  0x27   : > { %992 = vmatpush.msra.mxu2 %v781_v31  ;;  %v691_v38 = vld [vmem:[#allocation4 + $0x460] sm:$0xff]  ;;  %953 = vmatpush.msra.mxu0 %v616_v33  ;;  %v686_v42 = vld [vmem:[#allocation4 + $0x438] sm:$0xff]  ;;  %v681_v46 = vld [vmem:[#allocation4 + $0x410] sm:$0xff] }
  0x28   : > { %1012 = vmatpush.msra.mxu3 %v861_v32  ;;  %973 = vmatpush.msra.mxu1 %v696_v34  ;;  %v771_v39 = vld [vmem:[#allocation4 + $0x6e0] sm:$0xff]  ;;  %v766_v43 = vld [vmem:[#allocation4 + $0x6b8] sm:$0xff]  ;;  %v761_v47 = vld [vmem:[#allocation4 + $0x690] sm:$0xff] }
  0x29   : > { %v851_v40 = vld [vmem:[#allocation4 + $0x960] sm:$0xff]  ;;  %993 = vmatpush.msra.mxu2 %v776_v35  ;;  %954 = vmatpush.msra.mxu0 %v611_v37  ;;  %v846_v44 = vld [vmem:[#allocation4 + $0x938] sm:$0xff]  ;;  %v841_v48 = vld [vmem:[#allocation4 + $0x910] sm:$0xff] }
  0x2a   : > { %1013 = vmatpush.msra.mxu3 %v856_v36  ;;  %974 = vmatpush.msra.mxu1 %v691_v38  ;;  %v596_v49 = vld [vmem:[#allocation4 + $0x168] sm:$0xff]  ;;  %v591_v53 = vld [vmem:[#allocation4 + $0x140] sm:$0xff]  ;;  %v586_v57 = vld [vmem:[#allocation4 + $0x118] sm:$0xff] }
  0x2b   : > { %994 = vmatpush.msra.mxu2 %v771_v39  ;;  %955 = vmatpush.msra.mxu0 %v606_v41  ;;  %v676_v50 = vld [vmem:[#allocation4 + $0x3e8] sm:$0xff]  ;;  %v671_v54 = vld [vmem:[#allocation4 + $0x3c0] sm:$0xff]  ;;  %v666_v58 = vld [vmem:[#allocation4 + $0x398] sm:$0xff] }
  0x2c   : > { %1014 = vmatpush.msra.mxu3 %v851_v40  ;;  %975 = vmatpush.msra.mxu1 %v686_v42  ;;  %v756_v51 = vld [vmem:[#allocation4 + $0x668] sm:$0xff]  ;;  %v751_v55 = vld [vmem:[#allocation4 + $0x640] sm:$0xff]  ;;  %v746_v59 = vld [vmem:[#allocation4 + $0x618] sm:$0xff] }
  0x2d   : > { %995 = vmatpush.msra.mxu2 %v766_v43  ;;  %956 = vmatpush.msra.mxu0 %v601_v45  ;;  %v836_v52 = vld [vmem:[#allocation4 + $0x8e8] sm:$0xff]  ;;  %v831_v56 = vld [vmem:[#allocation4 + $0x8c0] sm:$0xff]  ;;  %v826_v60 = vld [vmem:[#allocation4 + $0x898] sm:$0xff] }
  0x2e   : > { %1015 = vmatpush.msra.mxu3 %v846_v44  ;;  %976 = vmatpush.msra.mxu1 %v681_v46  ;;  %v581_v61 = vld [vmem:[#allocation4 + $0xf0] sm:$0xff]  ;;  %v576_v26 = vld [vmem:[#allocation4 + $0xc8] sm:$0xff]  ;;  %v571_v30 = vld [vmem:[#allocation4 + $0xa0] sm:$0xff] }
  0x2f   : > { %996 = vmatpush.msra.mxu2 %v761_v47  ;;  %957 = vmatpush.msra.mxu0 %v596_v49  ;;  %v661_v62 = vld [vmem:[#allocation4 + $0x370] sm:$0xff]  ;;  %v656_v27 = vld [vmem:[#allocation4 + $0x348] sm:$0xff]  ;;  %v651_v31 = vld [vmem:[#allocation4 + $0x320] sm:$0xff] }
  0x30   : > { %1016 = vmatpush.msra.mxu3 %v841_v48  ;;  %977 = vmatpush.msra.mxu1 %v676_v50  ;;  %v741_v63 = vld [vmem:[#allocation4 + $0x5f0] sm:$0xff]  ;;  %v736_v28 = vld [vmem:[#allocation4 + $0x5c8] sm:$0xff]  ;;  %v731_v32 = vld [vmem:[#allocation4 + $0x5a0] sm:$0xff] }
  0x31   : > { %997 = vmatpush.msra.mxu2 %v756_v51  ;;  %958 = vmatpush.msra.mxu0 %v591_v53  ;;  %v821_v25 = vld [vmem:[#allocation4 + $0x870] sm:$0xff]  ;;  %v816_v29 = vld [vmem:[#allocation4 + $0x848] sm:$0xff]  ;;  %v811_v33 = vld [vmem:[#allocation4 + $0x820] sm:$0xff] }
  0x32   : > { %1017 = vmatpush.msra.mxu3 %v836_v52  ;;  %978 = vmatpush.msra.mxu1 %v671_v54  ;;  %v566_v34 = vld [vmem:[#allocation4 + $0x78] sm:$0xff]  ;;  %v561_v38 = vld [vmem:[#allocation4 + $0x50] sm:$0xff]  ;;  %v556_v42 = vld [vmem:[#allocation4 + $0x28] sm:$0xff] }
  0x33   : > { %998 = vmatpush.msra.mxu2 %v751_v55  ;;  %959 = vmatpush.msra.mxu0 %v586_v57  ;;  %v646_v35 = vld [vmem:[#allocation4 + $0x2f8] sm:$0xff]  ;;  %v641_v39 = vld [vmem:[#allocation4 + $0x2d0] sm:$0xff]  ;;  %v636_v43 = vld [vmem:[#allocation4 + $0x2a8] sm:$0xff] }
  0x34   : > { %1018 = vmatpush.msra.mxu3 %v831_v56  ;;  %979 = vmatpush.msra.mxu1 %v666_v58  ;;  %v726_v36 = vld [vmem:[#allocation4 + $0x578] sm:$0xff]  ;;  %v721_v40 = vld [vmem:[#allocation4 + $0x550] sm:$0xff]  ;;  %v716_v44 = vld [vmem:[#allocation4 + $0x528] sm:$0xff] }
  0x35   : > { %999 = vmatpush.msra.mxu2 %v746_v59  ;;  %960 = vmatpush.msra.mxu0 %v581_v61  ;;  %v806_v37 = vld [vmem:[#allocation4 + $0x7f8] sm:$0xff]  ;;  %v801_v41 = vld [vmem:[#allocation4 + $0x7d0] sm:$0xff]  ;;  %v796_v45 = vld [vmem:[#allocation4 + $0x7a8] sm:$0xff] }
  0x36   : > { %1019 = vmatpush.msra.mxu3 %v826_v60  ;;  %980 = vmatpush.msra.mxu1 %v661_v62  ;;  %v551_v46 = vld [vmem:[#allocation4] sm:$0xff]  ;;  %v946_v50 = vld [vmem:[#allocation4 + $0xc58] sm:$0xff]  ;;  %v941_v54 = vld [vmem:[#allocation4 + $0xc30] sm:$0xff] }
  0x37   : > { %1000 = vmatpush.msra.mxu2 %v741_v63  ;;  %961 = vmatpush.msra.mxu0 %v576_v26  ;;  %v631_v47 = vld [vmem:[#allocation4 + $0x280] sm:$0xff]  ;;  %v622_v55 = vld [vmem:[#allocation4 + $0x238] sm:$0xff]  ;;  %v936_v58 = vld [vmem:[#allocation4 + $0xc08] sm:$0xff] }
  0x38   : > { %1020 = vmatpush.msra.mxu3 %v821_v25  ;;  %981 = vmatpush.msra.mxu1 %v656_v27  ;;  %v711_v48 = vld [vmem:[#allocation4 + $0x500] sm:$0xff]  ;;  %v702_v56 = vld [vmem:[#allocation4 + $0x4b8] sm:$0xff]  ;;  %v617_v59 = vld [vmem:[#allocation4 + $0x210] sm:$0xff] }
  0x39   : > { %1001 = vmatpush.msra.mxu2 %v736_v28  ;;  %962 = vmatpush.msra.mxu0 %v571_v30  ;;  %v791_v49 = vld [vmem:[#allocation4 + $0x780] sm:$0xff]  ;;  %v782_v57 = vld [vmem:[#allocation4 + $0x738] sm:$0xff]  ;;  %v697_v60 = vld [vmem:[#allocation4 + $0x490] sm:$0xff] }
  0x3a   : > { %1021 = vmatpush.msra.mxu3 %v816_v29  ;;  %982 = vmatpush.msra.mxu1 %v651_v31  ;;  %v627_v51 = vld [vmem:[#allocation4 + $0x260] sm:$0xff]  ;;  %v777_v61 = vld [vmem:[#allocation4 + $0x710] sm:$0xff]  ;;  %v612_v63 = vld [vmem:[#allocation4 + $0x1e8] sm:$0xff] }
  0x3b   : > { %1002 = vmatpush.msra.mxu2 %v731_v32  ;;  %963 = vmatpush.msra.mxu0 %v566_v34  ;;  %v707_v52 = vld [vmem:[#allocation4 + $0x4e0] sm:$0xff]  ;;  %v692_v25 = vld [vmem:[#allocation4 + $0x468] sm:$0xff]  ;;  %v926_v27 = vld [vmem:[#allocation4 + $0xbb8] sm:$0xff] }
  0x3c   : > { %1022 = vmatpush.msra.mxu3 %v811_v33  ;;  %983 = vmatpush.msra.mxu1 %v646_v35  ;;  %v787_v53 = vld [vmem:[#allocation4 + $0x760] sm:$0xff]  ;;  %v772_v26 = vld [vmem:[#allocation4 + $0x6e8] sm:$0xff]  ;;  %v921_v31 = vld [vmem:[#allocation4 + $0xb90] sm:$0xff] }
  0x3d   : > { %1003 = vmatpush.msra.mxu2 %v726_v36  ;;  %964 = vmatpush.msra.mxu0 %v561_v38  ;;  %v931_v62 = vld [vmem:[#allocation4 + $0xbe0] sm:$0xff]  ;;  %v602_v32 = vld [vmem:[#allocation4 + $0x198] sm:$0xff]  ;;  %v916_v35 = vld [vmem:[#allocation4 + $0xb68] sm:$0xff] }
  0x3e   : > { %1023 = vmatpush.msra.mxu3 %v806_v37  ;;  %984 = vmatpush.msra.mxu1 %v641_v39  ;;  %v607_v28 = vld [vmem:[#allocation4 + $0x1c0] sm:$0xff]  ;;  %v682_v33 = vld [vmem:[#allocation4 + $0x418] sm:$0xff]  ;;  %v597_v36 = vld [vmem:[#allocation4 + $0x170] sm:$0xff] }
  0x3f   : > { %1004 = vmatpush.msra.mxu2 %v721_v40  ;;  %965 = vmatpush.msra.mxu0 %v556_v42  ;;  %v687_v29 = vld [vmem:[#allocation4 + $0x440] sm:$0xff]  ;;  %v762_v34 = vld [vmem:[#allocation4 + $0x698] sm:$0xff]  ;;  %v677_v37 = vld [vmem:[#allocation4 + $0x3f0] sm:$0xff] }
  0x40   : > { %1024 = vmatpush.msra.mxu3 %v801_v41  ;;  %985 = vmatpush.msra.mxu1 %v636_v43  ;;  %v767_v30 = vld [vmem:[#allocation4 + $0x6c0] sm:$0xff]  ;;  %v757_v38 = vld [vmem:[#allocation4 + $0x670] sm:$0xff]  ;;  %v592_v40 = vld [vmem:[#allocation4 + $0x148] sm:$0xff] }
  0x41   : > { %1005 = vmatpush.msra.mxu2 %v716_v44  ;;  %966 = vmatpush.msra.mxu0 %v551_v46  ;;  %v911_v39 = vld [vmem:[#allocation4 + $0xb40] sm:$0xff]  ;;  %v672_v41 = vld [vmem:[#allocation4 + $0x3c8] sm:$0xff]  ;;  %v906_v43 = vld [vmem:[#allocation4 + $0xb18] sm:$0xff] }
  0x42   : > { %1025 = vmatpush.msra.mxu3 %v796_v45  ;;  %986 = vmatpush.msra.mxu1 %v631_v47  ;;  %v752_v42 = vld [vmem:[#allocation4 + $0x648] sm:$0xff]  ;;  %v587_v44 = vld [vmem:[#allocation4 + $0x120] sm:$0xff]  ;;  %v901_v47 = vld [vmem:[#allocation4 + $0xaf0] sm:$0xff] }
  0x43   : > { %1006 = vmatpush.msra.mxu2 %v711_v48  ;;  %1031 = vmatpush.msrb.mxu0 %v946_v50  ;;  %v667_v45 = vld [vmem:[#allocation4 + $0x3a0] sm:$0xff]  ;;  %v582_v48 = vld [vmem:[#allocation4 + $0xf8] sm:$0xff] }
  0x44   : > { %1026 = vmatpush.msra.mxu3 %v791_v49  ;;  %1051 = vmatpush.msrb.mxu1 %v627_v51  ;;  %v747_v46 = vld [vmem:[#allocation4 + $0x620] sm:$0xff]  ;;  %v662_v49 = vld [vmem:[#allocation4 + $0x378] sm:$0xff]  ;;  %v896_v51 = vld [vmem:[#allocation4 + $0xac8] sm:$0xff] }
  0x45   : > { %1071 = vmatpush.msrb.mxu2 %v707_v52  ;;  %1032 = vmatpush.msrb.mxu0 %v941_v54  ;;  %v742_v50 = vld [vmem:[#allocation4 + $0x5f8] sm:$0xff]  ;;  %v577_v52 = vld [vmem:[#allocation4 + $0xd0] sm:$0xff] }
  0x46   : > { %1091 = vmatpush.msrb.mxu3 %v787_v53  ;;  %1052 = vmatpush.msrb.mxu1 %v622_v55  ;;  %v657_v53 = vld [vmem:[#allocation4 + $0x350] sm:$0xff]  ;;  %v891_v55 = vld [vmem:[#allocation4 + $0xaa0] sm:$0xff] }
  0x47   : > { %1072 = vmatpush.msrb.mxu2 %v702_v56  ;;  %1033 = vmatpush.msrb.mxu0 %v936_v58  ;;  %v737_v54 = vld [vmem:[#allocation4 + $0x5d0] sm:$0xff]  ;;  %v572_v56 = vld [vmem:[#allocation4 + $0xa8] sm:$0xff] }
  0x48   : > { %1092 = vmatpush.msrb.mxu3 %v782_v57  ;;  %1053 = vmatpush.msrb.mxu1 %v617_v59  ;;  %v652_v57 = vld [vmem:[#allocation4 + $0x328] sm:$0xff]  ;;  %v886_v59 = vld [vmem:[#allocation4 + $0xa78] sm:$0xff] }
  0x49   : > { %1073 = vmatpush.msrb.mxu2 %v697_v60  ;;  %1034 = vmatpush.msrb.mxu0 %v931_v62  ;;  %v732_v58 = vld [vmem:[#allocation4 + $0x5a8] sm:$0xff]  ;;  %v567_v60 = vld [vmem:[#allocation4 + $0x80] sm:$0xff] }
  0x4a   : > { %1093 = vmatpush.msrb.mxu3 %v777_v61  ;;  %1054 = vmatpush.msrb.mxu1 %v612_v63  ;;  %v647_v61 = vld [vmem:[#allocation4 + $0x300] sm:$0xff]  ;;  %v881_v63 = vld [vmem:[#allocation4 + $0xa50] sm:$0xff] }
  0x4b   : > { %1074 = vmatpush.msrb.mxu2 %v692_v25  ;;  %1035 = vmatpush.msrb.mxu0 %v926_v27  ;;  %v727_v62 = vld [vmem:[#allocation4 + $0x580] sm:$0xff]  ;;  %v562_v25 = vld [vmem:[#allocation4 + $0x58] sm:$0xff] }
  0x4c   : > { %1094 = vmatpush.msrb.mxu3 %v772_v26  ;;  %1055 = vmatpush.msrb.mxu1 %v607_v28  ;;  %v642_v26 = vld [vmem:[#allocation4 + $0x2d8] sm:$0xff]  ;;  %v876_v28 = vld [vmem:[#allocation4 + $0xa28] sm:$0xff] }
  0x4d   : > { %1075 = vmatpush.msrb.mxu2 %v687_v29  ;;  %1036 = vmatpush.msrb.mxu0 %v921_v31  ;;  %v722_v27 = vld [vmem:[#allocation4 + $0x558] sm:$0xff]  ;;  %v557_v29 = vld [vmem:[#allocation4 + $0x30] sm:$0xff] }
  0x4e   : > { %1095 = vmatpush.msrb.mxu3 %v767_v30  ;;  %1056 = vmatpush.msrb.mxu1 %v602_v32  ;;  %v637_v30 = vld [vmem:[#allocation4 + $0x2b0] sm:$0xff]  ;;  %v871_v32 = vld [vmem:[#allocation4 + $0xa00] sm:$0xff] }
  0x4f   : > { %1076 = vmatpush.msrb.mxu2 %v682_v33  ;;  %1037 = vmatpush.msrb.mxu0 %v916_v35  ;;  %v717_v31 = vld [vmem:[#allocation4 + $0x530] sm:$0xff]  ;;  %v552_v33 = vld [vmem:[#allocation4 + $0x8] sm:$0xff] }
  0x50   : > { %1096 = vmatpush.msrb.mxu3 %v762_v34  ;;  %1057 = vmatpush.msrb.mxu1 %v597_v36  ;;  %v632_v34 = vld [vmem:[#allocation4 + $0x288] sm:$0xff]  ;;  %v867_v36 = vld [vmem:[#allocation4 + $0x9e0] sm:$0xff] }
  0x51   : > { %1077 = vmatpush.msrb.mxu2 %v677_v37  ;;  %1038 = vmatpush.msrb.mxu0 %v911_v39  ;;  %v712_v35 = vld [vmem:[#allocation4 + $0x508] sm:$0xff]  ;;  %v947_v37 = vld [vmem:[#allocation4 + $0xc60] sm:$0xff] }
  0x52   : > { %1097 = vmatpush.msrb.mxu3 %v757_v38  ;;  %1058 = vmatpush.msrb.mxu1 %v592_v40  ;;  %v628_v38 = vld [vmem:[#allocation4 + $0x268] sm:$0xff]  ;;  %v862_v40 = vld [vmem:[#allocation4 + $0x9b8] sm:$0xff] }
  0x53   : > { %1078 = vmatpush.msrb.mxu2 %v672_v41  ;;  %1039 = vmatpush.msrb.mxu0 %v906_v43  ;;  %v708_v39 = vld [vmem:[#allocation4 + $0x4e8] sm:$0xff]  ;;  %v942_v41 = vld [vmem:[#allocation4 + $0xc38] sm:$0xff]  ;;  %v703_v43 = vld [vmem:[#allocation4 + $0x4c0] sm:$0xff] }
  0x54   : > { %1098 = vmatpush.msrb.mxu3 %v752_v42  ;;  %1059 = vmatpush.msrb.mxu1 %v587_v44  ;;  %v623_v42 = vld [vmem:[#allocation4 + $0x240] sm:$0xff]  ;;  %v857_v44 = vld [vmem:[#allocation4 + $0x990] sm:$0xff] }
  0x55   : > { %1079 = vmatpush.msrb.mxu2 %v667_v45  ;;  %1040 = vmatpush.msrb.mxu0 %v901_v47  ;;  %v937_v45 = vld [vmem:[#allocation4 + $0xc10] sm:$0xff]  ;;  %v698_v47 = vld [vmem:[#allocation4 + $0x498] sm:$0xff] }
  0x56   : > { %1099 = vmatpush.msrb.mxu3 %v747_v46  ;;  %1060 = vmatpush.msrb.mxu1 %v582_v48  ;;  %v618_v46 = vld [vmem:[#allocation4 + $0x218] sm:$0xff]  ;;  %v852_v48 = vld [vmem:[#allocation4 + $0x968] sm:$0xff] }
  0x57   : > { %1080 = vmatpush.msrb.mxu2 %v662_v49  ;;  %1041 = vmatpush.msrb.mxu0 %v896_v51  ;;  %v932_v49 = vld [vmem:[#allocation4 + $0xbe8] sm:$0xff]  ;;  %v693_v51 = vld [vmem:[#allocation4 + $0x470] sm:$0xff] }
  0x58   : > { %1100 = vmatpush.msrb.mxu3 %v742_v50  ;;  %1061 = vmatpush.msrb.mxu1 %v577_v52  ;;  %v613_v50 = vld [vmem:[#allocation4 + $0x1f0] sm:$0xff]  ;;  %v927_v52 = vld [vmem:[#allocation4 + $0xbc0] sm:$0xff] }
  0x59   : > { %1081 = vmatpush.msrb.mxu2 %v657_v53  ;;  %1042 = vmatpush.msrb.mxu0 %v891_v55  ;;  %v847_v53 = vld [vmem:[#allocation4 + $0x940] sm:$0xff]  ;;  %v688_v55 = vld [vmem:[#allocation4 + $0x448] sm:$0xff] }
  0x5a   : > { %1101 = vmatpush.msrb.mxu3 %v737_v54  ;;  %1062 = vmatpush.msrb.mxu1 %v572_v56  ;;  %v608_v54 = vld [vmem:[#allocation4 + $0x1c8] sm:$0xff]  ;;  %v922_v56 = vld [vmem:[#allocation4 + $0xb98] sm:$0xff] }
  0x5b   : > { %1082 = vmatpush.msrb.mxu2 %v652_v57  ;;  %1043 = vmatpush.msrb.mxu0 %v886_v59  ;;  %v842_v57 = vld [vmem:[#allocation4 + $0x918] sm:$0xff]  ;;  %v683_v59 = vld [vmem:[#allocation4 + $0x420] sm:$0xff] }
  0x5c   : > { %1102 = vmatpush.msrb.mxu3 %v732_v58  ;;  %1063 = vmatpush.msrb.mxu1 %v567_v60  ;;  %v603_v58 = vld [vmem:[#allocation4 + $0x1a0] sm:$0xff]  ;;  %v917_v60 = vld [vmem:[#allocation4 + $0xb70] sm:$0xff] }
  0x5d   : > { %1083 = vmatpush.msrb.mxu2 %v647_v61  ;;  %1044 = vmatpush.msrb.mxu0 %v881_v63  ;;  %v837_v61 = vld [vmem:[#allocation4 + $0x8f0] sm:$0xff]  ;;  %v678_v63 = vld [vmem:[#allocation4 + $0x3f8] sm:$0xff] }
  0x5e   : > { %1103 = vmatpush.msrb.mxu3 %v727_v62  ;;  %1064 = vmatpush.msrb.mxu1 %v562_v25  ;;  %v598_v62 = vld [vmem:[#allocation4 + $0x178] sm:$0xff]  ;;  %v912_v25 = vld [vmem:[#allocation4 + $0xb48] sm:$0xff] }
  0x5f   : > { %1084 = vmatpush.msrb.mxu2 %v642_v26  ;;  %1045 = vmatpush.msrb.mxu0 %v876_v28  ;;  %v832_v26 = vld [vmem:[#allocation4 + $0x8c8] sm:$0xff]  ;;  %v673_v28 = vld [vmem:[#allocation4 + $0x3d0] sm:$0xff] }
  0x60   : > { %1104 = vmatpush.msrb.mxu3 %v722_v27  ;;  %1065 = vmatpush.msrb.mxu1 %v557_v29  ;;  %v593_v27 = vld [vmem:[#allocation4 + $0x150] sm:$0xff]  ;;  %v907_v29 = vld [vmem:[#allocation4 + $0xb20] sm:$0xff] }
  0x61   : > { %1085 = vmatpush.msrb.mxu2 %v637_v30  ;;  %1046 = vmatpush.msrb.mxu0 %v871_v32  ;;  %v827_v30 = vld [vmem:[#allocation4 + $0x8a0] sm:$0xff]  ;;  %v668_v32 = vld [vmem:[#allocation4 + $0x3a8] sm:$0xff] }
  0x62   : > { %1105 = vmatpush.msrb.mxu3 %v717_v31  ;;  %1007 = vmatmul.f32.vlgmr.msra.gmra.mxu2 %v5130_v17  ;;  %v588_v31 = vld [vmem:[#allocation4 + $0x128] sm:$0xff] }
  0x63   : > { %1066 = vmatpush.msrb.mxu1 %v552_v33  ;;  %1086 = vmatpush.msrb.mxu2 %v632_v34  ;;  %v902_v33 = vld [vmem:[#allocation4 + $0xaf8] sm:$0xff] }
  0x64   : > { %1106 = vmatpush.msrb.mxu3 %v712_v35  ;;  %967 = vmatmul.f32.vlgmr.msra.gmra.mxu0 %v5138_v19  ;;  %v822_v34 = vld [vmem:[#allocation4 + $0x878] sm:$0xff]  ;;  %v583_v35 = vld [vmem:[#allocation4 + $0x100] sm:$0xff] }
  0x65   : > { %987 = vmatmul.f32.vlgmr.msra.gmra.mxu1 %v5134_v18  ;;  %1027 = vmatmul.f32.vlgmr.msra.gmra.mxu3 %v5126_v16 }
  0x66   : > { %1111 = vmatpush.msra.mxu0 %v867_v36  ;;  %1131 = vmatpush.msra.mxu1 %v947_v37  ;;  %v663_v36 = vld [vmem:[#allocation4 + $0x380] sm:$0xff]  ;;  %v897_v37 = vld [vmem:[#allocation4 + $0xad0] sm:$0xff] }
  0x67   : > { %1151 = vmatpush.msra.mxu2 %v628_v38  ;;  %1171 = vmatpush.msra.mxu3 %v708_v39  ;;  %v817_v38 = vld [vmem:[#allocation4 + $0x850] sm:$0xff]  ;;  %v578_v39 = vld [vmem:[#allocation4 + $0xd8] sm:$0xff] }
  0x68   : > { %1112 = vmatpush.msra.mxu0 %v862_v40  ;;  %1132 = vmatpush.msra.mxu1 %v942_v41  ;;  %v658_v40 = vld [vmem:[#allocation4 + $0x358] sm:$0xff]  ;;  %v892_v41 = vld [vmem:[#allocation4 + $0xaa8] sm:$0xff] }
  0x69   : > { %1152 = vmatpush.msra.mxu2 %v623_v42  ;;  %1172 = vmatpush.msra.mxu3 %v703_v43  ;;  %v812_v42 = vld [vmem:[#allocation4 + $0x828] sm:$0xff]  ;;  %v573_v43 = vld [vmem:[#allocation4 + $0xb0] sm:$0xff] }
  0x6a   : > { %1113 = vmatpush.msra.mxu0 %v857_v44  ;;  %1133 = vmatpush.msra.mxu1 %v937_v45  ;;  %v653_v44 = vld [vmem:[#allocation4 + $0x330] sm:$0xff]  ;;  %v887_v45 = vld [vmem:[#allocation4 + $0xa80] sm:$0xff] }
  0x6b   : > { %1153 = vmatpush.msra.mxu2 %v618_v46  ;;  %1173 = vmatpush.msra.mxu3 %v698_v47  ;;  %v807_v46 = vld [vmem:[#allocation4 + $0x800] sm:$0xff]  ;;  %v568_v47 = vld [vmem:[#allocation4 + $0x88] sm:$0xff] }
  0x6c   : > { %1114 = vmatpush.msra.mxu0 %v852_v48  ;;  %1134 = vmatpush.msra.mxu1 %v932_v49  ;;  %v648_v48 = vld [vmem:[#allocation4 + $0x308] sm:$0xff]  ;;  %v882_v49 = vld [vmem:[#allocation4 + $0xa58] sm:$0xff] }
  0x6d   : > { %1154 = vmatpush.msra.mxu2 %v613_v50  ;;  %1174 = vmatpush.msra.mxu3 %v693_v51  ;;  %v802_v50 = vld [vmem:[#allocation4 + $0x7d8] sm:$0xff]  ;;  %v563_v51 = vld [vmem:[#allocation4 + $0x60] sm:$0xff] }
  0x6e   : > { %1047 = vmatmul.f32.vlgmr.msrb.gmra.mxu0 %v5122_v15  ;;  %1135 = vmatpush.msra.mxu1 %v927_v52  ;;  %v643_v52 = vld [vmem:[#allocation4 + $0x2e0] sm:$0xff] }
  0x6f   : > { %1115 = vmatpush.msra.mxu0 %v847_v53  ;;  %1155 = vmatpush.msra.mxu2 %v608_v54  ;;  %v877_v53 = vld [vmem:[#allocation4 + $0xa30] sm:$0xff] }
  0x70   : > { %1175 = vmatpush.msra.mxu3 %v688_v55  ;;  %1136 = vmatpush.msra.mxu1 %v922_v56  ;;  %v797_v54 = vld [vmem:[#allocation4 + $0x7b0] sm:$0xff]  ;;  %v558_v55 = vld [vmem:[#allocation4 + $0x38] sm:$0xff] }
  0x71   : > { %1116 = vmatpush.msra.mxu0 %v842_v57  ;;  %1156 = vmatpush.msra.mxu2 %v603_v58  ;;  %v638_v56 = vld [vmem:[#allocation4 + $0x2b8] sm:$0xff]  ;;  %v792_v57 = vld [vmem:[#allocation4 + $0x788] sm:$0xff] }
  0x72   : > { %1176 = vmatpush.msra.mxu3 %v683_v59  ;;  %1137 = vmatpush.msra.mxu1 %v917_v60  ;;  %v872_v58 = vld [vmem:[#allocation4 + $0xa08] sm:$0xff]  ;;  %v553_v59 = vld [vmem:[#allocation4 + $0x10] sm:$0xff] }
  0x73   : > { %1117 = vmatpush.msra.mxu0 %v837_v61  ;;  %1157 = vmatpush.msra.mxu2 %v598_v62  ;;  %v633_v60 = vld [vmem:[#allocation4 + $0x290] sm:$0xff]  ;;  %v788_v61 = vld [vmem:[#allocation4 + $0x768] sm:$0xff] }
  0x74   : > { %1177 = vmatpush.msra.mxu3 %v678_v63  ;;  %1138 = vmatpush.msra.mxu1 %v912_v25  ;;  %v868_v62 = vld [vmem:[#allocation4 + $0x9e8] sm:$0xff]  ;;  %v629_v25 = vld [vmem:[#allocation4 + $0x270] sm:$0xff] }
  0x75   : > { %1118 = vmatpush.msra.mxu0 %v832_v26  ;;  %1158 = vmatpush.msra.mxu2 %v593_v27  ;;  %v948_v63 = vld [vmem:[#allocation4 + $0xc68] sm:$0xff]  ;;  %v783_v26 = vld [vmem:[#allocation4 + $0x740] sm:$0xff] }
  0x76   : > { %1178 = vmatpush.msra.mxu3 %v673_v28  ;;  %1139 = vmatpush.msra.mxu1 %v907_v29  ;;  %v863_v27 = vld [vmem:[#allocation4 + $0x9c0] sm:$0xff]  ;;  %v624_v29 = vld [vmem:[#allocation4 + $0x248] sm:$0xff] }
  0x77   : > { %1119 = vmatpush.msra.mxu0 %v827_v30  ;;  %1159 = vmatpush.msra.mxu2 %v588_v31  ;;  %v943_v28 = vld [vmem:[#allocation4 + $0xc40] sm:$0xff]  ;;  %v778_v30 = vld [vmem:[#allocation4 + $0x718] sm:$0xff] }
  0x78   : > { %1179 = vmatpush.msra.mxu3 %v668_v32  ;;  %1140 = vmatpush.msra.mxu1 %v902_v33  ;;  %v858_v31 = vld [vmem:[#allocation4 + $0x998] sm:$0xff]  ;;  %v619_v33 = vld [vmem:[#allocation4 + $0x220] sm:$0xff] }
  0x79   : > { %1120 = vmatpush.msra.mxu0 %v822_v34  ;;  %1160 = vmatpush.msra.mxu2 %v583_v35  ;;  %v938_v32 = vld [vmem:[#allocation4 + $0xc18] sm:$0xff]  ;;  %v773_v34 = vld [vmem:[#allocation4 + $0x6f0] sm:$0xff] }
  0x7a   : > { %1180 = vmatpush.msra.mxu3 %v663_v36  ;;  %1141 = vmatpush.msra.mxu1 %v897_v37  ;;  %v853_v35 = vld [vmem:[#allocation4 + $0x970] sm:$0xff]  ;;  %v614_v37 = vld [vmem:[#allocation4 + $0x1f8] sm:$0xff] }
  0x7b   : > { %1121 = vmatpush.msra.mxu0 %v817_v38  ;;  %1161 = vmatpush.msra.mxu2 %v578_v39  ;;  %v933_v36 = vld [vmem:[#allocation4 + $0xbf0] sm:$0xff]  ;;  %v848_v38 = vld [vmem:[#allocation4 + $0x948] sm:$0xff] }
  0x7c   : > { %1181 = vmatpush.msra.mxu3 %v658_v40  ;;  %1142 = vmatpush.msra.mxu1 %v892_v41  ;;  %v768_v39 = vld [vmem:[#allocation4 + $0x6c8] sm:$0xff]  ;;  %v609_v41 = vld [vmem:[#allocation4 + $0x1d0] sm:$0xff] }
  0x7d   : > { %1122 = vmatpush.msra.mxu0 %v812_v42  ;;  %1162 = vmatpush.msra.mxu2 %v573_v43  ;;  %v928_v40 = vld [vmem:[#allocation4 + $0xbc8] sm:$0xff]  ;;  %v763_v42 = vld [vmem:[#allocation4 + $0x6a0] sm:$0xff] }
  0x7e   : > { %1182 = vmatpush.msra.mxu3 %v653_v44  ;;  %1143 = vmatpush.msra.mxu1 %v887_v45  ;;  %v843_v43 = vld [vmem:[#allocation4 + $0x920] sm:$0xff]  ;;  %v604_v45 = vld [vmem:[#allocation4 + $0x1a8] sm:$0xff] }
  0x7f   : > { %1123 = vmatpush.msra.mxu0 %v807_v46  ;;  %1163 = vmatpush.msra.mxu2 %v568_v47  ;;  %v923_v44 = vld [vmem:[#allocation4 + $0xba0] sm:$0xff]  ;;  %v758_v46 = vld [vmem:[#allocation4 + $0x678] sm:$0xff] }
  0x80   : > { %1183 = vmatpush.msra.mxu3 %v648_v48  ;;  %1144 = vmatpush.msra.mxu1 %v882_v49  ;;  %v838_v47 = vld [vmem:[#allocation4 + $0x8f8] sm:$0xff]  ;;  %v599_v49 = vld [vmem:[#allocation4 + $0x180] sm:$0xff] }
  0x81   : > { %1124 = vmatpush.msra.mxu0 %v802_v50  ;;  %1164 = vmatpush.msra.mxu2 %v563_v51  ;;  %v918_v48 = vld [vmem:[#allocation4 + $0xb78] sm:$0xff]  ;;  %v753_v50 = vld [vmem:[#allocation4 + $0x650] sm:$0xff] }
  0x82   : > { %1184 = vmatpush.msra.mxu3 %v643_v52  ;;  %1145 = vmatpush.msra.mxu1 %v877_v53  ;;  %v833_v51 = vld [vmem:[#allocation4 + $0x8d0] sm:$0xff]  ;;  %v594_v53 = vld [vmem:[#allocation4 + $0x158] sm:$0xff] }
  0x83   : > { %1125 = vmatpush.msra.mxu0 %v797_v54  ;;  %1165 = vmatpush.msra.mxu2 %v558_v55  ;;  %v913_v52 = vld [vmem:[#allocation4 + $0xb50] sm:$0xff]  ;;  %v748_v54 = vld [vmem:[#allocation4 + $0x628] sm:$0xff] }
  0x84   : > { %1185 = vmatpush.msra.mxu3 %v638_v56  ;;  %1087 = vmatmul.f32.vlgmr.msrb.gmra.mxu2 %v5134_v18  ;;  %v828_v55 = vld [vmem:[#allocation4 + $0x8a8] sm:$0xff] }
  0x85   : > { %1126 = vmatpush.msra.mxu0 %v792_v57  ;;  %1146 = vmatpush.msra.mxu1 %v872_v58  ;;  %v908_v56 = vld [vmem:[#allocation4 + $0xb28] sm:$0xff]  ;;  %v589_v57 = vld [vmem:[#allocation4 + $0x130] sm:$0xff]  ;;  %v743_v58 = vld [vmem:[#allocation4 + $0x600] sm:$0xff] }
  0x86   : > { %1166 = vmatpush.msra.mxu2 %v553_v59  ;;  %1186 = vmatpush.msra.mxu3 %v633_v60  ;;  %v823_v59 = vld [vmem:[#allocation4 + $0x880] sm:$0xff] }
  0x87   : > { %1067 = vmatmul.f32.vlgmr.msrb.gmra.mxu1 %v5138_v19  ;;  %1107 = vmatmul.f32.vlgmr.msrb.gmra.mxu3 %v5130_v17  ;;  %v903_v60 = vld [vmem:[#allocation4 + $0xb00] sm:$0xff] }
  0x88   : > { %1191 = vmatpush.msrb.mxu0 %v788_v61  ;;  %1211 = vmatpush.msrb.mxu1 %v868_v62  ;;  %v584_v61 = vld [vmem:[#allocation4 + $0x108] sm:$0xff]  ;;  %v738_v62 = vld [vmem:[#allocation4 + $0x5d8] sm:$0xff] }
  0x89   : > { %1231 = vmatpush.msrb.mxu2 %v948_v63  ;;  %1251 = vmatpush.msrb.mxu3 %v629_v25  ;;  %v818_v63 = vld [vmem:[#allocation4 + $0x858] sm:$0xff] }
  0x8a   : > { %1192 = vmatpush.msrb.mxu0 %v783_v26  ;;  %1212 = vmatpush.msrb.mxu1 %v863_v27  ;;  %v898_v25 = vld [vmem:[#allocation4 + $0xad8] sm:$0xff]  ;;  %v579_v26 = vld [vmem:[#allocation4 + $0xe0] sm:$0xff]  ;;  %v733_v27 = vld [vmem:[#allocation4 + $0x5b0] sm:$0xff] }
  0x8b   : > { %1232 = vmatpush.msrb.mxu2 %v943_v28  ;;  %1252 = vmatpush.msrb.mxu3 %v624_v29  ;;  %v813_v28 = vld [vmem:[#allocation4 + $0x830] sm:$0xff] }
  0x8c   : > { %1193 = vmatpush.msrb.mxu0 %v778_v30  ;;  %1213 = vmatpush.msrb.mxu1 %v858_v31  ;;  %v893_v29 = vld [vmem:[#allocation4 + $0xab0] sm:$0xff]  ;;  %v574_v30 = vld [vmem:[#allocation4 + $0xb8] sm:$0xff]  ;;  %v728_v31 = vld [vmem:[#allocation4 + $0x588] sm:$0xff] }
  0x8d   : > { %1233 = vmatpush.msrb.mxu2 %v938_v32  ;;  %1253 = vmatpush.msrb.mxu3 %v619_v33  ;;  %v808_v32 = vld [vmem:[#allocation4 + $0x808] sm:$0xff] }
  0x8e   : > { %1194 = vmatpush.msrb.mxu0 %v773_v34  ;;  %1214 = vmatpush.msrb.mxu1 %v853_v35  ;;  %v888_v33 = vld [vmem:[#allocation4 + $0xa88] sm:$0xff]  ;;  %v569_v34 = vld [vmem:[#allocation4 + $0x90] sm:$0xff]  ;;  %v723_v35 = vld [vmem:[#allocation4 + $0x560] sm:$0xff] }
  0x8f   : > { %1234 = vmatpush.msrb.mxu2 %v933_v36  ;;  %1254 = vmatpush.msrb.mxu3 %v614_v37  ;;  %v803_v36 = vld [vmem:[#allocation4 + $0x7e0] sm:$0xff] }
  0x90   : > { %1127 = vmatmul.f32.vlgmr.msra.gmra.mxu0 %v5126_v16  ;;  %1215 = vmatpush.msrb.mxu1 %v848_v38  ;;  %v883_v37 = vld [vmem:[#allocation4 + $0xa60] sm:$0xff]  ;;  %v564_v38 = vld [vmem:[#allocation4 + $0x68] sm:$0xff] }
  0x91   : > { %1195 = vmatpush.msrb.mxu0 %v768_v39  ;;  %1235 = vmatpush.msrb.mxu2 %v928_v40  ;;  %v718_v39 = vld [vmem:[#allocation4 + $0x538] sm:$0xff] }
  0x92   : > { %1255 = vmatpush.msrb.mxu3 %v609_v41  ;;  %1147 = vmatmul.f32.vlgmr.msra.gmra.mxu1 %v5122_v15  ;;  %v798_v40 = vld [vmem:[#allocation4 + $0x7b8] sm:$0xff] }
  0x93   : > { %1196 = vmatpush.msrb.mxu0 %v763_v42  ;;  %1216 = vmatpush.msrb.mxu1 %v843_v43  ;;  %v878_v41 = vld [vmem:[#allocation4 + $0xa38] sm:$0xff]  ;;  %v559_v42 = vld [vmem:[#allocation4 + $0x40] sm:$0xff]  ;;  %v713_v43 = vld [vmem:[#allocation4 + $0x510] sm:$0xff] }
  0x94   : > { %1236 = vmatpush.msrb.mxu2 %v923_v44  ;;  %1256 = vmatpush.msrb.mxu3 %v604_v45  ;;  %v793_v44 = vld [vmem:[#allocation4 + $0x790] sm:$0xff] }
  0x95   : > { %1197 = vmatpush.msrb.mxu0 %v758_v46  ;;  %1217 = vmatpush.msrb.mxu1 %v838_v47  ;;  %v873_v45 = vld [vmem:[#allocation4 + $0xa10] sm:$0xff]  ;;  %v554_v46 = vld [vmem:[#allocation4 + $0x18] sm:$0xff] }
  0x96   : > { %1237 = vmatpush.msrb.mxu2 %v918_v48  ;;  %1257 = vmatpush.msrb.mxu3 %v599_v49  ;;  %v709_v47 = vld [vmem:[#allocation4 + $0x4f0] sm:$0xff] }
  0x97   : > { %1198 = vmatpush.msrb.mxu0 %v753_v50  ;;  %1218 = vmatpush.msrb.mxu1 %v833_v51  ;;  %v789_v48 = vld [vmem:[#allocation4 + $0x770] sm:$0xff]  ;;  %v704_v51 = vld [vmem:[#allocation4 + $0x4c8] sm:$0xff] }
  0x98   : > { %1238 = vmatpush.msrb.mxu2 %v913_v52  ;;  %1258 = vmatpush.msrb.mxu3 %v594_v53  ;;  %v869_v49 = vld [vmem:[#allocation4 + $0x9f0] sm:$0xff]  ;;  %v784_v52 = vld [vmem:[#allocation4 + $0x748] sm:$0xff] }
  0x99   : > { %1199 = vmatpush.msrb.mxu0 %v748_v54  ;;  %1219 = vmatpush.msrb.mxu1 %v828_v55  ;;  %v949_v50 = vld [vmem:[#allocation4 + $0xc70] sm:$0xff]  ;;  %v864_v53 = vld [vmem:[#allocation4 + $0x9c8] sm:$0xff]  ;;  %v699_v55 = vld [vmem:[#allocation4 + $0x4a0] sm:$0xff] }
  0x9a   : > { %1239 = vmatpush.msrb.mxu2 %v908_v56  ;;  %1259 = vmatpush.msrb.mxu3 %v589_v57  ;;  %v944_v54 = vld [vmem:[#allocation4 + $0xc48] sm:$0xff]  ;;  %v779_v56 = vld [vmem:[#allocation4 + $0x720] sm:$0xff] }
  0x9b   : > { %1200 = vmatpush.msrb.mxu0 %v743_v58  ;;  %1220 = vmatpush.msrb.mxu1 %v823_v59  ;;  %v859_v57 = vld [vmem:[#allocation4 + $0x9a0] sm:$0xff]  ;;  %v694_v59 = vld [vmem:[#allocation4 + $0x478] sm:$0xff] }
  0x9c   : > { %1240 = vmatpush.msrb.mxu2 %v903_v60  ;;  %1260 = vmatpush.msrb.mxu3 %v584_v61  ;;  %v939_v58 = vld [vmem:[#allocation4 + $0xc20] sm:$0xff]  ;;  %v774_v60 = vld [vmem:[#allocation4 + $0x6f8] sm:$0xff] }
  0x9d   : > { %1201 = vmatpush.msrb.mxu0 %v738_v62  ;;  %1221 = vmatpush.msrb.mxu1 %v818_v63  ;;  %v854_v61 = vld [vmem:[#allocation4 + $0x978] sm:$0xff]  ;;  %v689_v63 = vld [vmem:[#allocation4 + $0x450] sm:$0xff] }
  0x9e   : > { %1241 = vmatpush.msrb.mxu2 %v898_v25  ;;  %1261 = vmatpush.msrb.mxu3 %v579_v26  ;;  %v934_v62 = vld [vmem:[#allocation4 + $0xbf8] sm:$0xff]  ;;  %v769_v25 = vld [vmem:[#allocation4 + $0x6d0] sm:$0xff] }
  0x9f   : > { %1202 = vmatpush.msrb.mxu0 %v733_v27  ;;  %1222 = vmatpush.msrb.mxu1 %v813_v28  ;;  %v849_v26 = vld [vmem:[#allocation4 + $0x950] sm:$0xff]  ;;  %v684_v28 = vld [vmem:[#allocation4 + $0x428] sm:$0xff] }
  0xa0   : > { %1242 = vmatpush.msrb.mxu2 %v893_v29  ;;  %1262 = vmatpush.msrb.mxu3 %v574_v30  ;;  %v929_v27 = vld [vmem:[#allocation4 + $0xbd0] sm:$0xff]  ;;  %v764_v29 = vld [vmem:[#allocation4 + $0x6a8] sm:$0xff] }
  0xa1   : > { %1203 = vmatpush.msrb.mxu0 %v728_v31  ;;  %1223 = vmatpush.msrb.mxu1 %v808_v32  ;;  %v844_v30 = vld [vmem:[#allocation4 + $0x928] sm:$0xff]  ;;  %v679_v32 = vld [vmem:[#allocation4 + $0x400] sm:$0xff] }
  0xa2   : > { %1243 = vmatpush.msrb.mxu2 %v888_v33  ;;  %1263 = vmatpush.msrb.mxu3 %v569_v34  ;;  %v924_v31 = vld [vmem:[#allocation4 + $0xba8] sm:$0xff]  ;;  %v759_v33 = vld [vmem:[#allocation4 + $0x680] sm:$0xff] }
  0xa3   : > { %1204 = vmatpush.msrb.mxu0 %v723_v35  ;;  %1224 = vmatpush.msrb.mxu1 %v803_v36  ;;  %v839_v34 = vld [vmem:[#allocation4 + $0x900] sm:$0xff]  ;;  %v674_v36 = vld [vmem:[#allocation4 + $0x3d8] sm:$0xff] }
  0xa4   : > { %1244 = vmatpush.msrb.mxu2 %v883_v37  ;;  %1264 = vmatpush.msrb.mxu3 %v564_v38  ;;  %v919_v35 = vld [vmem:[#allocation4 + $0xb80] sm:$0xff]  ;;  %v754_v37 = vld [vmem:[#allocation4 + $0x658] sm:$0xff] }
  0xa5   : > { %1205 = vmatpush.msrb.mxu0 %v718_v39  ;;  %1225 = vmatpush.msrb.mxu1 %v798_v40  ;;  %v834_v38 = vld [vmem:[#allocation4 + $0x8d8] sm:$0xff]  ;;  %v669_v40 = vld [vmem:[#allocation4 + $0x3b0] sm:$0xff] }
  0xa6   : > { %1245 = vmatpush.msrb.mxu2 %v878_v41  ;;  %1265 = vmatpush.msrb.mxu3 %v559_v42  ;;  %v914_v39 = vld [vmem:[#allocation4 + $0xb58] sm:$0xff]  ;;  %v749_v41 = vld [vmem:[#allocation4 + $0x630] sm:$0xff] }
  0xa7   : > { %1167 = vmatmul.f32.vlgmr.msra.gmra.mxu2 %v5138_v19  ;;  %1206 = vmatpush.msrb.mxu0 %v713_v43  ;;  %v829_v42 = vld [vmem:[#allocation4 + $0x8b0] sm:$0xff] }
  0xa8   : > { %1226 = vmatpush.msrb.mxu1 %v793_v44  ;;  %1246 = vmatpush.msrb.mxu2 %v873_v45  ;;  %v909_v43 = vld [vmem:[#allocation4 + $0xb30] sm:$0xff]  ;;  %v664_v44 = vld [vmem:[#allocation4 + $0x388] sm:$0xff] }
  0xa9   : > { %1266 = vmatpush.msrb.mxu3 %v554_v46  ;;  %1271 = vmatpush.msra.mxu0 %v709_v47  ;;  %v744_v45 = vld [vmem:[#allocation4 + $0x608] sm:$0xff] }
  0xaa   : > { %1187 = vmatmul.f32.vlgmr.msra.gmra.mxu3 %v5134_v18  ;;  %1291 = vmatpush.msra.mxu1 %v789_v48  ;;  %v824_v46 = vld [vmem:[#allocation4 + $0x888] sm:$0xff]  ;;  %v659_v48 = vld [vmem:[#allocation4 + $0x360] sm:$0xff] }
  0xab   : > { %1311 = vmatpush.msra.mxu2 %v869_v49  ;;  %1331 = vmatpush.msra.mxu3 %v949_v50  ;;  %v904_v47 = vld [vmem:[#allocation4 + $0xb08] sm:$0xff]  ;;  %v739_v49 = vld [vmem:[#allocation4 + $0x5e0] sm:$0xff] }
  0xac   : > { %1272 = vmatpush.msra.mxu0 %v704_v51  ;;  %1292 = vmatpush.msra.mxu1 %v784_v52  ;;  %v819_v50 = vld [vmem:[#allocation4 + $0x860] sm:$0xff]  ;;  %v654_v52 = vld [vmem:[#allocation4 + $0x338] sm:$0xff] }
  0xad   : > { %1312 = vmatpush.msra.mxu2 %v864_v53  ;;  %1332 = vmatpush.msra.mxu3 %v944_v54  ;;  %v899_v51 = vld [vmem:[#allocation4 + $0xae0] sm:$0xff]  ;;  %v734_v53 = vld [vmem:[#allocation4 + $0x5b8] sm:$0xff] }
  0xae   : > { %1273 = vmatpush.msra.mxu0 %v699_v55  ;;  %1293 = vmatpush.msra.mxu1 %v779_v56  ;;  %v814_v54 = vld [vmem:[#allocation4 + $0x838] sm:$0xff]  ;;  %v649_v56 = vld [vmem:[#allocation4 + $0x310] sm:$0xff] }
  0xaf   : > { %1313 = vmatpush.msra.mxu2 %v859_v57  ;;  %1333 = vmatpush.msra.mxu3 %v939_v58  ;;  %v894_v55 = vld [vmem:[#allocation4 + $0xab8] sm:$0xff]  ;;  %v729_v57 = vld [vmem:[#allocation4 + $0x590] sm:$0xff] }
  0xb0   : > { %1247 = vmatmul.f32.vlgmr.msrb.gmra.mxu2 %v5122_v15  ;;  %1274 = vmatpush.msra.mxu0 %v694_v59  ;;  %v809_v58 = vld [vmem:[#allocation4 + $0x810] sm:$0xff] }
  0xb1   : > { %1294 = vmatpush.msra.mxu1 %v774_v60  ;;  %1314 = vmatpush.msra.mxu2 %v854_v61  ;;  %v889_v59 = vld [vmem:[#allocation4 + $0xa90] sm:$0xff]  ;;  %v644_v60 = vld [vmem:[#allocation4 + $0x2e8] sm:$0xff] }
  0xb2   : > { %1334 = vmatpush.msra.mxu3 %v934_v62  ;;  %1207 = vmatmul.f32.vlgmr.msrb.gmra.mxu0 %v5130_v17  ;;  %v724_v61 = vld [vmem:[#allocation4 + $0x568] sm:$0xff] }
  0xb3   : > { %1275 = vmatpush.msra.mxu0 %v689_v63  ;;  %1295 = vmatpush.msra.mxu1 %v769_v25  ;;  %v804_v62 = vld [vmem:[#allocation4 + $0x7e8] sm:$0xff]  ;;  %v639_v25 = vld [vmem:[#allocation4 + $0x2c0] sm:$0xff] }
  0xb4   : > { %1315 = vmatpush.msra.mxu2 %v849_v26  ;;  %1335 = vmatpush.msra.mxu3 %v929_v27  ;;  %v884_v63 = vld [vmem:[#allocation4 + $0xa68] sm:$0xff]  ;;  %v719_v26 = vld [vmem:[#allocation4 + $0x540] sm:$0xff] }
  0xb5   : > { %1227 = vmatmul.f32.vlgmr.msrb.gmra.mxu1 %v5126_v16  ;;  %1276 = vmatpush.msra.mxu0 %v684_v28  ;;  %v799_v27 = vld [vmem:[#allocation4 + $0x7c0] sm:$0xff] }
  0xb6   : > { %1296 = vmatpush.msra.mxu1 %v764_v29  ;;  %1316 = vmatpush.msra.mxu2 %v844_v30  ;;  %v879_v28 = vld [vmem:[#allocation4 + $0xa40] sm:$0xff]  ;;  %v634_v29 = vld [vmem:[#allocation4 + $0x298] sm:$0xff] }
  0xb7   : > { %1336 = vmatpush.msra.mxu3 %v924_v31  ;;  %1277 = vmatpush.msra.mxu0 %v679_v32  ;;  %v714_v30 = vld [vmem:[#allocation4 + $0x518] sm:$0xff] }
  0xb8   : > { %1297 = vmatpush.msra.mxu1 %v759_v33  ;;  %1317 = vmatpush.msra.mxu2 %v839_v34  ;;  %v794_v31 = vld [vmem:[#allocation4 + $0x798] sm:$0xff] }
  0xb9   : > { %1337 = vmatpush.msra.mxu3 %v919_v35  ;;  %1278 = vmatpush.msra.mxu0 %v674_v36  ;;  %v874_v32 = vld [vmem:[#allocation4 + $0xa18] sm:$0xff] }
  0xba   : > { %1298 = vmatpush.msra.mxu1 %v754_v37  ;;  %1318 = vmatpush.msra.mxu2 %v834_v38  ;;  %v630_v33 = vld [vmem:[#allocation4 + $0x278] sm:$0xff]  ;;  %v625_v37 = vld [vmem:[#allocation4 + $0x250] sm:$0xff] }
  0xbb   : > { %1338 = vmatpush.msra.mxu3 %v914_v39  ;;  %1279 = vmatpush.msra.mxu0 %v669_v40  ;;  %v710_v34 = vld [vmem:[#allocation4 + $0x4f8] sm:$0xff]  ;;  %v705_v38 = vld [vmem:[#allocation4 + $0x4d0] sm:$0xff] }
  0xbc   : > { %1299 = vmatpush.msra.mxu1 %v749_v41  ;;  %1319 = vmatpush.msra.mxu2 %v829_v42  ;;  %v790_v35 = vld [vmem:[#allocation4 + $0x778] sm:$0xff]  ;;  %v785_v39 = vld [vmem:[#allocation4 + $0x750] sm:$0xff]  ;;  %v620_v41 = vld [vmem:[#allocation4 + $0x228] sm:$0xff] }
  0xbd   : > { %1339 = vmatpush.msra.mxu3 %v909_v43  ;;  %1280 = vmatpush.msra.mxu0 %v664_v44  ;;  %v870_v36 = vld [vmem:[#allocation4 + $0x9f8] sm:$0xff]  ;;  %v865_v40 = vld [vmem:[#allocation4 + $0x9d0] sm:$0xff]  ;;  %v700_v42 = vld [vmem:[#allocation4 + $0x4a8] sm:$0xff] }
  0xbe   : > { %1300 = vmatpush.msra.mxu1 %v744_v45  ;;  %1320 = vmatpush.msra.mxu2 %v824_v46  ;;  %v780_v43 = vld [vmem:[#allocation4 + $0x728] sm:$0xff]  ;;  %v615_v45 = vld [vmem:[#allocation4 + $0x200] sm:$0xff] }
  0xbf   : > { %1340 = vmatpush.msra.mxu3 %v904_v47  ;;  %1281 = vmatpush.msra.mxu0 %v659_v48  ;;  %v860_v44 = vld [vmem:[#allocation4 + $0x9a8] sm:$0xff]  ;;  %v695_v46 = vld [vmem:[#allocation4 + $0x480] sm:$0xff] }
  0xc0   : > { %1301 = vmatpush.msra.mxu1 %v739_v49  ;;  %1321 = vmatpush.msra.mxu2 %v819_v50  ;;  %v775_v47 = vld [vmem:[#allocation4 + $0x700] sm:$0xff]  ;;  %v610_v49 = vld [vmem:[#allocation4 + $0x1d8] sm:$0xff] }
  0xc1   : > { %1341 = vmatpush.msra.mxu3 %v899_v51  ;;  %1282 = vmatpush.msra.mxu0 %v654_v52  ;;  %v855_v48 = vld [vmem:[#allocation4 + $0x980] sm:$0xff]  ;;  %v690_v50 = vld [vmem:[#allocation4 + $0x458] sm:$0xff] }
  0xc2   : > { %1302 = vmatpush.msra.mxu1 %v734_v53  ;;  %1322 = vmatpush.msra.mxu2 %v814_v54  ;;  %v770_v51 = vld [vmem:[#allocation4 + $0x6d8] sm:$0xff]  ;;  %v605_v53 = vld [vmem:[#allocation4 + $0x1b0] sm:$0xff] }
  0xc3   : > { %1342 = vmatpush.msra.mxu3 %v894_v55  ;;  %1283 = vmatpush.msra.mxu0 %v649_v56  ;;  %v850_v52 = vld [vmem:[#allocation4 + $0x958] sm:$0xff]  ;;  %v685_v54 = vld [vmem:[#allocation4 + $0x430] sm:$0xff] }
  0xc4   : > { %1303 = vmatpush.msra.mxu1 %v729_v57  ;;  %1323 = vmatpush.msra.mxu2 %v809_v58  ;;  %v765_v55 = vld [vmem:[#allocation4 + $0x6b0] sm:$0xff]  ;;  %v600_v57 = vld [vmem:[#allocation4 + $0x188] sm:$0xff] }
  0xc5   : > { %1343 = vmatpush.msra.mxu3 %v889_v59  ;;  %1284 = vmatpush.msra.mxu0 %v644_v60  ;;  %v845_v56 = vld [vmem:[#allocation4 + $0x930] sm:$0xff]  ;;  %v680_v58 = vld [vmem:[#allocation4 + $0x408] sm:$0xff] }
  0xc6   : > { %1304 = vmatpush.msra.mxu1 %v724_v61  ;;  %1324 = vmatpush.msra.mxu2 %v804_v62  ;;  %v760_v59 = vld [vmem:[#allocation4 + $0x688] sm:$0xff]  ;;  %v595_v61 = vld [vmem:[#allocation4 + $0x160] sm:$0xff] }
  0xc7   : > { %1344 = vmatpush.msra.mxu3 %v884_v63  ;;  %1285 = vmatpush.msra.mxu0 %v639_v25  ;;  %v840_v60 = vld [vmem:[#allocation4 + $0x908] sm:$0xff]  ;;  %v675_v62 = vld [vmem:[#allocation4 + $0x3e0] sm:$0xff] }
  0xc8   : > { %1305 = vmatpush.msra.mxu1 %v719_v26  ;;  %1325 = vmatpush.msra.mxu2 %v799_v27  ;;  %v755_v63 = vld [vmem:[#allocation4 + $0x660] sm:$0xff]  ;;  %v590_v26 = vld [vmem:[#allocation4 + $0x138] sm:$0xff] }
  0xc9   : > { %1345 = vmatpush.msra.mxu3 %v879_v28  ;;  %1286 = vmatpush.msra.mxu0 %v634_v29  ;;  %v835_v25 = vld [vmem:[#allocation4 + $0x8e0] sm:$0xff]  ;;  %v670_v27 = vld [vmem:[#allocation4 + $0x3b8] sm:$0xff] }
  0xca   : > { %1306 = vmatpush.msra.mxu1 %v714_v30  ;;  %1326 = vmatpush.msra.mxu2 %v794_v31  ;;  %v750_v28 = vld [vmem:[#allocation4 + $0x638] sm:$0xff]  ;;  %v585_v30 = vld [vmem:[#allocation4 + $0x110] sm:$0xff] }
  0xcb   : > { %1346 = vmatpush.msra.mxu3 %v874_v32  ;;  %1351 = vmatpush.msrb.mxu0 %v630_v33  ;;  %v830_v29 = vld [vmem:[#allocation4 + $0x8b8] sm:$0xff]  ;;  %v665_v31 = vld [vmem:[#allocation4 + $0x390] sm:$0xff] }
  0xcc   : > { %1267 = vmatmul.f32.vlgmr.msrb.gmra.mxu3 %v5138_v19  ;;  %1371 = vmatpush.msrb.mxu1 %v710_v34  ;;  %v745_v32 = vld [vmem:[#allocation4 + $0x610] sm:$0xff]  ;;  %v580_v34 = vld [vmem:[#allocation4 + $0xe8] sm:$0xff] }
  0xcd   : > { %1391 = vmatpush.msrb.mxu2 %v790_v35  ;;  %1411 = vmatpush.msrb.mxu3 %v870_v36  ;;  %v825_v33 = vld [vmem:[#allocation4 + $0x890] sm:$0xff]  ;;  %v660_v35 = vld [vmem:[#allocation4 + $0x368] sm:$0xff] }
  0xce   : > { %1352 = vmatpush.msrb.mxu0 %v625_v37  ;;  %1372 = vmatpush.msrb.mxu1 %v705_v38  ;;  %v740_v36 = vld [vmem:[#allocation4 + $0x5e8] sm:$0xff]  ;;  %v575_v38 = vld [vmem:[#allocation4 + $0xc0] sm:$0xff] }
  0xcf   : > { %1392 = vmatpush.msrb.mxu2 %v785_v39  ;;  %1412 = vmatpush.msrb.mxu3 %v865_v40  ;;  %v820_v37 = vld [vmem:[#allocation4 + $0x868] sm:$0xff]  ;;  %v655_v39 = vld [vmem:[#allocation4 + $0x340] sm:$0xff] }
  0xd0   : > { %1353 = vmatpush.msrb.mxu0 %v620_v41  ;;  %1373 = vmatpush.msrb.mxu1 %v700_v42  ;;  %v735_v40 = vld [vmem:[#allocation4 + $0x5c0] sm:$0xff]  ;;  %v570_v42 = vld [vmem:[#allocation4 + $0x98] sm:$0xff] }
  0xd1   : > { %1393 = vmatpush.msrb.mxu2 %v780_v43  ;;  %1413 = vmatpush.msrb.mxu3 %v860_v44  ;;  %v815_v41 = vld [vmem:[#allocation4 + $0x840] sm:$0xff]  ;;  %v650_v43 = vld [vmem:[#allocation4 + $0x318] sm:$0xff] }
  0xd2   : > { %1327 = vmatmul.f32.vlgmr.msra.gmra.mxu2 %v5126_v16  ;;  %1354 = vmatpush.msrb.mxu0 %v615_v45  ;;  %v730_v44 = vld [vmem:[#allocation4 + $0x598] sm:$0xff] }
  0xd3   : > { %1374 = vmatpush.msrb.mxu1 %v695_v46  ;;  %1394 = vmatpush.msrb.mxu2 %v775_v47  ;;  %v810_v45 = vld [vmem:[#allocation4 + $0x818] sm:$0xff]  ;;  %v565_v46 = vld [vmem:[#allocation4 + $0x70] sm:$0xff] }
  0xd4   : > { %1414 = vmatpush.msrb.mxu3 %v855_v48  ;;  %1287 = vmatmul.f32.vlgmr.msra.gmra.mxu0 %v5134_v18  ;;  %v645_v47 = vld [vmem:[#allocation4 + $0x2f0] sm:$0xff] }
  0xd5   : > { %1347 = vmatmul.f32.vlgmr.msra.gmra.mxu3 %v5122_v15  ;;  %1355 = vmatpush.msrb.mxu0 %v610_v49  ;;  %v725_v48 = vld [vmem:[#allocation4 + $0x570] sm:$0xff] }
  0xd6   : > { %1375 = vmatpush.msrb.mxu1 %v690_v50  ;;  %1395 = vmatpush.msrb.mxu2 %v770_v51  ;;  %v805_v49 = vld [vmem:[#allocation4 + $0x7f0] sm:$0xff]  ;;  %v560_v50 = vld [vmem:[#allocation4 + $0x48] sm:$0xff] }
  0xd7   : > { %1415 = vmatpush.msrb.mxu3 %v850_v52  ;;  %1307 = vmatmul.f32.vlgmr.msra.gmra.mxu1 %v5130_v17  ;;  %v640_v51 = vld [vmem:[#allocation4 + $0x2c8] sm:$0xff] }
  0xd8   : > { %1356 = vmatpush.msrb.mxu0 %v605_v53  ;;  %1376 = vmatpush.msrb.mxu1 %v685_v54  ;;  %v720_v52 = vld [vmem:[#allocation4 + $0x548] sm:$0xff]  ;;  %v555_v54 = vld [vmem:[#allocation4 + $0x20] sm:$0xff] }
  0xd9   : > { %1396 = vmatpush.msrb.mxu2 %v765_v55  ;;  %1416 = vmatpush.msrb.mxu3 %v845_v56  ;;  %v800_v53 = vld [vmem:[#allocation4 + $0x7c8] sm:$0xff]  ;;  %v635_v55 = vld [vmem:[#allocation4 + $0x2a0] sm:$0xff] }
  0xda   : > { %1357 = vmatpush.msrb.mxu0 %v600_v57  ;;  %1377 = vmatpush.msrb.mxu1 %v680_v58  ;;  %v715_v56 = vld [vmem:[#allocation4 + $0x520] sm:$0xff]  ;;  %v950_v58 = vld [vmem:[#allocation4 + $0xc78] sm:$0xff] }
  0xdb   : > { %1397 = vmatpush.msrb.mxu2 %v760_v59  ;;  %1417 = vmatpush.msrb.mxu3 %v840_v60  ;;  %v795_v57 = vld [vmem:[#allocation4 + $0x7a0] sm:$0xff]  ;;  %v226_v59 = vld [vmem:[#allocation2 + $0x258] sm:$0xff] }
  0xdc   : > { %1358 = vmatpush.msrb.mxu0 %v595_v61  ;;  %1378 = vmatpush.msrb.mxu1 %v675_v62  ;;  %v306_v60 = vld [vmem:[#allocation2 + $0x4d8] sm:$0xff]  ;;  %v945_v62 = vld [vmem:[#allocation4 + $0xc50] sm:$0xff] }
  0xdd   : > { %1398 = vmatpush.msrb.mxu2 %v755_v63  ;;  %1418 = vmatpush.msrb.mxu3 %v835_v25  ;;  %v386_v61 = vld [vmem:[#allocation2 + $0x758] sm:$0xff]  ;;  %v221_v63 = vld [vmem:[#allocation2 + $0x230] sm:$0xff] }
  0xde   : > { %1359 = vmatpush.msrb.mxu0 %v590_v26  ;;  %1379 = vmatpush.msrb.mxu1 %v670_v27  ;;  %v301_v25 = vld [vmem:[#allocation2 + $0x4b0] sm:$0xff]  ;;  %v940_v27 = vld [vmem:[#allocation4 + $0xc28] sm:$0xff] }
  0xdf   : > { %1399 = vmatpush.msrb.mxu2 %v750_v28  ;;  %1419 = vmatpush.msrb.mxu3 %v830_v29  ;;  %v381_v26 = vld [vmem:[#allocation2 + $0x730] sm:$0xff]  ;;  %v216_v28 = vld [vmem:[#allocation2 + $0x208] sm:$0xff] }
  0xe0   : > { %1360 = vmatpush.msrb.mxu0 %v585_v30  ;;  %1380 = vmatpush.msrb.mxu1 %v665_v31  ;;  %v296_v29 = vld [vmem:[#allocation2 + $0x488] sm:$0xff]  ;;  %v935_v31 = vld [vmem:[#allocation4 + $0xc00] sm:$0xff] }
  0xe1   : > { %1400 = vmatpush.msrb.mxu2 %v745_v32  ;;  %1420 = vmatpush.msrb.mxu3 %v825_v33  ;;  %v376_v30 = vld [vmem:[#allocation2 + $0x708] sm:$0xff]  ;;  %v211_v32 = vld [vmem:[#allocation2 + $0x1e0] sm:$0xff] }
  0xe2   : > { %1361 = vmatpush.msrb.mxu0 %v580_v34  ;;  %1381 = vmatpush.msrb.mxu1 %v660_v35  ;;  %v291_v33 = vld [vmem:[#allocation2 + $0x460] sm:$0xff]  ;;  %v930_v35 = vld [vmem:[#allocation4 + $0xbd8] sm:$0xff] }
  0xe3   : > { %1401 = vmatpush.msrb.mxu2 %v740_v36  ;;  %1421 = vmatpush.msrb.mxu3 %v820_v37  ;;  %v371_v34 = vld [vmem:[#allocation2 + $0x6e0] sm:$0xff]  ;;  %v206_v36 = vld [vmem:[#allocation2 + $0x1b8] sm:$0xff] }
  0xe4   : > { %1362 = vmatpush.msrb.mxu0 %v575_v38  ;;  %1382 = vmatpush.msrb.mxu1 %v655_v39  ;;  %v286_v37 = vld [vmem:[#allocation2 + $0x438] sm:$0xff]  ;;  %v925_v39 = vld [vmem:[#allocation4 + $0xbb0] sm:$0xff] }
  0xe5   : > { %1402 = vmatpush.msrb.mxu2 %v735_v40  ;;  %1422 = vmatpush.msrb.mxu3 %v815_v41  ;;  %v366_v38 = vld [vmem:[#allocation2 + $0x6b8] sm:$0xff]  ;;  %v201_v40 = vld [vmem:[#allocation2 + $0x190] sm:$0xff] }
  0xe6   : > { %1363 = vmatpush.msrb.mxu0 %v570_v42  ;;  %1383 = vmatpush.msrb.mxu1 %v650_v43  ;;  %v281_v41 = vld [vmem:[#allocation2 + $0x410] sm:$0xff]  ;;  %v920_v43 = vld [vmem:[#allocation4 + $0xb88] sm:$0xff] }
  0xe7   : > { %1403 = vmatpush.msrb.mxu2 %v730_v44  ;;  %1423 = vmatpush.msrb.mxu3 %v810_v45  ;;  %v361_v42 = vld [vmem:[#allocation2 + $0x690] sm:$0xff]  ;;  %v196_v44 = vld [vmem:[#allocation2 + $0x168] sm:$0xff] }
  0xe8   : > { %1364 = vmatpush.msrb.mxu0 %v565_v46  ;;  %1384 = vmatpush.msrb.mxu1 %v645_v47  ;;  %v276_v45 = vld [vmem:[#allocation2 + $0x3e8] sm:$0xff]  ;;  %v915_v47 = vld [vmem:[#allocation4 + $0xb60] sm:$0xff] }
  0xe9   : > { %1404 = vmatpush.msrb.mxu2 %v725_v48  ;;  %1424 = vmatpush.msrb.mxu3 %v805_v49  ;;  %v356_v46 = vld [vmem:[#allocation2 + $0x668] sm:$0xff]  ;;  %v191_v48 = vld [vmem:[#allocation2 + $0x140] sm:$0xff] }
  0xea   : > { %1365 = vmatpush.msrb.mxu0 %v560_v50  ;;  %1385 = vmatpush.msrb.mxu1 %v640_v51  ;;  %v271_v49 = vld [vmem:[#allocation2 + $0x3c0] sm:$0xff]  ;;  %v5387_v51 = vpop.f32.mrf.mxu0 }
  0xeb   : > { %1405 = vmatpush.msrb.mxu2 %v720_v52  ;;  %1425 = vmatpush.msrb.mxu3 %v800_v53  ;;  %v351_v50 = vld [vmem:[#allocation2 + $0x640] sm:$0xff]  ;;  %v910_v52 = vld [vmem:[#allocation4 + $0xb38] sm:$0xff] }
  0xec   : > { %1366 = vmatpush.msrb.mxu0 %v555_v54  ;;  %1386 = vmatpush.msrb.mxu1 %v635_v55  ;;  %v186_v53 = vld [vmem:[#allocation2 + $0x118] sm:$0xff] }
  0xed   : > { %1406 = vmatpush.msrb.mxu2 %v715_v56  ;;  %1426 = vmatpush.msrb.mxu3 %v795_v57  ;;  %v266_v54 = vld [vmem:[#allocation2 + $0x398] sm:$0xff]  ;;  %v5389_v56 = vpop.f32.mrf.mxu1  ;;  %v905_v57 = vld [vmem:[#allocation4 + $0xb10] sm:$0xff] }
  0xee   : > { %1431 = vmatpush.msra.mxu0 %v950_v58  ;;  %1451 = vmatpush.msra.mxu1 %v226_v59  ;;  %v346_v55 = vld [vmem:[#allocation2 + $0x618] sm:$0xff]  ;;  %v181_v58 = vld [vmem:[#allocation2 + $0xf0] sm:$0xff] }
  0xef   : > { %1471 = vmatpush.msra.mxu2 %v306_v60  ;;  %1491 = vmatpush.msra.mxu3 %v386_v61  ;;  %v261_v59 = vld [vmem:[#allocation2 + $0x370] sm:$0xff]  ;;  %v5391_v61 = vpop.f32.mrf.mxu2 }
  0xf0   : > { %1432 = vmatpush.msra.mxu0 %v945_v62  ;;  %1452 = vmatpush.msra.mxu1 %v221_v63  ;;  %v341_v60 = vld [vmem:[#allocation2 + $0x5f0] sm:$0xff]  ;;  %v900_v62 = vld [vmem:[#allocation4 + $0xae8] sm:$0xff] }
  0xf1   : > { %1472 = vmatpush.msra.mxu2 %v301_v25  ;;  %1492 = vmatpush.msra.mxu3 %v381_v26  ;;  %v176_v63 = vld [vmem:[#allocation2 + $0xc8] sm:$0xff] }
  0xf2   : > { %1433 = vmatpush.msra.mxu0 %v940_v27  ;;  %1453 = vmatpush.msra.mxu1 %v216_v28  ;;  %v256_v25 = vld [vmem:[#allocation2 + $0x348] sm:$0xff]  ;;  %v895_v27 = vld [vmem:[#allocation4 + $0xac0] sm:$0xff] }
  0xf3   : > { %1473 = vmatpush.msra.mxu2 %v296_v29  ;;  %1493 = vmatpush.msra.mxu3 %v376_v30  ;;  %v336_v26 = vld [vmem:[#allocation2 + $0x5c8] sm:$0xff]  ;;  %v171_v28 = vld [vmem:[#allocation2 + $0xa0] sm:$0xff]  ;;  %v5393_v29 = vpop.f32.mrf.mxu3 }
  0xf4   : > { %1434 = vmatpush.msra.mxu0 %v935_v31  ;;  %1454 = vmatpush.msra.mxu1 %v211_v32  ;;  %v251_v30 = vld [vmem:[#allocation2 + $0x320] sm:$0xff]  ;;  %v890_v32 = vld [vmem:[#allocation4 + $0xa98] sm:$0xff] }
  0xf5   : > { %1474 = vmatpush.msra.mxu2 %v291_v33  ;;  %1494 = vmatpush.msra.mxu3 %v371_v34  ;;  %v331_v31 = vld [vmem:[#allocation2 + $0x5a0] sm:$0xff]  ;;  %v166_v33 = vld [vmem:[#allocation2 + $0x78] sm:$0xff]  ;;  %v5395_v34 = vpop.f32.mrf.mxu0 }
  0xf6   : > { %1435 = vmatpush.msra.mxu0 %v930_v35  ;;  %1455 = vmatpush.msra.mxu1 %v206_v36  ;;  %v246_v35 = vld [vmem:[#allocation2 + $0x2f8] sm:$0xff] }
  0xf7   : > { %1475 = vmatpush.msra.mxu2 %v286_v37  ;;  %1495 = vmatpush.msra.mxu3 %v366_v38  ;;  %v326_v36 = vld [vmem:[#allocation2 + $0x578] sm:$0xff]  ;;  %v885_v38 = vld [vmem:[#allocation4 + $0xa70] sm:$0xff] }
  0xf8   : > { %1436 = vmatpush.msra.mxu0 %v925_v39  ;;  %1456 = vmatpush.msra.mxu1 %v201_v40  ;;  %v161_v39 = vld [vmem:[#allocation2 + $0x50] sm:$0xff] }
  0xf9   : > { %1476 = vmatpush.msra.mxu2 %v281_v41  ;;  %1496 = vmatpush.msra.mxu3 %v361_v42  ;;  %v241_v40 = vld [vmem:[#allocation2 + $0x2d0] sm:$0xff] }
  0xfa   : > { %1437 = vmatpush.msra.mxu0 %v920_v43  ;;  %1457 = vmatpush.msra.mxu1 %v196_v44  ;;  %v321_v42 = vld [vmem:[#allocation2 + $0x550] sm:$0xff]  ;;  %v880_v43 = vld [vmem:[#allocation4 + $0xa48] sm:$0xff] }
  0xfb   : > { %1477 = vmatpush.msra.mxu2 %v276_v45  ;;  %1497 = vmatpush.msra.mxu3 %v356_v46  ;;  %v156_v45 = vld [vmem:[#allocation2 + $0x28] sm:$0xff] }
  0xfc   : > { %1438 = vmatpush.msra.mxu0 %v915_v47  ;;  %1458 = vmatpush.msra.mxu1 %v191_v48  ;;  %v236_v46 = vld [vmem:[#allocation2 + $0x2a8] sm:$0xff]  ;;  %v875_v48 = vld [vmem:[#allocation4 + $0xa20] sm:$0xff] }
  0xfd   : > { %1478 = vmatpush.msra.mxu2 %v271_v49  ;;  %1498 = vmatpush.msra.mxu3 %v351_v50  ;;  %v316_v47 = vld [vmem:[#allocation2 + $0x528] sm:$0xff]  ;;  %v151_v50 = vld [vmem:[#allocation2] sm:$0xff] }
  0xfe   : > { %1439 = vmatpush.msra.mxu0 %v910_v52  ;;  %1459 = vmatpush.msra.mxu1 %v186_v53  ;;  %v231_v52 = vld [vmem:[#allocation2 + $0x280] sm:$0xff] }
  0xff   : > { %1479 = vmatpush.msra.mxu2 %v266_v54  ;;  %1499 = vmatpush.msra.mxu3 %v346_v55  ;;  %v311_v54 = vld [vmem:[#allocation2 + $0x500] sm:$0xff] }
 0x100   : > { %1440 = vmatpush.msra.mxu0 %v905_v57  ;;  %1460 = vmatpush.msra.mxu1 %v181_v58  ;;  %v466_v57 = vld [vmem:[#allocation2 + $0x9d8] sm:$0xff] }
 0x101   : > { %1480 = vmatpush.msra.mxu2 %v261_v59  ;;  %1500 = vmatpush.msra.mxu3 %v341_v60  ;;  %v546_v58 = vld [vmem:[#allocation2 + $0xc58] sm:$0xff]  ;;  %v227_v60 = vld [vmem:[#allocation2 + $0x260] sm:$0xff] }
 0x102   : > { %1441 = vmatpush.msra.mxu0 %v900_v62  ;;  %1461 = vmatpush.msra.mxu1 %v176_v63  ;;  %v307_v62 = vld [vmem:[#allocation2 + $0x4e0] sm:$0xff] }
 0x103   : > { %1481 = vmatpush.msra.mxu2 %v256_v25  ;;  %1501 = vmatpush.msra.mxu3 %v336_v26  ;;  %v461_v25 = vld [vmem:[#allocation2 + $0x9b0] sm:$0xff] }
 0x104   : > { %1442 = vmatpush.msra.mxu0 %v895_v27  ;;  %1462 = vmatpush.msra.mxu1 %v171_v28  ;;  %v1068_v37 = vpop.f32.mrf.mxu1  ;;  %v541_v27 = vld [vmem:[#allocation2 + $0xc30] sm:$0xff]  ;;  %v222_v28 = vld [vmem:[#allocation2 + $0x238] sm:$0xff] }
 0x105   : > { %1482 = vmatpush.msra.mxu2 %v251_v30  ;;  %1502 = vmatpush.msra.mxu3 %v331_v31  ;;  %v302_v30 = vld [vmem:[#allocation2 + $0x4b8] sm:$0xff]  ;;  %v456_v31 = vld [vmem:[#allocation2 + $0x988] sm:$0xff] }
 0x106   : > { %1387 = vmatmul.f32.vlgmr.msrb.gmra.mxu1 %v5134_v18  ;;  %1407 = vmatmul.f32.vlgmr.msrb.gmra.mxu2 %v5130_v17 }
 0x107   : > { %1443 = vmatpush.msra.mxu0 %v890_v32  ;;  %1463 = vmatpush.msra.mxu1 %v166_v33  ;;  %v1088_v41 = vpop.f32.mrf.mxu2  ;;  %v536_v32 = vld [vmem:[#allocation2 + $0xc08] sm:$0xff]  ;;  %v217_v33 = vld [vmem:[#allocation2 + $0x210] sm:$0xff] }
 0x108   : > { %1483 = vmatpush.msra.mxu2 %v246_v35  ;;  %1503 = vmatpush.msra.mxu3 %v326_v36  ;;  %v1089_v44 = vadd.f32 %v1088_v41, %v1068_v37  ;;  %v297_v35 = vld [vmem:[#allocation2 + $0x490] sm:$0xff]  ;;  %v451_v36 = vld [vmem:[#allocation2 + $0x960] sm:$0xff]  ;;  %v526_v41 = vld [vmem:[#allocation2 + $0xbb8] sm:$0xff] }
 0x109   : > { %1427 = vmatmul.f32.vlgmr.msrb.gmra.mxu3 %v5126_v16  ;;  %1444 = vmatpush.msra.mxu0 %v885_v38  ;;  %v531_v37 = vld [vmem:[#allocation2 + $0xbe0] sm:$0xff]  ;;  %v212_v38 = vld [vmem:[#allocation2 + $0x1e8] sm:$0xff] }
 0x10a   : > { %1464 = vmatpush.msra.mxu1 %v161_v39  ;;  %1484 = vmatpush.msra.mxu2 %v241_v40  ;;  %v1108_v49 = vpop.f32.mrf.mxu3  ;;  %v292_v39 = vld [vmem:[#allocation2 + $0x468] sm:$0xff]  ;;  %v446_v40 = vld [vmem:[#allocation2 + $0x938] sm:$0xff] }
 0x10b   : > { %1504 = vmatpush.msra.mxu3 %v321_v42  ;;  %1445 = vmatpush.msra.mxu0 %v880_v43  ;;  %v1109_v53 = vadd.f32 %v1108_v49, %v1089_v44  ;;  %v207_v42 = vld [vmem:[#allocation2 + $0x1c0] sm:$0xff]  ;;  %v441_v44 = vld [vmem:[#allocation2 + $0x910] sm:$0xff]  ;;  %v516_v49 = vld [vmem:[#allocation2 + $0xb68] sm:$0xff] }
 0x10c   : > { %1465 = vmatpush.msra.mxu1 %v156_v45  ;;  %1485 = vmatpush.msra.mxu2 %v236_v46  ;;  %v287_v43 = vld [vmem:[#allocation2 + $0x440] sm:$0xff]  ;;  %v521_v45 = vld [vmem:[#allocation2 + $0xb90] sm:$0xff]  ;;  %v202_v46 = vld [vmem:[#allocation2 + $0x198] sm:$0xff] }
 0x10d   : > { %1505 = vmatpush.msra.mxu3 %v316_v47  ;;  %1446 = vmatpush.msra.mxu0 %v875_v48  ;;  %v1128_v55 = vpop.f32.mrf.mxu0  ;;  %v282_v47 = vld [vmem:[#allocation2 + $0x418] sm:$0xff]  ;;  %v436_v48 = vld [vmem:[#allocation2 + $0x8e8] sm:$0xff] }
 0x10e   : > { %1466 = vmatpush.msra.mxu1 %v151_v50  ;;  %1486 = vmatpush.msra.mxu2 %v231_v52  ;;  %v1129_v59 = vadd.f32 %v1128_v55, %v1109_v53  ;;  %v197_v50 = vld [vmem:[#allocation2 + $0x170] sm:$0xff]  ;;  %v431_v53 = vld [vmem:[#allocation2 + $0x8c0] sm:$0xff]  ;;  %v192_v55 = vld [vmem:[#allocation2 + $0x148] sm:$0xff] }
 0x10f   : > { %1506 = vmatpush.msra.mxu3 %v311_v54  ;;  %1367 = vmatmul.f32.vlgmr.msrb.gmra.mxu0 %v5138_v19  ;;  %v1148_v63 = vpop.f32.mrf.mxu1  ;;  %v277_v52 = vld [vmem:[#allocation2 + $0x3f0] sm:$0xff]  ;;  %v511_v54 = vld [vmem:[#allocation2 + $0xb40] sm:$0xff] }
 0x110   : > { %1467 = vmatmul.f32.vlgmr.msra.gmra.mxu1 %v5158_v24  ;;  %1487 = vmatmul.f32.vlgmr.msra.gmra.mxu2 %v5154_v23  ;;  %v5403_v26 = vadd.f32 %v1148_v63, %v1129_v59  ;;  %v506_v59 = vld [vmem:[#allocation2 + $0xb18] sm:$0xff]  ;;  %v421_v63 = vld [vmem:[#allocation2 + $0x870] sm:$0xff] }
 0x111   : > { %1511 = vmatpush.msrb.mxu0 %v466_v57  ;;  %1531 = vmatpush.msrb.mxu1 %v546_v58  ;;  %v272_v57 = vld [vmem:[#allocation2 + $0x3c8] sm:$0xff]  ;;  %v426_v58 = vld [vmem:[#allocation2 + $0x898] sm:$0xff] }
 0x112   : > { %1551 = vmatpush.msrb.mxu2 %v227_v60  ;;  %1571 = vmatpush.msrb.mxu3 %v307_v62  ;;  %v187_v60 = vld [vmem:[#allocation2 + $0x120] sm:$0xff] }
 0x113   : > { %1507 = vmatmul.f32.vlgmr.msra.gmra.mxu3 %v5150_v22  ;;  %1512 = vmatpush.msrb.mxu0 %v461_v25  ;;  %v267_v62 = vld [vmem:[#allocation2 + $0x3a0] sm:$0xff]  ;;  %v501_v25 = vld [vmem:[#allocation2 + $0xaf0] sm:$0xff] }
 0x114   : > { %1532 = vmatpush.msrb.mxu1 %v541_v27  ;;  %1552 = vmatpush.msrb.mxu2 %v222_v28  ;;  %v182_v27 = vld [vmem:[#allocation2 + $0xf8] sm:$0xff] }
 0x115   : > { %1572 = vmatpush.msrb.mxu3 %v302_v30  ;;  %1513 = vmatpush.msrb.mxu0 %v456_v31  ;;  %v262_v28 = vld [vmem:[#allocation2 + $0x378] sm:$0xff]  ;;  %v416_v30 = vld [vmem:[#allocation2 + $0x848] sm:$0xff] }
 0x116   : > { %1533 = vmatpush.msrb.mxu1 %v536_v32  ;;  %1553 = vmatpush.msrb.mxu2 %v217_v33  ;;  %v496_v31 = vld [vmem:[#allocation2 + $0xac8] sm:$0xff]  ;;  %v177_v32 = vld [vmem:[#allocation2 + $0xd0] sm:$0xff] }
 0x117   : > { %1573 = vmatpush.msrb.mxu3 %v297_v35  ;;  %1514 = vmatpush.msrb.mxu0 %v451_v36  ;;  %v257_v33 = vld [vmem:[#allocation2 + $0x350] sm:$0xff]  ;;  %v411_v35 = vld [vmem:[#allocation2 + $0x820] sm:$0xff] }
 0x118   : > { %1534 = vmatpush.msrb.mxu1 %v531_v37  ;;  %1554 = vmatpush.msrb.mxu2 %v212_v38  ;;  %v491_v36 = vld [vmem:[#allocation2 + $0xaa0] sm:$0xff]  ;;  %v172_v37 = vld [vmem:[#allocation2 + $0xa8] sm:$0xff] }
 0x119   : > { %1574 = vmatpush.msrb.mxu3 %v292_v39  ;;  %1447 = vmatmul.f32.vlgmr.msra.gmra.mxu0 %v5122_v15  ;;  %v252_v38 = vld [vmem:[#allocation2 + $0x328] sm:$0xff]  ;;  %v406_v39 = vld [vmem:[#allocation2 + $0x7f8] sm:$0xff] }
 0x11a   : > { %1515 = vmatpush.msrb.mxu0 %v446_v40  ;;  %1535 = vmatpush.msrb.mxu1 %v526_v41  ;;  %v486_v40 = vld [vmem:[#allocation2 + $0xa78] sm:$0xff]  ;;  %v167_v41 = vld [vmem:[#allocation2 + $0x80] sm:$0xff] }
 0x11b   : > { %1555 = vmatpush.msrb.mxu2 %v207_v42  ;;  %1575 = vmatpush.msrb.mxu3 %v287_v43  ;;  %v247_v42 = vld [vmem:[#allocation2 + $0x300] sm:$0xff]  ;;  %v401_v43 = vld [vmem:[#allocation2 + $0x7d0] sm:$0xff] }
 0x11c   : > { %1516 = vmatpush.msrb.mxu0 %v441_v44  ;;  %1536 = vmatpush.msrb.mxu1 %v521_v45  ;;  %v481_v44 = vld [vmem:[#allocation2 + $0xa50] sm:$0xff]  ;;  %v162_v45 = vld [vmem:[#allocation2 + $0x58] sm:$0xff] }
 0x11d   : > { %1556 = vmatpush.msrb.mxu2 %v202_v46  ;;  %1576 = vmatpush.msrb.mxu3 %v282_v47  ;;  %v242_v46 = vld [vmem:[#allocation2 + $0x2d8] sm:$0xff] }
 0x11e   : > { %1517 = vmatpush.msrb.mxu0 %v436_v48  ;;  %1537 = vmatpush.msrb.mxu1 %v516_v49  ;;  %v396_v48 = vld [vmem:[#allocation2 + $0x7a8] sm:$0xff] }
 0x11f   : > { %1557 = vmatpush.msrb.mxu2 %v197_v50  ;;  %1577 = vmatpush.msrb.mxu3 %v277_v52  ;;  %v476_v49 = vld [vmem:[#allocation2 + $0xa28] sm:$0xff]  ;;  %v157_v50 = vld [vmem:[#allocation2 + $0x30] sm:$0xff] }
 0x120   : > { %1518 = vmatpush.msrb.mxu0 %v431_v53  ;;  %1538 = vmatpush.msrb.mxu1 %v511_v54  ;;  %v237_v52 = vld [vmem:[#allocation2 + $0x2b0] sm:$0xff]  ;;  %v391_v53 = vld [vmem:[#allocation2 + $0x780] sm:$0xff] }
 0x121   : > { %1558 = vmatpush.msrb.mxu2 %v192_v55  ;;  %1578 = vmatpush.msrb.mxu3 %v272_v57  ;;  %v471_v54 = vld [vmem:[#allocation2 + $0xa00] sm:$0xff]  ;;  %v152_v57 = vld [vmem:[#allocation2 + $0x8] sm:$0xff] }
 0x122   : > { %1519 = vmatpush.msrb.mxu0 %v426_v58  ;;  %1539 = vmatpush.msrb.mxu1 %v506_v59  ;;  %v232_v58 = vld [vmem:[#allocation2 + $0x288] sm:$0xff] }
 0x123   : > { %1559 = vmatpush.msrb.mxu2 %v187_v60  ;;  %1579 = vmatpush.msrb.mxu3 %v267_v62  ;;  %v387_v62 = vld [vmem:[#allocation2 + $0x760] sm:$0xff] }
 0x124   : > { %1520 = vmatpush.msrb.mxu0 %v421_v63  ;;  %1540 = vmatpush.msrb.mxu1 %v501_v25  ;;  %v467_v63 = vld [vmem:[#allocation2 + $0x9e0] sm:$0xff] }
 0x125   : > { %1560 = vmatpush.msrb.mxu2 %v182_v27  ;;  %1580 = vmatpush.msrb.mxu3 %v262_v28  ;;  %v547_v27 = vld [vmem:[#allocation2 + $0xc60] sm:$0xff]  ;;  %v228_v28 = vld [vmem:[#allocation2 + $0x268] sm:$0xff] }
 0x126   : > { %1521 = vmatpush.msrb.mxu0 %v416_v30  ;;  %1541 = vmatpush.msrb.mxu1 %v496_v31  ;;  %v382_v31 = vld [vmem:[#allocation2 + $0x738] sm:$0xff] }
 0x127   : > { %1561 = vmatpush.msrb.mxu2 %v177_v32  ;;  %1581 = vmatpush.msrb.mxu3 %v257_v33  ;;  %v462_v32 = vld [vmem:[#allocation2 + $0x9b8] sm:$0xff] }
 0x128   : > { %1522 = vmatpush.msrb.mxu0 %v411_v35  ;;  %1542 = vmatpush.msrb.mxu1 %v491_v36  ;;  %v542_v36 = vld [vmem:[#allocation2 + $0xc38] sm:$0xff] }
 0x129   : > { %1562 = vmatpush.msrb.mxu2 %v172_v37  ;;  %1582 = vmatpush.msrb.mxu3 %v252_v38  ;;  %v223_v37 = vld [vmem:[#allocation2 + $0x240] sm:$0xff]  ;;  %v377_v38 = vld [vmem:[#allocation2 + $0x710] sm:$0xff] }
 0x12a   : > { %1523 = vmatpush.msrb.mxu0 %v406_v39  ;;  %1543 = vmatpush.msrb.mxu1 %v486_v40  ;;  %v1168_v47 = vpop.f32.mrf.mxu2  ;;  %v457_v39 = vld [vmem:[#allocation2 + $0x990] sm:$0xff] }
 0x12b   : > { %1563 = vmatpush.msrb.mxu2 %v167_v41  ;;  %1583 = vmatpush.msrb.mxu3 %v247_v42  ;;  %v537_v41 = vld [vmem:[#allocation2 + $0xc10] sm:$0xff]  ;;  %v218_v42 = vld [vmem:[#allocation2 + $0x218] sm:$0xff] }
 0x12c   : > { %1524 = vmatpush.msrb.mxu0 %v401_v43  ;;  %1544 = vmatpush.msrb.mxu1 %v481_v44  ;;  %v372_v43 = vld [vmem:[#allocation2 + $0x6e8] sm:$0xff] }
 0x12d   : > { %1564 = vmatpush.msrb.mxu2 %v162_v45  ;;  %1584 = vmatpush.msrb.mxu3 %v242_v46  ;;  %v1188_v55 = vpop.f32.mrf.mxu3  ;;  %v452_v44 = vld [vmem:[#allocation2 + $0x968] sm:$0xff]  ;;  %v213_v46 = vld [vmem:[#allocation2 + $0x1f0] sm:$0xff] }
 0x12e   : > { %1525 = vmatpush.msrb.mxu0 %v396_v48  ;;  %1545 = vmatpush.msrb.mxu1 %v476_v49  ;;  %v1189_v59 = vadd.f32 %v1188_v55, %v1168_v47  ;;  %v532_v45 = vld [vmem:[#allocation2 + $0xbe8] sm:$0xff]  ;;  %v367_v47 = vld [vmem:[#allocation2 + $0x6c0] sm:$0xff] }
 0x12f   : > { %1565 = vmatpush.msrb.mxu2 %v157_v50  ;;  %1585 = vmatpush.msrb.mxu3 %v237_v52  ;;  %v1208_v60 = vpop.f32.mrf.mxu0  ;;  %v447_v48 = vld [vmem:[#allocation2 + $0x940] sm:$0xff]  ;;  %v208_v50 = vld [vmem:[#allocation2 + $0x1c8] sm:$0xff]  ;;  %v362_v52 = vld [vmem:[#allocation2 + $0x698] sm:$0xff] }
 0x130   : > { %1526 = vmatpush.msrb.mxu0 %v391_v53  ;;  %1546 = vmatpush.msrb.mxu1 %v471_v54  ;;  %v1209_v25 = vadd.f32 %v1208_v60, %v1189_v59  ;;  %v527_v49 = vld [vmem:[#allocation2 + $0xbc0] sm:$0xff]  ;;  %v442_v53 = vld [vmem:[#allocation2 + $0x918] sm:$0xff]  ;;  %v517_v59 = vld [vmem:[#allocation2 + $0xb70] sm:$0xff] }
 0x131   : > { %1566 = vmatpush.msrb.mxu2 %v152_v57  ;;  %1586 = vmatpush.msrb.mxu3 %v232_v58  ;;  %v522_v54 = vld [vmem:[#allocation2 + $0xb98] sm:$0xff]  ;;  %v203_v55 = vld [vmem:[#allocation2 + $0x1a0] sm:$0xff]  ;;  %v357_v57 = vld [vmem:[#allocation2 + $0x670] sm:$0xff] }
 0x132   : > { %1527 = vmatmul.f32.vlgmr.msrb.gmra.mxu0 %v5146_v21  ;;  %1567 = vmatmul.f32.vlgmr.msrb.gmra.mxu2 %v5158_v24  ;;  %v1228_v30 = vpop.f32.mrf.mxu1  ;;  %v437_v58 = vld [vmem:[#allocation2 + $0x8f0] sm:$0xff]  ;;  %v198_v60 = vld [vmem:[#allocation2 + $0x178] sm:$0xff] }
 0x133   : > { %1591 = vmatpush.msra.mxu0 %v387_v62  ;;  %1611 = vmatpush.msra.mxu1 %v467_v63  ;;  %v1229_v33 = vadd.f32 %v1228_v30, %v1209_v25  ;;  %v1248_v35 = vpop.f32.mrf.mxu2  ;;  %v352_v62 = vld [vmem:[#allocation2 + $0x648] sm:$0xff]  ;;  %v427_v30 = vld [vmem:[#allocation2 + $0x8a0] sm:$0xff] }
 0x134   : > { %1631 = vmatpush.msra.mxu2 %v547_v27  ;;  %1651 = vmatpush.msra.mxu3 %v228_v28  ;;  %v432_v63 = vld [vmem:[#allocation2 + $0x8c8] sm:$0xff]  ;;  %v193_v27 = vld [vmem:[#allocation2 + $0x150] sm:$0xff]  ;;  %v347_v28 = vld [vmem:[#allocation2 + $0x620] sm:$0xff] }
 0x135   : > { %1547 = vmatmul.f32.vlgmr.msrb.gmra.mxu1 %v5142_v20  ;;  %1587 = vmatmul.f32.vlgmr.msrb.gmra.mxu3 %v5154_v23  ;;  %v5411_v40 = vadd.f32 %v1248_v35, %v1229_v33  ;;  %v512_v25 = vld [vmem:[#allocation2 + $0xb48] sm:$0xff]  ;;  %v342_v33 = vld [vmem:[#allocation2 + $0x5f8] sm:$0xff] }
 0x136   : > { %1592 = vmatpush.msra.mxu0 %v382_v31  ;;  %1612 = vmatpush.msra.mxu1 %v462_v32  ;;  %v507_v31 = vld [vmem:[#allocation2 + $0xb20] sm:$0xff]  ;;  %v188_v32 = vld [vmem:[#allocation2 + $0x128] sm:$0xff]  ;;  %v422_v35 = vld [vmem:[#allocation2 + $0x878] sm:$0xff] }
 0x137   : > { %1632 = vmatpush.msra.mxu2 %v542_v36  ;;  %1652 = vmatpush.msra.mxu3 %v223_v37  ;;  %v502_v36 = vld [vmem:[#allocation2 + $0xaf8] sm:$0xff]  ;;  %v183_v37 = vld [vmem:[#allocation2 + $0x100] sm:$0xff] }
 0x138   : > { %1593 = vmatpush.msra.mxu0 %v377_v38  ;;  %1613 = vmatpush.msra.mxu1 %v457_v39  ;;  %v337_v38 = vld [vmem:[#allocation2 + $0x5d0] sm:$0xff] }
 0x139   : > { %1633 = vmatpush.msra.mxu2 %v537_v41  ;;  %1653 = vmatpush.msra.mxu3 %v218_v42  ;;  %v417_v39 = vld [vmem:[#allocation2 + $0x850] sm:$0xff]  ;;  %v178_v42 = vld [vmem:[#allocation2 + $0xd8] sm:$0xff] }
 0x13a   : > { %1594 = vmatpush.msra.mxu0 %v372_v43  ;;  %1614 = vmatpush.msra.mxu1 %v452_v44  ;;  %v497_v41 = vld [vmem:[#allocation2 + $0xad0] sm:$0xff]  ;;  %v332_v43 = vld [vmem:[#allocation2 + $0x5a8] sm:$0xff] }
 0x13b   : > { %1634 = vmatpush.msra.mxu2 %v532_v45  ;;  %1654 = vmatpush.msra.mxu3 %v213_v46  ;;  %v412_v44 = vld [vmem:[#allocation2 + $0x828] sm:$0xff]  ;;  %v173_v46 = vld [vmem:[#allocation2 + $0xb0] sm:$0xff] }
 0x13c   : > { %1595 = vmatpush.msra.mxu0 %v367_v47  ;;  %1615 = vmatpush.msra.mxu1 %v447_v48  ;;  %v492_v45 = vld [vmem:[#allocation2 + $0xaa8] sm:$0xff]  ;;  %v327_v47 = vld [vmem:[#allocation2 + $0x580] sm:$0xff] }
 0x13d   : > { %1635 = vmatpush.msra.mxu2 %v527_v49  ;;  %1655 = vmatpush.msra.mxu3 %v208_v50  ;;  %v407_v48 = vld [vmem:[#allocation2 + $0x800] sm:$0xff]  ;;  %v168_v50 = vld [vmem:[#allocation2 + $0x88] sm:$0xff] }
 0x13e   : > { %1596 = vmatpush.msra.mxu0 %v362_v52  ;;  %1616 = vmatpush.msra.mxu1 %v442_v53  ;;  %v487_v49 = vld [vmem:[#allocation2 + $0xa80] sm:$0xff]  ;;  %v322_v52 = vld [vmem:[#allocation2 + $0x558] sm:$0xff] }
 0x13f   : > { %1636 = vmatpush.msra.mxu2 %v522_v54  ;;  %1656 = vmatpush.msra.mxu3 %v203_v55  ;;  %v402_v53 = vld [vmem:[#allocation2 + $0x7d8] sm:$0xff]  ;;  %v163_v55 = vld [vmem:[#allocation2 + $0x60] sm:$0xff] }
 0x140   : > { %1597 = vmatpush.msra.mxu0 %v357_v57  ;;  %1617 = vmatpush.msra.mxu1 %v437_v58  ;;  %v482_v54 = vld [vmem:[#allocation2 + $0xa58] sm:$0xff]  ;;  %v317_v57 = vld [vmem:[#allocation2 + $0x530] sm:$0xff] }
 0x141   : > { %1637 = vmatpush.msra.mxu2 %v517_v59  ;;  %1657 = vmatpush.msra.mxu3 %v198_v60  ;;  %v397_v58 = vld [vmem:[#allocation2 + $0x7b0] sm:$0xff]  ;;  %v158_v60 = vld [vmem:[#allocation2 + $0x38] sm:$0xff] }
 0x142   : > { %1598 = vmatpush.msra.mxu0 %v352_v62  ;;  %1618 = vmatpush.msra.mxu1 %v432_v63  ;;  %v477_v59 = vld [vmem:[#allocation2 + $0xa30] sm:$0xff]  ;;  %v312_v62 = vld [vmem:[#allocation2 + $0x508] sm:$0xff] }
 0x143   : > { %1638 = vmatpush.msra.mxu2 %v512_v25  ;;  %1658 = vmatpush.msra.mxu3 %v193_v27  ;;  %v392_v63 = vld [vmem:[#allocation2 + $0x788] sm:$0xff] }
 0x144   : > { %1599 = vmatpush.msra.mxu0 %v347_v28  ;;  %1619 = vmatpush.msra.mxu1 %v427_v30  ;;  %v472_v27 = vld [vmem:[#allocation2 + $0xa08] sm:$0xff]  ;;  %v153_v28 = vld [vmem:[#allocation2 + $0x10] sm:$0xff] }
 0x145   : > { %1639 = vmatpush.msra.mxu2 %v507_v31  ;;  %1659 = vmatpush.msra.mxu3 %v188_v32  ;;  %v308_v31 = vld [vmem:[#allocation2 + $0x4e8] sm:$0xff] }
 0x146   : > { %1600 = vmatpush.msra.mxu0 %v342_v33  ;;  %1620 = vmatpush.msra.mxu1 %v422_v35  ;;  %v388_v33 = vld [vmem:[#allocation2 + $0x768] sm:$0xff] }
 0x147   : > { %1640 = vmatpush.msra.mxu2 %v502_v36  ;;  %1660 = vmatpush.msra.mxu3 %v183_v37  ;;  %v468_v35 = vld [vmem:[#allocation2 + $0x9e8] sm:$0xff] }
 0x148   : > { %1601 = vmatpush.msra.mxu0 %v337_v38  ;;  %1621 = vmatpush.msra.mxu1 %v417_v39  ;;  %v548_v36 = vld [vmem:[#allocation2 + $0xc68] sm:$0xff]  ;;  %v303_v38 = vld [vmem:[#allocation2 + $0x4c0] sm:$0xff] }
 0x149   : > { %1641 = vmatpush.msra.mxu2 %v497_v41  ;;  %1661 = vmatpush.msra.mxu3 %v178_v42  ;;  %v383_v39 = vld [vmem:[#allocation2 + $0x740] sm:$0xff] }
 0x14a   : > { %1602 = vmatpush.msra.mxu0 %v332_v43  ;;  %1622 = vmatpush.msra.mxu1 %v412_v44  ;;  %v463_v43 = vld [vmem:[#allocation2 + $0x9c0] sm:$0xff] }
 0x14b   : > { %1642 = vmatpush.msra.mxu2 %v492_v45  ;;  %1662 = vmatpush.msra.mxu3 %v173_v46  ;;  %v543_v44 = vld [vmem:[#allocation2 + $0xc40] sm:$0xff]  ;;  %v298_v45 = vld [vmem:[#allocation2 + $0x498] sm:$0xff] }
 0x14c   : > { %1603 = vmatpush.msra.mxu0 %v327_v47  ;;  %1623 = vmatpush.msra.mxu1 %v407_v48  ;;  %v378_v46 = vld [vmem:[#allocation2 + $0x718] sm:$0xff] }
 0x14d   : > { %1643 = vmatpush.msra.mxu2 %v487_v49  ;;  %1663 = vmatpush.msra.mxu3 %v168_v50  ;;  %v458_v48 = vld [vmem:[#allocation2 + $0x998] sm:$0xff] }
 0x14e   : > { %1604 = vmatpush.msra.mxu0 %v322_v52  ;;  %1624 = vmatpush.msra.mxu1 %v402_v53  ;;  %v538_v49 = vld [vmem:[#allocation2 + $0xc18] sm:$0xff]  ;;  %v293_v52 = vld [vmem:[#allocation2 + $0x470] sm:$0xff] }
 0x14f   : > { %1644 = vmatpush.msra.mxu2 %v482_v54  ;;  %1664 = vmatpush.msra.mxu3 %v163_v55  ;;  %v1268_v25 = vpop.f32.mrf.mxu3  ;;  %v373_v53 = vld [vmem:[#allocation2 + $0x6f0] sm:$0xff] }
 0x150   : > { %1605 = vmatpush.msra.mxu0 %v317_v57  ;;  %1625 = vmatpush.msra.mxu1 %v397_v58  ;;  %v453_v55 = vld [vmem:[#allocation2 + $0x970] sm:$0xff]  ;;  %v288_v58 = vld [vmem:[#allocation2 + $0x448] sm:$0xff] }
 0x151   : > { %1645 = vmatpush.msra.mxu2 %v477_v59  ;;  %1665 = vmatpush.msra.mxu3 %v158_v60  ;;  %v1288_v30 = vpop.f32.mrf.mxu0  ;;  %v533_v57 = vld [vmem:[#allocation2 + $0xbf0] sm:$0xff]  ;;  %v368_v59 = vld [vmem:[#allocation2 + $0x6c8] sm:$0xff] }
 0x152   : > { %1606 = vmatpush.msra.mxu0 %v312_v62  ;;  %1626 = vmatpush.msra.mxu1 %v392_v63  ;;  %v1289_v32 = vadd.f32 %v1288_v30, %v1268_v25  ;;  %v448_v60 = vld [vmem:[#allocation2 + $0x948] sm:$0xff]  ;;  %v283_v63 = vld [vmem:[#allocation2 + $0x420] sm:$0xff]  ;;  %v278_v30 = vld [vmem:[#allocation2 + $0x3f8] sm:$0xff] }
 0x153   : > { %1646 = vmatpush.msra.mxu2 %v472_v27  ;;  %1666 = vmatpush.msra.mxu3 %v153_v28  ;;  %v528_v62 = vld [vmem:[#allocation2 + $0xbc8] sm:$0xff]  ;;  %v363_v25 = vld [vmem:[#allocation2 + $0x6a0] sm:$0xff] }
 0x154   : > { %1607 = vmatmul.f32.vlgmr.msra.gmra.mxu0 %v5150_v22  ;;  %1647 = vmatmul.f32.vlgmr.msra.gmra.mxu2 %v5142_v20  ;;  %v1308_v37 = vpop.f32.mrf.mxu1  ;;  %v443_v27 = vld [vmem:[#allocation2 + $0x920] sm:$0xff] }
 0x155   : > { %1667 = vmatmul.f32.vlgmr.msra.gmra.mxu3 %v5158_v24  ;;  %1671 = vmatpush.msrb.mxu0 %v308_v31  ;;  %v1309_v41 = vadd.f32 %v1308_v37, %v1289_v32  ;;  %v1328_v42 = vpop.f32.mrf.mxu2  ;;  %v523_v28 = vld [vmem:[#allocation2 + $0xba0] sm:$0xff]  ;;  %v358_v31 = vld [vmem:[#allocation2 + $0x678] sm:$0xff]  ;;  %v433_v37 = vld [vmem:[#allocation2 + $0x8d0] sm:$0xff] }
 0x156   : > { %1691 = vmatpush.msrb.mxu1 %v388_v33  ;;  %1711 = vmatpush.msrb.mxu2 %v468_v35  ;;  %v438_v32 = vld [vmem:[#allocation2 + $0x8f8] sm:$0xff]  ;;  %v273_v35 = vld [vmem:[#allocation2 + $0x3d0] sm:$0xff] }
 0x157   : > { %1731 = vmatpush.msrb.mxu3 %v548_v36  ;;  %1627 = vmatmul.f32.vlgmr.msra.gmra.mxu1 %v5146_v21  ;;  %v1329_v47 = vadd.f32 %v1328_v42, %v1309_v41  ;;  %v518_v33 = vld [vmem:[#allocation2 + $0xb78] sm:$0xff]  ;;  %v353_v36 = vld [vmem:[#allocation2 + $0x650] sm:$0xff]  ;;  %v348_v41 = vld [vmem:[#allocation2 + $0x628] sm:$0xff] }
 0x158   : > { %1672 = vmatpush.msrb.mxu0 %v303_v38  ;;  %1692 = vmatpush.msrb.mxu1 %v383_v39  ;;  %v1348_v50 = vpop.f32.mrf.mxu3  ;;  %v513_v38 = vld [vmem:[#allocation2 + $0xb50] sm:$0xff]  ;;  %v268_v39 = vld [vmem:[#allocation2 + $0x3a8] sm:$0xff] }
 0x159   : > { %1712 = vmatpush.msrb.mxu2 %v463_v43  ;;  %1732 = vmatpush.msrb.mxu3 %v543_v44  ;;  %v5417_v54 = vadd.f32 %v1348_v50, %v1329_v47  ;;  %v428_v42 = vld [vmem:[#allocation2 + $0x8a8] sm:$0xff]  ;;  %v263_v44 = vld [vmem:[#allocation2 + $0x380] sm:$0xff]  ;;  %v418_v50 = vld [vmem:[#allocation2 + $0x858] sm:$0xff] }
 0x15a   : > { %1673 = vmatpush.msrb.mxu0 %v298_v45  ;;  %1693 = vmatpush.msrb.mxu1 %v378_v46  ;;  %v508_v43 = vld [vmem:[#allocation2 + $0xb28] sm:$0xff]  ;;  %v343_v45 = vld [vmem:[#allocation2 + $0x600] sm:$0xff] }
 0x15b   : > { %1713 = vmatpush.msrb.mxu2 %v458_v48  ;;  %1733 = vmatpush.msrb.mxu3 %v538_v49  ;;  %v423_v46 = vld [vmem:[#allocation2 + $0x880] sm:$0xff]  ;;  %v258_v48 = vld [vmem:[#allocation2 + $0x358] sm:$0xff] }
 0x15c   : > { %1674 = vmatpush.msrb.mxu0 %v293_v52  ;;  %1694 = vmatpush.msrb.mxu1 %v373_v53  ;;  %v503_v47 = vld [vmem:[#allocation2 + $0xb00] sm:$0xff]  ;;  %v338_v49 = vld [vmem:[#allocation2 + $0x5d8] sm:$0xff]  ;;  %v253_v53 = vld [vmem:[#allocation2 + $0x330] sm:$0xff] }
 0x15d   : > { %1714 = vmatpush.msrb.mxu2 %v453_v55  ;;  %1734 = vmatpush.msrb.mxu3 %v533_v57  ;;  %v498_v52 = vld [vmem:[#allocation2 + $0xad8] sm:$0xff]  ;;  %v333_v55 = vld [vmem:[#allocation2 + $0x5b0] sm:$0xff] }
 0x15e   : > { %1675 = vmatpush.msrb.mxu0 %v288_v58  ;;  %1695 = vmatpush.msrb.mxu1 %v368_v59  ;;  %v413_v57 = vld [vmem:[#allocation2 + $0x830] sm:$0xff]  ;;  %v248_v59 = vld [vmem:[#allocation2 + $0x308] sm:$0xff] }
 0x15f   : > { %1715 = vmatpush.msrb.mxu2 %v448_v60  ;;  %1735 = vmatpush.msrb.mxu3 %v528_v62  ;;  %v493_v58 = vld [vmem:[#allocation2 + $0xab0] sm:$0xff]  ;;  %v328_v60 = vld [vmem:[#allocation2 + $0x588] sm:$0xff] }
 0x160   : > { %1676 = vmatpush.msrb.mxu0 %v283_v63  ;;  %1696 = vmatpush.msrb.mxu1 %v363_v25  ;;  %v408_v62 = vld [vmem:[#allocation2 + $0x808] sm:$0xff]  ;;  %v243_v25 = vld [vmem:[#allocation2 + $0x2e0] sm:$0xff] }
 0x161   : > { %1716 = vmatpush.msrb.mxu2 %v443_v27  ;;  %1736 = vmatpush.msrb.mxu3 %v523_v28  ;;  %v488_v63 = vld [vmem:[#allocation2 + $0xa88] sm:$0xff]  ;;  %v323_v27 = vld [vmem:[#allocation2 + $0x560] sm:$0xff] }
 0x162   : > { %1677 = vmatpush.msrb.mxu0 %v278_v30  ;;  %1697 = vmatpush.msrb.mxu1 %v358_v31  ;;  %v403_v28 = vld [vmem:[#allocation2 + $0x7e0] sm:$0xff]  ;;  %v238_v31 = vld [vmem:[#allocation2 + $0x2b8] sm:$0xff] }
 0x163   : > { %1717 = vmatpush.msrb.mxu2 %v438_v32  ;;  %1737 = vmatpush.msrb.mxu3 %v518_v33  ;;  %v483_v30 = vld [vmem:[#allocation2 + $0xa60] sm:$0xff]  ;;  %v318_v32 = vld [vmem:[#allocation2 + $0x538] sm:$0xff] }
 0x164   : > { %1678 = vmatpush.msrb.mxu0 %v273_v35  ;;  %1698 = vmatpush.msrb.mxu1 %v353_v36  ;;  %v398_v33 = vld [vmem:[#allocation2 + $0x7b8] sm:$0xff]  ;;  %v233_v36 = vld [vmem:[#allocation2 + $0x290] sm:$0xff] }
 0x165   : > { %1718 = vmatpush.msrb.mxu2 %v433_v37  ;;  %1738 = vmatpush.msrb.mxu3 %v513_v38  ;;  %v478_v35 = vld [vmem:[#allocation2 + $0xa38] sm:$0xff]  ;;  %v313_v37 = vld [vmem:[#allocation2 + $0x510] sm:$0xff] }
 0x166   : > { %1679 = vmatpush.msrb.mxu0 %v268_v39  ;;  %1699 = vmatpush.msrb.mxu1 %v348_v41  ;;  %v393_v38 = vld [vmem:[#allocation2 + $0x790] sm:$0xff] }
 0x167   : > { %1719 = vmatpush.msrb.mxu2 %v428_v42  ;;  %1739 = vmatpush.msrb.mxu3 %v508_v43  ;;  %v473_v39 = vld [vmem:[#allocation2 + $0xa10] sm:$0xff] }
 0x168   : > { %1680 = vmatpush.msrb.mxu0 %v263_v44  ;;  %1700 = vmatpush.msrb.mxu1 %v343_v45  ;;  %v229_v41 = vld [vmem:[#allocation2 + $0x270] sm:$0xff]  ;;  %v224_v45 = vld [vmem:[#allocation2 + $0x248] sm:$0xff] }
 0x169   : > { %1720 = vmatpush.msrb.mxu2 %v423_v46  ;;  %1740 = vmatpush.msrb.mxu3 %v503_v47  ;;  %v309_v42 = vld [vmem:[#allocation2 + $0x4f0] sm:$0xff]  ;;  %v304_v46 = vld [vmem:[#allocation2 + $0x4c8] sm:$0xff] }
 0x16a   : > { %1681 = vmatpush.msrb.mxu0 %v258_v48  ;;  %1701 = vmatpush.msrb.mxu1 %v338_v49  ;;  %v389_v43 = vld [vmem:[#allocation2 + $0x770] sm:$0xff]  ;;  %v384_v47 = vld [vmem:[#allocation2 + $0x748] sm:$0xff]  ;;  %v219_v49 = vld [vmem:[#allocation2 + $0x220] sm:$0xff] }
 0x16b   : > { %1721 = vmatpush.msrb.mxu2 %v418_v50  ;;  %1741 = vmatpush.msrb.mxu3 %v498_v52  ;;  %v469_v44 = vld [vmem:[#allocation2 + $0x9f0] sm:$0xff]  ;;  %v464_v48 = vld [vmem:[#allocation2 + $0x9c8] sm:$0xff]  ;;  %v299_v50 = vld [vmem:[#allocation2 + $0x4a0] sm:$0xff] }
 0x16c   : > { %1682 = vmatpush.msrb.mxu0 %v253_v53  ;;  %1702 = vmatpush.msrb.mxu1 %v333_v55  ;;  %v379_v52 = vld [vmem:[#allocation2 + $0x720] sm:$0xff]  ;;  %v214_v55 = vld [vmem:[#allocation2 + $0x1f8] sm:$0xff] }
 0x16d   : > { %1722 = vmatpush.msrb.mxu2 %v413_v57  ;;  %1742 = vmatpush.msrb.mxu3 %v493_v58  ;;  %v459_v53 = vld [vmem:[#allocation2 + $0x9a0] sm:$0xff]  ;;  %v294_v57 = vld [vmem:[#allocation2 + $0x478] sm:$0xff] }
 0x16e   : > { %1683 = vmatpush.msrb.mxu0 %v248_v59  ;;  %1703 = vmatpush.msrb.mxu1 %v328_v60  ;;  %v374_v58 = vld [vmem:[#allocation2 + $0x6f8] sm:$0xff]  ;;  %v209_v60 = vld [vmem:[#allocation2 + $0x1d0] sm:$0xff] }
 0x16f   : > { %1723 = vmatpush.msrb.mxu2 %v408_v62  ;;  %1743 = vmatpush.msrb.mxu3 %v488_v63  ;;  %v454_v59 = vld [vmem:[#allocation2 + $0x978] sm:$0xff]  ;;  %v289_v62 = vld [vmem:[#allocation2 + $0x450] sm:$0xff] }
 0x170   : > { %1684 = vmatpush.msrb.mxu0 %v243_v25  ;;  %1704 = vmatpush.msrb.mxu1 %v323_v27  ;;  %v369_v63 = vld [vmem:[#allocation2 + $0x6d0] sm:$0xff]  ;;  %v204_v27 = vld [vmem:[#allocation2 + $0x1a8] sm:$0xff] }
 0x171   : > { %1724 = vmatpush.msrb.mxu2 %v403_v28  ;;  %1744 = vmatpush.msrb.mxu3 %v483_v30  ;;  %v449_v25 = vld [vmem:[#allocation2 + $0x950] sm:$0xff]  ;;  %v284_v28 = vld [vmem:[#allocation2 + $0x428] sm:$0xff]  ;;  %v989_v30 = vadd.f32 %v5389_v56, %v5387_v51  ;;  %v354_v51 = vld [vmem:[#allocation2 + $0x658] sm:$0xff] }
 0x172   : > { %1685 = vmatpush.msrb.mxu0 %v238_v31  ;;  %1705 = vmatpush.msrb.mxu1 %v318_v32  ;;  %v364_v31 = vld [vmem:[#allocation2 + $0x6a8] sm:$0xff]  ;;  %v434_v56 = vld [vmem:[#allocation2 + $0x8d8] sm:$0xff] }
 0x173   : > { %1725 = vmatpush.msrb.mxu2 %v398_v33  ;;  %1745 = vmatpush.msrb.mxu3 %v478_v35  ;;  %v444_v32 = vld [vmem:[#allocation2 + $0x928] sm:$0xff]  ;;  %v199_v33 = vld [vmem:[#allocation2 + $0x180] sm:$0xff] }
 0x174   : > { %1686 = vmatpush.msrb.mxu0 %v233_v36  ;;  %1706 = vmatpush.msrb.mxu1 %v313_v37  ;;  %v279_v35 = vld [vmem:[#allocation2 + $0x400] sm:$0xff] }
 0x175   : > { %1726 = vmatpush.msrb.mxu2 %v393_v38  ;;  %1746 = vmatpush.msrb.mxu3 %v473_v39  ;;  %v359_v36 = vld [vmem:[#allocation2 + $0x680] sm:$0xff]  ;;  %v194_v38 = vld [vmem:[#allocation2 + $0x158] sm:$0xff] }
 0x176   : > { %1687 = vmatmul.f32.vlgmr.msrb.gmra.mxu0 %v5154_v23  ;;  %1727 = vmatmul.f32.vlgmr.msrb.gmra.mxu2 %v5146_v21  ;;  %v439_v37 = vld [vmem:[#allocation2 + $0x900] sm:$0xff]  ;;  %v274_v39 = vld [vmem:[#allocation2 + $0x3d8] sm:$0xff] }
 0x177   : > { %1751 = vmatpush.msra.mxu0 %v229_v41  ;;  %1771 = vmatpush.msra.mxu1 %v309_v42  ;;  %v1009_v42 = vadd.f32 %v5391_v61, %v989_v30  ;;  %v344_v61 = vld [vmem:[#allocation2 + $0x608] sm:$0xff]  ;;  %v249_v30 = vld [vmem:[#allocation2 + $0x310] sm:$0xff] }
 0x178   : > { %1791 = vmatpush.msra.mxu2 %v389_v43  ;;  %1811 = vmatpush.msra.mxu3 %v469_v44  ;;  %v189_v43 = vld [vmem:[#allocation2 + $0x130] sm:$0xff] }
 0x179   : > { %1707 = vmatmul.f32.vlgmr.msrb.gmra.mxu1 %v5150_v22  ;;  %1747 = vmatmul.f32.vlgmr.msrb.gmra.mxu3 %v5142_v20  ;;  %v269_v44 = vld [vmem:[#allocation2 + $0x3b0] sm:$0xff] }
 0x17a   : > { %1752 = vmatpush.msra.mxu0 %v224_v45  ;;  %1772 = vmatpush.msra.mxu1 %v304_v46  ;;  %v349_v45 = vld [vmem:[#allocation2 + $0x630] sm:$0xff] }
 0x17b   : > { %1792 = vmatpush.msra.mxu2 %v384_v47  ;;  %1812 = vmatpush.msra.mxu3 %v464_v48  ;;  %v429_v46 = vld [vmem:[#allocation2 + $0x8b0] sm:$0xff]  ;;  %v184_v47 = vld [vmem:[#allocation2 + $0x108] sm:$0xff] }
 0x17c   : > { %1753 = vmatpush.msra.mxu0 %v219_v49  ;;  %1773 = vmatpush.msra.mxu1 %v299_v50  ;;  %v264_v48 = vld [vmem:[#allocation2 + $0x388] sm:$0xff]  ;;  %v1029_v49 = vadd.f32 %v5393_v29, %v1009_v42  ;;  %v334_v29 = vld [vmem:[#allocation2 + $0x5b8] sm:$0xff] }
 0x17d   : > { %1793 = vmatpush.msra.mxu2 %v379_v52  ;;  %1813 = vmatpush.msra.mxu3 %v459_v53  ;;  %v424_v50 = vld [vmem:[#allocation2 + $0x888] sm:$0xff]  ;;  %v179_v52 = vld [vmem:[#allocation2 + $0xe0] sm:$0xff] }
 0x17e   : > { %1754 = vmatpush.msra.mxu0 %v214_v55  ;;  %1774 = vmatpush.msra.mxu1 %v294_v57  ;;  %v259_v53 = vld [vmem:[#allocation2 + $0x360] sm:$0xff]  ;;  %v404_v42 = vld [vmem:[#allocation2 + $0x7e8] sm:$0xff] }
 0x17f   : > { %1794 = vmatpush.msra.mxu2 %v374_v58  ;;  %1814 = vmatpush.msra.mxu3 %v454_v59  ;;  %v339_v57 = vld [vmem:[#allocation2 + $0x5e0] sm:$0xff]  ;;  %v174_v59 = vld [vmem:[#allocation2 + $0xb8] sm:$0xff] }
 0x180   : > { %1755 = vmatpush.msra.mxu0 %v209_v60  ;;  %1775 = vmatpush.msra.mxu1 %v289_v62  ;;  %v419_v58 = vld [vmem:[#allocation2 + $0x860] sm:$0xff]  ;;  %v254_v60 = vld [vmem:[#allocation2 + $0x338] sm:$0xff]  ;;  %v1049_v62 = vadd.f32 %v5395_v34, %v1029_v49  ;;  %v164_v34 = vld [vmem:[#allocation2 + $0x68] sm:$0xff] }
 0x181   : > { %1795 = vmatpush.msra.mxu2 %v369_v63  ;;  %1815 = vmatpush.msra.mxu3 %v449_v25  ;;  %v414_v63 = vld [vmem:[#allocation2 + $0x838] sm:$0xff] }
 0x182   : > { %1756 = vmatpush.msra.mxu0 %v204_v27  ;;  %1776 = vmatpush.msra.mxu1 %v284_v28  ;;  %v169_v28 = vld [vmem:[#allocation2 + $0x90] sm:$0xff]  ;;  %v394_v49 = vld [vmem:[#allocation2 + $0x798] sm:$0xff] }
 0x183   : > { %1796 = vmatpush.msra.mxu2 %v364_v31  ;;  %1816 = vmatpush.msra.mxu3 %v444_v32  ;;  %v1388_v41 = vpop.f32.mrf.mxu1 }
 0x184   : > { %1757 = vmatpush.msra.mxu0 %v199_v33  ;;  %1777 = vmatpush.msra.mxu1 %v279_v35  ;;  %v329_v33 = vld [vmem:[#allocation2 + $0x590] sm:$0xff] }
 0x185   : > { %1797 = vmatpush.msra.mxu2 %v359_v36  ;;  %1817 = vmatpush.msra.mxu3 %v439_v37  ;;  %v409_v35 = vld [vmem:[#allocation2 + $0x810] sm:$0xff]  ;;  %v244_v37 = vld [vmem:[#allocation2 + $0x2e8] sm:$0xff] }
 0x186   : > { %1758 = vmatpush.msra.mxu0 %v194_v38  ;;  %1778 = vmatpush.msra.mxu1 %v274_v39  ;;  %v324_v39 = vld [vmem:[#allocation2 + $0x568] sm:$0xff] }
 0x187   : > { %1798 = vmatpush.msra.mxu2 %v354_v51  ;;  %1818 = vmatpush.msra.mxu3 %v434_v56  ;;  %v159_v51 = vld [vmem:[#allocation2 + $0x40] sm:$0xff] }
 0x188   : > { %1759 = vmatpush.msra.mxu0 %v189_v43  ;;  %1779 = vmatpush.msra.mxu1 %v269_v44  ;;  %v239_v56 = vld [vmem:[#allocation2 + $0x2c0] sm:$0xff] }
 0x189   : > { %1799 = vmatpush.msra.mxu2 %v349_v45  ;;  %1819 = vmatpush.msra.mxu3 %v429_v46  ;;  %v1408_v55 = vpop.f32.mrf.mxu2  ;;  %v319_v43 = vld [vmem:[#allocation2 + $0x540] sm:$0xff]  ;;  %v154_v45 = vld [vmem:[#allocation2 + $0x18] sm:$0xff] }
 0x18a   : > { %1760 = vmatpush.msra.mxu0 %v184_v47  ;;  %1780 = vmatpush.msra.mxu1 %v264_v48  ;;  %v399_v44 = vld [vmem:[#allocation2 + $0x7c0] sm:$0xff]  ;;  %v234_v46 = vld [vmem:[#allocation2 + $0x298] sm:$0xff] }
 0x18b   : > { %1800 = vmatpush.msra.mxu2 %v344_v61  ;;  %1820 = vmatpush.msra.mxu3 %v424_v50  ;;  %v314_v48 = vld [vmem:[#allocation2 + $0x518] sm:$0xff]  ;;  %v549_v50 = vld [vmem:[#allocation2 + $0xc70] sm:$0xff] }
 0x18c   : > { %1761 = vmatpush.msra.mxu0 %v179_v52  ;;  %1781 = vmatpush.msra.mxu1 %v259_v53  ;;  %v1368_v25 = vpop.f32.mrf.mxu0  ;;  %v1428_v27 = vpop.f32.mrf.mxu3  ;;  %v230_v52 = vld [vmem:[#allocation2 + $0x278] sm:$0xff] }
 0x18d   : > { %1801 = vmatpush.msra.mxu2 %v339_v57  ;;  %1821 = vmatpush.msra.mxu3 %v419_v58  ;;  %v1389_v31 = vadd.f32 %v1388_v41, %v1368_v25  ;;  %v1468_v32 = vpop.f32.mrf.mxu1  ;;  %v310_v57 = vld [vmem:[#allocation2 + $0x4f8] sm:$0xff]  ;;  %v385_v25 = vld [vmem:[#allocation2 + $0x750] sm:$0xff] }
 0x18e   : > { %1762 = vmatpush.msra.mxu0 %v174_v59  ;;  %1782 = vmatpush.msra.mxu1 %v254_v60  ;;  %v1469_v36 = vadd.f32 %v1468_v32, %v1049_v62  ;;  %v390_v58 = vld [vmem:[#allocation2 + $0x778] sm:$0xff]  ;;  %v544_v62 = vld [vmem:[#allocation2 + $0xc48] sm:$0xff] }
 0x18f   : > { %1802 = vmatpush.msra.mxu2 %v334_v29  ;;  %1822 = vmatpush.msra.mxu3 %v414_v63  ;;  %v1409_v38 = vadd.f32 %v1408_v55, %v1389_v31  ;;  %v225_v29 = vld [vmem:[#allocation2 + $0x250] sm:$0xff]  ;;  %v380_v31 = vld [vmem:[#allocation2 + $0x728] sm:$0xff]  ;;  %v534_v32 = vld [vmem:[#allocation2 + $0xbf8] sm:$0xff] }
 0x190   : > { %1763 = vmatpush.msra.mxu0 %v169_v28  ;;  %1783 = vmatpush.msra.mxu1 %v249_v30  ;;  %v305_v63 = vld [vmem:[#allocation2 + $0x4d0] sm:$0xff]  ;;  %v220_v28 = vld [vmem:[#allocation2 + $0x228] sm:$0xff] }
 0x191   : > { %1803 = vmatpush.msra.mxu2 %v329_v33  ;;  %1823 = vmatpush.msra.mxu3 %v409_v35  ;;  %v1429_v41 = vadd.f32 %v1428_v27, %v1409_v38  ;;  %v539_v27 = vld [vmem:[#allocation2 + $0xc20] sm:$0xff]  ;;  %v300_v30 = vld [vmem:[#allocation2 + $0x4a8] sm:$0xff]  ;;  %v290_v38 = vld [vmem:[#allocation2 + $0x458] sm:$0xff] }
 0x192   : > { %1764 = vmatpush.msra.mxu0 %v164_v34  ;;  %1784 = vmatpush.msra.mxu1 %v244_v37  ;;  %v215_v33 = vld [vmem:[#allocation2 + $0x200] sm:$0xff]  ;;  %v529_v34 = vld [vmem:[#allocation2 + $0xbd0] sm:$0xff]  ;;  %v210_v37 = vld [vmem:[#allocation2 + $0x1d8] sm:$0xff] }
 0x193   : > { %1804 = vmatpush.msra.mxu2 %v324_v39  ;;  %1824 = vmatpush.msra.mxu3 %v404_v42  ;;  %v1488_v47 = vpop.f32.mrf.mxu2  ;;  %v295_v35 = vld [vmem:[#allocation2 + $0x480] sm:$0xff]  ;;  %v370_v39 = vld [vmem:[#allocation2 + $0x6d8] sm:$0xff]  ;;  %v524_v42 = vld [vmem:[#allocation2 + $0xba8] sm:$0xff] }
 0x194   : > { %1765 = vmatpush.msra.mxu0 %v159_v51  ;;  %1785 = vmatpush.msra.mxu1 %v239_v56  ;;  %v1489_v61 = vadd.f32 %v1488_v47, %v1469_v36  ;;  %v375_v36 = vld [vmem:[#allocation2 + $0x700] sm:$0xff]  ;;  %v205_v51 = vld [vmem:[#allocation2 + $0x1b0] sm:$0xff]  ;;  %v514_v47 = vld [vmem:[#allocation2 + $0xb58] sm:$0xff] }
 0x195   : > { %1805 = vmatpush.msra.mxu2 %v319_v43  ;;  %1825 = vmatpush.msra.mxu3 %v399_v44  ;;  %v285_v56 = vld [vmem:[#allocation2 + $0x430] sm:$0xff]  ;;  %v519_v43 = vld [vmem:[#allocation2 + $0xb80] sm:$0xff]  ;;  %v200_v44 = vld [vmem:[#allocation2 + $0x188] sm:$0xff] }
 0x196   : > { %1766 = vmatpush.msra.mxu0 %v154_v45  ;;  %1786 = vmatpush.msra.mxu1 %v234_v46  ;;  %v1448_v53 = vpop.f32.mrf.mxu0  ;;  %v1508_v55 = vpop.f32.mrf.mxu3  ;;  %v280_v45 = vld [vmem:[#allocation2 + $0x408] sm:$0xff] }
 0x197   : > { %1806 = vmatpush.msra.mxu2 %v314_v48  ;;  %1826 = vmatpush.msra.mxu3 %v394_v49  ;;  %v5428_v59 = vadd.f32 %v1448_v53, %v1429_v41  ;;  %v5430_v60 = vadd.f32 %v1508_v55, %v1489_v61  ;;  %v365_v41 = vld [vmem:[#allocation2 + $0x6b0] sm:$0xff]  ;;  %v360_v46 = vld [vmem:[#allocation2 + $0x688] sm:$0xff]  ;;  %v195_v48 = vld [vmem:[#allocation2 + $0x160] sm:$0xff] }
 0x198   : > { %1767 = vmatmul.f32.vlgmr.msra.gmra.mxu0 %v5158_v24  ;;  %1807 = vmatmul.f32.vlgmr.msra.gmra.mxu2 %v5150_v22  ;;  %v275_v49 = vld [vmem:[#allocation2 + $0x3e0] sm:$0xff]  ;;  %v270_v53 = vld [vmem:[#allocation2 + $0x3b8] sm:$0xff] }
 0x199   : > { %1831 = vmatpush.msrb.mxu0 %v549_v50  ;;  %1851 = vmatpush.msrb.mxu1 %v230_v52  ;;  %v355_v61 = vld [vmem:[#allocation2 + $0x660] sm:$0xff]  ;;  %v509_v50 = vld [vmem:[#allocation2 + $0xb30] sm:$0xff]  ;;  %v190_v52 = vld [vmem:[#allocation2 + $0x138] sm:$0xff] }
 0x19a   : > { %1871 = vmatpush.msrb.mxu2 %v310_v57  ;;  %1891 = vmatpush.msrb.mxu3 %v390_v58  ;;  %v350_v55 = vld [vmem:[#allocation2 + $0x638] sm:$0xff]  ;;  %v504_v57 = vld [vmem:[#allocation2 + $0xb08] sm:$0xff]  ;;  %v185_v58 = vld [vmem:[#allocation2 + $0x110] sm:$0xff] }
 0x19b   : > { %1787 = vmatmul.f32.vlgmr.msra.gmra.mxu1 %v5154_v23  ;;  %1827 = vmatmul.f32.vlgmr.msra.gmra.mxu3 %v5146_v21 }
 0x19c   : > { %1832 = vmatpush.msrb.mxu0 %v544_v62  ;;  %1852 = vmatpush.msrb.mxu1 %v225_v29  ;;  %v265_v62 = vld [vmem:[#allocation2 + $0x390] sm:$0xff] }
 0x19d   : > { %1872 = vmatpush.msrb.mxu2 %v305_v63  ;;  %1892 = vmatpush.msrb.mxu3 %v385_v25  ;;  %v345_v29 = vld [vmem:[#allocation2 + $0x610] sm:$0xff]  ;;  %v499_v63 = vld [vmem:[#allocation2 + $0xae0] sm:$0xff]  ;;  %v180_v25 = vld [vmem:[#allocation2 + $0xe8] sm:$0xff] }
 0x19e   : > { %1833 = vmatpush.msrb.mxu0 %v539_v27  ;;  %1853 = vmatpush.msrb.mxu1 %v220_v28  ;;  %v260_v27 = vld [vmem:[#allocation2 + $0x368] sm:$0xff] }
 0x19f   : > { %1873 = vmatpush.msrb.mxu2 %v300_v30  ;;  %1893 = vmatpush.msrb.mxu3 %v380_v31  ;;  %v340_v28 = vld [vmem:[#allocation2 + $0x5e8] sm:$0xff]  ;;  %v494_v30 = vld [vmem:[#allocation2 + $0xab8] sm:$0xff]  ;;  %v175_v31 = vld [vmem:[#allocation2 + $0xc0] sm:$0xff] }
 0x1a0   : > { %1834 = vmatpush.msrb.mxu0 %v534_v32  ;;  %1854 = vmatpush.msrb.mxu1 %v215_v33  ;;  %v255_v32 = vld [vmem:[#allocation2 + $0x340] sm:$0xff] }
 0x1a1   : > { %1874 = vmatpush.msrb.mxu2 %v295_v35  ;;  %1894 = vmatpush.msrb.mxu3 %v375_v36  ;;  %v335_v33 = vld [vmem:[#allocation2 + $0x5c0] sm:$0xff]  ;;  %v489_v35 = vld [vmem:[#allocation2 + $0xa90] sm:$0xff]  ;;  %v170_v36 = vld [vmem:[#allocation2 + $0x98] sm:$0xff] }
 0x1a2   : > { %1835 = vmatpush.msrb.mxu0 %v529_v34  ;;  %1855 = vmatpush.msrb.mxu1 %v210_v37  ;;  %v250_v37 = vld [vmem:[#allocation2 + $0x318] sm:$0xff] }
 0x1a3   : > { %1875 = vmatpush.msrb.mxu2 %v290_v38  ;;  %1895 = vmatpush.msrb.mxu3 %v370_v39  ;;  %v330_v38 = vld [vmem:[#allocation2 + $0x598] sm:$0xff] }
 0x1a4   : > { %1836 = vmatpush.msrb.mxu0 %v524_v42  ;;  %1856 = vmatpush.msrb.mxu1 %v205_v51  ;;  %v484_v42 = vld [vmem:[#allocation2 + $0xa68] sm:$0xff]  ;;  %v165_v51 = vld [vmem:[#allocation2 + $0x70] sm:$0xff] }
 0x1a5   : > { %1876 = vmatpush.msrb.mxu2 %v285_v56  ;;  %1896 = vmatpush.msrb.mxu3 %v365_v41  ;;  %v245_v56 = vld [vmem:[#allocation2 + $0x2f0] sm:$0xff] }
 0x1a6   : > { %1837 = vmatpush.msrb.mxu0 %v519_v43  ;;  %1857 = vmatpush.msrb.mxu1 %v200_v44  ;;  %v325_v41 = vld [vmem:[#allocation2 + $0x570] sm:$0xff]  ;;  %v479_v44 = vld [vmem:[#allocation2 + $0xa40] sm:$0xff] }
 0x1a7   : > { %1877 = vmatpush.msrb.mxu2 %v280_v45  ;;  %1897 = vmatpush.msrb.mxu3 %v360_v46  ;;  %v160_v45 = vld [vmem:[#allocation2 + $0x48] sm:$0xff] }
 0x1a8   : > { %1838 = vmatpush.msrb.mxu0 %v514_v47  ;;  %1858 = vmatpush.msrb.mxu1 %v195_v48  ;;  %v240_v47 = vld [vmem:[#allocation2 + $0x2c8] sm:$0xff] }
 0x1a9   : > { %1878 = vmatpush.msrb.mxu2 %v275_v49  ;;  %1898 = vmatpush.msrb.mxu3 %v355_v61  ;;  %v320_v48 = vld [vmem:[#allocation2 + $0x548] sm:$0xff]  ;;  %v155_v49 = vld [vmem:[#allocation2 + $0x20] sm:$0xff] }
 0x1aa   : > { %1839 = vmatpush.msrb.mxu0 %v509_v50  ;;  %1859 = vmatpush.msrb.mxu1 %v190_v52  ;;  %v235_v50 = vld [vmem:[#allocation2 + $0x2a0] sm:$0xff] }
 0x1ab   : > { %1879 = vmatpush.msrb.mxu2 %v270_v53  ;;  %1899 = vmatpush.msrb.mxu3 %v350_v55  ;;  %v315_v52 = vld [vmem:[#allocation2 + $0x520] sm:$0xff]  ;;  %v470_v55 = vld [vmem:[#allocation2 + $0x9f8] sm:$0xff] }
 0x1ac   : > { %1840 = vmatpush.msrb.mxu0 %v504_v57  ;;  %1860 = vmatpush.msrb.mxu1 %v185_v58  ;;  %v550_v58 = vld [vmem:[#allocation2 + $0xc78] sm:$0xff] }
 0x1ad   : > { %1880 = vmatpush.msrb.mxu2 %v265_v62  ;;  %1900 = vmatpush.msrb.mxu3 %v345_v29  ;;  %v2426_v62 = vld [vmem:[#allocation7 + $0x258] sm:$0xff] }
 0x1ae   : > { %1841 = vmatpush.msrb.mxu0 %v499_v63  ;;  %1861 = vmatpush.msrb.mxu1 %v180_v25  ;;  %v2506_v63 = vld [vmem:[#allocation7 + $0x4d8] sm:$0xff]  ;;  %v465_v25 = vld [vmem:[#allocation2 + $0x9d0] sm:$0xff] }
 0x1af   : > { %1881 = vmatpush.msrb.mxu2 %v260_v27  ;;  %1901 = vmatpush.msrb.mxu3 %v340_v28  ;;  %v1528_v34 = vpop.f32.mrf.mxu0  ;;  %v2421_v27 = vld [vmem:[#allocation7 + $0x230] sm:$0xff] }
 0x1b0   : > { %1842 = vmatpush.msrb.mxu0 %v494_v30  ;;  %1862 = vmatpush.msrb.mxu1 %v175_v31  ;;  %v1529_v39 = vadd.f32 %v1528_v34, %v5430_v60  ;;  %v474_v60 = vld [vmem:[#allocation2 + $0xa18] sm:$0xff]  ;;  %v2501_v28 = vld [vmem:[#allocation7 + $0x4b0] sm:$0xff]  ;;  %v460_v30 = vld [vmem:[#allocation2 + $0x9a8] sm:$0xff] }
 0x1b1   : > { %1882 = vmatpush.msrb.mxu2 %v255_v32  ;;  %1902 = vmatpush.msrb.mxu3 %v335_v33  ;;  %v540_v31 = vld [vmem:[#allocation2 + $0xc28] sm:$0xff]  ;;  %v2411_v34 = vld [vmem:[#allocation7 + $0x1e0] sm:$0xff] }
 0x1b2   : > { %1843 = vmatpush.msrb.mxu0 %v489_v35  ;;  %1863 = vmatpush.msrb.mxu1 %v170_v36  ;;  %v1548_v43 = vpop.f32.mrf.mxu1  ;;  %v2416_v32 = vld [vmem:[#allocation7 + $0x208] sm:$0xff]  ;;  %v455_v35 = vld [vmem:[#allocation2 + $0x980] sm:$0xff] }
 0x1b3   : > { %1883 = vmatpush.msrb.mxu2 %v250_v37  ;;  %1903 = vmatpush.msrb.mxu3 %v330_v38  ;;  %v5437_v46 = vadd.f32 %v1548_v43, %v1529_v39   ;;  %v2496_v33 = vld [vmem:[#allocation7 + $0x488] sm:$0xff]  ;;  %v535_v36 = vld [vmem:[#allocation2 + $0xc00] sm:$0xff]  ;;  %v450_v38 = vld [vmem:[#allocation2 + $0x958] sm:$0xff] }
 0x1b4   : > { %1844 = vmatpush.msrb.mxu0 %v484_v42  ;;  %1864 = vmatpush.msrb.mxu1 %v165_v51  ;;  %v2491_v37 = vld [vmem:[#allocation7 + $0x460] sm:$0xff]  ;;  %v530_v39 = vld [vmem:[#allocation2 + $0xbd8] sm:$0xff]  ;;  %v2401_v43 = vld [vmem:[#allocation7 + $0x190] sm:$0xff] }
 0x1b5   : > { %1884 = vmatpush.msrb.mxu2 %v245_v56  ;;  %1904 = vmatpush.msrb.mxu3 %v325_v41  ;;  %v1568_v61 = vpop.f32.mrf.mxu2  ;;  %v2406_v42 = vld [vmem:[#allocation7 + $0x1b8] sm:$0xff]  ;;  %v445_v56 = vld [vmem:[#allocation2 + $0x930] sm:$0xff] }
 0x1b6   : > { %1845 = vmatpush.msrb.mxu0 %v479_v44  ;;  %1865 = vmatpush.msrb.mxu1 %v160_v45  ;;  %v1569_v53 = vadd.f32 %v1568_v61, %v5403_v26  ;;  %v545_v26 = vld [vmem:[#allocation2 + $0xc50] sm:$0xff]  ;;  %v2486_v51 = vld [vmem:[#allocation7 + $0x438] sm:$0xff]  ;;  %v440_v45 = vld [vmem:[#allocation2 + $0x908] sm:$0xff] }
 0x1b7   : > { %1885 = vmatpush.msrb.mxu2 %v240_v47  ;;  %1905 = vmatpush.msrb.mxu3 %v320_v48  ;;  %v525_v41 = vld [vmem:[#allocation2 + $0xbb0] sm:$0xff]  ;;  %v520_v47 = vld [vmem:[#allocation2 + $0xb88] sm:$0xff]  ;;  %v515_v61 = vld [vmem:[#allocation2 + $0xb60] sm:$0xff] }
 0x1b8   : > { %1846 = vmatpush.msrb.mxu0 %v474_v60  ;;  %1866 = vmatpush.msrb.mxu1 %v155_v49  ;;  %v1588_v57 = vpop.f32.mrf.mxu3  ;;  %v2481_v44 = vld [vmem:[#allocation7 + $0x410] sm:$0xff]  ;;  %v2396_v48 = vld [vmem:[#allocation7 + $0x168] sm:$0xff]  ;;  %v435_v49 = vld [vmem:[#allocation2 + $0x8e0] sm:$0xff] }
 0x1b9   : > { %1886 = vmatpush.msrb.mxu2 %v235_v50  ;;  %1906 = vmatpush.msrb.mxu3 %v315_v52  ;;  %v5440_v29 = vadd.f32 %v1588_v57, %v1569_v53  ;;  %v2476_v60 = vld [vmem:[#allocation7 + $0x3e8] sm:$0xff]  ;;  %v2391_v50 = vld [vmem:[#allocation7 + $0x140] sm:$0xff]  ;;  %v430_v53 = vld [vmem:[#allocation2 + $0x8b8] sm:$0xff] }
 0x1ba   : > { %1847 = vmatmul.f32.vlgmr.msrb.gmra.mxu0 %v5142_v20  ;;  %1867 = vmatmul.f32.vlgmr.msrb.gmra.mxu1 %v5158_v24  ;;  %v2471_v52 = vld [vmem:[#allocation7 + $0x3c0] sm:$0xff]  ;;  %v2386_v57 = vld [vmem:[#allocation7 + $0x118] sm:$0xff] }
 0x1bb   : > { %1887 = vmatmul.f32.vlgmr.msrb.gmra.mxu2 %v5154_v23  ;;  %1911 = vmatpush.msra.mxu0 %v470_v55  ;;  %v510_v55 = vld [vmem:[#allocation2 + $0xb38] sm:$0xff] }
 0x1bc   : > { %1931 = vmatpush.msra.mxu1 %v550_v58  ;;  %2751 = vmatpush.msra.mxu2 %v2426_v62  ;;  %v2466_v58 = vld [vmem:[#allocation7 + $0x398] sm:$0xff]  ;;  %v425_v62 = vld [vmem:[#allocation2 + $0x890] sm:$0xff] }
 0x1bd   : > { %2771 = vmatpush.msra.mxu3 %v2506_v63  ;;  %1912 = vmatpush.msra.mxu0 %v465_v25  ;;  %v505_v63 = vld [vmem:[#allocation2 + $0xb10] sm:$0xff] }
 0x1be   : > { %1907 = vmatmul.f32.vlgmr.msrb.gmra.mxu3 %v5150_v22  ;;  %1932 = vmatpush.msra.mxu1 %v545_v26  ;;  %v2381_v25 = vld [vmem:[#allocation7 + $0xf0] sm:$0xff] }
 0x1bf   : > { %2752 = vmatpush.msra.mxu2 %v2421_v27  ;;  %2772 = vmatpush.msra.mxu3 %v2501_v28  ;;  %v2461_v26 = vld [vmem:[#allocation7 + $0x370] sm:$0xff]  ;;  %v420_v27 = vld [vmem:[#allocation2 + $0x868] sm:$0xff] }
 0x1c0   : > { %1913 = vmatpush.msra.mxu0 %v460_v30  ;;  %1933 = vmatpush.msra.mxu1 %v540_v31  ;;  %v500_v28 = vld [vmem:[#allocation2 + $0xae8] sm:$0xff] }
 0x1c1   : > { %2753 = vmatpush.msra.mxu2 %v2416_v32  ;;  %2773 = vmatpush.msra.mxu3 %v2496_v33  ;;  %v2376_v30 = vld [vmem:[#allocation7 + $0xc8] sm:$0xff]  ;;  %v415_v32 = vld [vmem:[#allocation2 + $0x840] sm:$0xff] }
 0x1c2   : > { %1914 = vmatpush.msra.mxu0 %v455_v35  ;;  %1934 = vmatpush.msra.mxu1 %v535_v36  ;;  %v2456_v31 = vld [vmem:[#allocation7 + $0x348] sm:$0xff]  ;;  %v495_v33 = vld [vmem:[#allocation2 + $0xac0] sm:$0xff] }
 0x1c3   : > { %2754 = vmatpush.msra.mxu2 %v2411_v34  ;;  %2774 = vmatpush.msra.mxu3 %v2491_v37  ;;  %v2371_v35 = vld [vmem:[#allocation7 + $0xa0] sm:$0xff]  ;;  %v410_v34 = vld [vmem:[#allocation2 + $0x818] sm:$0xff] }
 0x1c4   : > { %1915 = vmatpush.msra.mxu0 %v450_v38  ;;  %1935 = vmatpush.msra.mxu1 %v530_v39  ;;  %v2451_v36 = vld [vmem:[#allocation7 + $0x320] sm:$0xff]  ;;  %v490_v37 = vld [vmem:[#allocation2 + $0xa98] sm:$0xff] }
 0x1c5   : > { %2755 = vmatpush.msra.mxu2 %v2406_v42  ;;  %2775 = vmatpush.msra.mxu3 %v2486_v51  ;;  %v2366_v39 = vld [vmem:[#allocation7 + $0x78] sm:$0xff] }
 0x1c6   : > { %1916 = vmatpush.msra.mxu0 %v445_v56  ;;  %1936 = vmatpush.msra.mxu1 %v525_v41  ;;  %v2446_v42 = vld [vmem:[#allocation7 + $0x2f8] sm:$0xff]  ;;  %v405_v56 = vld [vmem:[#allocation2 + $0x7f0] sm:$0xff] }
 0x1c7   : > { %2756 = vmatpush.msra.mxu2 %v2401_v43  ;;  %2776 = vmatpush.msra.mxu3 %v2481_v44  ;;  %v485_v41 = vld [vmem:[#allocation2 + $0xa70] sm:$0xff] }
 0x1c8   : > { %1917 = vmatpush.msra.mxu0 %v440_v45  ;;  %1937 = vmatpush.msra.mxu1 %v520_v47  ;;  %v2361_v43 = vld [vmem:[#allocation7 + $0x50] sm:$0xff]  ;;  %v400_v47 = vld [vmem:[#allocation2 + $0x7c8] sm:$0xff] }
 0x1c9   : > { %2757 = vmatpush.msra.mxu2 %v2396_v48  ;;  %2777 = vmatpush.msra.mxu3 %v2476_v60  ;;  %v2441_v44 = vld [vmem:[#allocation7 + $0x2d0] sm:$0xff]  ;;  %v480_v48 = vld [vmem:[#allocation2 + $0xa48] sm:$0xff] }
 0x1ca   : > { %1918 = vmatpush.msra.mxu0 %v435_v49  ;;  %1938 = vmatpush.msra.mxu1 %v515_v61  ;;  %v2356_v49 = vld [vmem:[#allocation7 + $0x28] sm:$0xff] }
 0x1cb   : > { %2758 = vmatpush.msra.mxu2 %v2391_v50  ;;  %2778 = vmatpush.msra.mxu3 %v2471_v52  ;;  %v2436_v61 = vld [vmem:[#allocation7 + $0x2a8] sm:$0xff]  ;;  %v475_v50 = vld [vmem:[#allocation2 + $0xa20] sm:$0xff] }
 0x1cc   : > { %1919 = vmatpush.msra.mxu0 %v430_v53  ;;  %1939 = vmatpush.msra.mxu1 %v510_v55  ;;  %v2351_v53 = vld [vmem:[#allocation7] sm:$0xff] }
 0x1cd   : > { %2759 = vmatpush.msra.mxu2 %v2386_v57  ;;  %2779 = vmatpush.msra.mxu3 %v2466_v58  ;;  %v2431_v55 = vld [vmem:[#allocation7 + $0x280] sm:$0xff] }
 0x1ce   : > { %1920 = vmatpush.msra.mxu0 %v425_v62  ;;  %1940 = vmatpush.msra.mxu1 %v505_v63  ;;  %v2666_v62 = vld [vmem:[#allocation7 + $0x9d8] sm:$0xff] }
 0x1cf   : > { %2760 = vmatpush.msra.mxu2 %v2381_v25  ;;  %2780 = vmatpush.msra.mxu3 %v2461_v26  ;;  %v2586_v25 = vld [vmem:[#allocation7 + $0x758] sm:$0xff] }
 0x1d0   : > { %1921 = vmatpush.msra.mxu0 %v420_v27  ;;  %1941 = vmatpush.msra.mxu1 %v500_v28  ;;  %v2746_v26 = vld [vmem:[#allocation7 + $0xc58] sm:$0xff]  ;;  %v2427_v27 = vld [vmem:[#allocation7 + $0x260] sm:$0xff]  ;;  %v2581_v28 = vld [vmem:[#allocation7 + $0x730] sm:$0xff] }
 0x1d1   : > { %2761 = vmatpush.msra.mxu2 %v2376_v30  ;;  %2781 = vmatpush.msra.mxu3 %v2456_v31  ;;  %v1608_v38 = vpop.f32.mrf.mxu0  ;;  %v2661_v30 = vld [vmem:[#allocation7 + $0x9b0] sm:$0xff] }
 0x1d2   : > { %1922 = vmatpush.msra.mxu0 %v415_v32  ;;  %1942 = vmatpush.msra.mxu1 %v495_v33  ;;  %v1609_v51 = vadd.f32 %v1608_v38, %v5440_v29  ;;  %v395_v29 = vld [vmem:[#allocation2 + $0x7a0] sm:$0xff]  ;;  %v2741_v31 = vld [vmem:[#allocation7 + $0xc30] sm:$0xff]  ;;  %v2422_v32 = vld [vmem:[#allocation7 + $0x238] sm:$0xff] }
 0x1d3   : > { %2762 = vmatpush.msra.mxu2 %v2371_v35  ;;  %2782 = vmatpush.msra.mxu3 %v2451_v36  ;;  %v2656_v33 = vld [vmem:[#allocation7 + $0x988] sm:$0xff]  ;;  %v2417_v36 = vld [vmem:[#allocation7 + $0x210] sm:$0xff]  ;;  %v2731_v38 = vld [vmem:[#allocation7 + $0xbe0] sm:$0xff] }
 0x1d4   : > { %1923 = vmatpush.msra.mxu0 %v410_v34  ;;  %1943 = vmatpush.msra.mxu1 %v490_v37  ;;  %v1628_v45 = vpop.f32.mrf.mxu1  ;;  %v2736_v35 = vld [vmem:[#allocation7 + $0xc08] sm:$0xff]  ;;  %v2571_v34 = vld [vmem:[#allocation7 + $0x6e0] sm:$0xff] }
 0x1d5   : > { %2763 = vmatpush.msra.mxu2 %v2366_v39  ;;  %2783 = vmatpush.msra.mxu3 %v2446_v42  ;;  %v1629_v60 = vadd.f32 %v1628_v45, %v1609_v51  ;;  %v2651_v37 = vld [vmem:[#allocation7 + $0x960] sm:$0xff]  ;;  %v2412_v39 = vld [vmem:[#allocation7 + $0x1e8] sm:$0xff]  ;;  %v2566_v42 = vld [vmem:[#allocation7 + $0x6b8] sm:$0xff] }
 0x1d6   : > { %1924 = vmatpush.msra.mxu0 %v405_v56  ;;  %1944 = vmatpush.msra.mxu1 %v485_v41  ;;  %v2646_v51 = vld [vmem:[#allocation7 + $0x938] sm:$0xff]  ;;  %v2407_v41 = vld [vmem:[#allocation7 + $0x1c0] sm:$0xff]  ;;  %v2721_v45 = vld [vmem:[#allocation7 + $0xb90] sm:$0xff] }
 0x1d7   : > { %2764 = vmatpush.msra.mxu2 %v2361_v43  ;;  %2784 = vmatpush.msra.mxu3 %v2441_v44  ;;  %v1648_v52 = vpop.f32.mrf.mxu2  ;;  %v2726_v56 = vld [vmem:[#allocation7 + $0xbb8] sm:$0xff]  ;;  %v2561_v43 = vld [vmem:[#allocation7 + $0x690] sm:$0xff] }
 0x1d8   : > { %1925 = vmatpush.msra.mxu0 %v400_v47  ;;  %1945 = vmatpush.msra.mxu1 %v480_v48  ;;  %v5447_v57 = vadd.f32 %v1648_v52, %v1629_v60   ;;  %v1668_v58 = vpop.f32.mrf.mxu3  ;;  %v2641_v44 = vld [vmem:[#allocation7 + $0x910] sm:$0xff]  ;;  %v2402_v47 = vld [vmem:[#allocation7 + $0x198] sm:$0xff]  ;;  %v2556_v48 = vld [vmem:[#allocation7 + $0x668] sm:$0xff] }
 0x1d9   : > { %2765 = vmatpush.msra.mxu2 %v2356_v49  ;;  %2785 = vmatpush.msra.mxu3 %v2436_v61  ;;  %v5450_v63 = vadd.f32 %v1668_v58, %v5411_v40  ;;  %v2576_v40 = vld [vmem:[#allocation7 + $0x708] sm:$0xff]  ;;  %v2397_v61 = vld [vmem:[#allocation7 + $0x170] sm:$0xff]  ;;  %v2711_v52 = vld [vmem:[#allocation7 + $0xb40] sm:$0xff] }
 0x1da   : > { %1926 = vmatpush.msra.mxu0 %v395_v29  ;;  %1946 = vmatpush.msra.mxu1 %v475_v50  ;;  %v2636_v60 = vld [vmem:[#allocation7 + $0x8e8] sm:$0xff]  ;;  %v2551_v29 = vld [vmem:[#allocation7 + $0x640] sm:$0xff]  ;;  %v2626_v58 = vld [vmem:[#allocation7 + $0x898] sm:$0xff] }
 0x1db   : > { %2766 = vmatpush.msra.mxu2 %v2351_v53  ;;  %2786 = vmatpush.msra.mxu3 %v2431_v55  ;;  %v2716_v49 = vld [vmem:[#allocation7 + $0xb68] sm:$0xff]  ;;  %v2631_v50 = vld [vmem:[#allocation7 + $0x8c0] sm:$0xff]  ;;  %v2546_v55 = vld [vmem:[#allocation7 + $0x618] sm:$0xff] }
 0x1dc   : > { %1927 = vmatmul.f32.vlgmr.msra.gmra.mxu0 %v5146_v21  ;;  %2811 = vmatpush.msrb.mxu1 %v2666_v62  ;;  %v2392_v53 = vld [vmem:[#allocation7 + $0x148] sm:$0xff]  ;;  %v2706_v62 = vld [vmem:[#allocation7 + $0xb18] sm:$0xff] }
 0x1dd   : > { %2791 = vmatpush.msrb.mxu0 %v2586_v25  ;;  %2831 = vmatpush.msrb.mxu2 %v2746_v26  ;;  %v2387_v25 = vld [vmem:[#allocation7 + $0x120] sm:$0xff]  ;;  %v2541_v26 = vld [vmem:[#allocation7 + $0x5f0] sm:$0xff] }
 0x1de   : > { %2851 = vmatpush.msrb.mxu3 %v2427_v27  ;;  %1947 = vmatmul.f32.vlgmr.msra.gmra.mxu1 %v5142_v20  ;;  %v2621_v27 = vld [vmem:[#allocation7 + $0x870] sm:$0xff] }
 0x1df   : > { %2792 = vmatpush.msrb.mxu0 %v2581_v28  ;;  %2812 = vmatpush.msrb.mxu1 %v2661_v30  ;;  %v2701_v28 = vld [vmem:[#allocation7 + $0xaf0] sm:$0xff]  ;;  %v2382_v30 = vld [vmem:[#allocation7 + $0xf8] sm:$0xff] }
 0x1e0   : > { %2832 = vmatpush.msrb.mxu2 %v2741_v31  ;;  %2852 = vmatpush.msrb.mxu3 %v2422_v32  ;;  %v2536_v31 = vld [vmem:[#allocation7 + $0x5c8] sm:$0xff] }
 0x1e1   : > { %2793 = vmatpush.msrb.mxu0 %v2576_v40  ;;  %2813 = vmatpush.msrb.mxu1 %v2656_v33  ;;  %v2616_v32 = vld [vmem:[#allocation7 + $0x848] sm:$0xff]  ;;  %v2377_v33 = vld [vmem:[#allocation7 + $0xd0] sm:$0xff] }
 0x1e2   : > { %2833 = vmatpush.msrb.mxu2 %v2736_v35  ;;  %2853 = vmatpush.msrb.mxu3 %v2417_v36  ;;  %v2696_v40 = vld [vmem:[#allocation7 + $0xac8] sm:$0xff]  ;;  %v2531_v35 = vld [vmem:[#allocation7 + $0x5a0] sm:$0xff] }
 0x1e3   : > { %2794 = vmatpush.msrb.mxu0 %v2571_v34  ;;  %2814 = vmatpush.msrb.mxu1 %v2651_v37  ;;  %v2611_v36 = vld [vmem:[#allocation7 + $0x820] sm:$0xff]  ;;  %v2372_v37 = vld [vmem:[#allocation7 + $0xa8] sm:$0xff] }
 0x1e4   : > { %2834 = vmatpush.msrb.mxu2 %v2731_v38  ;;  %2854 = vmatpush.msrb.mxu3 %v2412_v39  ;;  %v2691_v34 = vld [vmem:[#allocation7 + $0xaa0] sm:$0xff]  ;;  %v2526_v38 = vld [vmem:[#allocation7 + $0x578] sm:$0xff] }
 0x1e5   : > { %2795 = vmatpush.msrb.mxu0 %v2566_v42  ;;  %2815 = vmatpush.msrb.mxu1 %v2646_v51  ;;  %v2606_v39 = vld [vmem:[#allocation7 + $0x7f8] sm:$0xff]  ;;  %v2367_v51 = vld [vmem:[#allocation7 + $0x80] sm:$0xff] }
 0x1e6   : > { %2835 = vmatpush.msrb.mxu2 %v2726_v56  ;;  %2855 = vmatpush.msrb.mxu3 %v2407_v41  ;;  %v2686_v42 = vld [vmem:[#allocation7 + $0xa78] sm:$0xff]  ;;  %v2521_v41 = vld [vmem:[#allocation7 + $0x550] sm:$0xff] }
 0x1e7   : > { %2796 = vmatpush.msrb.mxu0 %v2561_v43  ;;  %2816 = vmatpush.msrb.mxu1 %v2641_v44  ;;  %v2601_v43 = vld [vmem:[#allocation7 + $0x7d0] sm:$0xff] }
 0x1e8   : > { %2836 = vmatpush.msrb.mxu2 %v2721_v45  ;;  %2856 = vmatpush.msrb.mxu3 %v2402_v47  ;;  %v2681_v45 = vld [vmem:[#allocation7 + $0xa50] sm:$0xff]  ;;  %v2362_v47 = vld [vmem:[#allocation7 + $0x58] sm:$0xff] }
 0x1e9   : > { %2797 = vmatpush.msrb.mxu0 %v2556_v48  ;;  %2817 = vmatpush.msrb.mxu1 %v2636_v60  ;;  %v2516_v48 = vld [vmem:[#allocation7 + $0x528] sm:$0xff] }
 0x1ea   : > { %2837 = vmatpush.msrb.mxu2 %v2716_v49  ;;  %2857 = vmatpush.msrb.mxu3 %v2397_v61  ;;  %v2596_v60 = vld [vmem:[#allocation7 + $0x7a8] sm:$0xff] }
 0x1eb   : > { %2798 = vmatpush.msrb.mxu0 %v2551_v29  ;;  %2818 = vmatpush.msrb.mxu1 %v2631_v50  ;;  %v2676_v61 = vld [vmem:[#allocation7 + $0xa28] sm:$0xff]  ;;  %v2357_v29 = vld [vmem:[#allocation7 + $0x30] sm:$0xff] }
 0x1ec   : > { %2838 = vmatpush.msrb.mxu2 %v2711_v52  ;;  %2858 = vmatpush.msrb.mxu3 %v2392_v53  ;;  %v2511_v52 = vld [vmem:[#allocation7 + $0x500] sm:$0xff] }
 0x1ed   : > { %2799 = vmatpush.msrb.mxu0 %v2546_v55  ;;  %2819 = vmatpush.msrb.mxu1 %v2626_v58  ;;  %v2671_v53 = vld [vmem:[#allocation7 + $0xa00] sm:$0xff]  ;;  %v2352_v58 = vld [vmem:[#allocation7 + $0x8] sm:$0xff] }
 0x1ee   : > { %2839 = vmatpush.msrb.mxu2 %v2706_v62  ;;  %2859 = vmatpush.msrb.mxu3 %v2387_v25  ;;  %v2507_v62 = vld [vmem:[#allocation7 + $0x4e0] sm:$0xff] }
 0x1ef   : > { %2800 = vmatpush.msrb.mxu0 %v2541_v26  ;;  %2820 = vmatpush.msrb.mxu1 %v2621_v27  ;;  %v2587_v26 = vld [vmem:[#allocation7 + $0x760] sm:$0xff] }
 0x1f0   : > { %2840 = vmatpush.msrb.mxu2 %v2701_v28  ;;  %2860 = vmatpush.msrb.mxu3 %v2382_v30  ;;  %v2667_v27 = vld [vmem:[#allocation7 + $0x9e0] sm:$0xff] }
 0x1f1   : > { %2801 = vmatpush.msrb.mxu0 %v2536_v31  ;;  %2821 = vmatpush.msrb.mxu1 %v2616_v32  ;;  %v2747_v28 = vld [vmem:[#allocation7 + $0xc60] sm:$0xff]  ;;  %v2502_v31 = vld [vmem:[#allocation7 + $0x4b8] sm:$0xff] }
 0x1f2   : > { %2841 = vmatpush.msrb.mxu2 %v2696_v40  ;;  %2861 = vmatpush.msrb.mxu3 %v2377_v33  ;;  %v2582_v32 = vld [vmem:[#allocation7 + $0x738] sm:$0xff] }
 0x1f3   : > { %2802 = vmatpush.msrb.mxu0 %v2531_v35  ;;  %2822 = vmatpush.msrb.mxu1 %v2611_v36  ;;  %v1688_v56 = vpop.f32.mrf.mxu0  ;;  %v2662_v33 = vld [vmem:[#allocation7 + $0x9b8] sm:$0xff]  ;;  %v2497_v36 = vld [vmem:[#allocation7 + $0x490] sm:$0xff] }
 0x1f4   : > { %2842 = vmatpush.msrb.mxu2 %v2691_v34  ;;  %2862 = vmatpush.msrb.mxu3 %v2372_v37  ;;  %v1689_v44 = vadd.f32 %v1688_v56, %v5450_v63  ;;  %v2591_v63 = vld [vmem:[#allocation7 + $0x780] sm:$0xff]  ;;  %v2742_v35 = vld [vmem:[#allocation7 + $0xc38] sm:$0xff]  ;;  %v2577_v34 = vld [vmem:[#allocation7 + $0x710] sm:$0xff] }
 0x1f5   : > { %2803 = vmatpush.msrb.mxu0 %v2526_v38  ;;  %2823 = vmatpush.msrb.mxu1 %v2606_v39  ;;  %v2657_v37 = vld [vmem:[#allocation7 + $0x990] sm:$0xff]  ;;  %v2492_v39 = vld [vmem:[#allocation7 + $0x468] sm:$0xff] }
 0x1f6   : > { %2843 = vmatpush.msrb.mxu2 %v2686_v42  ;;  %2863 = vmatpush.msrb.mxu3 %v2367_v51  ;;  %v1708_v49 = vpop.f32.mrf.mxu1  ;;  %v2737_v38 = vld [vmem:[#allocation7 + $0xc10] sm:$0xff]  ;;  %v2572_v42 = vld [vmem:[#allocation7 + $0x6e8] sm:$0xff] }
 0x1f7   : > { %2804 = vmatpush.msrb.mxu0 %v2521_v41  ;;  %2824 = vmatpush.msrb.mxu1 %v2601_v43  ;;  %v1709_v50 = vadd.f32 %v1708_v49, %v1689_v44  ;;  %v2652_v51 = vld [vmem:[#allocation7 + $0x968] sm:$0xff]  ;;  %v2487_v41 = vld [vmem:[#allocation7 + $0x440] sm:$0xff]  ;;  %v2722_v49 = vld [vmem:[#allocation7 + $0xb98] sm:$0xff] }
 0x1f8   : > { %2844 = vmatpush.msrb.mxu2 %v2681_v45  ;;  %2864 = vmatpush.msrb.mxu3 %v2362_v47  ;;  %v2732_v56 = vld [vmem:[#allocation7 + $0xbe8] sm:$0xff]  ;;  %v2567_v43 = vld [vmem:[#allocation7 + $0x6c0] sm:$0xff]  ;;  %v2482_v47 = vld [vmem:[#allocation7 + $0x418] sm:$0xff] }
 0x1f9   : > { %2805 = vmatpush.msrb.mxu0 %v2516_v48  ;;  %2825 = vmatpush.msrb.mxu1 %v2596_v60  ;;  %v1728_v55 = vpop.f32.mrf.mxu2  ;;  %v2647_v44 = vld [vmem:[#allocation7 + $0x940] sm:$0xff]  ;;  %v2562_v48 = vld [vmem:[#allocation7 + $0x698] sm:$0xff] }
 0x1fa   : > { %2845 = vmatpush.msrb.mxu2 %v2676_v61  ;;  %2865 = vmatpush.msrb.mxu3 %v2357_v29  ;;  %v1729_v25 = vadd.f32 %v1728_v55, %v1709_v50  ;;  %v2727_v45 = vld [vmem:[#allocation7 + $0xbc0] sm:$0xff]  ;;  %v2642_v60 = vld [vmem:[#allocation7 + $0x918] sm:$0xff]  ;;  %v2477_v61 = vld [vmem:[#allocation7 + $0x3f0] sm:$0xff] }
 0x1fb   : > { %2767 = vmatmul.f32.vlgmr.msra.gmra.mxu2 %v5138_v19  ;;  %2806 = vmatpush.msrb.mxu0 %v2511_v52  ;;  %v2557_v29 = vld [vmem:[#allocation7 + $0x670] sm:$0xff]  ;;  %v2632_v55 = vld [vmem:[#allocation7 + $0x8c8] sm:$0xff] }
 0x1fc   : > { %2826 = vmatpush.msrb.mxu1 %v2591_v63  ;;  %2846 = vmatpush.msrb.mxu2 %v2671_v53  ;;  %v1748_v30 = vpop.f32.mrf.mxu3  ;;  %v2637_v50 = vld [vmem:[#allocation7 + $0x8f0] sm:$0xff]  ;;  %v2472_v63 = vld [vmem:[#allocation7 + $0x3c8] sm:$0xff] }
 0x1fd   : > { %2866 = vmatpush.msrb.mxu3 %v2352_v58  ;;  %2871 = vmatpush.msra.mxu0 %v2507_v62  ;;  %v5456_v40 = vadd.f32 %v1748_v30, %v1729_v25   ;;  %v2717_v52 = vld [vmem:[#allocation7 + $0xb70] sm:$0xff]  ;;  %v2552_v53 = vld [vmem:[#allocation7 + $0x648] sm:$0xff]  ;;  %v2467_v62 = vld [vmem:[#allocation7 + $0x3a0] sm:$0xff] }
 0x1fe   : > { %2787 = vmatmul.f32.vlgmr.msra.gmra.mxu3 %v5134_v18  ;;  %2891 = vmatpush.msra.mxu1 %v2587_v26  ;;  %v2712_v58 = vld [vmem:[#allocation7 + $0xb48] sm:$0xff]  ;;  %v2547_v25 = vld [vmem:[#allocation7 + $0x620] sm:$0xff]  ;;  %v2542_v30 = vld [vmem:[#allocation7 + $0x5f8] sm:$0xff] }
 0x1ff   : > { %2911 = vmatpush.msra.mxu2 %v2667_v27  ;;  %2931 = vmatpush.msra.mxu3 %v2747_v28  ;;  %v2627_v26 = vld [vmem:[#allocation7 + $0x8a0] sm:$0xff]  ;;  %v2462_v28 = vld [vmem:[#allocation7 + $0x378] sm:$0xff] }
 0x200   : > { %2872 = vmatpush.msra.mxu0 %v2502_v31  ;;  %2892 = vmatpush.msra.mxu1 %v2582_v32  ;;  %v2707_v27 = vld [vmem:[#allocation7 + $0xb20] sm:$0xff]  ;;  %v2622_v31 = vld [vmem:[#allocation7 + $0x878] sm:$0xff] }
 0x201   : > { %2912 = vmatpush.msra.mxu2 %v2662_v33  ;;  %2932 = vmatpush.msra.mxu3 %v2742_v35  ;;  %v2702_v32 = vld [vmem:[#allocation7 + $0xaf8] sm:$0xff]  ;;  %v2457_v33 = vld [vmem:[#allocation7 + $0x350] sm:$0xff] }
 0x202   : > { %2873 = vmatpush.msra.mxu0 %v2497_v36  ;;  %2893 = vmatpush.msra.mxu1 %v2577_v34  ;;  %v2537_v35 = vld [vmem:[#allocation7 + $0x5d0] sm:$0xff] }
 0x203   : > { %2913 = vmatpush.msra.mxu2 %v2657_v37  ;;  %2933 = vmatpush.msra.mxu3 %v2737_v38  ;;  %v2617_v36 = vld [vmem:[#allocation7 + $0x850] sm:$0xff]  ;;  %v2452_v37 = vld [vmem:[#allocation7 + $0x328] sm:$0xff] }
 0x204   : > { %2847 = vmatmul.f32.vlgmr.msrb.gmra.mxu2 %v5122_v15  ;;  %2874 = vmatpush.msra.mxu0 %v2492_v39  ;;  %v2697_v34 = vld [vmem:[#allocation7 + $0xad0] sm:$0xff]  ;;  %v2532_v38 = vld [vmem:[#allocation7 + $0x5a8] sm:$0xff] }
 0x205   : > { %2894 = vmatpush.msra.mxu1 %v2572_v42  ;;  %2914 = vmatpush.msra.mxu2 %v2652_v51  ;;  %v2612_v39 = vld [vmem:[#allocation7 + $0x828] sm:$0xff]  ;;  %v2447_v51 = vld [vmem:[#allocation7 + $0x300] sm:$0xff] }
 0x206   : > { %2934 = vmatpush.msra.mxu3 %v2732_v56  ;;  %2807 = vmatmul.f32.vlgmr.msrb.gmra.mxu0 %v5130_v17  ;;  %v2692_v42 = vld [vmem:[#allocation7 + $0xaa8] sm:$0xff]  ;;  %v2527_v56 = vld [vmem:[#allocation7 + $0x580] sm:$0xff] }
 0x207   : > { %2875 = vmatpush.msra.mxu0 %v2487_v41  ;;  %2895 = vmatpush.msra.mxu1 %v2567_v43  ;;  %v2607_v41 = vld [vmem:[#allocation7 + $0x800] sm:$0xff] }
 0x208   : > { %2915 = vmatpush.msra.mxu2 %v2647_v44  ;;  %2935 = vmatpush.msra.mxu3 %v2727_v45  ;;  %v2687_v44 = vld [vmem:[#allocation7 + $0xa80] sm:$0xff]  ;;  %v2442_v45 = vld [vmem:[#allocation7 + $0x2d8] sm:$0xff] }
 0x209   : > { %2827 = vmatmul.f32.vlgmr.msrb.gmra.mxu1 %v5126_v16  ;;  %2876 = vmatpush.msra.mxu0 %v2482_v47 }
 0x20a   : > { %2896 = vmatpush.msra.mxu1 %v2562_v48  ;;  %2916 = vmatpush.msra.mxu2 %v2642_v60  ;;  %v2522_v48 = vld [vmem:[#allocation7 + $0x558] sm:$0xff] }
 0x20b   : > { %2936 = vmatpush.msra.mxu3 %v2722_v49  ;;  %2877 = vmatpush.msra.mxu0 %v2477_v61  ;;  %v2602_v60 = vld [vmem:[#allocation7 + $0x7d8] sm:$0xff]  ;;  %v2437_v61 = vld [vmem:[#allocation7 + $0x2b0] sm:$0xff] }
 0x20c   : > { %2897 = vmatpush.msra.mxu1 %v2557_v29  ;;  %2917 = vmatpush.msra.mxu2 %v2637_v50  ;;  %v2682_v49 = vld [vmem:[#allocation7 + $0xa58] sm:$0xff]  ;;  %v2517_v50 = vld [vmem:[#allocation7 + $0x530] sm:$0xff] }
 0x20d   : > { %2937 = vmatpush.msra.mxu3 %v2717_v52  ;;  %2878 = vmatpush.msra.mxu0 %v2472_v63  ;;  %v2597_v52 = vld [vmem:[#allocation7 + $0x7b0] sm:$0xff] }
 0x20e   : > { %2898 = vmatpush.msra.mxu1 %v2552_v53  ;;  %2918 = vmatpush.msra.mxu2 %v2632_v55  ;;  %v2677_v53 = vld [vmem:[#allocation7 + $0xa30] sm:$0xff]  ;;  %v2432_v55 = vld [vmem:[#allocation7 + $0x288] sm:$0xff] }
 0x20f   : > { %2938 = vmatpush.msra.mxu3 %v2712_v58  ;;  %2879 = vmatpush.msra.mxu0 %v2467_v62  ;;  %v2592_v58 = vld [vmem:[#allocation7 + $0x788] sm:$0xff] }
 0x210   : > { %2899 = vmatpush.msra.mxu1 %v2547_v25  ;;  %2919 = vmatpush.msra.mxu2 %v2627_v26  ;;  %v2672_v25 = vld [vmem:[#allocation7 + $0xa08] sm:$0xff] }
 0x211   : > { %2939 = vmatpush.msra.mxu3 %v2707_v27  ;;  %2880 = vmatpush.msra.mxu0 %v2462_v28  ;;  %v2428_v26 = vld [vmem:[#allocation7 + $0x268] sm:$0xff] }
 0x212   : > { %2900 = vmatpush.msra.mxu1 %v2542_v30  ;;  %2920 = vmatpush.msra.mxu2 %v2622_v31  ;;  %v2508_v28 = vld [vmem:[#allocation7 + $0x4e8] sm:$0xff] }
 0x213   : > { %2940 = vmatpush.msra.mxu3 %v2702_v32  ;;  %2881 = vmatpush.msra.mxu0 %v2457_v33  ;;  %v2588_v30 = vld [vmem:[#allocation7 + $0x768] sm:$0xff]  ;;  %v2423_v33 = vld [vmem:[#allocation7 + $0x240] sm:$0xff] }
 0x214   : > { %2901 = vmatpush.msra.mxu1 %v2537_v35  ;;  %2921 = vmatpush.msra.mxu2 %v2617_v36  ;;  %v2668_v31 = vld [vmem:[#allocation7 + $0x9e8] sm:$0xff]  ;;  %v2503_v35 = vld [vmem:[#allocation7 + $0x4c0] sm:$0xff] }
 0x215   : > { %2941 = vmatpush.msra.mxu3 %v2697_v34  ;;  %2882 = vmatpush.msra.mxu0 %v2452_v37  ;;  %v1768_v43 = vpop.f32.mrf.mxu0  ;;  %v2583_v34 = vld [vmem:[#allocation7 + $0x740] sm:$0xff] }
 0x216   : > { %2902 = vmatpush.msra.mxu1 %v2532_v38  ;;  %2922 = vmatpush.msra.mxu2 %v2612_v39  ;;  %v1769_v47 = vadd.f32 %v1768_v43, %v5417_v54  ;;  %v2512_v54 = vld [vmem:[#allocation7 + $0x508] sm:$0xff]  ;;  %v2663_v37 = vld [vmem:[#allocation7 + $0x9c0] sm:$0xff]  ;;  %v2418_v38 = vld [vmem:[#allocation7 + $0x218] sm:$0xff] }
 0x217   : > { %2942 = vmatpush.msra.mxu3 %v2692_v42  ;;  %2883 = vmatpush.msra.mxu0 %v2447_v51  ;;  %v2498_v39 = vld [vmem:[#allocation7 + $0x498] sm:$0xff]  ;;  %v2573_v43 = vld [vmem:[#allocation7 + $0x6f0] sm:$0xff] }
 0x218   : > { %2903 = vmatpush.msra.mxu1 %v2527_v56  ;;  %2923 = vmatpush.msra.mxu2 %v2607_v41  ;;  %v1788_v29 = vpop.f32.mrf.mxu1  ;;  %v2578_v42 = vld [vmem:[#allocation7 + $0x718] sm:$0xff]  ;;  %v2413_v56 = vld [vmem:[#allocation7 + $0x1f0] sm:$0xff] }
 0x219   : > { %2943 = vmatpush.msra.mxu3 %v2687_v44  ;;  %2884 = vmatpush.msra.mxu0 %v2442_v45  ;;  %v1789_v63 = vadd.f32 %v1788_v29, %v1769_v47  ;;  %v2658_v51 = vld [vmem:[#allocation7 + $0x998] sm:$0xff]  ;;  %v2493_v41 = vld [vmem:[#allocation7 + $0x470] sm:$0xff]  ;;  %v2408_v45 = vld [vmem:[#allocation7 + $0x1c8] sm:$0xff] }
 0x21a   : > { %2904 = vmatpush.msra.mxu1 %v2522_v48  ;;  %2924 = vmatpush.msra.mxu2 %v2602_v60  ;;  %v2653_v44 = vld [vmem:[#allocation7 + $0x970] sm:$0xff]  ;;  %v2488_v47 = vld [vmem:[#allocation7 + $0x448] sm:$0xff]  ;;  %v2563_v29 = vld [vmem:[#allocation7 + $0x6a0] sm:$0xff] }
 0x21b   : > { %2944 = vmatpush.msra.mxu3 %v2682_v49  ;;  %2885 = vmatpush.msra.mxu0 %v2437_v61  ;;  %v1808_v62 = vpop.f32.mrf.mxu2  ;;  %v2568_v48 = vld [vmem:[#allocation7 + $0x6c8] sm:$0xff]  ;;  %v2403_v49 = vld [vmem:[#allocation7 + $0x1a0] sm:$0xff] }
 0x21c   : > { %2905 = vmatpush.msra.mxu1 %v2517_v50  ;;  %2925 = vmatpush.msra.mxu2 %v2597_v52  ;;  %v1809_v27 = vadd.f32 %v1808_v62, %v1789_v63  ;;  %v2648_v60 = vld [vmem:[#allocation7 + $0x948] sm:$0xff]  ;;  %v2483_v61 = vld [vmem:[#allocation7 + $0x420] sm:$0xff]  ;;  %v2398_v52 = vld [vmem:[#allocation7 + $0x178] sm:$0xff] }
 0x21d   : > { %2945 = vmatpush.msra.mxu3 %v2677_v53  ;;  %2886 = vmatpush.msra.mxu0 %v2432_v55  ;;  %v2643_v50 = vld [vmem:[#allocation7 + $0x920] sm:$0xff]  ;;  %v2478_v63 = vld [vmem:[#allocation7 + $0x3f8] sm:$0xff]  ;;  %v2553_v62 = vld [vmem:[#allocation7 + $0x650] sm:$0xff] }
 0x21e   : > { %2906 = vmatpush.msra.mxu1 %v2512_v54  ;;  %2926 = vmatpush.msra.mxu2 %v2592_v58  ;;  %v1828_v32 = vpop.f32.mrf.mxu3  ;;  %v2558_v53 = vld [vmem:[#allocation7 + $0x678] sm:$0xff]  ;;  %v2393_v54 = vld [vmem:[#allocation7 + $0x150] sm:$0xff] }
 0x21f   : > { %2946 = vmatpush.msra.mxu3 %v2672_v25  ;;  %2951 = vmatpush.msrb.mxu0 %v2428_v26  ;;  %v5463_v36 = vadd.f32 %v1828_v32, %v1809_v27  ;;  %v2638_v55 = vld [vmem:[#allocation7 + $0x8f8] sm:$0xff]  ;;  %v2473_v58 = vld [vmem:[#allocation7 + $0x3d0] sm:$0xff]  ;;  %v2388_v26 = vld [vmem:[#allocation7 + $0x128] sm:$0xff] }
 0x220   : > { %2867 = vmatmul.f32.vlgmr.msrb.gmra.mxu3 %v5138_v19  ;;  %2971 = vmatpush.msrb.mxu1 %v2508_v28  ;;  %v2633_v25 = vld [vmem:[#allocation7 + $0x8d0] sm:$0xff]  ;;  %v2468_v27 = vld [vmem:[#allocation7 + $0x3a8] sm:$0xff]  ;;  %v2463_v32 = vld [vmem:[#allocation7 + $0x380] sm:$0xff] }
 0x221   : > { %2991 = vmatpush.msrb.mxu2 %v2588_v30  ;;  %3011 = vmatpush.msrb.mxu3 %v2668_v31  ;;  %v2548_v28 = vld [vmem:[#allocation7 + $0x628] sm:$0xff]  ;;  %v2383_v31 = vld [vmem:[#allocation7 + $0x100] sm:$0xff] }
 0x222   : > { %2952 = vmatpush.msrb.mxu0 %v2423_v33  ;;  %2972 = vmatpush.msrb.mxu1 %v2503_v35  ;;  %v2628_v30 = vld [vmem:[#allocation7 + $0x8a8] sm:$0xff]  ;;  %v2543_v33 = vld [vmem:[#allocation7 + $0x600] sm:$0xff] }
 0x223   : > { %2992 = vmatpush.msrb.mxu2 %v2583_v34  ;;  %3012 = vmatpush.msrb.mxu3 %v2663_v37  ;;  %v2623_v35 = vld [vmem:[#allocation7 + $0x880] sm:$0xff]  ;;  %v2378_v34 = vld [vmem:[#allocation7 + $0xd8] sm:$0xff] }
 0x224   : > { %2953 = vmatpush.msrb.mxu0 %v2418_v38  ;;  %2973 = vmatpush.msrb.mxu1 %v2498_v39  ;;  %v2458_v37 = vld [vmem:[#allocation7 + $0x358] sm:$0xff] }
 0x225   : > { %2993 = vmatpush.msrb.mxu2 %v2578_v42  ;;  %3013 = vmatpush.msrb.mxu3 %v2658_v51  ;;  %v2538_v38 = vld [vmem:[#allocation7 + $0x5d8] sm:$0xff]  ;;  %v2373_v42 = vld [vmem:[#allocation7 + $0xb0] sm:$0xff] }
 0x226   : > { %2927 = vmatmul.f32.vlgmr.msra.gmra.mxu2 %v5126_v16  ;;  %2954 = vmatpush.msrb.mxu0 %v2413_v56  ;;  %v2618_v39 = vld [vmem:[#allocation7 + $0x858] sm:$0xff]  ;;  %v2453_v51 = vld [vmem:[#allocation7 + $0x330] sm:$0xff] }
 0x227   : > { %2974 = vmatpush.msrb.mxu1 %v2493_v41  ;;  %2994 = vmatpush.msrb.mxu2 %v2573_v43  ;;  %v2533_v56 = vld [vmem:[#allocation7 + $0x5b0] sm:$0xff]  ;;  %v2368_v43 = vld [vmem:[#allocation7 + $0x88] sm:$0xff] }
 0x228   : > { %3014 = vmatpush.msrb.mxu3 %v2653_v44  ;;  %2887 = vmatmul.f32.vlgmr.msra.gmra.mxu0 %v5134_v18  ;;  %v2613_v41 = vld [vmem:[#allocation7 + $0x830] sm:$0xff]  ;;  %v2448_v44 = vld [vmem:[#allocation7 + $0x308] sm:$0xff] }
 0x229   : > { %2947 = vmatmul.f32.vlgmr.msra.gmra.mxu3 %v5122_v15  ;;  %2955 = vmatpush.msrb.mxu0 %v2408_v45 }
 0x22a   : > { %2975 = vmatpush.msrb.mxu1 %v2488_v47  ;;  %2995 = vmatpush.msrb.mxu2 %v2568_v48  ;;  %v2528_v48 = vld [vmem:[#allocation7 + $0x588] sm:$0xff] }
 0x22b   : > { %3015 = vmatpush.msrb.mxu3 %v2648_v60  ;;  %2907 = vmatmul.f32.vlgmr.msra.gmra.mxu1 %v5130_v17  ;;  %v2608_v60 = vld [vmem:[#allocation7 + $0x808] sm:$0xff] }
 0x22c   : > { %2956 = vmatpush.msrb.mxu0 %v2403_v49  ;;  %2976 = vmatpush.msrb.mxu1 %v2483_v61 }
 0x22d   : > { %2996 = vmatpush.msrb.mxu2 %v2563_v29  ;;  %3016 = vmatpush.msrb.mxu3 %v2643_v50  ;;  %v2363_v29 = vld [vmem:[#allocation7 + $0x60] sm:$0xff] }
 0x22e   : > { %2957 = vmatpush.msrb.mxu0 %v2398_v52  ;;  %2977 = vmatpush.msrb.mxu1 %v2478_v63  ;;  %v2443_v50 = vld [vmem:[#allocation7 + $0x2e0] sm:$0xff] }
 0x22f   : > { %2997 = vmatpush.msrb.mxu2 %v2558_v53  ;;  %3017 = vmatpush.msrb.mxu3 %v2638_v55  ;;  %v2523_v52 = vld [vmem:[#allocation7 + $0x560] sm:$0xff]  ;;  %v2358_v53 = vld [vmem:[#allocation7 + $0x38] sm:$0xff] }
 0x230   : > { %2958 = vmatpush.msrb.mxu0 %v2393_v54  ;;  %2978 = vmatpush.msrb.mxu1 %v2473_v58  ;;  %v2603_v63 = vld [vmem:[#allocation7 + $0x7e0] sm:$0xff]  ;;  %v2438_v55 = vld [vmem:[#allocation7 + $0x2b8] sm:$0xff] }
 0x231   : > { %2998 = vmatpush.msrb.mxu2 %v2553_v62  ;;  %3018 = vmatpush.msrb.mxu3 %v2633_v25  ;;  %v2518_v54 = vld [vmem:[#allocation7 + $0x538] sm:$0xff]  ;;  %v2513_v62 = vld [vmem:[#allocation7 + $0x510] sm:$0xff] }
 0x232   : > { %2959 = vmatpush.msrb.mxu0 %v2388_v26  ;;  %2979 = vmatpush.msrb.mxu1 %v2468_v27  ;;  %v2598_v58 = vld [vmem:[#allocation7 + $0x7b8] sm:$0xff]  ;;  %v2593_v25 = vld [vmem:[#allocation7 + $0x790] sm:$0xff]  ;;  %v2748_v27 = vld [vmem:[#allocation7 + $0xc68] sm:$0xff] }
 0x233   : > { %2999 = vmatpush.msrb.mxu2 %v2548_v28  ;;  %3019 = vmatpush.msrb.mxu3 %v2628_v30  ;;  %v2429_v28 = vld [vmem:[#allocation7 + $0x270] sm:$0xff] }
 0x234   : > { %2960 = vmatpush.msrb.mxu0 %v2383_v31  ;;  %2980 = vmatpush.msrb.mxu1 %v2463_v32  ;;  %v2509_v31 = vld [vmem:[#allocation7 + $0x4f0] sm:$0xff] }
 0x235   : > { %3000 = vmatpush.msrb.mxu2 %v2543_v33  ;;  %3020 = vmatpush.msrb.mxu3 %v2623_v35  ;;  %v2589_v32 = vld [vmem:[#allocation7 + $0x770] sm:$0xff]  ;;  %v2743_v33 = vld [vmem:[#allocation7 + $0xc40] sm:$0xff]  ;;  %v2424_v35 = vld [vmem:[#allocation7 + $0x248] sm:$0xff] }
 0x236   : > { %2961 = vmatpush.msrb.mxu0 %v2378_v34  ;;  %2981 = vmatpush.msrb.mxu1 %v2458_v37  ;;  %v2504_v37 = vld [vmem:[#allocation7 + $0x4c8] sm:$0xff] }
 0x237   : > { %3001 = vmatpush.msrb.mxu2 %v2538_v38  ;;  %3021 = vmatpush.msrb.mxu3 %v2618_v39  ;;  %v1848_v45 = vpop.f32.mrf.mxu0  ;;  %v1868_v47 = vpop.f32.mrf.mxu1  ;;  %v2584_v38 = vld [vmem:[#allocation7 + $0x748] sm:$0xff] }
 0x238   : > { %2962 = vmatpush.msrb.mxu0 %v2373_v42  ;;  %2982 = vmatpush.msrb.mxu1 %v2453_v51  ;;  %v5471_v49 = vadd.f32 %v1848_v45, %v5463_v36   ;;  %v1869_v61 = vadd.f32 %v1868_v47, %v5428_v59  ;;  %v2353_v36 = vld [vmem:[#allocation7 + $0x10] sm:$0xff]  ;;  %v2738_v42 = vld [vmem:[#allocation7 + $0xc18] sm:$0xff]  ;;  %v2419_v51 = vld [vmem:[#allocation7 + $0x220] sm:$0xff] }
 0x239   : > { %3002 = vmatpush.msrb.mxu2 %v2533_v56  ;;  %3022 = vmatpush.msrb.mxu3 %v2613_v41  ;;  %v2433_v59 = vld [vmem:[#allocation7 + $0x290] sm:$0xff]  ;;  %v2499_v56 = vld [vmem:[#allocation7 + $0x4a0] sm:$0xff]  ;;  %v2494_v45 = vld [vmem:[#allocation7 + $0x478] sm:$0xff] }
 0x23a   : > { %2963 = vmatpush.msrb.mxu0 %v2368_v43  ;;  %2983 = vmatpush.msrb.mxu1 %v2448_v44  ;;  %v2579_v41 = vld [vmem:[#allocation7 + $0x720] sm:$0xff]  ;;  %v2733_v43 = vld [vmem:[#allocation7 + $0xbf0] sm:$0xff]  ;;  %v2414_v44 = vld [vmem:[#allocation7 + $0x1f8] sm:$0xff] }
 0x23b   : > { %3003 = vmatpush.msrb.mxu2 %v2528_v48  ;;  %3023 = vmatpush.msrb.mxu3 %v2608_v60  ;;  %v2574_v47 = vld [vmem:[#allocation7 + $0x6f8] sm:$0xff]  ;;  %v2728_v48 = vld [vmem:[#allocation7 + $0xbc8] sm:$0xff]  ;;  %v2409_v60 = vld [vmem:[#allocation7 + $0x1d0] sm:$0xff] }
 0x23c   : > { %2964 = vmatpush.msrb.mxu0 %v2363_v29  ;;  %2984 = vmatpush.msrb.mxu1 %v2443_v50  ;;  %v2569_v29 = vld [vmem:[#allocation7 + $0x6d0] sm:$0xff]  ;;  %v2723_v50 = vld [vmem:[#allocation7 + $0xba0] sm:$0xff] }
 0x23d   : > { %3004 = vmatpush.msrb.mxu2 %v2523_v52  ;;  %3024 = vmatpush.msrb.mxu3 %v2603_v63  ;;  %v2404_v52 = vld [vmem:[#allocation7 + $0x1a8] sm:$0xff] }
 0x23e   : > { %2965 = vmatpush.msrb.mxu0 %v2358_v53  ;;  %2985 = vmatpush.msrb.mxu1 %v2438_v55  ;;  %v1888_v26 = vpop.f32.mrf.mxu2  ;;  %v2484_v63 = vld [vmem:[#allocation7 + $0x428] sm:$0xff]  ;;  %v2718_v55 = vld [vmem:[#allocation7 + $0xb78] sm:$0xff] }
 0x23f   : > { %3005 = vmatpush.msrb.mxu2 %v2518_v54  ;;  %3025 = vmatpush.msrb.mxu3 %v2598_v58  ;;  %v1889_v30 = vadd.f32 %v1888_v26, %v1869_v61  ;;  %v2489_v61 = vld [vmem:[#allocation7 + $0x450] sm:$0xff]  ;;  %v2564_v53 = vld [vmem:[#allocation7 + $0x6a8] sm:$0xff]  ;;  %v2399_v54 = vld [vmem:[#allocation7 + $0x180] sm:$0xff] }
 0x240   : > { %2966 = vmatpush.msrb.mxu0 %v2353_v36  ;;  %2986 = vmatpush.msrb.mxu1 %v2433_v59  ;;  %v2479_v58 = vld [vmem:[#allocation7 + $0x400] sm:$0xff]  ;;  %v2713_v59 = vld [vmem:[#allocation7 + $0xb50] sm:$0xff]  ;;  %v2554_v26 = vld [vmem:[#allocation7 + $0x658] sm:$0xff] }
 0x241   : > { %3006 = vmatpush.msrb.mxu2 %v2513_v62  ;;  %3026 = vmatpush.msrb.mxu3 %v2593_v25  ;;  %v1908_v34 = vpop.f32.mrf.mxu3  ;;  %v2559_v36 = vld [vmem:[#allocation7 + $0x680] sm:$0xff]  ;;  %v2394_v62 = vld [vmem:[#allocation7 + $0x158] sm:$0xff] }
 0x242   : > { %3031 = vmatpush.msra.mxu0 %v2748_v27  ;;  %3051 = vmatpush.msra.mxu1 %v2429_v28  ;;  %v5474_v39 = vadd.f32 %v1908_v34, %v1889_v30  ;;  %v2474_v25 = vld [vmem:[#allocation7 + $0x3d8] sm:$0xff]  ;;  %v2708_v27 = vld [vmem:[#allocation7 + $0xb28] sm:$0xff]  ;;  %v2389_v28 = vld [vmem:[#allocation7 + $0x130] sm:$0xff] }
 0x243   : > { %3071 = vmatpush.msra.mxu2 %v2509_v31  ;;  %3091 = vmatpush.msra.mxu3 %v2589_v32  ;;  %v2469_v30 = vld [vmem:[#allocation7 + $0x3b0] sm:$0xff]  ;;  %v2703_v32 = vld [vmem:[#allocation7 + $0xb00] sm:$0xff]  ;;  %v2544_v34 = vld [vmem:[#allocation7 + $0x608] sm:$0xff] }
 0x244   : > { %3032 = vmatpush.msra.mxu0 %v2743_v33  ;;  %3052 = vmatpush.msra.mxu1 %v2424_v35  ;;  %v2549_v31 = vld [vmem:[#allocation7 + $0x630] sm:$0xff]  ;;  %v2384_v33 = vld [vmem:[#allocation7 + $0x108] sm:$0xff] }
 0x245   : > { %3072 = vmatpush.msra.mxu2 %v2504_v37  ;;  %3092 = vmatpush.msra.mxu3 %v2584_v38  ;;  %v2464_v35 = vld [vmem:[#allocation7 + $0x388] sm:$0xff]  ;;  %v2698_v37 = vld [vmem:[#allocation7 + $0xad8] sm:$0xff]  ;;  %v2379_v38 = vld [vmem:[#allocation7 + $0xe0] sm:$0xff] }
 0x246   : > { %3033 = vmatpush.msra.mxu0 %v2738_v42  ;;  %3053 = vmatpush.msra.mxu1 %v2419_v51  ;;  %v2459_v42 = vld [vmem:[#allocation7 + $0x360] sm:$0xff] }
 0x247   : > { %3073 = vmatpush.msra.mxu2 %v2499_v56  ;;  %3093 = vmatpush.msra.mxu3 %v2579_v41  ;;  %v2539_v51 = vld [vmem:[#allocation7 + $0x5e0] sm:$0xff]  ;;  %v2693_v56 = vld [vmem:[#allocation7 + $0xab0] sm:$0xff]  ;;  %v2374_v41 = vld [vmem:[#allocation7 + $0xb8] sm:$0xff] }
 0x248   : > { %3034 = vmatpush.msra.mxu0 %v2733_v43  ;;  %3054 = vmatpush.msra.mxu1 %v2414_v44  ;;  %v2454_v43 = vld [vmem:[#allocation7 + $0x338] sm:$0xff] }
 0x249   : > { %3074 = vmatpush.msra.mxu2 %v2494_v45  ;;  %3094 = vmatpush.msra.mxu3 %v2574_v47  ;;  %v2534_v44 = vld [vmem:[#allocation7 + $0x5b8] sm:$0xff]  ;;  %v2688_v45 = vld [vmem:[#allocation7 + $0xa88] sm:$0xff]  ;;  %v2369_v47 = vld [vmem:[#allocation7 + $0x90] sm:$0xff] }
 0x24a   : > { %3035 = vmatpush.msra.mxu0 %v2728_v48  ;;  %3055 = vmatpush.msra.mxu1 %v2409_v60  ;;  %v2449_v48 = vld [vmem:[#allocation7 + $0x310] sm:$0xff] }
 0x24b   : > { %3075 = vmatpush.msra.mxu2 %v2489_v61  ;;  %3095 = vmatpush.msra.mxu3 %v2569_v29  ;;  %v2529_v60 = vld [vmem:[#allocation7 + $0x590] sm:$0xff]  ;;  %v2683_v61 = vld [vmem:[#allocation7 + $0xa60] sm:$0xff]  ;;  %v2364_v29 = vld [vmem:[#allocation7 + $0x68] sm:$0xff] }
 0x24c   : > { %3036 = vmatpush.msra.mxu0 %v2723_v50  ;;  %3056 = vmatpush.msra.mxu1 %v2404_v52  ;;  %v2444_v52 = vld [vmem:[#allocation7 + $0x2e8] sm:$0xff] }
 0x24d   : > { %3076 = vmatpush.msra.mxu2 %v2484_v63  ;;  %3096 = vmatpush.msra.mxu3 %v2564_v53  ;;  %v2524_v63 = vld [vmem:[#allocation7 + $0x568] sm:$0xff] }
 0x24e   : > { %3037 = vmatpush.msra.mxu0 %v2718_v55  ;;  %3057 = vmatpush.msra.mxu1 %v2399_v54  ;;  %v2678_v55 = vld [vmem:[#allocation7 + $0xa38] sm:$0xff]  ;;  %v2359_v54 = vld [vmem:[#allocation7 + $0x40] sm:$0xff] }
 0x24f   : > { %3077 = vmatpush.msra.mxu2 %v2479_v58  ;;  %3097 = vmatpush.msra.mxu3 %v2559_v36  ;;  %v2439_v36 = vld [vmem:[#allocation7 + $0x2c0] sm:$0xff] }
 0x250   : > { %3038 = vmatpush.msra.mxu0 %v2713_v59  ;;  %3058 = vmatpush.msra.mxu1 %v2394_v62  ;;  %v2519_v59 = vld [vmem:[#allocation7 + $0x540] sm:$0xff] }
 0x251   : > { %3078 = vmatpush.msra.mxu2 %v2474_v25  ;;  %3098 = vmatpush.msra.mxu3 %v2554_v26  ;;  %v2673_v25 = vld [vmem:[#allocation7 + $0xa10] sm:$0xff]  ;;  %v2354_v26 = vld [vmem:[#allocation7 + $0x18] sm:$0xff] }
 0x252   : > { %3039 = vmatpush.msra.mxu0 %v2708_v27  ;;  %3059 = vmatpush.msra.mxu1 %v2389_v28  ;;  %v2434_v27 = vld [vmem:[#allocation7 + $0x298] sm:$0xff]  ;;  %v2669_v28 = vld [vmem:[#allocation7 + $0x9f0] sm:$0xff] }
 0x253   : > { %3079 = vmatpush.msra.mxu2 %v2469_v30  ;;  %3099 = vmatpush.msra.mxu3 %v2549_v31  ;;  %v2749_v30 = vld [vmem:[#allocation7 + $0xc70] sm:$0xff]  ;;  %v2430_v31 = vld [vmem:[#allocation7 + $0x278] sm:$0xff] }
 0x254   : > { %3040 = vmatpush.msra.mxu0 %v2703_v32  ;;  %3060 = vmatpush.msra.mxu1 %v2384_v33  ;;  %v2510_v32 = vld [vmem:[#allocation7 + $0x4f8] sm:$0xff]  ;;  %v2664_v33 = vld [vmem:[#allocation7 + $0x9c8] sm:$0xff] }
 0x255   : > { %3080 = vmatpush.msra.mxu2 %v2464_v35  ;;  %3100 = vmatpush.msra.mxu3 %v2544_v34  ;;  %v2744_v35 = vld [vmem:[#allocation7 + $0xc48] sm:$0xff]  ;;  %v2425_v34 = vld [vmem:[#allocation7 + $0x250] sm:$0xff] }
 0x256   : > { %3041 = vmatpush.msra.mxu0 %v2698_v37  ;;  %3061 = vmatpush.msra.mxu1 %v2379_v38  ;;  %v2505_v37 = vld [vmem:[#allocation7 + $0x4d0] sm:$0xff]  ;;  %v2659_v38 = vld [vmem:[#allocation7 + $0x9a0] sm:$0xff] }
 0x257   : > { %3081 = vmatpush.msra.mxu2 %v2459_v42  ;;  %3101 = vmatpush.msra.mxu3 %v2539_v51  ;;  %v2739_v42 = vld [vmem:[#allocation7 + $0xc20] sm:$0xff]  ;;  %v2420_v51 = vld [vmem:[#allocation7 + $0x228] sm:$0xff] }
 0x258   : > { %3042 = vmatpush.msra.mxu0 %v2693_v56  ;;  %3062 = vmatpush.msra.mxu1 %v2374_v41  ;;  %v2500_v56 = vld [vmem:[#allocation7 + $0x4a8] sm:$0xff]  ;;  %v2654_v41 = vld [vmem:[#allocation7 + $0x978] sm:$0xff] }
 0x259   : > { %3082 = vmatpush.msra.mxu2 %v2454_v43  ;;  %3102 = vmatpush.msra.mxu3 %v2534_v44  ;;  %v1928_v50 = vpop.f32.mrf.mxu0  ;;  %v2734_v43 = vld [vmem:[#allocation7 + $0xbf8] sm:$0xff]  ;;  %v2415_v44 = vld [vmem:[#allocation7 + $0x200] sm:$0xff] }
 0x25a   : > { %3043 = vmatpush.msra.mxu0 %v2688_v45  ;;  %3063 = vmatpush.msra.mxu1 %v2369_v47  ;;  %v1929_v53 = vadd.f32 %v1928_v50, %v5474_v39  ;;  %v2514_v39 = vld [vmem:[#allocation7 + $0x518] sm:$0xff]  ;;  %v2495_v45 = vld [vmem:[#allocation7 + $0x480] sm:$0xff]  ;;  %v2729_v47 = vld [vmem:[#allocation7 + $0xbd0] sm:$0xff] }
 0x25b   : > { %3083 = vmatpush.msra.mxu2 %v2449_v48  ;;  %3103 = vmatpush.msra.mxu3 %v2529_v60  ;;  %v1948_v58 = vpop.f32.mrf.mxu1  ;;  %v2649_v48 = vld [vmem:[#allocation7 + $0x950] sm:$0xff]  ;;  %v2410_v60 = vld [vmem:[#allocation7 + $0x1d8] sm:$0xff]  ;;  %v2644_v50 = vld [vmem:[#allocation7 + $0x928] sm:$0xff] }
 0x25c   : > { %3044 = vmatpush.msra.mxu0 %v2683_v61  ;;  %3064 = vmatpush.msra.mxu1 %v2364_v29  ;;  %v5477_v62 = vadd.f32 %v1948_v58, %v1929_v53   ;;  %v2490_v61 = vld [vmem:[#allocation7 + $0x458] sm:$0xff]  ;;  %v2724_v29 = vld [vmem:[#allocation7 + $0xba8] sm:$0xff]  ;;  %v2719_v53 = vld [vmem:[#allocation7 + $0xb80] sm:$0xff] }
 0x25d   : > { %3084 = vmatpush.msra.mxu2 %v2444_v52  ;;  %3104 = vmatpush.msra.mxu3 %v2524_v63  ;;  %v2405_v52 = vld [vmem:[#allocation7 + $0x1b0] sm:$0xff]  ;;  %v2480_v58 = vld [vmem:[#allocation7 + $0x408] sm:$0xff] }
 0x25e   : > { %3045 = vmatpush.msra.mxu0 %v2678_v55  ;;  %3065 = vmatpush.msra.mxu1 %v2359_v54  ;;  %v2485_v63 = vld [vmem:[#allocation7 + $0x430] sm:$0xff]  ;;  %v2639_v55 = vld [vmem:[#allocation7 + $0x900] sm:$0xff]  ;;  %v2400_v54 = vld [vmem:[#allocation7 + $0x188] sm:$0xff] }
 0x25f   : > { %3085 = vmatpush.msra.mxu2 %v2439_v36  ;;  %3105 = vmatpush.msra.mxu3 %v2519_v59  ;;  %v2714_v36 = vld [vmem:[#allocation7 + $0xb58] sm:$0xff] }
 0x260   : > { %3007 = vmatmul.f32.vlgmr.msrb.gmra.mxu2 %v5130_v17  ;;  %3046 = vmatpush.msra.mxu0 %v2673_v25  ;;  %v2634_v59 = vld [vmem:[#allocation7 + $0x8d8] sm:$0xff]  ;;  %v2395_v25 = vld [vmem:[#allocation7 + $0x160] sm:$0xff] }
 0x261   : > { %3066 = vmatpush.msra.mxu1 %v2354_v26  ;;  %3086 = vmatpush.msra.mxu2 %v2434_v27  ;;  %v2475_v26 = vld [vmem:[#allocation7 + $0x3e0] sm:$0xff]  ;;  %v2709_v27 = vld [vmem:[#allocation7 + $0xb30] sm:$0xff] }
 0x262   : > { %3106 = vmatpush.msra.mxu3 %v2514_v39  ;;  %2967 = vmatmul.f32.vlgmr.msrb.gmra.mxu0 %v5138_v19  ;;  %v2629_v39 = vld [vmem:[#allocation7 + $0x8b0] sm:$0xff] }
 0x263   : > { %2987 = vmatmul.f32.vlgmr.msrb.gmra.mxu1 %v5134_v18  ;;  %3027 = vmatmul.f32.vlgmr.msrb.gmra.mxu3 %v5126_v16 }
 0x264   : > { %3111 = vmatpush.msrb.mxu0 %v2669_v28  ;;  %3131 = vmatpush.msrb.mxu1 %v2749_v30  ;;  %v2390_v28 = vld [vmem:[#allocation7 + $0x138] sm:$0xff] }
 0x265   : > { %3151 = vmatpush.msrb.mxu2 %v2430_v31  ;;  %3171 = vmatpush.msrb.mxu3 %v2510_v32  ;;  %v2470_v30 = vld [vmem:[#allocation7 + $0x3b8] sm:$0xff]  ;;  %v2704_v31 = vld [vmem:[#allocation7 + $0xb08] sm:$0xff] }
 0x266   : > { %3112 = vmatpush.msrb.mxu0 %v2664_v33  ;;  %3132 = vmatpush.msrb.mxu1 %v2744_v35  ;;  %v2624_v32 = vld [vmem:[#allocation7 + $0x888] sm:$0xff]  ;;  %v2385_v33 = vld [vmem:[#allocation7 + $0x110] sm:$0xff] }
 0x267   : > { %3152 = vmatpush.msrb.mxu2 %v2425_v34  ;;  %3172 = vmatpush.msrb.mxu3 %v2505_v37  ;;  %v2465_v35 = vld [vmem:[#allocation7 + $0x390] sm:$0xff]  ;;  %v2699_v34 = vld [vmem:[#allocation7 + $0xae0] sm:$0xff] }
 0x268   : > { %3113 = vmatpush.msrb.mxu0 %v2659_v38  ;;  %3133 = vmatpush.msrb.mxu1 %v2739_v42  ;;  %v2619_v37 = vld [vmem:[#allocation7 + $0x860] sm:$0xff]  ;;  %v2380_v38 = vld [vmem:[#allocation7 + $0xe8] sm:$0xff] }
 0x269   : > { %3153 = vmatpush.msrb.mxu2 %v2420_v51  ;;  %3173 = vmatpush.msrb.mxu3 %v2500_v56  ;;  %v2460_v42 = vld [vmem:[#allocation7 + $0x368] sm:$0xff]  ;;  %v2694_v51 = vld [vmem:[#allocation7 + $0xab8] sm:$0xff] }
 0x26a   : > { %3114 = vmatpush.msrb.mxu0 %v2654_v41  ;;  %3134 = vmatpush.msrb.mxu1 %v2734_v43  ;;  %v2614_v56 = vld [vmem:[#allocation7 + $0x838] sm:$0xff]  ;;  %v2375_v41 = vld [vmem:[#allocation7 + $0xc0] sm:$0xff] }
 0x26b   : > { %3154 = vmatpush.msrb.mxu2 %v2415_v44  ;;  %3174 = vmatpush.msrb.mxu3 %v2495_v45  ;;  %v2455_v43 = vld [vmem:[#allocation7 + $0x340] sm:$0xff]  ;;  %v2689_v44 = vld [vmem:[#allocation7 + $0xa90] sm:$0xff] }
 0x26c   : > { %3047 = vmatmul.f32.vlgmr.msra.gmra.mxu0 %v5122_v15  ;;  %3135 = vmatpush.msrb.mxu1 %v2729_v47  ;;  %v2609_v45 = vld [vmem:[#allocation7 + $0x810] sm:$0xff]  ;;  %v2370_v47 = vld [vmem:[#allocation7 + $0x98] sm:$0xff] }
 0x26d   : > { %3115 = vmatpush.msrb.mxu0 %v2649_v48  ;;  %3155 = vmatpush.msrb.mxu2 %v2410_v60  ;;  %v2450_v48 = vld [vmem:[#allocation7 + $0x318] sm:$0xff]  ;;  %v2684_v60 = vld [vmem:[#allocation7 + $0xa68] sm:$0xff] }
 0x26e   : > { %3175 = vmatpush.msrb.mxu3 %v2490_v61  ;;  %3136 = vmatpush.msrb.mxu1 %v2724_v29  ;;  %v2604_v61 = vld [vmem:[#allocation7 + $0x7e8] sm:$0xff]  ;;  %v2365_v29 = vld [vmem:[#allocation7 + $0x70] sm:$0xff] }
 0x26f   : > { %3116 = vmatpush.msrb.mxu0 %v2644_v50  ;;  %3156 = vmatpush.msrb.mxu2 %v2405_v52  ;;  %v2445_v50 = vld [vmem:[#allocation7 + $0x2f0] sm:$0xff]  ;;  %v2679_v52 = vld [vmem:[#allocation7 + $0xa40] sm:$0xff] }
 0x270   : > { %3176 = vmatpush.msrb.mxu3 %v2485_v63  ;;  %3137 = vmatpush.msrb.mxu1 %v2719_v53  ;;  %v2599_v63 = vld [vmem:[#allocation7 + $0x7c0] sm:$0xff]  ;;  %v2360_v53 = vld [vmem:[#allocation7 + $0x48] sm:$0xff] }
 0x271   : > { %3117 = vmatpush.msrb.mxu0 %v2639_v55  ;;  %3157 = vmatpush.msrb.mxu2 %v2400_v54  ;;  %v2440_v54 = vld [vmem:[#allocation7 + $0x2c8] sm:$0xff] }
 0x272   : > { %3177 = vmatpush.msrb.mxu3 %v2480_v58  ;;  %3138 = vmatpush.msrb.mxu1 %v2714_v36  ;;  %v2594_v58 = vld [vmem:[#allocation7 + $0x798] sm:$0xff] }
 0x273   : > { %3118 = vmatpush.msrb.mxu0 %v2634_v59  ;;  %3158 = vmatpush.msrb.mxu2 %v2395_v25  ;;  %v2674_v36 = vld [vmem:[#allocation7 + $0xa18] sm:$0xff]  ;;  %v2355_v59 = vld [vmem:[#allocation7 + $0x20] sm:$0xff] }
 0x274   : > { %3178 = vmatpush.msrb.mxu3 %v2475_v26  ;;  %3139 = vmatpush.msrb.mxu1 %v2709_v27  ;;  %v2435_v25 = vld [vmem:[#allocation7 + $0x2a0] sm:$0xff] }
 0x275   : > { %3119 = vmatpush.msrb.mxu0 %v2629_v39  ;;  %3159 = vmatpush.msrb.mxu2 %v2390_v28  ;;  %v2590_v39 = vld [vmem:[#allocation7 + $0x778] sm:$0xff] }
 0x276   : > { %3179 = vmatpush.msrb.mxu3 %v2470_v30  ;;  %3140 = vmatpush.msrb.mxu1 %v2704_v31  ;;  %v2670_v28 = vld [vmem:[#allocation7 + $0x9f8] sm:$0xff] }
 0x277   : > { %3120 = vmatpush.msrb.mxu0 %v2624_v32  ;;  %3160 = vmatpush.msrb.mxu2 %v2385_v33  ;;  %v2750_v31 = vld [vmem:[#allocation7 + $0xc78] sm:$0xff] }
 0x278   : > { %3180 = vmatpush.msrb.mxu3 %v2465_v35  ;;  %3141 = vmatpush.msrb.mxu1 %v2699_v34  ;;  %v2026_v32 = vld [vmem:[#allocation6 + $0x258] sm:$0xff]  ;;  %v2585_v35 = vld [vmem:[#allocation7 + $0x750] sm:$0xff] }
 0x279   : > { %3121 = vmatpush.msrb.mxu0 %v2619_v37  ;;  %3161 = vmatpush.msrb.mxu2 %v2380_v38  ;;  %v2665_v34 = vld [vmem:[#allocation7 + $0x9d0] sm:$0xff] }
 0x27a   : > { %3181 = vmatpush.msrb.mxu3 %v2460_v42  ;;  %3142 = vmatpush.msrb.mxu1 %v2694_v51  ;;  %v2745_v37 = vld [vmem:[#allocation7 + $0xc50] sm:$0xff]  ;;  %v2580_v51 = vld [vmem:[#allocation7 + $0x728] sm:$0xff] }
 0x27b   : > { %3122 = vmatpush.msrb.mxu0 %v2614_v56  ;;  %3162 = vmatpush.msrb.mxu2 %v2375_v41  ;;  %v2021_v38 = vld [vmem:[#allocation6 + $0x230] sm:$0xff]  ;;  %v2660_v56 = vld [vmem:[#allocation7 + $0x9a8] sm:$0xff] }
 0x27c   : > { %3182 = vmatpush.msrb.mxu3 %v2455_v43  ;;  %3143 = vmatpush.msrb.mxu1 %v2689_v44  ;;  %v2740_v44 = vld [vmem:[#allocation7 + $0xc28] sm:$0xff] }
 0x27d   : > { %3123 = vmatpush.msrb.mxu0 %v2609_v45  ;;  %3163 = vmatpush.msrb.mxu2 %v2370_v47  ;;  %v2016_v45 = vld [vmem:[#allocation6 + $0x208] sm:$0xff]  ;;  %v2575_v47 = vld [vmem:[#allocation7 + $0x700] sm:$0xff] }
 0x27e   : > { %3183 = vmatpush.msrb.mxu3 %v2450_v48  ;;  %3144 = vmatpush.msrb.mxu1 %v2684_v60  ;;  %v2768_v55 = vpop.f32.mrf.mxu2  ;;  %v2655_v48 = vld [vmem:[#allocation7 + $0x980] sm:$0xff] }
 0x27f   : > { %3124 = vmatpush.msrb.mxu0 %v2604_v61  ;;  %3164 = vmatpush.msrb.mxu2 %v2365_v29  ;;  %v2735_v61 = vld [vmem:[#allocation7 + $0xc00] sm:$0xff] }
 0x280   : > { %3184 = vmatpush.msrb.mxu3 %v2445_v50  ;;  %3145 = vmatpush.msrb.mxu1 %v2679_v52  ;;  %v2011_v29 = vld [vmem:[#allocation6 + $0x1e0] sm:$0xff]  ;;  %v2650_v50 = vld [vmem:[#allocation7 + $0x958] sm:$0xff] }
 0x281   : > { %3125 = vmatpush.msrb.mxu0 %v2599_v63  ;;  %3165 = vmatpush.msrb.mxu2 %v2360_v53  ;;  %v2788_v26 = vpop.f32.mrf.mxu3  ;;  %v2570_v52 = vld [vmem:[#allocation7 + $0x6d8] sm:$0xff] }
 0x282   : > { %3185 = vmatpush.msrb.mxu3 %v2440_v54  ;;  %3087 = vmatmul.f32.vlgmr.msra.gmra.mxu2 %v5134_v18  ;;  %v2789_v27 = vadd.f32 %v2788_v26, %v2768_v55  ;;  %v2730_v63 = vld [vmem:[#allocation7 + $0xbd8] sm:$0xff]  ;;  %v2565_v55 = vld [vmem:[#allocation7 + $0x6b0] sm:$0xff]  ;;  %v2720_v26 = vld [vmem:[#allocation7 + $0xb88] sm:$0xff] }
 0x283   : > { %3126 = vmatpush.msrb.mxu0 %v2594_v58  ;;  %3146 = vmatpush.msrb.mxu1 %v2674_v36  ;;  %v2808_v30 = vpop.f32.mrf.mxu0  ;;  %v2006_v53 = vld [vmem:[#allocation6 + $0x1b8] sm:$0xff]  ;;  %v2645_v54 = vld [vmem:[#allocation7 + $0x930] sm:$0xff] }
 0x284   : > { %3166 = vmatpush.msrb.mxu2 %v2355_v59  ;;  %3186 = vmatpush.msrb.mxu3 %v2435_v25  ;;  %v2809_v33 = vadd.f32 %v2808_v30, %v2789_v27  ;;  %v2725_v58 = vld [vmem:[#allocation7 + $0xbb0] sm:$0xff]  ;;  %v2560_v59 = vld [vmem:[#allocation7 + $0x688] sm:$0xff]  ;;  %v2715_v30 = vld [vmem:[#allocation7 + $0xb60] sm:$0xff] }
 0x285   : > { %3067 = vmatmul.f32.vlgmr.msra.gmra.mxu1 %v5138_v19  ;;  %3107 = vmatmul.f32.vlgmr.msra.gmra.mxu3 %v5130_v17  ;;  %v2001_v36 = vld [vmem:[#allocation6 + $0x190] sm:$0xff]  ;;  %v2640_v25 = vld [vmem:[#allocation7 + $0x908] sm:$0xff] }
 0x286   : > { %3191 = vmatpush.msra.mxu0 %v2590_v39  ;;  %3211 = vmatpush.msra.mxu1 %v2670_v28  ;;  %v2828_v42 = vpop.f32.mrf.mxu1  ;;  %v1996_v27 = vld [vmem:[#allocation6 + $0x168] sm:$0xff]  ;;  %v2555_v39 = vld [vmem:[#allocation7 + $0x660] sm:$0xff] }
 0x287   : > { %3231 = vmatpush.msra.mxu2 %v2750_v31  ;;  %3251 = vmatpush.msra.mxu3 %v2026_v32  ;;  %v2829_v41 = vadd.f32 %v2828_v42, %v2809_v33  ;;  %v2848_v43 = vpop.f32.mrf.mxu2  ;;  %v2635_v28 = vld [vmem:[#allocation7 + $0x8e0] sm:$0xff]  ;;  %v2550_v32 = vld [vmem:[#allocation7 + $0x638] sm:$0xff]  ;;  %v2705_v42 = vld [vmem:[#allocation7 + $0xb10] sm:$0xff] }
 0x288   : > { %3192 = vmatpush.msra.mxu0 %v2585_v35  ;;  %3212 = vmatpush.msra.mxu1 %v2665_v34  ;;  %v1991_v31 = vld [vmem:[#allocation6 + $0x140] sm:$0xff]  ;;  %v2630_v33 = vld [vmem:[#allocation7 + $0x8b8] sm:$0xff] }
 0x289   : > { %3232 = vmatpush.msra.mxu2 %v2745_v37  ;;  %3252 = vmatpush.msra.mxu3 %v2021_v38  ;;  %v5487_v60 = vadd.f32 %v2848_v43, %v2829_v41  ;;  %v2710_v35 = vld [vmem:[#allocation7 + $0xb38] sm:$0xff]  ;;  %v2545_v37 = vld [vmem:[#allocation7 + $0x610] sm:$0xff]  ;;  %v2620_v41 = vld [vmem:[#allocation7 + $0x868] sm:$0xff] }
 0x28a   : > { %3193 = vmatpush.msra.mxu0 %v2580_v51  ;;  %3213 = vmatpush.msra.mxu1 %v2660_v56  ;;  %v1986_v34 = vld [vmem:[#allocation6 + $0x118] sm:$0xff]  ;;  %v2625_v38 = vld [vmem:[#allocation7 + $0x890] sm:$0xff]  ;;  %v2540_v56 = vld [vmem:[#allocation7 + $0x5e8] sm:$0xff] }
 0x28b   : > { %3233 = vmatpush.msra.mxu2 %v2740_v44  ;;  %3253 = vmatpush.msra.mxu3 %v2016_v45  ;;  %v1981_v51 = vld [vmem:[#allocation6 + $0xf0] sm:$0xff]  ;;  %v2700_v43 = vld [vmem:[#allocation7 + $0xae8] sm:$0xff]  ;;  %v2535_v45 = vld [vmem:[#allocation7 + $0x5c0] sm:$0xff] }
 0x28c   : > { %3194 = vmatpush.msra.mxu0 %v2575_v47  ;;  %3214 = vmatpush.msra.mxu1 %v2655_v48  ;;  %v1976_v44 = vld [vmem:[#allocation6 + $0xc8] sm:$0xff]  ;;  %v2615_v47 = vld [vmem:[#allocation7 + $0x840] sm:$0xff] }
 0x28d   : > { %3234 = vmatpush.msra.mxu2 %v2735_v61  ;;  %3254 = vmatpush.msra.mxu3 %v2011_v29  ;;  %v2695_v48 = vld [vmem:[#allocation7 + $0xac0] sm:$0xff]  ;;  %v2530_v29 = vld [vmem:[#allocation7 + $0x598] sm:$0xff] }
 0x28e   : > { %3127 = vmatmul.f32.vlgmr.msrb.gmra.mxu0 %v5126_v16  ;;  %3215 = vmatpush.msra.mxu1 %v2650_v50  ;;  %v1971_v61 = vld [vmem:[#allocation6 + $0xa0] sm:$0xff]  ;;  %v2610_v50 = vld [vmem:[#allocation7 + $0x818] sm:$0xff] }
 0x28f   : > { %3195 = vmatpush.msra.mxu0 %v2570_v52  ;;  %3235 = vmatpush.msra.mxu2 %v2730_v63  ;;  %v2690_v52 = vld [vmem:[#allocation7 + $0xa98] sm:$0xff] }
 0x290   : > { %3255 = vmatpush.msra.mxu3 %v2006_v53  ;;  %3147 = vmatmul.f32.vlgmr.msrb.gmra.mxu1 %v5122_v15  ;;  %v1966_v63 = vld [vmem:[#allocation6 + $0x78] sm:$0xff]  ;;  %v2525_v53 = vld [vmem:[#allocation7 + $0x570] sm:$0xff] }
 0x291   : > { %3196 = vmatpush.msra.mxu0 %v2565_v55  ;;  %3216 = vmatpush.msra.mxu1 %v2645_v54  ;;  %v2605_v55 = vld [vmem:[#allocation7 + $0x7f0] sm:$0xff] }
 0x292   : > { %3236 = vmatpush.msra.mxu2 %v2725_v58  ;;  %3256 = vmatpush.msra.mxu3 %v2001_v36  ;;  %v2685_v54 = vld [vmem:[#allocation7 + $0xa70] sm:$0xff]  ;;  %v2520_v36 = vld [vmem:[#allocation7 + $0x548] sm:$0xff] }
 0x293   : > { %3197 = vmatpush.msra.mxu0 %v2560_v59  ;;  %3217 = vmatpush.msra.mxu1 %v2640_v25  ;;  %v1961_v58 = vld [vmem:[#allocation6 + $0x50] sm:$0xff]  ;;  %v2600_v59 = vld [vmem:[#allocation7 + $0x7c8] sm:$0xff] }
 0x294   : > { %3237 = vmatpush.msra.mxu2 %v2720_v26  ;;  %3257 = vmatpush.msra.mxu3 %v1996_v27  ;;  %v2680_v25 = vld [vmem:[#allocation7 + $0xa48] sm:$0xff]  ;;  %v2515_v27 = vld [vmem:[#allocation7 + $0x520] sm:$0xff] }
 0x295   : > { %3198 = vmatpush.msra.mxu0 %v2555_v39  ;;  %3218 = vmatpush.msra.mxu1 %v2635_v28  ;;  %v1956_v26 = vld [vmem:[#allocation6 + $0x28] sm:$0xff]  ;;  %v2595_v39 = vld [vmem:[#allocation7 + $0x7a0] sm:$0xff] }
 0x296   : > { %3238 = vmatpush.msra.mxu2 %v2715_v30  ;;  %3258 = vmatpush.msra.mxu3 %v1991_v31  ;;  %v1951_v30 = vld [vmem:[#allocation6] sm:$0xff]  ;;  %v2106_v31 = vld [vmem:[#allocation6 + $0x4d8] sm:$0xff] }
 0x297   : > { %3199 = vmatpush.msra.mxu0 %v2550_v32  ;;  %3219 = vmatpush.msra.mxu1 %v2630_v33  ;;  %v2186_v33 = vld [vmem:[#allocation6 + $0x758] sm:$0xff] }
 0x298   : > { %3239 = vmatpush.msra.mxu2 %v2710_v35  ;;  %3259 = vmatpush.msra.mxu3 %v1986_v34  ;;  %v2266_v35 = vld [vmem:[#allocation6 + $0x9d8] sm:$0xff] }
 0x299   : > { %3200 = vmatpush.msra.mxu0 %v2545_v37  ;;  %3220 = vmatpush.msra.mxu1 %v2625_v38  ;;  %v2346_v37 = vld [vmem:[#allocation6 + $0xc58] sm:$0xff]  ;;  %v2101_v38 = vld [vmem:[#allocation6 + $0x4b0] sm:$0xff] }
 0x29a   : > { %3240 = vmatpush.msra.mxu2 %v2705_v42  ;;  %3260 = vmatpush.msra.mxu3 %v1981_v51  ;;  %v2181_v42 = vld [vmem:[#allocation6 + $0x730] sm:$0xff] }
 0x29b   : > { %3201 = vmatpush.msra.mxu0 %v2540_v56  ;;  %3221 = vmatpush.msra.mxu1 %v2620_v41  ;;  %v2261_v51 = vld [vmem:[#allocation6 + $0x9b0] sm:$0xff]  ;;  %v2096_v41 = vld [vmem:[#allocation6 + $0x488] sm:$0xff] }
 0x29c   : > { %3241 = vmatpush.msra.mxu2 %v2700_v43  ;;  %3261 = vmatpush.msra.mxu3 %v1976_v44 }
 0x29d   : > { %3202 = vmatpush.msra.mxu0 %v2535_v45  ;;  %3222 = vmatpush.msra.mxu1 %v2615_v47  ;;  %v2176_v45 = vld [vmem:[#allocation6 + $0x708] sm:$0xff] }
 0x29e   : > { %3242 = vmatpush.msra.mxu2 %v2695_v48  ;;  %3262 = vmatpush.msra.mxu3 %v1971_v61  ;;  %v2256_v47 = vld [vmem:[#allocation6 + $0x988] sm:$0xff] }
 0x29f   : > { %3187 = vmatmul.f32.vlgmr.msrb.gmra.mxu3 %v5134_v18  ;;  %3203 = vmatpush.msra.mxu0 %v2530_v29  ;;  %v2675_v18 = vld [vmem:[#allocation7 + $0xa20] sm:$0xff]  ;;  %v2336_v48 = vld [vmem:[#allocation6 + $0xc08] sm:$0xff] }
 0x2a0   : > { %3223 = vmatpush.msra.mxu1 %v2610_v50  ;;  %3243 = vmatpush.msra.mxu2 %v2690_v52  ;;  %v2091_v29 = vld [vmem:[#allocation6 + $0x460] sm:$0xff] }
 0x2a1   : > { %3263 = vmatpush.msra.mxu3 %v1966_v63  ;;  %3204 = vmatpush.msra.mxu0 %v2525_v53  ;;  %v2171_v50 = vld [vmem:[#allocation6 + $0x6e0] sm:$0xff] }
 0x2a2   : > { %3224 = vmatpush.msra.mxu1 %v2605_v55  ;;  %3244 = vmatpush.msra.mxu2 %v2685_v54  ;;  %v2251_v63 = vld [vmem:[#allocation6 + $0x960] sm:$0xff]  ;;  %v2166_v54 = vld [vmem:[#allocation6 + $0x6b8] sm:$0xff] }
 0x2a3   : > { %3264 = vmatpush.msra.mxu3 %v1961_v58  ;;  %3205 = vmatpush.msra.mxu0 %v2520_v36  ;;  %v2868_v28 = vpop.f32.mrf.mxu3  ;;  %v2331_v53 = vld [vmem:[#allocation6 + $0xbe0] sm:$0xff]  ;;  %v2086_v58 = vld [vmem:[#allocation6 + $0x438] sm:$0xff] }
 0x2a4   : > { %3225 = vmatpush.msra.mxu1 %v2600_v59  ;;  %3245 = vmatpush.msra.mxu2 %v2680_v25  ;;  %v2246_v36 = vld [vmem:[#allocation6 + $0x938] sm:$0xff]  ;;  %v2081_v25 = vld [vmem:[#allocation6 + $0x410] sm:$0xff] }
 0x2a5   : > { %3265 = vmatpush.msra.mxu3 %v1956_v26  ;;  %3167 = vmatmul.f32.vlgmr.msrb.gmra.mxu2 %v5138_v19  ;;  %v2888_v32 = vpop.f32.mrf.mxu0  ;;  %v2341_v19 = vld [vmem:[#allocation6 + $0xc30] sm:$0xff]  ;;  %v2326_v59 = vld [vmem:[#allocation6 + $0xbb8] sm:$0xff] }
 0x2a6   : > { %3206 = vmatpush.msra.mxu0 %v2515_v27  ;;  %3226 = vmatpush.msra.mxu1 %v2595_v39  ;;  %v2889_v34 = vadd.f32 %v2888_v32, %v2868_v28  ;;  %v2161_v26 = vld [vmem:[#allocation6 + $0x690] sm:$0xff]  ;;  %v2156_v28 = vld [vmem:[#allocation6 + $0x668] sm:$0xff]  ;;  %v2231_v32 = vld [vmem:[#allocation6 + $0x8c0] sm:$0xff] }
 0x2a7   : > { %3246 = vmatpush.msra.mxu2 %v2675_v18  ;;  %3266 = vmatpush.msra.mxu3 %v1951_v30  ;;  %v2241_v27 = vld [vmem:[#allocation6 + $0x910] sm:$0xff]  ;;  %v2236_v18 = vld [vmem:[#allocation6 + $0x8e8] sm:$0xff] }
 0x2a8   : > { %3267 = vmatmul.f32.vlgmr.msra.gmra.mxu3 %v5158_v24  ;;  %3271 = vmatpush.msrb.mxu0 %v2106_v31  ;;  %v2908_v56 = vpop.f32.mrf.mxu1  ;;  %v2321_v39 = vld [vmem:[#allocation6 + $0xb90] sm:$0xff]  ;;  %v2316_v30 = vld [vmem:[#allocation6 + $0xb68] sm:$0xff]  ;;  %v2071_v31 = vld [vmem:[#allocation6 + $0x3c0] sm:$0xff] }
 0x2a9   : > { %3291 = vmatpush.msrb.mxu1 %v2186_v33  ;;  %3311 = vmatpush.msrb.mxu2 %v2266_v35  ;;  %v2909_v43 = vadd.f32 %v2908_v56, %v2889_v34  ;;  %v2928_v44 = vpop.f32.mrf.mxu2  ;;  %v2311_v33 = vld [vmem:[#allocation6 + $0xb40] sm:$0xff]  ;;  %v2066_v35 = vld [vmem:[#allocation6 + $0x398] sm:$0xff]  ;;  %v2301_v56 = vld [vmem:[#allocation6 + $0xaf0] sm:$0xff] }
 0x2aa   : > { %3331 = vmatpush.msrb.mxu3 %v2346_v37  ;;  %3272 = vmatpush.msrb.mxu0 %v2101_v38  ;;  %v2146_v34 = vld [vmem:[#allocation6 + $0x618] sm:$0xff]  ;;  %v2061_v38 = vld [vmem:[#allocation6 + $0x370] sm:$0xff] }
 0x2ab   : > { %3292 = vmatpush.msrb.mxu1 %v2181_v42  ;;  %3312 = vmatpush.msrb.mxu2 %v2261_v51  ;;  %v2929_v61 = vadd.f32 %v2928_v44, %v2909_v43  ;;  %v2306_v37 = vld [vmem:[#allocation6 + $0xb18] sm:$0xff]  ;;  %v2141_v42 = vld [vmem:[#allocation6 + $0x5f0] sm:$0xff]  ;;  %v2216_v43 = vld [vmem:[#allocation6 + $0x848] sm:$0xff] }
 0x2ac   : > { %3332 = vmatpush.msrb.mxu3 %v2341_v19  ;;  %3273 = vmatpush.msrb.mxu0 %v2096_v41  ;;  %v2948_v52 = vpop.f32.mrf.mxu3  ;;  %v2221_v51 = vld [vmem:[#allocation6 + $0x870] sm:$0xff]  ;;  %v2056_v19 = vld [vmem:[#allocation6 + $0x348] sm:$0xff] }
 0x2ad   : > { %3293 = vmatpush.msrb.mxu1 %v2176_v45  ;;  %3313 = vmatpush.msrb.mxu2 %v2256_v47  ;;  %v5494_v55 = vadd.f32 %v2948_v52, %v2929_v61  ;;  %v2136_v41 = vld [vmem:[#allocation6 + $0x5c8] sm:$0xff]  ;;  %v2051_v45 = vld [vmem:[#allocation6 + $0x320] sm:$0xff]  ;;  %v2206_v52 = vld [vmem:[#allocation6 + $0x7f8] sm:$0xff] }
 0x2ae   : > { %3333 = vmatpush.msrb.mxu3 %v2336_v48  ;;  %3247 = vmatmul.f32.vlgmr.msra.gmra.mxu2 %v5122_v15  ;;  %v2076_v15 = vld [vmem:[#allocation6 + $0x3e8] sm:$0xff]  ;;  %v2131_v47 = vld [vmem:[#allocation6 + $0x5a0] sm:$0xff] }
 0x2af   : > { %3274 = vmatpush.msrb.mxu0 %v2091_v29  ;;  %3294 = vmatpush.msrb.mxu1 %v2171_v50  ;;  %v2296_v44 = vld [vmem:[#allocation6 + $0xac8] sm:$0xff]  ;;  %v2211_v48 = vld [vmem:[#allocation6 + $0x820] sm:$0xff]  ;;  %v2046_v29 = vld [vmem:[#allocation6 + $0x2f8] sm:$0xff] }
 0x2b0   : > { %3314 = vmatpush.msrb.mxu2 %v2251_v63  ;;  %3334 = vmatpush.msrb.mxu3 %v2331_v53  ;;  %v2291_v61 = vld [vmem:[#allocation6 + $0xaa0] sm:$0xff]  ;;  %v2126_v50 = vld [vmem:[#allocation6 + $0x578] sm:$0xff]  ;;  %v2041_v53 = vld [vmem:[#allocation6 + $0x2d0] sm:$0xff] }
 0x2b1   : > { %3207 = vmatmul.f32.vlgmr.msra.gmra.mxu0 %v5130_v17  ;;  %3295 = vmatpush.msrb.mxu1 %v2166_v54  ;;  %v2151_v17 = vld [vmem:[#allocation6 + $0x640] sm:$0xff]  ;;  %v2286_v63 = vld [vmem:[#allocation6 + $0xa78] sm:$0xff]  ;;  %v2121_v54 = vld [vmem:[#allocation6 + $0x550] sm:$0xff] }
 0x2b2   : > { %3275 = vmatpush.msrb.mxu0 %v2086_v58  ;;  %3315 = vmatpush.msrb.mxu2 %v2246_v36  ;;  %v2201_v58 = vld [vmem:[#allocation6 + $0x7d0] sm:$0xff] }
 0x2b3   : > { %3335 = vmatpush.msrb.mxu3 %v2326_v59  ;;  %3227 = vmatmul.f32.vlgmr.msra.gmra.mxu1 %v5126_v16  ;;  %v2226_v16 = vld [vmem:[#allocation6 + $0x898] sm:$0xff]  ;;  %v2281_v36 = vld [vmem:[#allocation6 + $0xa50] sm:$0xff]  ;;  %v2036_v59 = vld [vmem:[#allocation6 + $0x2a8] sm:$0xff] }
 0x2b4   : > { %3276 = vmatpush.msrb.mxu0 %v2081_v25  ;;  %3296 = vmatpush.msrb.mxu1 %v2161_v26  ;;  %v2116_v25 = vld [vmem:[#allocation6 + $0x528] sm:$0xff] }
 0x2b5   : > { %3316 = vmatpush.msrb.mxu2 %v2241_v27  ;;  %3336 = vmatpush.msrb.mxu3 %v2321_v39  ;;  %v2196_v26 = vld [vmem:[#allocation6 + $0x7a8] sm:$0xff]  ;;  %v2031_v39 = vld [vmem:[#allocation6 + $0x280] sm:$0xff] }
 0x2b6   : > { %3277 = vmatpush.msrb.mxu0 %v2076_v15  ;;  %3297 = vmatpush.msrb.mxu1 %v2156_v28  ;;  %v2276_v27 = vld [vmem:[#allocation6 + $0xa28] sm:$0xff]  ;;  %v2111_v15 = vld [vmem:[#allocation6 + $0x500] sm:$0xff] }
 0x2b7   : > { %3317 = vmatpush.msrb.mxu2 %v2236_v18  ;;  %3337 = vmatpush.msrb.mxu3 %v2316_v30  ;;  %v2191_v28 = vld [vmem:[#allocation6 + $0x780] sm:$0xff] }
 0x2b8   : > { %3278 = vmatpush.msrb.mxu0 %v2071_v31  ;;  %3298 = vmatpush.msrb.mxu1 %v2151_v17  ;;  %v2271_v18 = vld [vmem:[#allocation6 + $0xa00] sm:$0xff] }
 0x2b9   : > { %3318 = vmatpush.msrb.mxu2 %v2231_v32  ;;  %3338 = vmatpush.msrb.mxu3 %v2311_v33  ;;  %v2027_v30 = vld [vmem:[#allocation6 + $0x260] sm:$0xff]  ;;  %v2022_v33 = vld [vmem:[#allocation6 + $0x238] sm:$0xff] }
 0x2ba   : > { %3279 = vmatpush.msrb.mxu0 %v2066_v35  ;;  %3299 = vmatpush.msrb.mxu1 %v2146_v34  ;;  %v2107_v31 = vld [vmem:[#allocation6 + $0x4e0] sm:$0xff]  ;;  %v2102_v35 = vld [vmem:[#allocation6 + $0x4b8] sm:$0xff] }
 0x2bb   : > { %3319 = vmatpush.msrb.mxu2 %v2226_v16  ;;  %3339 = vmatpush.msrb.mxu3 %v2306_v37  ;;  %v2187_v17 = vld [vmem:[#allocation6 + $0x760] sm:$0xff]  ;;  %v2182_v34 = vld [vmem:[#allocation6 + $0x738] sm:$0xff]  ;;  %v2017_v37 = vld [vmem:[#allocation6 + $0x210] sm:$0xff] }
 0x2bc   : > { %3280 = vmatpush.msrb.mxu0 %v2061_v38  ;;  %3300 = vmatpush.msrb.mxu1 %v2141_v42  ;;  %v2267_v32 = vld [vmem:[#allocation6 + $0x9e0] sm:$0xff]  ;;  %v2262_v16 = vld [vmem:[#allocation6 + $0x9b8] sm:$0xff]  ;;  %v2097_v38 = vld [vmem:[#allocation6 + $0x490] sm:$0xff] }
 0x2bd   : > { %3320 = vmatpush.msrb.mxu2 %v2221_v51  ;;  %3340 = vmatpush.msrb.mxu3 %v2301_v56  ;;  %v2177_v42 = vld [vmem:[#allocation6 + $0x710] sm:$0xff]  ;;  %v2012_v56 = vld [vmem:[#allocation6 + $0x1e8] sm:$0xff] }
 0x2be   : > { %3281 = vmatpush.msrb.mxu0 %v2056_v19  ;;  %3301 = vmatpush.msrb.mxu1 %v2136_v41  ;;  %v2257_v51 = vld [vmem:[#allocation6 + $0x990] sm:$0xff]  ;;  %v2092_v19 = vld [vmem:[#allocation6 + $0x468] sm:$0xff] }
 0x2bf   : > { %3321 = vmatpush.msrb.mxu2 %v2216_v43  ;;  %3341 = vmatpush.msrb.mxu3 %v2296_v44  ;;  %v2172_v41 = vld [vmem:[#allocation6 + $0x6e8] sm:$0xff]  ;;  %v2007_v44 = vld [vmem:[#allocation6 + $0x1c0] sm:$0xff] }
 0x2c0   : > { %3282 = vmatpush.msrb.mxu0 %v2051_v45  ;;  %3302 = vmatpush.msrb.mxu1 %v2131_v47  ;;  %v2252_v43 = vld [vmem:[#allocation6 + $0x968] sm:$0xff]  ;;  %v2087_v45 = vld [vmem:[#allocation6 + $0x440] sm:$0xff] }
 0x2c1   : > { %3322 = vmatpush.msrb.mxu2 %v2211_v48  ;;  %3342 = vmatpush.msrb.mxu3 %v2291_v61  ;;  %v2167_v47 = vld [vmem:[#allocation6 + $0x6c0] sm:$0xff]  ;;  %v2002_v61 = vld [vmem:[#allocation6 + $0x198] sm:$0xff] }
 0x2c2   : > { %3283 = vmatpush.msrb.mxu0 %v2046_v29  ;;  %3303 = vmatpush.msrb.mxu1 %v2126_v50  ;;  %v2247_v48 = vld [vmem:[#allocation6 + $0x940] sm:$0xff]  ;;  %v2082_v29 = vld [vmem:[#allocation6 + $0x418] sm:$0xff] }
 0x2c3   : > { %3323 = vmatpush.msrb.mxu2 %v2206_v52  ;;  %3343 = vmatpush.msrb.mxu3 %v2286_v63  ;;  %v2162_v50 = vld [vmem:[#allocation6 + $0x698] sm:$0xff]  ;;  %v1997_v63 = vld [vmem:[#allocation6 + $0x170] sm:$0xff] }
 0x2c4   : > { %3284 = vmatpush.msrb.mxu0 %v2041_v53  ;;  %3304 = vmatpush.msrb.mxu1 %v2121_v54  ;;  %v2242_v52 = vld [vmem:[#allocation6 + $0x918] sm:$0xff]  ;;  %v2077_v53 = vld [vmem:[#allocation6 + $0x3f0] sm:$0xff] }
 0x2c5   : > { %3324 = vmatpush.msrb.mxu2 %v2201_v58  ;;  %3344 = vmatpush.msrb.mxu3 %v2281_v36  ;;  %v2157_v54 = vld [vmem:[#allocation6 + $0x670] sm:$0xff]  ;;  %v1992_v36 = vld [vmem:[#allocation6 + $0x148] sm:$0xff] }
 0x2c6   : > { %3285 = vmatpush.msrb.mxu0 %v2036_v59  ;;  %3305 = vmatpush.msrb.mxu1 %v2116_v25  ;;  %v2237_v58 = vld [vmem:[#allocation6 + $0x8f0] sm:$0xff]  ;;  %v2072_v59 = vld [vmem:[#allocation6 + $0x3c8] sm:$0xff] }
 0x2c7   : > { %3325 = vmatpush.msrb.mxu2 %v2196_v26  ;;  %3345 = vmatpush.msrb.mxu3 %v2276_v27  ;;  %v2152_v25 = vld [vmem:[#allocation6 + $0x648] sm:$0xff]  ;;  %v1987_v27 = vld [vmem:[#allocation6 + $0x120] sm:$0xff] }
 0x2c8   : > { %3286 = vmatpush.msrb.mxu0 %v2031_v39  ;;  %3306 = vmatpush.msrb.mxu1 %v2111_v15  ;;  %v2232_v26 = vld [vmem:[#allocation6 + $0x8c8] sm:$0xff]  ;;  %v2067_v39 = vld [vmem:[#allocation6 + $0x3a0] sm:$0xff] }
 0x2c9   : > { %3326 = vmatpush.msrb.mxu2 %v2191_v28  ;;  %3346 = vmatpush.msrb.mxu3 %v2271_v18  ;;  %v2147_v15 = vld [vmem:[#allocation6 + $0x620] sm:$0xff]  ;;  %v1982_v18 = vld [vmem:[#allocation6 + $0xf8] sm:$0xff] }
 0x2ca   : > { %3287 = vmatmul.f32.vlgmr.msrb.gmra.mxu0 %v5154_v23  ;;  %3327 = vmatmul.f32.vlgmr.msrb.gmra.mxu2 %v5146_v21  ;;  %v2227_v28 = vld [vmem:[#allocation6 + $0x8a0] sm:$0xff] }
 0x2cb   : > { %3351 = vmatpush.msra.mxu0 %v2027_v30  ;;  %3371 = vmatpush.msra.mxu1 %v2107_v31  ;;  %v2062_v30 = vld [vmem:[#allocation6 + $0x378] sm:$0xff] }
 0x2cc   : > { %3391 = vmatpush.msra.mxu2 %v2187_v17  ;;  %3411 = vmatpush.msra.mxu3 %v2267_v32  ;;  %v2142_v31 = vld [vmem:[#allocation6 + $0x5f8] sm:$0xff]  ;;  %v1977_v32 = vld [vmem:[#allocation6 + $0xd0] sm:$0xff] }
 0x2cd   : > { %3307 = vmatmul.f32.vlgmr.msrb.gmra.mxu1 %v5150_v22  ;;  %3347 = vmatmul.f32.vlgmr.msrb.gmra.mxu3 %v5142_v20  ;;  %v2222_v17 = vld [vmem:[#allocation6 + $0x878] sm:$0xff] }
 0x2ce   : > { %3352 = vmatpush.msra.mxu0 %v2022_v33  ;;  %3372 = vmatpush.msra.mxu1 %v2102_v35  ;;  %v2057_v33 = vld [vmem:[#allocation6 + $0x350] sm:$0xff] }
 0x2cf   : > { %3392 = vmatpush.msra.mxu2 %v2182_v34  ;;  %3412 = vmatpush.msra.mxu3 %v2262_v16  ;;  %v2137_v35 = vld [vmem:[#allocation6 + $0x5d0] sm:$0xff]  ;;  %v1972_v16 = vld [vmem:[#allocation6 + $0xa8] sm:$0xff] }
 0x2d0   : > { %3353 = vmatpush.msra.mxu0 %v2017_v37  ;;  %3373 = vmatpush.msra.mxu1 %v2097_v38  ;;  %v2217_v34 = vld [vmem:[#allocation6 + $0x850] sm:$0xff]  ;;  %v2052_v37 = vld [vmem:[#allocation6 + $0x328] sm:$0xff] }
 0x2d1   : > { %3393 = vmatpush.msra.mxu2 %v2177_v42  ;;  %3413 = vmatpush.msra.mxu3 %v2257_v51  ;;  %v2132_v38 = vld [vmem:[#allocation6 + $0x5a8] sm:$0xff]  ;;  %v1967_v51 = vld [vmem:[#allocation6 + $0x80] sm:$0xff] }
 0x2d2   : > { %3354 = vmatpush.msra.mxu0 %v2012_v56  ;;  %3374 = vmatpush.msra.mxu1 %v2092_v19  ;;  %v2212_v42 = vld [vmem:[#allocation6 + $0x828] sm:$0xff]  ;;  %v2047_v56 = vld [vmem:[#allocation6 + $0x300] sm:$0xff] }
 0x2d3   : > { %3394 = vmatpush.msra.mxu2 %v2172_v41  ;;  %3414 = vmatpush.msra.mxu3 %v2252_v43  ;;  %v2127_v19 = vld [vmem:[#allocation6 + $0x580] sm:$0xff]  ;;  %v1962_v43 = vld [vmem:[#allocation6 + $0x58] sm:$0xff] }
 0x2d4   : > { %3355 = vmatpush.msra.mxu0 %v2007_v44  ;;  %3375 = vmatpush.msra.mxu1 %v2087_v45  ;;  %v2207_v41 = vld [vmem:[#allocation6 + $0x800] sm:$0xff]  ;;  %v2042_v44 = vld [vmem:[#allocation6 + $0x2d8] sm:$0xff] }
 0x2d5   : > { %3395 = vmatpush.msra.mxu2 %v2167_v47  ;;  %3415 = vmatpush.msra.mxu3 %v2247_v48  ;;  %v2122_v45 = vld [vmem:[#allocation6 + $0x558] sm:$0xff]  ;;  %v1957_v48 = vld [vmem:[#allocation6 + $0x30] sm:$0xff] }
 0x2d6   : > { %3356 = vmatpush.msra.mxu0 %v2002_v61  ;;  %3376 = vmatpush.msra.mxu1 %v2082_v29  ;;  %v2202_v47 = vld [vmem:[#allocation6 + $0x7d8] sm:$0xff]  ;;  %v2037_v61 = vld [vmem:[#allocation6 + $0x2b0] sm:$0xff] }
 0x2d7   : > { %3396 = vmatpush.msra.mxu2 %v2162_v50  ;;  %3416 = vmatpush.msra.mxu3 %v2242_v52  ;;  %v2117_v29 = vld [vmem:[#allocation6 + $0x530] sm:$0xff]  ;;  %v1952_v52 = vld [vmem:[#allocation6 + $0x8] sm:$0xff] }
 0x2d8   : > { %3357 = vmatpush.msra.mxu0 %v1997_v63  ;;  %3377 = vmatpush.msra.mxu1 %v2077_v53  ;;  %v2197_v50 = vld [vmem:[#allocation6 + $0x7b0] sm:$0xff]  ;;  %v2032_v63 = vld [vmem:[#allocation6 + $0x288] sm:$0xff] }
 0x2d9   : > { %3397 = vmatpush.msra.mxu2 %v2157_v54  ;;  %3417 = vmatpush.msra.mxu3 %v2237_v58  ;;  %v2112_v53 = vld [vmem:[#allocation6 + $0x508] sm:$0xff]  ;;  %v2347_v58 = vld [vmem:[#allocation6 + $0xc60] sm:$0xff] }
 0x2da   : > { %3358 = vmatpush.msra.mxu0 %v1992_v36  ;;  %3378 = vmatpush.msra.mxu1 %v2072_v59  ;;  %v2192_v54 = vld [vmem:[#allocation6 + $0x788] sm:$0xff] }
 0x2db   : > { %3398 = vmatpush.msra.mxu2 %v2152_v25  ;;  %3418 = vmatpush.msra.mxu3 %v2232_v26  ;;  %v2028_v36 = vld [vmem:[#allocation6 + $0x268] sm:$0xff]  ;;  %v2342_v26 = vld [vmem:[#allocation6 + $0xc38] sm:$0xff] }
 0x2dc   : > { %3359 = vmatpush.msra.mxu0 %v1987_v27  ;;  %3379 = vmatpush.msra.mxu1 %v2067_v39  ;;  %v2108_v59 = vld [vmem:[#allocation6 + $0x4e8] sm:$0xff]  ;;  %v2023_v27 = vld [vmem:[#allocation6 + $0x240] sm:$0xff] }
 0x2dd   : > { %3399 = vmatpush.msra.mxu2 %v2147_v15  ;;  %3419 = vmatpush.msra.mxu3 %v2227_v28  ;;  %v2188_v25 = vld [vmem:[#allocation6 + $0x768] sm:$0xff]  ;;  %v2103_v39 = vld [vmem:[#allocation6 + $0x4c0] sm:$0xff]  ;;  %v2337_v28 = vld [vmem:[#allocation6 + $0xc10] sm:$0xff] }
 0x2de   : > { %3360 = vmatpush.msra.mxu0 %v1982_v18  ;;  %3380 = vmatpush.msra.mxu1 %v2062_v30  ;;  %v2183_v15 = vld [vmem:[#allocation6 + $0x740] sm:$0xff]  ;;  %v2018_v18 = vld [vmem:[#allocation6 + $0x218] sm:$0xff] }
 0x2df   : > { %3400 = vmatpush.msra.mxu2 %v2142_v31  ;;  %3420 = vmatpush.msra.mxu3 %v2222_v17  ;;  %v2098_v30 = vld [vmem:[#allocation6 + $0x498] sm:$0xff]  ;;  %v2332_v17 = vld [vmem:[#allocation6 + $0xbe8] sm:$0xff] }
 0x2e0   : > { %3361 = vmatpush.msra.mxu0 %v1977_v32  ;;  %3381 = vmatpush.msra.mxu1 %v2057_v33  ;;  %v2178_v31 = vld [vmem:[#allocation6 + $0x718] sm:$0xff]  ;;  %v2013_v32 = vld [vmem:[#allocation6 + $0x1f0] sm:$0xff] }
 0x2e1   : > { %3401 = vmatpush.msra.mxu2 %v2137_v35  ;;  %3421 = vmatpush.msra.mxu3 %v2217_v34  ;;  %v2093_v33 = vld [vmem:[#allocation6 + $0x470] sm:$0xff]  ;;  %v2327_v34 = vld [vmem:[#allocation6 + $0xbc0] sm:$0xff] }
 0x2e2   : > { %3362 = vmatpush.msra.mxu0 %v1972_v16  ;;  %3382 = vmatpush.msra.mxu1 %v2052_v37  ;;  %v2173_v35 = vld [vmem:[#allocation6 + $0x6f0] sm:$0xff]  ;;  %v2008_v16 = vld [vmem:[#allocation6 + $0x1c8] sm:$0xff] }
 0x2e3   : > { %3402 = vmatpush.msra.mxu2 %v2132_v38  ;;  %3422 = vmatpush.msra.mxu3 %v2212_v42  ;;  %v2088_v37 = vld [vmem:[#allocation6 + $0x448] sm:$0xff]  ;;  %v2322_v42 = vld [vmem:[#allocation6 + $0xb98] sm:$0xff] }
 0x2e4   : > { %3363 = vmatpush.msra.mxu0 %v1967_v51  ;;  %3383 = vmatpush.msra.mxu1 %v2047_v56  ;;  %v2168_v38 = vld [vmem:[#allocation6 + $0x6c8] sm:$0xff]  ;;  %v2003_v51 = vld [vmem:[#allocation6 + $0x1a0] sm:$0xff] }
 0x2e5   : > { %3403 = vmatpush.msra.mxu2 %v2127_v19  ;;  %3423 = vmatpush.msra.mxu3 %v2207_v41  ;;  %v2083_v56 = vld [vmem:[#allocation6 + $0x420] sm:$0xff]  ;;  %v2317_v41 = vld [vmem:[#allocation6 + $0xb70] sm:$0xff] }
 0x2e6   : > { %3364 = vmatpush.msra.mxu0 %v1962_v43  ;;  %3384 = vmatpush.msra.mxu1 %v2042_v44  ;;  %v2163_v19 = vld [vmem:[#allocation6 + $0x6a0] sm:$0xff]  ;;  %v1998_v43 = vld [vmem:[#allocation6 + $0x178] sm:$0xff] }
 0x2e7   : > { %3404 = vmatpush.msra.mxu2 %v2122_v45  ;;  %3424 = vmatpush.msra.mxu3 %v2202_v47  ;;  %v2078_v44 = vld [vmem:[#allocation6 + $0x3f8] sm:$0xff]  ;;  %v2312_v47 = vld [vmem:[#allocation6 + $0xb48] sm:$0xff] }
 0x2e8   : > { %3365 = vmatpush.msra.mxu0 %v1957_v48  ;;  %3385 = vmatpush.msra.mxu1 %v2037_v61  ;;  %v2158_v45 = vld [vmem:[#allocation6 + $0x678] sm:$0xff]  ;;  %v1993_v48 = vld [vmem:[#allocation6 + $0x150] sm:$0xff] }
 0x2e9   : > { %3405 = vmatpush.msra.mxu2 %v2117_v29  ;;  %3425 = vmatpush.msra.mxu3 %v2197_v50  ;;  %v2073_v61 = vld [vmem:[#allocation6 + $0x3d0] sm:$0xff]  ;;  %v2307_v50 = vld [vmem:[#allocation6 + $0xb20] sm:$0xff] }
 0x2ea   : > { %3366 = vmatpush.msra.mxu0 %v1952_v52  ;;  %3386 = vmatpush.msra.mxu1 %v2032_v63  ;;  %v2153_v29 = vld [vmem:[#allocation6 + $0x650] sm:$0xff]  ;;  %v1988_v52 = vld [vmem:[#allocation6 + $0x128] sm:$0xff] }
 0x2eb   : > { %3406 = vmatpush.msra.mxu2 %v2112_v53  ;;  %3426 = vmatpush.msra.mxu3 %v2192_v54  ;;  %v2068_v63 = vld [vmem:[#allocation6 + $0x3a8] sm:$0xff]  ;;  %v2302_v54 = vld [vmem:[#allocation6 + $0xaf8] sm:$0xff] }
 0x2ec   : > { %3367 = vmatmul.f32.vlgmr.msra.gmra.mxu0 %v5158_v24  ;;  %3407 = vmatmul.f32.vlgmr.msra.gmra.mxu2 %v5150_v22  ;;  %v2148_v53 = vld [vmem:[#allocation6 + $0x628] sm:$0xff] }
 0x2ed   : > { %3431 = vmatpush.msrb.mxu0 %v2347_v58  ;;  %3451 = vmatpush.msrb.mxu1 %v2028_v36  ;;  %v1983_v58 = vld [vmem:[#allocation6 + $0x100] sm:$0xff] }
 0x2ee   : > { %3471 = vmatpush.msrb.mxu2 %v2108_v59  ;;  %3491 = vmatpush.msrb.mxu3 %v2188_v25  ;;  %v2063_v36 = vld [vmem:[#allocation6 + $0x380] sm:$0xff]  ;;  %v2297_v25 = vld [vmem:[#allocation6 + $0xad0] sm:$0xff] }
 0x2ef   : > { %3387 = vmatmul.f32.vlgmr.msra.gmra.mxu1 %v5154_v23  ;;  %3427 = vmatmul.f32.vlgmr.msra.gmra.mxu3 %v5146_v21  ;;  %v2143_v59 = vld [vmem:[#allocation6 + $0x600] sm:$0xff] }
 0x2f0   : > { %3432 = vmatpush.msrb.mxu0 %v2342_v26  ;;  %3452 = vmatpush.msrb.mxu1 %v2023_v27  ;;  %v1978_v26 = vld [vmem:[#allocation6 + $0xd8] sm:$0xff] }
 0x2f1   : > { %3472 = vmatpush.msrb.mxu2 %v2103_v39  ;;  %3492 = vmatpush.msrb.mxu3 %v2183_v15  ;;  %v2058_v27 = vld [vmem:[#allocation6 + $0x358] sm:$0xff]  ;;  %v2292_v15 = vld [vmem:[#allocation6 + $0xaa8] sm:$0xff] }
 0x2f2   : > { %3433 = vmatpush.msrb.mxu0 %v2337_v28  ;;  %3453 = vmatpush.msrb.mxu1 %v2018_v18  ;;  %v2138_v39 = vld [vmem:[#allocation6 + $0x5d8] sm:$0xff]  ;;  %v1973_v28 = vld [vmem:[#allocation6 + $0xb0] sm:$0xff] }
 0x2f3   : > { %3473 = vmatpush.msrb.mxu2 %v2098_v30  ;;  %3493 = vmatpush.msrb.mxu3 %v2178_v31  ;;  %v2053_v18 = vld [vmem:[#allocation6 + $0x330] sm:$0xff]  ;;  %v2287_v31 = vld [vmem:[#allocation6 + $0xa80] sm:$0xff] }
 0x2f4   : > { %3434 = vmatpush.msrb.mxu0 %v2332_v17  ;;  %3454 = vmatpush.msrb.mxu1 %v2013_v32  ;;  %v2133_v30 = vld [vmem:[#allocation6 + $0x5b0] sm:$0xff]  ;;  %v1968_v17 = vld [vmem:[#allocation6 + $0x88] sm:$0xff] }
 0x2f5   : > { %3474 = vmatpush.msrb.mxu2 %v2093_v33  ;;  %3494 = vmatpush.msrb.mxu3 %v2173_v35  ;;  %v2048_v32 = vld [vmem:[#allocation6 + $0x308] sm:$0xff]  ;;  %v2282_v35 = vld [vmem:[#allocation6 + $0xa58] sm:$0xff] }
 0x2f6   : > { %3435 = vmatpush.msrb.mxu0 %v2327_v34  ;;  %3455 = vmatpush.msrb.mxu1 %v2008_v16  ;;  %v2128_v33 = vld [vmem:[#allocation6 + $0x588] sm:$0xff]  ;;  %v1963_v34 = vld [vmem:[#allocation6 + $0x60] sm:$0xff] }
 0x2f7   : > { %3475 = vmatpush.msrb.mxu2 %v2088_v37  ;;  %3495 = vmatpush.msrb.mxu3 %v2168_v38  ;;  %v2043_v16 = vld [vmem:[#allocation6 + $0x2e0] sm:$0xff]  ;;  %v2277_v38 = vld [vmem:[#allocation6 + $0xa30] sm:$0xff] }
 0x2f8   : > { %3436 = vmatpush.msrb.mxu0 %v2322_v42  ;;  %3456 = vmatpush.msrb.mxu1 %v2003_v51  ;;  %v2123_v37 = vld [vmem:[#allocation6 + $0x560] sm:$0xff]  ;;  %v1958_v42 = vld [vmem:[#allocation6 + $0x38] sm:$0xff] }
 0x2f9   : > { %3476 = vmatpush.msrb.mxu2 %v2083_v56  ;;  %3496 = vmatpush.msrb.mxu3 %v2163_v19  ;;  %v2038_v51 = vld [vmem:[#allocation6 + $0x2b8] sm:$0xff]  ;;  %v2272_v19 = vld [vmem:[#allocation6 + $0xa08] sm:$0xff] }
 0x2fa   : > { %3437 = vmatpush.msrb.mxu0 %v2317_v41  ;;  %3457 = vmatpush.msrb.mxu1 %v1998_v43  ;;  %v2118_v56 = vld [vmem:[#allocation6 + $0x538] sm:$0xff]  ;;  %v1953_v41 = vld [vmem:[#allocation6 + $0x10] sm:$0xff] }
 0x2fb   : > { %3477 = vmatpush.msrb.mxu2 %v2078_v44  ;;  %3497 = vmatpush.msrb.mxu3 %v2158_v45  ;;  %v2033_v43 = vld [vmem:[#allocation6 + $0x290] sm:$0xff]  ;;  %v2268_v45 = vld [vmem:[#allocation6 + $0x9e8] sm:$0xff] }
 0x2fc   : > { %3438 = vmatpush.msrb.mxu0 %v2312_v47  ;;  %3458 = vmatpush.msrb.mxu1 %v1993_v48  ;;  %v2113_v44 = vld [vmem:[#allocation6 + $0x510] sm:$0xff] }
 0x2fd   : > { %3478 = vmatpush.msrb.mxu2 %v2073_v61  ;;  %3498 = vmatpush.msrb.mxu3 %v2153_v29  ;;  %v2029_v47 = vld [vmem:[#allocation6 + $0x270] sm:$0xff]  ;;  %v2263_v61 = vld [vmem:[#allocation6 + $0x9c0] sm:$0xff]  ;;  %v2348_v29 = vld [vmem:[#allocation6 + $0xc68] sm:$0xff] }
 0x2fe   : > { %3439 = vmatpush.msrb.mxu0 %v2307_v50  ;;  %3459 = vmatpush.msrb.mxu1 %v1988_v52  ;;  %v2109_v48 = vld [vmem:[#allocation6 + $0x4f0] sm:$0xff]  ;;  %v2024_v50 = vld [vmem:[#allocation6 + $0x248] sm:$0xff] }
 0x2ff   : > { %3479 = vmatpush.msrb.mxu2 %v2068_v63  ;;  %3499 = vmatpush.msrb.mxu3 %v2148_v53  ;;  %v2104_v52 = vld [vmem:[#allocation6 + $0x4c8] sm:$0xff]  ;;  %v2258_v63 = vld [vmem:[#allocation6 + $0x998] sm:$0xff]  ;;  %v2343_v53 = vld [vmem:[#allocation6 + $0xc40] sm:$0xff] }
 0x300   : > { %3440 = vmatpush.msrb.mxu0 %v2302_v54  ;;  %3460 = vmatpush.msrb.mxu1 %v1983_v58  ;;  %v2019_v54 = vld [vmem:[#allocation6 + $0x220] sm:$0xff] }
 0x301   : > { %3480 = vmatpush.msrb.mxu2 %v2063_v36  ;;  %3500 = vmatpush.msrb.mxu3 %v2143_v59  ;;  %v2099_v58 = vld [vmem:[#allocation6 + $0x4a0] sm:$0xff]  ;;  %v2253_v36 = vld [vmem:[#allocation6 + $0x970] sm:$0xff]  ;;  %v2338_v59 = vld [vmem:[#allocation6 + $0xc18] sm:$0xff] }
 0x302   : > { %3441 = vmatpush.msrb.mxu0 %v2297_v25  ;;  %3461 = vmatpush.msrb.mxu1 %v1978_v26  ;;  %v2014_v25 = vld [vmem:[#allocation6 + $0x1f8] sm:$0xff] }
 0x303   : > { %3481 = vmatpush.msrb.mxu2 %v2058_v27  ;;  %3501 = vmatpush.msrb.mxu3 %v2138_v39  ;;  %v2094_v26 = vld [vmem:[#allocation6 + $0x478] sm:$0xff]  ;;  %v2248_v27 = vld [vmem:[#allocation6 + $0x948] sm:$0xff]  ;;  %v2333_v39 = vld [vmem:[#allocation6 + $0xbf0] sm:$0xff] }
 0x304   : > { %3442 = vmatpush.msrb.mxu0 %v2292_v15  ;;  %3462 = vmatpush.msrb.mxu1 %v1973_v28  ;;  %v2009_v15 = vld [vmem:[#allocation6 + $0x1d0] sm:$0xff] }
 0x305   : > { %3482 = vmatpush.msrb.mxu2 %v2053_v18  ;;  %3502 = vmatpush.msrb.mxu3 %v2133_v30  ;;  %v2089_v28 = vld [vmem:[#allocation6 + $0x450] sm:$0xff]  ;;  %v2243_v18 = vld [vmem:[#allocation6 + $0x920] sm:$0xff]  ;;  %v2328_v30 = vld [vmem:[#allocation6 + $0xbc8] sm:$0xff] }
 0x306   : > { %3443 = vmatpush.msrb.mxu0 %v2287_v31  ;;  %3463 = vmatpush.msrb.mxu1 %v1968_v17  ;;  %v2004_v31 = vld [vmem:[#allocation6 + $0x1a8] sm:$0xff] }
 0x307   : > { %3483 = vmatpush.msrb.mxu2 %v2048_v32  ;;  %3503 = vmatpush.msrb.mxu3 %v2128_v33  ;;  %v2084_v17 = vld [vmem:[#allocation6 + $0x428] sm:$0xff]  ;;  %v2238_v32 = vld [vmem:[#allocation6 + $0x8f8] sm:$0xff]  ;;  %v2323_v33 = vld [vmem:[#allocation6 + $0xba0] sm:$0xff] }
 0x308   : > { %3444 = vmatpush.msrb.mxu0 %v2282_v35  ;;  %3464 = vmatpush.msrb.mxu1 %v1963_v34  ;;  %v1999_v35 = vld [vmem:[#allocation6 + $0x180] sm:$0xff] }
 0x309   : > { %3484 = vmatpush.msrb.mxu2 %v2043_v16  ;;  %3504 = vmatpush.msrb.mxu3 %v2123_v37  ;;  %v2079_v34 = vld [vmem:[#allocation6 + $0x400] sm:$0xff]  ;;  %v2233_v16 = vld [vmem:[#allocation6 + $0x8d0] sm:$0xff]  ;;  %v2318_v37 = vld [vmem:[#allocation6 + $0xb78] sm:$0xff] }
 0x30a   : > { %3445 = vmatpush.msrb.mxu0 %v2277_v38  ;;  %3465 = vmatpush.msrb.mxu1 %v1958_v42  ;;  %v1994_v38 = vld [vmem:[#allocation6 + $0x158] sm:$0xff] }
 0x30b   : > { %3485 = vmatpush.msrb.mxu2 %v2038_v51  ;;  %3505 = vmatpush.msrb.mxu3 %v2118_v56  ;;  %v2074_v42 = vld [vmem:[#allocation6 + $0x3d8] sm:$0xff]  ;;  %v2228_v51 = vld [vmem:[#allocation6 + $0x8a8] sm:$0xff]  ;;  %v2313_v56 = vld [vmem:[#allocation6 + $0xb50] sm:$0xff] }
 0x30c   : > { %3446 = vmatpush.msrb.mxu0 %v2272_v19  ;;  %3466 = vmatpush.msrb.mxu1 %v1953_v41  ;;  %v1989_v19 = vld [vmem:[#allocation6 + $0x130] sm:$0xff] }
 0x30d   : > { %3486 = vmatpush.msrb.mxu2 %v2033_v43  ;;  %3506 = vmatpush.msrb.mxu3 %v2113_v44  ;;  %v2069_v41 = vld [vmem:[#allocation6 + $0x3b0] sm:$0xff]  ;;  %v2223_v43 = vld [vmem:[#allocation6 + $0x880] sm:$0xff]  ;;  %v2308_v44 = vld [vmem:[#allocation6 + $0xb28] sm:$0xff] }
 0x30e   : > { %3447 = vmatmul.f32.vlgmr.msrb.gmra.mxu0 %v5142_v20  ;;  %3467 = vmatmul.f32.vlgmr.msrb.gmra.mxu1 %v5158_v24 }
 0x30f   : > { %3487 = vmatmul.f32.vlgmr.msrb.gmra.mxu2 %v5154_v23  ;;  %3511 = vmatpush.msra.mxu0 %v2268_v45  ;;  %v1984_v45 = vld [vmem:[#allocation6 + $0x108] sm:$0xff] }
 0x310   : > { %3551 = vmatpush.msra.mxu2 %v2029_v47  ;;  %3571 = vmatpush.msra.mxu3 %v2109_v48  ;;  %v2064_v47 = vld [vmem:[#allocation6 + $0x388] sm:$0xff]  ;;  %v2218_v48 = vld [vmem:[#allocation6 + $0x858] sm:$0xff] }
 0x311   : > { %3507 = vmatmul.f32.vlgmr.msrb.gmra.mxu3 %v5150_v22  ;;  %3512 = vmatpush.msra.mxu0 %v2263_v61  ;;  %v2303_v61 = vld [vmem:[#allocation6 + $0xb00] sm:$0xff] }
 0x312   : > { %3531 = vmatpush.msra.mxu1 %v2348_v29  ;;  %3552 = vmatpush.msra.mxu2 %v2024_v50  ;;  %v1979_v29 = vld [vmem:[#allocation6 + $0xe0] sm:$0xff] }
 0x313   : > { %3572 = vmatpush.msra.mxu3 %v2104_v52  ;;  %3513 = vmatpush.msra.mxu0 %v2258_v63  ;;  %v2059_v50 = vld [vmem:[#allocation6 + $0x360] sm:$0xff]  ;;  %v2213_v52 = vld [vmem:[#allocation6 + $0x830] sm:$0xff]  ;;  %v2298_v63 = vld [vmem:[#allocation6 + $0xad8] sm:$0xff] }
 0x314   : > { %3532 = vmatpush.msra.mxu1 %v2343_v53  ;;  %3553 = vmatpush.msra.mxu2 %v2019_v54  ;;  %v1974_v53 = vld [vmem:[#allocation6 + $0xb8] sm:$0xff] }
 0x315   : > { %3573 = vmatpush.msra.mxu3 %v2099_v58  ;;  %3514 = vmatpush.msra.mxu0 %v2253_v36  ;;  %v2054_v54 = vld [vmem:[#allocation6 + $0x338] sm:$0xff]  ;;  %v2208_v58 = vld [vmem:[#allocation6 + $0x808] sm:$0xff]  ;;  %v5511_v36 = vpop.f32.mrf.mxu0 }
 0x316   : > { %3533 = vmatpush.msra.mxu1 %v2338_v59  ;;  %3554 = vmatpush.msra.mxu2 %v2014_v25  ;;  %v2293_v59 = vld [vmem:[#allocation6 + $0xab0] sm:$0xff] }
 0x317   : > { %3574 = vmatpush.msra.mxu3 %v2094_v26  ;;  %3515 = vmatpush.msra.mxu0 %v2248_v27  ;;  %v1969_v25 = vld [vmem:[#allocation6 + $0x90] sm:$0xff]  ;;  %v2203_v27 = vld [vmem:[#allocation6 + $0x7e0] sm:$0xff] }
 0x318   : > { %3534 = vmatpush.msra.mxu1 %v2333_v39  ;;  %3555 = vmatpush.msra.mxu2 %v2009_v15  ;;  %v2049_v26 = vld [vmem:[#allocation6 + $0x310] sm:$0xff]  ;;  %v2288_v39 = vld [vmem:[#allocation6 + $0xa88] sm:$0xff] }
 0x319   : > { %3575 = vmatpush.msra.mxu3 %v2089_v28  ;;  %3516 = vmatpush.msra.mxu0 %v2243_v18  ;;  %v1964_v15 = vld [vmem:[#allocation6 + $0x68] sm:$0xff]  ;;  %v5513_v28 = vpop.f32.mrf.mxu1 }
 0x31a   : > { %3535 = vmatpush.msra.mxu1 %v2328_v30  ;;  %3556 = vmatpush.msra.mxu2 %v2004_v31  ;;  %v2044_v18 = vld [vmem:[#allocation6 + $0x2e8] sm:$0xff]  ;;  %v2198_v30 = vld [vmem:[#allocation6 + $0x7b8] sm:$0xff]  ;;  %v5515_v31 = vpop.f32.mrf.mxu3 }
 0x31b   : > { %3576 = vmatpush.msra.mxu3 %v2084_v17  ;;  %3517 = vmatpush.msra.mxu0 %v2238_v32  ;;  %v2283_v17 = vld [vmem:[#allocation6 + $0xa60] sm:$0xff] }
 0x31c   : > { %3536 = vmatpush.msra.mxu1 %v2323_v33  ;;  %3557 = vmatpush.msra.mxu2 %v1999_v35  ;;  %v1959_v32 = vld [vmem:[#allocation6 + $0x40] sm:$0xff]  ;;  %v2193_v35 = vld [vmem:[#allocation6 + $0x790] sm:$0xff] }
 0x31d   : > { %3577 = vmatpush.msra.mxu3 %v2079_v34  ;;  %3518 = vmatpush.msra.mxu0 %v2233_v16  ;;  %v2039_v33 = vld [vmem:[#allocation6 + $0x2c0] sm:$0xff]  ;;  %v5517_v34 = vpop.f32.mrf.mxu2  ;;  %v2278_v16 = vld [vmem:[#allocation6 + $0xa38] sm:$0xff] }
 0x31e   : > { %3537 = vmatpush.msra.mxu1 %v2318_v37  ;;  %3558 = vmatpush.msra.mxu2 %v1994_v38  ;;  %v1954_v37 = vld [vmem:[#allocation6 + $0x18] sm:$0xff] }
 0x31f   : > { %3578 = vmatpush.msra.mxu3 %v2074_v42  ;;  %3519 = vmatpush.msra.mxu0 %v2228_v51  ;;  %v2034_v38 = vld [vmem:[#allocation6 + $0x298] sm:$0xff]  ;;  %v2189_v42 = vld [vmem:[#allocation6 + $0x770] sm:$0xff] }
 0x320   : > { %3538 = vmatpush.msra.mxu1 %v2313_v56  ;;  %3559 = vmatpush.msra.mxu2 %v1989_v19  ;;  %v2349_v51 = vld [vmem:[#allocation6 + $0xc70] sm:$0xff]  ;;  %v2030_v56 = vld [vmem:[#allocation6 + $0x278] sm:$0xff]  ;;  %v5519_v19 = vpop.f32.mrf.mxu0 }
 0x321   : > { %3579 = vmatpush.msra.mxu3 %v2069_v41  ;;  %3520 = vmatpush.msra.mxu0 %v2223_v43  ;;  %v2273_v41 = vld [vmem:[#allocation6 + $0xa10] sm:$0xff]  ;;  %v5522_v43 = vpop.f32.mrf.mxu1 }
 0x322   : > { %3539 = vmatpush.msra.mxu1 %v2308_v44  ;;  %3560 = vmatpush.msra.mxu2 %v1984_v45  ;;  %v2184_v44 = vld [vmem:[#allocation6 + $0x748] sm:$0xff]  ;;  %v5525_v45 = vpop.f32.mrf.mxu3 }
 0x323   : > { %3580 = vmatpush.msra.mxu3 %v2064_v47  ;;  %3521 = vmatpush.msra.mxu0 %v2218_v48  ;;  %v2269_v47 = vld [vmem:[#allocation6 + $0x9f0] sm:$0xff]  ;;  %v2344_v48 = vld [vmem:[#allocation6 + $0xc48] sm:$0xff] }
 0x324   : > { %3540 = vmatpush.msra.mxu1 %v2303_v61  ;;  %3561 = vmatpush.msra.mxu2 %v1979_v29  ;;  %v2025_v61 = vld [vmem:[#allocation6 + $0x250] sm:$0xff]  ;;  %v2179_v29 = vld [vmem:[#allocation6 + $0x720] sm:$0xff] }
 0x325   : > { %3581 = vmatpush.msra.mxu3 %v2059_v50  ;;  %3522 = vmatpush.msra.mxu0 %v2213_v52  ;;  %v5528_v50 = vpop.f32.mrf.mxu2  ;;  %v2264_v52 = vld [vmem:[#allocation6 + $0x9c8] sm:$0xff] }
 0x326   : > { %3541 = vmatpush.msra.mxu1 %v2298_v63  ;;  %3562 = vmatpush.msra.mxu2 %v1974_v53  ;;  %v2339_v63 = vld [vmem:[#allocation6 + $0xc20] sm:$0xff]  ;;  %v2020_v53 = vld [vmem:[#allocation6 + $0x228] sm:$0xff] }
 0x327   : > { %3582 = vmatpush.msra.mxu3 %v2054_v54  ;;  %3523 = vmatpush.msra.mxu0 %v2208_v58  ;;  %v2174_v54 = vld [vmem:[#allocation6 + $0x6f8] sm:$0xff]  ;;  %v2259_v58 = vld [vmem:[#allocation6 + $0x9a0] sm:$0xff] }
 0x328   : > { %3542 = vmatpush.msra.mxu1 %v2293_v59  ;;  %3563 = vmatpush.msra.mxu2 %v1969_v25  ;;  %v2334_v59 = vld [vmem:[#allocation6 + $0xbf8] sm:$0xff]  ;;  %v2015_v25 = vld [vmem:[#allocation6 + $0x200] sm:$0xff] }
 0x329   : > { %3583 = vmatpush.msra.mxu3 %v2049_v26  ;;  %3524 = vmatpush.msra.mxu0 %v2203_v27  ;;  %v2169_v26 = vld [vmem:[#allocation6 + $0x6d0] sm:$0xff]  ;;  %v5531_v27 = vpop.f32.mrf.mxu0 }
 0x32a   : > { %3543 = vmatpush.msra.mxu1 %v2288_v39  ;;  %3564 = vmatpush.msra.mxu2 %v1964_v15  ;;  %v2254_v39 = vld [vmem:[#allocation6 + $0x978] sm:$0xff]  ;;  %v2329_v15 = vld [vmem:[#allocation6 + $0xbd0] sm:$0xff] }
 0x32b   : > { %3584 = vmatpush.msra.mxu3 %v2044_v18  ;;  %3525 = vmatpush.msra.mxu0 %v2198_v30  ;;  %v2010_v18 = vld [vmem:[#allocation6 + $0x1d8] sm:$0xff]  ;;  %v2164_v30 = vld [vmem:[#allocation6 + $0x6a8] sm:$0xff] }
 0x32c   : > { %3544 = vmatpush.msra.mxu1 %v2283_v17  ;;  %3565 = vmatpush.msra.mxu2 %v1959_v32  ;;  %v5533_v17 = vpop.f32.mrf.mxu3  ;;  %v2249_v32 = vld [vmem:[#allocation6 + $0x950] sm:$0xff] }
 0x32d   : > { %3585 = vmatpush.msra.mxu3 %v2039_v33  ;;  %3526 = vmatpush.msra.mxu0 %v2193_v35  ;;  %v2324_v33 = vld [vmem:[#allocation6 + $0xba8] sm:$0xff]  ;;  %v5535_v35 = vpop.f32.mrf.mxu1 }
 0x32e   : > { %3545 = vmatpush.msra.mxu1 %v2278_v16  ;;  %3566 = vmatpush.msra.mxu2 %v1954_v37  ;;  %v2005_v16 = vld [vmem:[#allocation6 + $0x1b0] sm:$0xff]  ;;  %v2159_v37 = vld [vmem:[#allocation6 + $0x680] sm:$0xff] }
 0x32f   : > { %3586 = vmatpush.msra.mxu3 %v2034_v38  ;;  %3527 = vmatmul.f32.vlgmr.msra.gmra.mxu0 %v5146_v21  ;;  %v5537_v38 = vpop.f32.mrf.mxu2 }
 0x330   : > { %3567 = vmatmul.f32.vlgmr.msra.gmra.mxu2 %v5158_v24  ;;  %3591 = vmatpush.msrb.mxu0 %v2189_v42  ;;  %v2244_v42 = vld [vmem:[#allocation6 + $0x928] sm:$0xff] }
 0x331   : > { %3631 = vmatpush.msrb.mxu2 %v2349_v51  ;;  %3651 = vmatpush.msrb.mxu3 %v2030_v56  ;;  %v2319_v51 = vld [vmem:[#allocation6 + $0xb80] sm:$0xff]  ;;  %v2000_v56 = vld [vmem:[#allocation6 + $0x188] sm:$0xff] }
 0x332   : > { %3546 = vmatpush.msra.mxu1 %v2273_v41  ;;  %3587 = vmatmul.f32.vlgmr.msra.gmra.mxu3 %v5154_v23  ;;  %v2154_v41 = vld [vmem:[#allocation6 + $0x658] sm:$0xff] }
 0x333   : > { %3547 = vmatmul.f32.vlgmr.msra.gmra.mxu1 %v5142_v20  ;;  %3592 = vmatpush.msrb.mxu0 %v2184_v44  ;;  %v2239_v44 = vld [vmem:[#allocation6 + $0x900] sm:$0xff] }
 0x334   : > { %3611 = vmatpush.msrb.mxu1 %v2269_v47  ;;  %3632 = vmatpush.msrb.mxu2 %v2344_v48  ;;  %v2314_v47 = vld [vmem:[#allocation6 + $0xb58] sm:$0xff]  ;;  %v1995_v48 = vld [vmem:[#allocation6 + $0x160] sm:$0xff] }
 0x335   : > { %3652 = vmatpush.msrb.mxu3 %v2025_v61  ;;  %3593 = vmatpush.msrb.mxu0 %v2179_v29  ;;  %v2149_v61 = vld [vmem:[#allocation6 + $0x630] sm:$0xff]  ;;  %v5539_v29 = vpop.f32.mrf.mxu0 }
 0x336   : > { %3612 = vmatpush.msrb.mxu1 %v2264_v52  ;;  %3633 = vmatpush.msrb.mxu2 %v2339_v63  ;;  %v2234_v52 = vld [vmem:[#allocation6 + $0x8d8] sm:$0xff]  ;;  %v2309_v63 = vld [vmem:[#allocation6 + $0xb30] sm:$0xff] }
 0x337   : > { %3653 = vmatpush.msrb.mxu3 %v2020_v53  ;;  %3594 = vmatpush.msrb.mxu0 %v2174_v54  ;;  %v1990_v53 = vld [vmem:[#allocation6 + $0x138] sm:$0xff]  ;;  %v2144_v54 = vld [vmem:[#allocation6 + $0x608] sm:$0xff] }
 0x338   : > { %3613 = vmatpush.msrb.mxu1 %v2259_v58  ;;  %3634 = vmatpush.msrb.mxu2 %v2334_v59  ;;  %v2229_v58 = vld [vmem:[#allocation6 + $0x8b0] sm:$0xff]  ;;  %v2304_v59 = vld [vmem:[#allocation6 + $0xb08] sm:$0xff] }
 0x339   : > { %3654 = vmatpush.msrb.mxu3 %v2015_v25  ;;  %3595 = vmatpush.msrb.mxu0 %v2169_v26  ;;  %v5541_v25 = vpop.f32.mrf.mxu1  ;;  %v1985_v26 = vld [vmem:[#allocation6 + $0x110] sm:$0xff] }
 0x33a   : > { %3614 = vmatpush.msrb.mxu1 %v2254_v39  ;;  %3635 = vmatpush.msrb.mxu2 %v2329_v15  ;;  %v2139_v39 = vld [vmem:[#allocation6 + $0x5e0] sm:$0xff]  ;;  %v3268_v15 = vpop.f32.mrf.mxu3 }
 0x33b   : > { %3655 = vmatpush.msrb.mxu3 %v2010_v18  ;;  %3596 = vmatpush.msrb.mxu0 %v2164_v30  ;;  %v2224_v18 = vld [vmem:[#allocation6 + $0x888] sm:$0xff]  ;;  %v2299_v30 = vld [vmem:[#allocation6 + $0xae0] sm:$0xff] }
 0x33c   : > { %3615 = vmatpush.msrb.mxu1 %v2249_v32  ;;  %3636 = vmatpush.msrb.mxu2 %v2324_v33  ;;  %v1980_v32 = vld [vmem:[#allocation6 + $0xe8] sm:$0xff]  ;;  %v2134_v33 = vld [vmem:[#allocation6 + $0x5b8] sm:$0xff] }
 0x33d   : > { %3656 = vmatpush.msrb.mxu3 %v2005_v16  ;;  %3597 = vmatpush.msrb.mxu0 %v2159_v37  ;;  %v5543_v16 = vpop.f32.mrf.mxu2  ;;  %v2219_v37 = vld [vmem:[#allocation6 + $0x860] sm:$0xff] }
 0x33e   : > { %3616 = vmatpush.msrb.mxu1 %v2244_v42  ;;  %3637 = vmatpush.msrb.mxu2 %v2319_v51  ;;  %v2294_v42 = vld [vmem:[#allocation6 + $0xab8] sm:$0xff]  ;;  %v3269_v51 = vadd.f32 %v3268_v15, %v5487_v60  ;;  %v1965_v60 = vld [vmem:[#allocation6 + $0x70] sm:$0xff]  ;;  %v1960_v15 = vld [vmem:[#allocation6 + $0x48] sm:$0xff] }
 0x33f   : > { %3657 = vmatpush.msrb.mxu3 %v2000_v56  ;;  %3598 = vmatpush.msrb.mxu0 %v2154_v41  ;;  %v1975_v56 = vld [vmem:[#allocation6 + $0xc0] sm:$0xff]  ;;  %v2129_v41 = vld [vmem:[#allocation6 + $0x590] sm:$0xff] }
 0x340   : > { %3617 = vmatpush.msrb.mxu1 %v2239_v44  ;;  %3638 = vmatpush.msrb.mxu2 %v2314_v47  ;;  %v2214_v44 = vld [vmem:[#allocation6 + $0x838] sm:$0xff]  ;;  %v2289_v47 = vld [vmem:[#allocation6 + $0xa90] sm:$0xff] }
 0x341   : > { %3658 = vmatpush.msrb.mxu3 %v1995_v48  ;;  %3599 = vmatpush.msrb.mxu0 %v2149_v61  ;;  %v1970_v61 = vld [vmem:[#allocation6 + $0x98] sm:$0xff] }
 0x342   : > { %3618 = vmatpush.msrb.mxu1 %v2234_v52  ;;  %3639 = vmatpush.msrb.mxu2 %v2309_v63  ;;  %v2124_v52 = vld [vmem:[#allocation6 + $0x568] sm:$0xff] }
 0x343   : > { %3659 = vmatpush.msrb.mxu3 %v1990_v53  ;;  %3600 = vmatpush.msrb.mxu0 %v2144_v54  ;;  %v2209_v53 = vld [vmem:[#allocation6 + $0x810] sm:$0xff]  ;;  %v2284_v54 = vld [vmem:[#allocation6 + $0xa68] sm:$0xff] }
 0x344   : > { %3619 = vmatpush.msrb.mxu1 %v2229_v58  ;;  %3640 = vmatpush.msrb.mxu2 %v2304_v59  ;;  %v2119_v58 = vld [vmem:[#allocation6 + $0x540] sm:$0xff] }
 0x345   : > { %3660 = vmatpush.msrb.mxu3 %v1985_v26  ;;  %3601 = vmatpush.msrb.mxu0 %v2139_v39  ;;  %v2204_v26 = vld [vmem:[#allocation6 + $0x7e8] sm:$0xff]  ;;  %v2279_v39 = vld [vmem:[#allocation6 + $0xa40] sm:$0xff] }
 0x346   : > { %3620 = vmatpush.msrb.mxu1 %v2224_v18  ;;  %3641 = vmatpush.msrb.mxu2 %v2299_v30  ;;  %v2114_v18 = vld [vmem:[#allocation6 + $0x518] sm:$0xff] }
 0x347   : > { %3661 = vmatpush.msrb.mxu3 %v1980_v32  ;;  %3602 = vmatpush.msrb.mxu0 %v2134_v33  ;;  %v3288_v48 = vpop.f32.mrf.mxu0  ;;  %v3751_v32 = vmul.f32 0.49748743, %v5118_v14  ;;  %v2199_v33 = vld [vmem:[#allocation6 + $0x7c0] sm:$0xff] }
 0x348   : > { %3621 = vmatpush.msrb.mxu1 %v2219_v37  ;;  %3642 = vmatpush.msrb.mxu2 %v2294_v42  ;;  %v3289_v63 = vadd.f32 %v3288_v48, %v3269_v51  ;;  %v2274_v37 = vld [vmem:[#allocation6 + $0xa18] sm:$0xff]  ;;  %v1955_v51 = vld [vmem:[#allocation6 + $0x20] sm:$0xff] }
 0x349   : > { %3662 = vmatpush.msrb.mxu3 %v1975_v56  ;;  %3603 = vmatpush.msrb.mxu0 %v2129_v41  ;;  %v3761_v41 = vmul.f32 0.49748743, %v5098_v9  ;;  %v5549_v14 = vsub.f32 %v5437_v46, %v3751_v32  ;;  %v2180_v32 = vld [vmem:[#allocation6 + $0x728] sm:$0xff] }
 0x34a   : > { %3622 = vmatpush.msrb.mxu1 %v2214_v44  ;;  %3643 = vmatpush.msrb.mxu2 %v2289_v47  ;;  %v3308_v59 = vpop.f32.mrf.mxu1  ;;  %v2110_v44 = vld [vmem:[#allocation6 + $0x4f8] sm:$0xff] }
 0x34b   : > { %3663 = vmatpush.msrb.mxu3 %v1970_v61  ;;  %3604 = vmatpush.msrb.mxu0 %v2124_v52  ;;  %v3309_v30 = vadd.f32 %v3308_v59, %v3289_v63  ;;  %v2270_v47 = vld [vmem:[#allocation6 + $0x9f8] sm:$0xff]  ;;  %v2105_v63 = vld [vmem:[#allocation6 + $0x4d0] sm:$0xff] }
 0x34c   : > { %3623 = vmatpush.msrb.mxu1 %v2209_v53  ;;  %3644 = vmatpush.msrb.mxu2 %v2284_v54  ;;  %v2194_v61 = vld [vmem:[#allocation6 + $0x798] sm:$0xff]  ;;  %v2265_v54 = vld [vmem:[#allocation6 + $0x9d0] sm:$0xff] }
 0x34d   : > { %3664 = vmatpush.msrb.mxu3 %v1965_v60  ;;  %3605 = vmatpush.msrb.mxu0 %v2119_v58  ;;  %v3328_v42 = vpop.f32.mrf.mxu2  ;;  %v2350_v52 = vld [vmem:[#allocation6 + $0xc78] sm:$0xff]  ;;  %v2100_v58 = vld [vmem:[#allocation6 + $0x4a8] sm:$0xff]  ;;  %v2345_v59 = vld [vmem:[#allocation6 + $0xc50] sm:$0xff] }
 0x34e   : > { %3624 = vmatpush.msrb.mxu1 %v2204_v26  ;;  %3645 = vmatpush.msrb.mxu2 %v2279_v39  ;;  %v3329_v56 = vadd.f32 %v3328_v42, %v3309_v30  ;;  %v2190_v53 = vld [vmem:[#allocation6 + $0x778] sm:$0xff]  ;;  %v3771_v26 = vmul.f32 %v5549_v14, %v5549_v14  ;;  %v2185_v39 = vld [vmem:[#allocation6 + $0x750] sm:$0xff]  ;;  %v2340_v30 = vld [vmem:[#allocation6 + $0xc28] sm:$0xff] }
 0x34f   : > { %3665 = vmatpush.msrb.mxu3 %v1960_v15  ;;  %3606 = vmatpush.msrb.mxu0 %v2114_v18  ;;  %v2095_v18 = vld [vmem:[#allocation6 + $0x480] sm:$0xff]  ;;  %v2090_v42 = vld [vmem:[#allocation6 + $0x458] sm:$0xff] }
 0x350   : > { %3625 = vmatpush.msrb.mxu1 %v2199_v33  ;;  %3646 = vmatpush.msrb.mxu2 %v2274_v37  ;;  %v3348_v48 = vpop.f32.mrf.mxu3  ;;  %v2255_v33 = vld [vmem:[#allocation6 + $0x980] sm:$0xff] }
 0x351   : > { %3666 = vmatpush.msrb.mxu3 %v1955_v51  ;;  %3607 = vmatmul.f32.vlgmr.msrb.gmra.mxu0 %v5150_v22  ;;  %v5552_v9 = vadd.f32 %v3348_v48, %v3329_v56   ;;  %v2335_v51 = vld [vmem:[#allocation6 + $0xc00] sm:$0xff]  ;;  %v2330_v48 = vld [vmem:[#allocation6 + $0xbd8] sm:$0xff] }
 0x352   : > { %3647 = vmatmul.f32.vlgmr.msrb.gmra.mxu2 %v5142_v20  ;;  %3667 = vmatmul.f32.vlgmr.msrb.gmra.mxu3 %v5158_v24  ;;  %v2260_v24 = vld [vmem:[#allocation6 + $0x9a8] sm:$0xff]  ;;  %v2175_v56 = vld [vmem:[#allocation6 + $0x700] sm:$0xff] }
 0x353   : > { %3671 = vmatpush.msra.mxu0 %v2110_v44  ;;  %3711 = vmatpush.msra.mxu2 %v2270_v47  ;;  %v5557_v60 = vsub.f32 %v5552_v9, %v3761_v41  ;;  %v2250_v41 = vld [vmem:[#allocation6 + $0x958] sm:$0xff]  ;;  %v2085_v47 = vld [vmem:[#allocation6 + $0x430] sm:$0xff]  ;;  %v4105_v9 = vld [vmem:[#allocation10 + $0x2a0] sm:$0xff] (%p5641_p0) }
 0x354   : > { %3626 = vmatpush.msrb.mxu1 %v2194_v61  ;;  %3731 = vmatpush.msra.mxu3 %v2350_v52  ;;  %v2170_v61 = vld [vmem:[#allocation6 + $0x6d8] sm:$0xff]  ;;  %v2245_v52 = vld [vmem:[#allocation6 + $0x930] sm:$0xff] }
 0x355   : > { %3627 = vmatmul.f32.vlgmr.msrb.gmra.mxu1 %v5146_v21  ;;  %3672 = vmatpush.msra.mxu0 %v2105_v63  ;;  %v3776_v15 = vmul.f32 %v5557_v60, %v5557_v60  ;;  %v2080_v63 = vld [vmem:[#allocation6 + $0x408] sm:$0xff] }
 0x356   : > { %3691 = vmatpush.msra.mxu1 %v2190_v53  ;;  %3712 = vmatpush.msra.mxu2 %v2265_v54  ;;  %v2325_v53 = vld [vmem:[#allocation6 + $0xbb0] sm:$0xff] }
 0x357   : > { %3673 = vmatpush.msra.mxu0 %v2100_v58  ;;  %3732 = vmatpush.msra.mxu3 %v2345_v59  ;;  %v3781_v37 = vadd.f32 %v3776_v15, %v3771_v26  ;;  %v2165_v54 = vld [vmem:[#allocation6 + $0x6b0] sm:$0xff]  ;;  %v2240_v58 = vld [vmem:[#allocation6 + $0x908] sm:$0xff]  ;;  %v2075_v59 = vld [vmem:[#allocation6 + $0x3e0] sm:$0xff] }
 0x358   : > { %3692 = vmatpush.msra.mxu1 %v2185_v39  ;;  %3713 = vmatpush.msra.mxu2 %v2260_v24  ;;  %v2320_v26 = vld [vmem:[#allocation6 + $0xb88] sm:$0xff]  ;;  %v2235_v24 = vld [vmem:[#allocation6 + $0x8e0] sm:$0xff]  ;;  %v2070_v15 = vld [vmem:[#allocation6 + $0x3b8] sm:$0xff] }
 0x359   : > { %3674 = vmatpush.msra.mxu0 %v2095_v18  ;;  %3733 = vmatpush.msra.mxu3 %v2340_v30  ;;  %v5564_v44 = vadd.f32 1e-32, %v3781_v37  ;;  %v2160_v39 = vld [vmem:[#allocation6 + $0x688] sm:$0xff]  ;;  %v2315_v18 = vld [vmem:[#allocation6 + $0xb60] sm:$0xff] }
 0x35a   : > { %3693 = vmatpush.msra.mxu1 %v2180_v32  ;;  %3714 = vmatpush.msra.mxu2 %v2255_v33  ;;  %v2155_v32 = vld [vmem:[#allocation6 + $0x660] sm:$0xff]  ;;  %v2230_v33 = vld [vmem:[#allocation6 + $0x8b8] sm:$0xff] }
 0x35b   : > { %3675 = vmatpush.msra.mxu0 %v2090_v42  ;;  %3734 = vmatpush.msra.mxu3 %v2335_v51  ;;  %4834 = vrsqrt.f32 %v5564_v44  ;;  %v2065_v42 = vld [vmem:[#allocation6 + $0x390] sm:$0xff]  ;;  %v2310_v51 = vld [vmem:[#allocation6 + $0xb38] sm:$0xff]  ;;  %vm3797_vm1 = vweird.f32 %v5564_v44 }
 0x35c   : > { %3694 = vmatpush.msra.mxu1 %v2175_v56  ;;  %3715 = vmatpush.msra.mxu2 %v2250_v41  ;;  %v2150_v56 = vld [vmem:[#allocation6 + $0x638] sm:$0xff]  ;;  %v2225_v41 = vld [vmem:[#allocation6 + $0x890] sm:$0xff] }
 0x35d   : > { %3676 = vmatpush.msra.mxu0 %v2085_v47  ;;  %3735 = vmatpush.msra.mxu3 %v2330_v48  ;;  %v2060_v48 = vld [vmem:[#allocation6 + $0x368] sm:$0xff] }
 0x35e   : > { %3695 = vmatpush.msra.mxu1 %v2170_v61  ;;  %3716 = vmatpush.msra.mxu2 %v2245_v52  ;;  %v2305_v61 = vld [vmem:[#allocation6 + $0xb10] sm:$0xff] }
 0x35f   : > { %3677 = vmatpush.msra.mxu0 %v2080_v63  ;;  %3736 = vmatpush.msra.mxu3 %v2325_v53  ;;  %v2145_v52 = vld [vmem:[#allocation6 + $0x610] sm:$0xff]  ;;  %v2220_v63 = vld [vmem:[#allocation6 + $0x868] sm:$0xff] }
 0x360   : > { %3696 = vmatpush.msra.mxu1 %v2165_v54  ;;  %3717 = vmatpush.msra.mxu2 %v2240_v58  ;;  %v2055_v54 = vld [vmem:[#allocation6 + $0x340] sm:$0xff]  ;;  %v2300_v58 = vld [vmem:[#allocation6 + $0xae8] sm:$0xff] }
 0x361   : > { %v4835_v30 = vpop.eup %4834  ;;  %3678 = vmatpush.msra.mxu0 %v2075_v59  ;;  %3737 = vmatpush.msra.mxu3 %v2320_v26  ;;  %v2140_v59 = vld [vmem:[#allocation6 + $0x5e8] sm:$0xff]  ;;  %v2215_v26 = vld [vmem:[#allocation6 + $0x840] sm:$0xff] }
 0x362   : > { %v3792_v37 = vmul.f32 %v4835_v30, %v5564_v44  ;;  %3697 = vmatpush.msra.mxu1 %v2160_v39  ;;  %3718 = vmatpush.msra.mxu2 %v2235_v24  ;;  %vm3798_vm0 = vweird.f32 %v4835_v30  ;;  %v2050_v24 = vld [vmem:[#allocation6 + $0x318] sm:$0xff]  ;;  %v2040_v44 = vld [vmem:[#allocation6 + $0x2c8] sm:$0xff] }
 0x363   : > { %3679 = vmatpush.msra.mxu0 %v2070_v15  ;;  %3738 = vmatpush.msra.mxu3 %v2315_v18  ;;  %v2295_v15 = vld [vmem:[#allocation6 + $0xac0] sm:$0xff]  ;;  %vm3799_vm2 = vmor %vm3797_vm1, %vm3798_vm0 }
 0x364   : > { %v3793_v47 = vmul.f32 %v4835_v30, %v3792_v37  ;;  %3698 = vmatpush.msra.mxu1 %v2155_v32  ;;  %3719 = vmatpush.msra.mxu2 %v2230_v33  ;;  %v2135_v18 = vld [vmem:[#allocation6 + $0x5c0] sm:$0xff]  ;;  %v2210_v32 = vld [vmem:[#allocation6 + $0x818] sm:$0xff]  ;;  %v2045_v37 = vld [vmem:[#allocation6 + $0x2f0] sm:$0xff] }
 0x365   : > { %3680 = vmatpush.msra.mxu0 %v2065_v42  ;;  %3739 = vmatpush.msra.mxu3 %v2310_v51  ;;  %v2290_v42 = vld [vmem:[#allocation6 + $0xa98] sm:$0xff]  ;;  %v3841_v51 = vmul.f32 %v5549_v14, %v5235_v0  ;;  %v2125_v14 = vld [vmem:[#allocation6 + $0x570] sm:$0xff] }
 0x366   : > { %v3794_v53 = vmul.f32 0.5, %v3793_v47  ;;  %3699 = vmatpush.msra.mxu1 %v2150_v56  ;;  %3720 = vmatpush.msra.mxu2 %v2225_v41  ;;  %v3851_v56 = vmul.f32 %v5557_v60, %v5235_v0  ;;  %v2130_v41 = vld [vmem:[#allocation6 + $0x598] sm:$0xff]  ;;  %v2205_v47 = vld [vmem:[#allocation6 + $0x7f0] sm:$0xff]  ;;  %v2035_v60 = vld [vmem:[#allocation6 + $0x2a0] sm:$0xff] }
 0x367   : > { %3681 = vmatpush.msra.mxu0 %v2060_v48  ;;  %3740 = vmatpush.msra.mxu3 %v2305_v61  ;;  %v2285_v61 = vld [vmem:[#allocation6 + $0xa70] sm:$0xff] }
 0x368   : > { %v3795_v39 = vsub.f32 1.5, %v3794_v53  ;;  %3700 = vmatpush.msra.mxu1 %v2145_v52  ;;  %3721 = vmatpush.msra.mxu2 %v2220_v63  ;;  %v2200_v53 = vld [vmem:[#allocation6 + $0x7c8] sm:$0xff]  ;;  %v4079_v0 = vld [vmem:[#allocation10 + $0x1d0] sm:$0xff] (%p5641_p0) }
 0x369   : > { %3682 = vmatpush.msra.mxu0 %v2055_v54  ;;  %3741 = vmatpush.msra.mxu3 %v2300_v58  ;;  %v2280_v54 = vld [vmem:[#allocation6 + $0xa48] sm:$0xff] }
 0x36a   : > { %v3796_v33 = vmul.f32 %v4835_v30, %v3795_v39  ;;  %3701 = vmatpush.msra.mxu1 %v2140_v59  ;;  %3722 = vmatpush.msra.mxu2 %v2215_v26  ;;  %v2120_v58 = vld [vmem:[#allocation6 + $0x548] sm:$0xff]  ;;  %v2115_v59 = vld [vmem:[#allocation6 + $0x520] sm:$0xff]  ;;  %v3368_v39 = vpop.f32.mrf.mxu0 }
 0x36b   : > { %3683 = vmatpush.msra.mxu0 %v2050_v24  ;;  %3742 = vmatpush.msra.mxu3 %v2295_v15  ;;  %v2275_v26 = vld [vmem:[#allocation6 + $0xa20] sm:$0xff] }
 0x36c   : > { %v3800_v48 = vsel %vm3799_vm2, %v4835_v30, %v3796_v33  ;;  %3702 = vmatpush.msra.mxu1 %v2135_v18  ;;  %3723 = vmatpush.msra.mxu2 %v2210_v32  ;;  %v2195_v30 = vld [vmem:[#allocation6 + $0x7a0] sm:$0xff]  ;;  %v3388_v15 = vpop.f32.mrf.mxu1 }
 0x36d   : > { %v5574_v24 = vmul.f32 %v3841_v51, %v3800_v48   ;;  %v5576_v63 = vmul.f32 %v3851_v56, %v3800_v48   ;;  %3684 = vmatpush.msra.mxu0 %v2045_v37  ;;  %3743 = vmatpush.msra.mxu3 %v2290_v42  ;;  %v3752_v42 = vmul.f32 0.49748743, %v5114_v13  ;;  %v2989_v48 = vadd.f32 %v5513_v28, %v5511_v36 }
 0x36e   : > { %3703 = vmatpush.msra.mxu1 %v2130_v41  ;;  %3724 = vmatpush.msra.mxu2 %v2205_v47 }
 0x36f   : > { %v5746_v52 = vmov %v5574_v24  ;;  %3685 = vmatpush.msra.mxu0 %v2040_v44  ;;  %3744 = vmatpush.msra.mxu3 %v2285_v61  ;;  %v3369_v24 = vadd.f32 %v3368_v39, %v5494_v55  ;;  %v3408_v18 = vpop.f32.mrf.mxu2  ;;  %v3757_v56 = vsub.f32 %v5447_v57, %v3752_v42  ;;  %v3009_v13 = vadd.f32 %v5517_v34, %v2989_v48 }
 0x370   : > { %3704 = vmatpush.msra.mxu1 %v2125_v14  ;;  %3725 = vmatpush.msra.mxu2 %v2200_v53 }
 0x371   : > { %3686 = vmatpush.msra.mxu0 %v2035_v60  ;;  %3745 = vmatpush.msra.mxu3 %v2280_v54  ;;  %v3389_v32 = vadd.f32 %v3388_v15, %v3369_v24  ;;  %v3029_v14 = vadd.f32 %v5515_v31, %v3009_v13  ;;  %v3842_v24 = vmul.f32 %v3757_v56, %v5240_v1 }
 0x372   : > { %3705 = vmatpush.msra.mxu1 %v2120_v58  ;;  %3726 = vmatpush.msra.mxu2 %v2195_v30  ;;  %v3428_v37 = vpop.f32.mrf.mxu3 }
 0x373   : > { %3687 = vmatmul.f32.vlgmr.msra.gmra.mxu0 %v5154_v23  ;;  %3727 = vmatmul.f32.vlgmr.msra.gmra.mxu2 %v5146_v21  ;;  %v3409_v33 = vadd.f32 %v3408_v18, %v3389_v32  ;;  %v3762_v23 = vmul.f32 0.49748743, %v5094_v8  ;;  %v3049_v58 = vadd.f32 %v5519_v19, %v3029_v14 }
 0x374   : > { %3706 = vmatpush.msra.mxu1 %v2115_v59  ;;  %3746 = vmatpush.msra.mxu3 %v2275_v26 }
 0x375   : > { %3707 = vmatmul.f32.vlgmr.msra.gmra.mxu1 %v5150_v22  ;;  %3747 = vmatmul.f32.vlgmr.msra.gmra.mxu3 %v5142_v20  ;;  %v3429_v51 = vadd.f32 %v3428_v37, %v3409_v33  ;;  %v3772_v22 = vmul.f32 %v3757_v56, %v3757_v56  ;;  %v3753_v37 = vmul.f32 0.49748743, %v5110_v12 }
 0x377   : > { %v3758_v56 = vsub.f32 %v5456_v40, %v3753_v37 }
 0x38b   : > { %v3448_v21 = vpop.f32.mrf.mxu0  ;;  %v3468_v54 = vpop.f32.mrf.mxu1 }
 0x38c   : > { %v5586_v8 = vadd.f32 %v3448_v21, %v3429_v51   ;;  %v3469_v39 = vadd.f32 %v3468_v54, %v3049_v58  ;;  %v3763_v51 = vmul.f32 0.49748743, %v5090_v7 }
 0x38e   : > { %v3767_v20 = vsub.f32 %v5586_v8, %v3762_v23  ;;  %v4041_v8 = vld [vmem:[#allocation10 + $0xa0] sm:$0xff] (%p5641_p0) }
 0x390   : > { %v3777_v41 = vmul.f32 %v3767_v20, %v3767_v20  ;;  %v3852_v36 = vmul.f32 %v3767_v20, %v5240_v1  ;;  %v4109_v1 = vld [vmem:[#allocation10 + $0x2c0] sm:$0xff] (%p5641_p0) }
 0x392   : > { %v3782_v55 = vadd.f32 %v3777_v41, %v3772_v22  ;;  %v3488_v59 = vpop.f32.mrf.mxu2  ;;  %v3773_v22 = vmul.f32 %v3758_v56, %v3758_v56 }
 0x393   : > { %v3489_v34 = vadd.f32 %v3488_v59, %v3469_v39 }
 0x394   : > { %v3787_v47 = vadd.f32 1e-32, %v3782_v55  ;;  %v3508_v15 = vpop.f32.mrf.mxu3 }
 0x395   : > { %v3509_v33 = vadd.f32 %v3508_v15, %v3489_v34  ;;  %v3764_v34 = vmul.f32 0.49748743, %v5086_v6 }
 0x396   : > { %4836 = vrsqrt.f32 %v3787_v47  ;;  %vm3807_vm4 = vweird.f32 %v3787_v47 }
 0x39c   : > { %v4837_v44 = vpop.eup %4836 }
 0x39d   : > { %v3802_v61 = vmul.f32 %v4837_v44, %v3787_v47  ;;  %vm3808_vm3 = vweird.f32 %v4837_v44 }
 0x39e   : > { %vm3809_vm5 = vmor %vm3807_vm4, %vm3808_vm3 }
 0x39f   : > { %v3803_v53 = vmul.f32 %v4837_v44, %v3802_v61 }
 0x3a1   : > { %v3804_v60 = vmul.f32 0.5, %v3803_v53 }
 0x3a3   : > { %v3805_v30 = vsub.f32 1.5, %v3804_v60 }
 0x3a5   : > { %v3806_v26 = vmul.f32 %v4837_v44, %v3805_v30  ;;  %v3843_v30 = vmul.f32 %v3758_v56, %v5245_v2  ;;  %v3189_v56 = vadd.f32 %v5533_v17, %v5537_v38 }
 0x3a7   : > { %v3810_v28 = vsel %vm3809_vm5, %v4837_v44, %v3806_v26 }
 0x3a8   : > { %v5596_v23 = vmul.f32 %v3842_v24, %v3810_v28   ;;  %v5598_v18 = vmul.f32 %v3852_v36, %v3810_v28  }
 0x3aa   : > { %v5747_v31 = vmov %v5596_v23  ;;  %v5748_v32 = vmov %v5598_v18  ;;  %v3089_v18 = vadd.f32 %v5528_v50, %v5522_v43 }
 0x3ac   : > { %v3528_v19 = vpop.f32.mrf.mxu0  ;;  %v3109_v12 = vadd.f32 %v5525_v45, %v3089_v18 }
 0x3ad   : > { %v3529_v42 = vadd.f32 %v3528_v19, %v3509_v33 }
 0x3ae   : > { %v3129_v13 = vadd.f32 %v5531_v27, %v3109_v12 }
 0x3b0   : > { %v3548_v21 = vpop.f32.mrf.mxu1  ;;  %v3149_v53 = vadd.f32 %v5535_v35, %v3129_v13  ;;  %v3754_v35 = vmul.f32 0.49748743, %v5106_v11 }
 0x3b1   : > { %v5603_v7 = vadd.f32 %v3548_v21, %v3529_v42  }
 0x3b2   : > { %v3759_v33 = vsub.f32 %v5471_v49, %v3754_v35 }
 0x3b3   : > { %v3768_v20 = vsub.f32 %v5603_v7, %v3763_v51  ;;  %v3568_v14 = vpop.f32.mrf.mxu2  ;;  %v4075_v7 = vld [vmem:[#allocation10 + $0x1b0] sm:$0xff] (%p5641_p0) }
 0x3b4   : > { %v3569_v58 = vadd.f32 %v3568_v14, %v3149_v53  ;;  %v3774_v37 = vmul.f32 %v3759_v33, %v3759_v33 }
 0x3b5   : > { %v3778_v41 = vmul.f32 %v3768_v20, %v3768_v20  ;;  %v3853_v43 = vmul.f32 %v3768_v20, %v5245_v2  ;;  %v3588_v45 = vpop.f32.mrf.mxu3  ;;  %v3209_v20 = vadd.f32 %v5539_v29, %v3189_v56  ;;  %v4141_v2 = vld [vmem:[#allocation10 + $0x3c0] sm:$0xff] (%p5641_p0) }
 0x3b6   : > { %v3589_v26 = vadd.f32 %v3588_v45, %v3569_v58 }
 0x3b7   : > { %v3783_v23 = vadd.f32 %v3778_v41, %v3773_v22  ;;  %v3229_v41 = vadd.f32 %v5541_v25, %v3209_v20 }
 0x3b9   : > { %v3788_v55 = vadd.f32 1e-32, %v3783_v23  ;;  %v3249_v12 = vadd.f32 %v5543_v16, %v3229_v41  ;;  %v4113_v41 = vld [vmem:[#allocation10 + $0x2e0] sm:$0xff] (%p5641_p0) }
 0x3bb   : > { %4838 = vrsqrt.f32 %v3788_v55  ;;  %vm3817_vm7 = vweird.f32 %v3788_v55 }
 0x3c1   : > { %v4839_v47 = vpop.eup %4838 }
 0x3c2   : > { %v3812_v48 = vmul.f32 %v4839_v47, %v3788_v55  ;;  %vm3818_vm6 = vweird.f32 %v4839_v47 }
 0x3c3   : > { %vm3819_vm8 = vmor %vm3817_vm7, %vm3818_vm6 }
 0x3c4   : > { %v3813_v44 = vmul.f32 %v4839_v47, %v3812_v48 }
 0x3c6   : > { %v3814_v61 = vmul.f32 0.5, %v3813_v44  ;;  %v3844_v44 = vmul.f32 %v3759_v33, %v5250_v3 }
 0x3c8   : > { %v3815_v60 = vsub.f32 1.5, %v3814_v61 }
 0x3ca   : > { %v3816_v54 = vmul.f32 %v4839_v47, %v3815_v60  ;;  %v3755_v60 = vmul.f32 0.49748743, %v5102_v10 }
 0x3cc   : > { %v3820_v50 = vsel %vm3819_vm8, %v4839_v47, %v3816_v54 }
 0x3cd   : > { %v5613_v22 = vmul.f32 %v3843_v30, %v3820_v50   ;;  %v5615_v27 = vmul.f32 %v3853_v43, %v3820_v50   ;;  %v3765_v43 = vmul.f32 0.49748743, %v5082_v5  ;;  %v3760_v50 = vsub.f32 %v5477_v62, %v3755_v60  ;;  %v4099_v60 = vld [vmem:[#allocation10 + $0x270] sm:$0xff] (%p5641_p0) }
 0x3ce   : > { %v3608_v39 = vpop.f32.mrf.mxu0 }
 0x3cf   : > { %v5749_v59 = vmov %v5613_v22  ;;  %v3609_v24 = vadd.f32 %v3608_v39, %v3589_v26  ;;  %v3775_v39 = vmul.f32 %v3760_v50, %v3760_v50 }
 0x3d2   : > { %v3628_v36 = vpop.f32.mrf.mxu1 }
 0x3d3   : > { %v3629_v28 = vadd.f32 %v3628_v36, %v3609_v24 }
 0x3d5   : > { %v3648_v15 = vpop.f32.mrf.mxu2  ;;  %v3668_v18 = vpop.f32.mrf.mxu3 }
 0x3d6   : > { %v3649_v6 = vadd.f32 %v3648_v15, %v3629_v28   ;;  %v3669_v13 = vadd.f32 %v3668_v18, %v3249_v12  ;;  %v5757_v12 = vmov %v5456_v40  ;;  %v5763_v18 = vmov %v5748_v32  ;;  %v4147_v40 = vld [vmem:[#allocation10 + $0x3f0] sm:$0xff] (%p5641_p0) }
 0x3d7   :  { %4241 = vmatpush.msra.mxu3 (%p5641_p0), %v4147_v40  ;;  %v4071_v18 = vld [vmem:[#allocation10 + $0x190] sm:$0xff] (%p5641_p0)  ;;  %v4037_v12 = vld [vmem:[#allocation10 + $0x80] sm:$0xff] (%p5641_p0) }
 0x3d8   : > { %v3769_v19 = vsub.f32 %v3649_v6, %v3764_v34  ;;  %v4139_v6 = vld [vmem:[#allocation10 + $0x3b0] sm:$0xff] (%p5641_p0) }
 0x3d9   :  { %v4023_v40 = vld [vmem:[#allocation10 + $0x10] sm:$0xff] (%p5641_p0) }
 0x3da   : > { %v3779_v42 = vmul.f32 %v3769_v19, %v3769_v19  ;;  %v3854_v17 = vmul.f32 %v3769_v19, %v5250_v3  ;;  %v3845_v19 = vmul.f32 %v3760_v50, %v5255_v4  ;;  %v4077_v3 = vld [vmem:[#allocation10 + $0x1c0] sm:$0xff] (%p5641_p0) }
 0x3db   :  { %v4065_v50 = vld [vmem:[#allocation10 + $0x160] sm:$0xff] (%p5641_p0) }
 0x3dc   : > { %v3784_v51 = vadd.f32 %v3779_v42, %v3774_v37 }
 0x3de   : > { %v3789_v21 = vadd.f32 1e-32, %v3784_v51 }
 0x3e0   : > { %4840 = vrsqrt.f32 %v3789_v21  ;;  %vm3827_vm10 = vweird.f32 %v3789_v21 }
 0x3e6   : > { %v4841_v11 = vpop.eup %4840 }
 0x3e7   : > { %v3822_v22 = vmul.f32 %v4841_v11, %v3789_v21  ;;  %vm3828_vm9 = vweird.f32 %v4841_v11 }
 0x3e8   : > { %vm3829_vm11 = vmor %vm3827_vm10, %vm3828_vm9 }
 0x3e9   : > { %v3823_v23 = vmul.f32 %v4841_v11, %v3822_v22  ;;  %v5767_v22 = vmov %v5749_v59 }
 0x3ea   :  { %v4103_v22 = vld [vmem:[#allocation10 + $0x290] sm:$0xff] (%p5641_p0) }
 0x3eb   : > { %v3824_v55 = vmul.f32 0.5, %v3823_v23  ;;  %v5768_v23 = vmov %v5747_v31 }
 0x3ec   :  { %v4135_v23 = vld [vmem:[#allocation10 + $0x390] sm:$0xff] (%p5641_p0) }
 0x3ed   : > { %v3825_v47 = vsub.f32 1.5, %v3824_v55  ;;  %v4145_v55 = vld [vmem:[#allocation10 + $0x3e0] sm:$0xff] (%p5641_p0) }
 0x3ee   :  { %4242 = vmatpush.msra.mxu3 (%p5641_p0), %v4145_v55  ;;  %v4021_v55 = vld [vmem:[#allocation10] sm:$0xff] (%p5641_p0) }
 0x3ef   : > { %v3826_v48 = vmul.f32 %v4841_v11, %v3825_v47  ;;  %v4047_v47 = vld [vmem:[#allocation10 + $0xd0] sm:$0xff] (%p5641_p0) }
 0x3f0   : > { %v3688_v38 = vpop.f32.mrf.mxu0 }
 0x3f1   : > { %v3830_v29 = vsel %vm3829_vm11, %v4841_v11, %v3826_v48  ;;  %v3689_v61 = vadd.f32 %v3688_v38, %v3669_v13  ;;  %v5756_v11 = vmov %v5471_v49  ;;  %v5758_v13 = vmov %v5447_v57  ;;  %v4115_v57 = vld [vmem:[#allocation10 + $0x2f0] sm:$0xff] (%p5641_p0)  ;;  %v4049_v49 = vld [vmem:[#allocation10 + $0xe0] sm:$0xff] (%p5641_p0) }
 0x3f2   : > { %v5627_v21 = vmul.f32 %v3844_v44, %v3830_v29   ;;  %v5629_v16 = vmul.f32 %v3854_v17, %v3830_v29   ;;  %v3708_v14 = vpop.f32.mrf.mxu1  ;;  %v5762_v17 = vmov %v5615_v27  ;;  %4221 = vmatpush.msra.mxu2 (%p5641_p0), %v4115_v57  ;;  %v4081_v48 = vld [vmem:[#allocation10 + $0x1e0] sm:$0xff] (%p5641_p0)  ;;  %v4111_v44 = vld [vmem:[#allocation10 + $0x2d0] sm:$0xff] (%p5641_p0) }
 0x3f3   : > { %v3709_v54 = vadd.f32 %v3708_v14, %v3689_v61  ;;  %v5759_v14 = vmov %v5437_v46  ;;  %v4051_v46 = vld [vmem:[#allocation10 + $0xf0] sm:$0xff] (%p5641_p0)  ;;  %v4045_v29 = vld [vmem:[#allocation10 + $0xc0] sm:$0xff] (%p5641_p0) }
 0x3f4   : > { %v5750_v25 = vmov %v5627_v21  ;;  %v5751_v53 = vmov %v5629_v16  ;;  %4181 = vmatpush.msra.mxu0 (%p5641_p0), %v4051_v46  ;;  %4222 = vmatpush.msra.mxu2 (%p5641_p0), %v4113_v41  ;;  %v4143_v38 = vld [vmem:[#allocation10 + $0x3d0] sm:$0xff] (%p5641_p0)  ;;  %v4101_v13 = vld [vmem:[#allocation10 + $0x280] sm:$0xff] (%p5641_p0) }
 0x3f5   : > { %v5766_v21 = vmov %v5750_v25  ;;  %4243 = vmatpush.msra.mxu3 (%p5641_p0), %v4143_v38  ;;  %v4039_v11 = vld [vmem:[#allocation10 + $0x90] sm:$0xff] (%p5641_p0)  ;;  %v4133_v17 = vld [vmem:[#allocation10 + $0x380] sm:$0xff] (%p5641_p0)  ;;  %v4084_v38 = vld [vmem:[#allocation10 + $0x1f8] sm:$0xff] (%p5641_p0) }
 0x3f6   : > { %v3728_v58 = vpop.f32.mrf.mxu2  ;;  %4182 = vmatpush.msra.mxu0 (%p5641_p0), %v4049_v49  ;;  %4223 = vmatpush.msra.mxu2 (%p5641_p0), %v4111_v44  ;;  %v4137_v21 = vld [vmem:[#allocation10 + $0x3a0] sm:$0xff] (%p5641_p0)  ;;  %v4035_v14 = vld [vmem:[#allocation10 + $0x70] sm:$0xff] (%p5641_p0) }
 0x3f7   : > { %v3729_v30 = vadd.f32 %v3728_v58, %v3709_v54  ;;  %4244 = vmatpush.msra.mxu3 (%p5641_p0), %v4141_v2  ;;  %v4069_v61 = vld [vmem:[#allocation10 + $0x180] sm:$0xff] (%p5641_p0)  ;;  %v4131_v54 = vld [vmem:[#allocation10 + $0x370] sm:$0xff] (%p5641_p0)  ;;  %v4052_v2 = vld [vmem:[#allocation10 + $0xf8] sm:$0xff] (%p5641_p0) }
 0x3f8   : > { %v3748_v45 = vpop.f32.mrf.mxu3  ;;  %4183 = vmatpush.msra.mxu0 (%p5641_p0), %v4047_v47  ;;  %4224 = vmatpush.msra.mxu2 (%p5641_p0), %v4109_v1  ;;  %v4067_v58 = vld [vmem:[#allocation10 + $0x170] sm:$0xff] (%p5641_p0)  ;;  %v4121_v46 = vld [vmem:[#allocation10 + $0x320] sm:$0xff] (%p5641_p0) }
 0x3f9   : > { %v3749_v5 = vadd.f32 %v3748_v45, %v3729_v30   ;;  %4245 = vmatpush.msra.mxu3 (%p5641_p0), %v4139_v6  ;;  %v4033_v30 = vld [vmem:[#allocation10 + $0x60] sm:$0xff] (%p5641_p0)  ;;  %v4087_v49 = vld [vmem:[#allocation10 + $0x210] sm:$0xff] (%p5641_p0)  ;;  %v4050_v6 = vld [vmem:[#allocation10 + $0xe8] sm:$0xff] (%p5641_p0) }
 0x3fa   :  { %4184 = vmatpush.msra.mxu0 (%p5641_p0), %v4045_v29  ;;  %v4129_v45 = vld [vmem:[#allocation10 + $0x360] sm:$0xff] (%p5641_p0)  ;;  %v4055_v41 = vld [vmem:[#allocation10 + $0x110] sm:$0xff] (%p5641_p0)  ;;  %v4116_v29 = vld [vmem:[#allocation10 + $0x2f8] sm:$0xff] (%p5641_p0) }
 0x3fb   : > { %v3770_v26 = vsub.f32 %v3749_v5, %v3765_v43  ;;  %v4107_v5 = vld [vmem:[#allocation10 + $0x2b0] sm:$0xff] (%p5641_p0)  ;;  %4246 = vmatpush.msra.mxu3 (%p5641_p0), %v4137_v21  ;;  %v4097_v43 = vld [vmem:[#allocation10 + $0x260] sm:$0xff] (%p5641_p0)  ;;  %v4048_v21 = vld [vmem:[#allocation10 + $0xd8] sm:$0xff] (%p5641_p0) }
 0x3fc   :  { %4225 = vmatpush.msra.mxu2 (%p5641_p0), %v4107_v5  ;;  %v4057_v57 = vld [vmem:[#allocation10 + $0x120] sm:$0xff] (%p5641_p0)  ;;  %v4179_v44 = vld [vmem:[#allocation10 + $0x4f0] sm:$0xff] (%p5641_p0) }
 0x3fd   : > { %v3780_v24 = vmul.f32 %v3770_v26, %v3770_v26  ;;  %v3855_v37 = vmul.f32 %v3770_v26, %v5255_v4  ;;  %v4043_v4 = vld [vmem:[#allocation10 + $0xb0] sm:$0xff] (%p5641_p0)  ;;  %4247 = vmatpush.msra.mxu3 (%p5641_p0), %v4135_v23  ;;  %v4085_v47 = vld [vmem:[#allocation10 + $0x200] sm:$0xff] (%p5641_p0)  ;;  %v4046_v23 = vld [vmem:[#allocation10 + $0xc8] sm:$0xff] (%p5641_p0) }
 0x3fe   :  { %4185 = vmatpush.msra.mxu0 (%p5641_p0), %v4043_v4  ;;  %4226 = vmatpush.msra.mxu2 (%p5641_p0), %v4105_v9  ;;  %v4031_v26 = vld [vmem:[#allocation10 + $0x50] sm:$0xff] (%p5641_p0)  ;;  %v4177_v1 = vld [vmem:[#allocation10 + $0x4e0] sm:$0xff] (%p5641_p0)  ;;  %v4114_v4 = vld [vmem:[#allocation10 + $0x2e8] sm:$0xff] (%p5641_p0) }
 0x3ff   : > { %v3785_v35 = vadd.f32 %v3780_v24, %v3775_v39  ;;  %v5769_v24 = vmov %v5746_v52  ;;  %4248 = vmatpush.msra.mxu3 (%p5641_p0), %v4133_v17  ;;  %v4095_v39 = vld [vmem:[#allocation10 + $0x250] sm:$0xff] (%p5641_p0)  ;;  %v4173_v9 = vld [vmem:[#allocation10 + $0x4c0] sm:$0xff] (%p5641_p0)  ;;  %v4044_v17 = vld [vmem:[#allocation10 + $0xb8] sm:$0xff] (%p5641_p0) }
 0x400   :  { %4186 = vmatpush.msra.mxu0 (%p5641_p0), %v4041_v8  ;;  %4227 = vmatpush.msra.mxu2 (%p5641_p0), %v4103_v22  ;;  %v4127_v24 = vld [vmem:[#allocation10 + $0x350] sm:$0xff] (%p5641_p0)  ;;  %v4112_v8 = vld [vmem:[#allocation10 + $0x2d8] sm:$0xff] (%p5641_p0) }
 0x401   : > { %v3790_v36 = vadd.f32 1e-32, %v3785_v35  ;;  %4249 = vmatpush.msra.mxu3 (%p5641_p0), %v4131_v54  ;;  %v4063_v35 = vld [vmem:[#allocation10 + $0x150] sm:$0xff] (%p5641_p0)  ;;  %v4042_v54 = vld [vmem:[#allocation10 + $0xa8] sm:$0xff] (%p5641_p0) }
 0x402   :  { %4187 = vmatpush.msra.mxu0 (%p5641_p0), %v4039_v11  ;;  %4228 = vmatpush.msra.mxu2 (%p5641_p0), %v4101_v13  ;;  %v4175_v5 = vld [vmem:[#allocation10 + $0x4d0] sm:$0xff] (%p5641_p0)  ;;  %v4110_v11 = vld [vmem:[#allocation10 + $0x2c8] sm:$0xff] (%p5641_p0)  ;;  %v4169_v13 = vld [vmem:[#allocation10 + $0x4a0] sm:$0xff] (%p5641_p0) }
 0x403   : > { %4842 = vrsqrt.f32 %v3790_v36  ;;  %vm3837_vm13 = vweird.f32 %v3790_v36  ;;  %4250 = vmatpush.msra.mxu3 (%p5641_p0), %v4129_v45  ;;  %v4171_v22 = vld [vmem:[#allocation10 + $0x4b0] sm:$0xff] (%p5641_p0)  ;;  %v4040_v45 = vld [vmem:[#allocation10 + $0x98] sm:$0xff] (%p5641_p0) }
 0x404   :  { %4188 = vmatpush.msra.mxu0 (%p5641_p0), %v4037_v12  ;;  %4229 = vmatpush.msra.mxu2 (%p5641_p0), %v4099_v60  ;;  %v4108_v12 = vld [vmem:[#allocation10 + $0x2b8] sm:$0xff] (%p5641_p0)  ;;  %v4167_v60 = vld [vmem:[#allocation10 + $0x490] sm:$0xff] (%p5641_p0) }
 0x405   :  { %4251 = vmatpush.msra.mxu3 (%p5641_p0), %v4127_v24  ;;  %v4038_v24 = vld [vmem:[#allocation10 + $0x88] sm:$0xff] (%p5641_p0) }
 0x406   :  { %4189 = vmatpush.msra.mxu0 (%p5641_p0), %v4035_v14  ;;  %4230 = vmatpush.msra.mxu2 (%p5641_p0), %v4097_v43  ;;  %v4106_v14 = vld [vmem:[#allocation10 + $0x2a8] sm:$0xff] (%p5641_p0)  ;;  %v4165_v43 = vld [vmem:[#allocation10 + $0x480] sm:$0xff] (%p5641_p0) }
 0x408   :  { %4190 = vmatpush.msra.mxu0 (%p5641_p0), %v4033_v30  ;;  %4231 = vmatpush.msra.mxu2 (%p5641_p0), %v4095_v39  ;;  %v4104_v30 = vld [vmem:[#allocation10 + $0x298] sm:$0xff] (%p5641_p0)  ;;  %v4163_v39 = vld [vmem:[#allocation10 + $0x470] sm:$0xff] (%p5641_p0) }
 0x409   : > { %v4843_v28 = vpop.eup %4842 }
 0x40a   : > { %v3832_v16 = vmul.f32 %v4843_v28, %v3790_v36  ;;  %vm3838_vm12 = vweird.f32 %v4843_v28  ;;  %v4029_v36 = vld [vmem:[#allocation10 + $0x40] sm:$0xff] (%p5641_p0)  ;;  %4191 = vmatpush.msra.mxu0 (%p5641_p0), %v4031_v26  ;;  %v4102_v26 = vld [vmem:[#allocation10 + $0x288] sm:$0xff] (%p5641_p0) }
 0x40b   : > { %vm3839_vm14 = vmor %vm3837_vm13, %vm3838_vm12 }
 0x40c   : > { %v3833_v34 = vmul.f32 %v4843_v28, %v3832_v16  ;;  %v5761_v16 = vmov %v5751_v53  ;;  %4192 = vmatpush.msra.mxu0 (%p5641_p0), %v4029_v36  ;;  %v4100_v36 = vld [vmem:[#allocation10 + $0x278] sm:$0xff] (%p5641_p0) }
 0x40d   :  { %v4125_v16 = vld [vmem:[#allocation10 + $0x340] sm:$0xff] (%p5641_p0) }
 0x40e   : > { %v3834_v15 = vmul.f32 0.5, %v3833_v34  ;;  %v4061_v34 = vld [vmem:[#allocation10 + $0x140] sm:$0xff] (%p5641_p0)  ;;  %4252 = vmatpush.msra.mxu3 (%p5641_p0), %v4125_v16  ;;  %v4036_v16 = vld [vmem:[#allocation10 + $0x78] sm:$0xff] (%p5641_p0) }
 0x410   : > { %v3835_v10 = vsub.f32 1.5, %v3834_v15 }
 0x412   : > { %v3836_v33 = vmul.f32 %v4843_v28, %v3835_v10  ;;  %v5755_v10 = vmov %v5477_v62  ;;  %v4083_v62 = vld [vmem:[#allocation10 + $0x1f0] sm:$0xff] (%p5641_p0) }
 0x413   :  { %4201 = vmatpush.msra.mxu1 (%p5641_p0), %v4083_v62  ;;  %v4091_v10 = vld [vmem:[#allocation10 + $0x230] sm:$0xff] (%p5641_p0) }
 0x414   : > { %v3840_v42 = vsel %vm3839_vm14, %v4843_v28, %v3836_v33  ;;  %129 = sbr.rel (!%p5641_p0) target bundleno = 34 (0x22), region = 79  ;;  %v4093_v28 = vld [vmem:[#allocation10 + $0x240] sm:$0xff] (%p5641_p0)  ;;  %v4123_v33 = vld [vmem:[#allocation10 + $0x330] sm:$0xff] (%p5641_p0) }
 0x415   : > { %v5636_v20 = vmul.f32 %v3845_v19, %v3840_v42   ;;  %v5638_v15 = vmul.f32 %v3855_v37, %v3840_v42   ;;  %v5764_v19 = vmov %v5576_v63  ;;  %4202 = vmatpush.msra.mxu1 (%p5641_p0), %v4081_v48  ;;  %4232 = vmatpush.msra.mxu2 (%p5641_p0), %v4093_v28  ;;  %v4025_v37 = vld [vmem:[#allocation10 + $0x20] sm:$0xff] (%p5641_p0)  ;;  %v4119_v62 = vld [vmem:[#allocation10 + $0x310] sm:$0xff] (%p5641_p0) }
 0x416   :  { %v4059_v19 = vld [vmem:[#allocation10 + $0x130] sm:$0xff] (%p5641_p0)  ;;  %v4089_v42 = vld [vmem:[#allocation10 + $0x220] sm:$0xff] (%p5641_p0)  ;;  %4253 = vmatpush.msra.mxu3 (%p5641_p0), %v4123_v33  ;;  %v4034_v33 = vld [vmem:[#allocation10 + $0x68] sm:$0xff] (%p5641_p0) }
 0x417   : > { %v5752_v51 = vmov %v5636_v20  ;;  %v5753_v56 = vmov %v5638_v15  ;;  %4203 = vmatpush.msra.mxu1 (%p5641_p0), %v4079_v0  ;;  %4233 = vmatpush.msra.mxu2 (%p5641_p0), %v4091_v10  ;;  %v4117_v48 = vld [vmem:[#allocation10 + $0x300] sm:$0xff] (%p5641_p0)  ;;  %v4159_v10 = vld [vmem:[#allocation10 + $0x450] sm:$0xff] (%p5641_p0) }
 0x418   : > { %v5760_v15 = vmov %v5753_v56  ;;  %v5765_v20 = vmov %v5752_v51  ;;  %4254 = vmatpush.msra.mxu3 (%p5641_p0), %v4121_v46  ;;  %v4053_v0 = vld [vmem:[#allocation10 + $0x100] sm:$0xff] (%p5641_p0)  ;;  %v4032_v46 = vld [vmem:[#allocation10 + $0x58] sm:$0xff] (%p5641_p0) }
 0x419   :  { %4204 = vmatpush.msra.mxu1 %v4077_v3  ;;  %v4073_v20 = vld [vmem:[#allocation10 + $0x1a0] sm:$0xff]  ;;  %v4027_v15 = vld [vmem:[#allocation10 + $0x30] sm:$0xff]  ;;  %4234 = vmatpush.msra.mxu2 %v4089_v42  ;;  %v4082_v3 = vld [vmem:[#allocation10 + $0x1e8] sm:$0xff] }
 0x41a   :  { %4193 = vmatpush.msra.mxu0 %v4027_v15  ;;  %4255 = vmatpush.msra.mxu3 %v4119_v62  ;;  %v4161_v28 = vld [vmem:[#allocation10 + $0x460] sm:$0xff]  ;;  %v4098_v15 = vld [vmem:[#allocation10 + $0x268] sm:$0xff] }
 0x41b   :  { %4205 = vmatpush.msra.mxu1 %v4075_v7  ;;  %4235 = vmatpush.msra.mxu2 %v4087_v49  ;;  %v4080_v7 = vld [vmem:[#allocation10 + $0x1d8] sm:$0xff]  ;;  %v4157_v42 = vld [vmem:[#allocation10 + $0x440] sm:$0xff]  ;;  %v4155_v49 = vld [vmem:[#allocation10 + $0x430] sm:$0xff] }
 0x41c   :  { %4194 = vmatpush.msra.mxu0 %v4025_v37  ;;  %4256 = vmatpush.msra.mxu3 %v4117_v48  ;;  %v4096_v37 = vld [vmem:[#allocation10 + $0x258] sm:$0xff]  ;;  %v4030_v62 = vld [vmem:[#allocation10 + $0x48] sm:$0xff] }
 0x41d   :  { %4206 = vmatpush.msra.mxu1 %v4073_v20  ;;  %4236 = vmatpush.msra.mxu2 %v4085_v47  ;;  %v4078_v20 = vld [vmem:[#allocation10 + $0x1c8] sm:$0xff]  ;;  %v4153_v47 = vld [vmem:[#allocation10 + $0x420] sm:$0xff]  ;;  %v4028_v48 = vld [vmem:[#allocation10 + $0x38] sm:$0xff] }
 0x41e   :  { %4195 = vmatpush.msra.mxu0 %v4023_v40  ;;  %4321 = vmatpush.msrb.mxu3 %v4116_v29  ;;  %v4094_v40 = vld [vmem:[#allocation10 + $0x248] sm:$0xff]  ;;  %v4151_v29 = vld [vmem:[#allocation10 + $0x410] sm:$0xff] }
 0x41f   :  { %4207 = vmatpush.msra.mxu1 %v4071_v18  ;;  %4301 = vmatpush.msrb.mxu2 %v4084_v38  ;;  %v4076_v18 = vld [vmem:[#allocation10 + $0x1b8] sm:$0xff]  ;;  %v4090_v38 = vld [vmem:[#allocation10 + $0x228] sm:$0xff] }
 0x420   :  { %4196 = vmatpush.msra.mxu0 %v4021_v55  ;;  %4322 = vmatpush.msrb.mxu3 %v4114_v4  ;;  %v4092_v55 = vld [vmem:[#allocation10 + $0x238] sm:$0xff] }
 0x421   :  { %4208 = vmatpush.msra.mxu1 %v4069_v61  ;;  %4302 = vmatpush.msrb.mxu2 %v4082_v3  ;;  %v4074_v61 = vld [vmem:[#allocation10 + $0x1a8] sm:$0xff]  ;;  %v4149_v3 = vld [vmem:[#allocation10 + $0x400] sm:$0xff]  ;;  %v4024_v4 = vld [vmem:[#allocation10 + $0x18] sm:$0xff] }
 0x422   :  { %4261 = vmatpush.msrb.mxu0 %v4179_v44  ;;  %4323 = vmatpush.msrb.mxu3 %v4112_v8  ;;  %v4058_v44 = vld [vmem:[#allocation10 + $0x128] sm:$0xff]  ;;  %v3891_v8 = vld [vmem:[#allocation9 + $0xf0] sm:$0xff] }
 0x423   :  { %4209 = vmatpush.msra.mxu1 %v4067_v58  ;;  %4303 = vmatpush.msrb.mxu2 %v4080_v7  ;;  %v4072_v58 = vld [vmem:[#allocation10 + $0x198] sm:$0xff] }
 0x424   :  { %4262 = vmatpush.msrb.mxu0 %v4177_v1  ;;  %4324 = vmatpush.msrb.mxu3 %v4110_v11  ;;  %v4056_v1 = vld [vmem:[#allocation10 + $0x118] sm:$0xff] }
 0x425   :  { %4210 = vmatpush.msra.mxu1 %v4065_v50  ;;  %4304 = vmatpush.msrb.mxu2 %v4078_v20  ;;  %v4070_v50 = vld [vmem:[#allocation10 + $0x188] sm:$0xff]  ;;  %v4148_v7 = vld [vmem:[#allocation10 + $0x3f8] sm:$0xff] }
 0x426   :  { %4263 = vmatpush.msrb.mxu0 %v4175_v5  ;;  %4325 = vmatpush.msrb.mxu3 %v4108_v12  ;;  %v4054_v5 = vld [vmem:[#allocation10 + $0x108] sm:$0xff]  ;;  %v4180_v11 = vld [vmem:[#allocation10 + $0x4f8] sm:$0xff] }
 0x427   :  { %4211 = vmatpush.msra.mxu1 %v4063_v35  ;;  %4305 = vmatpush.msrb.mxu2 %v4076_v18  ;;  %v4068_v35 = vld [vmem:[#allocation10 + $0x178] sm:$0xff]  ;;  %v4146_v20 = vld [vmem:[#allocation10 + $0x3e8] sm:$0xff] }
 0x428   :  { %4264 = vmatpush.msrb.mxu0 %v4173_v9  ;;  %4326 = vmatpush.msrb.mxu3 %v4106_v14  ;;  %v3923_v9 = vld [vmem:[#allocation9 + $0x1f0] sm:$0xff]  ;;  %v4144_v18 = vld [vmem:[#allocation10 + $0x3d8] sm:$0xff]  ;;  %v4178_v12 = vld [vmem:[#allocation10 + $0x4e8] sm:$0xff] }
 0x429   :  { %4212 = vmatpush.msra.mxu1 %v4061_v34  ;;  %4306 = vmatpush.msrb.mxu2 %v4074_v61  ;;  %v4066_v34 = vld [vmem:[#allocation10 + $0x168] sm:$0xff]  ;;  %v4176_v14 = vld [vmem:[#allocation10 + $0x4d8] sm:$0xff] }
 0x42a   :  { %4265 = vmatpush.msrb.mxu0 %v4171_v22  ;;  %4327 = vmatpush.msrb.mxu3 %v4104_v30  ;;  %v3889_v22 = vld [vmem:[#allocation9 + $0xe0] sm:$0xff]  ;;  %v4142_v61 = vld [vmem:[#allocation10 + $0x3c8] sm:$0xff] }
 0x42b   :  { %4213 = vmatpush.msra.mxu1 %v4059_v19  ;;  %4307 = vmatpush.msrb.mxu2 %v4072_v58  ;;  %v4064_v19 = vld [vmem:[#allocation10 + $0x158] sm:$0xff]  ;;  %v4174_v30 = vld [vmem:[#allocation10 + $0x4c8] sm:$0xff] }
 0x42c   :  { %4266 = vmatpush.msrb.mxu0 %v4169_v13  ;;  %4328 = vmatpush.msrb.mxu3 %v4102_v26  ;;  %v3887_v13 = vld [vmem:[#allocation9 + $0xd0] sm:$0xff]  ;;  %v4140_v58 = vld [vmem:[#allocation10 + $0x3b8] sm:$0xff] }
 0x42d   :  { %4214 = vmatpush.msra.mxu1 %v4057_v57  ;;  %4308 = vmatpush.msrb.mxu2 %v4070_v50  ;;  %v4062_v57 = vld [vmem:[#allocation10 + $0x148] sm:$0xff]  ;;  %v4172_v26 = vld [vmem:[#allocation10 + $0x4b8] sm:$0xff] }
 0x42e   :  { %4267 = vmatpush.msrb.mxu0 %v4167_v60  ;;  %4329 = vmatpush.msrb.mxu3 %v4100_v36  ;;  %v3885_v60 = vld [vmem:[#allocation9 + $0xc0] sm:$0xff]  ;;  %v4138_v50 = vld [vmem:[#allocation10 + $0x3a8] sm:$0xff] }
 0x42f   :  { %4215 = vmatpush.msra.mxu1 %v4055_v41  ;;  %4309 = vmatpush.msrb.mxu2 %v4068_v35  ;;  %v4060_v41 = vld [vmem:[#allocation10 + $0x138] sm:$0xff]  ;;  %v4170_v36 = vld [vmem:[#allocation10 + $0x4a8] sm:$0xff] }
 0x430   :  { %4268 = vmatpush.msrb.mxu0 %v4165_v43  ;;  %4330 = vmatpush.msrb.mxu3 %v4098_v15  ;;  %v3883_v43 = vld [vmem:[#allocation9 + $0xb0] sm:$0xff]  ;;  %v4136_v35 = vld [vmem:[#allocation10 + $0x398] sm:$0xff] }
 0x431   :  { %4216 = vmatpush.msra.mxu1 %v4053_v0  ;;  %4310 = vmatpush.msrb.mxu2 %v4066_v34  ;;  %v4026_v0 = vld [vmem:[#allocation10 + $0x28] sm:$0xff]  ;;  %v4168_v15 = vld [vmem:[#allocation10 + $0x498] sm:$0xff] }
 0x432   :  { %4269 = vmatpush.msrb.mxu0 %v4163_v39  ;;  %4331 = vmatpush.msrb.mxu3 %v4096_v37  ;;  %v3881_v39 = vld [vmem:[#allocation9 + $0xa0] sm:$0xff]  ;;  %v4134_v34 = vld [vmem:[#allocation10 + $0x388] sm:$0xff] }
 0x433   :  { %4281 = vmatpush.msrb.mxu1 %v4052_v2  ;;  %4311 = vmatpush.msrb.mxu2 %v4064_v19  ;;  %v4088_v2 = vld [vmem:[#allocation10 + $0x218] sm:$0xff]  ;;  %v4166_v37 = vld [vmem:[#allocation10 + $0x488] sm:$0xff] }
 0x434   :  { %4270 = vmatpush.msrb.mxu0 %v4161_v28  ;;  %4332 = vmatpush.msrb.mxu3 %v4094_v40  ;;  %v3879_v28 = vld [vmem:[#allocation9 + $0x90] sm:$0xff]  ;;  %v4132_v19 = vld [vmem:[#allocation10 + $0x378] sm:$0xff] }
 0x435   :  { %4282 = vmatpush.msrb.mxu1 %v4050_v6  ;;  %4312 = vmatpush.msrb.mxu2 %v4062_v57  ;;  %v4086_v6 = vld [vmem:[#allocation10 + $0x208] sm:$0xff]  ;;  %v4164_v40 = vld [vmem:[#allocation10 + $0x478] sm:$0xff] }
 0x436   :  { %4271 = vmatpush.msrb.mxu0 %v4159_v10  ;;  %4333 = vmatpush.msrb.mxu3 %v4092_v55  ;;  %v3877_v10 = vld [vmem:[#allocation9 + $0x80] sm:$0xff]  ;;  %v4130_v57 = vld [vmem:[#allocation10 + $0x368] sm:$0xff] }
 0x437   :  { %4283 = vmatpush.msrb.mxu1 %v4048_v21  ;;  %4313 = vmatpush.msrb.mxu2 %v4060_v41  ;;  %v4022_v21 = vld [vmem:[#allocation10 + $0x8] sm:$0xff]  ;;  %v4128_v41 = vld [vmem:[#allocation10 + $0x358] sm:$0xff] }
 0x438   :  { %4272 = vmatpush.msrb.mxu0 %v4157_v42  ;;  %4334 = vmatpush.msrb.mxu3 %v4090_v38  ;;  %v3875_v42 = vld [vmem:[#allocation9 + $0x70] sm:$0xff]  ;;  %v4162_v55 = vld [vmem:[#allocation10 + $0x468] sm:$0xff]  ;;  %v4160_v38 = vld [vmem:[#allocation10 + $0x458] sm:$0xff] }
 0x439   :  { %4284 = vmatpush.msrb.mxu1 %v4046_v23  ;;  %4314 = vmatpush.msrb.mxu2 %v4058_v44  ;;  %v3921_v23 = vld [vmem:[#allocation9 + $0x1e0] sm:$0xff]  ;;  %v4126_v44 = vld [vmem:[#allocation10 + $0x348] sm:$0xff] }
 0x43a   :  { %4273 = vmatpush.msrb.mxu0 %v4155_v49  ;;  %4335 = vmatpush.msrb.mxu3 %v4088_v2  ;;  %v3873_v49 = vld [vmem:[#allocation9 + $0x60] sm:$0xff]  ;;  %v4158_v2 = vld [vmem:[#allocation10 + $0x448] sm:$0xff] }
 0x43b   :  { %4285 = vmatpush.msrb.mxu1 %v4044_v17  ;;  %4315 = vmatpush.msrb.mxu2 %v4056_v1  ;;  %v3919_v17 = vld [vmem:[#allocation9 + $0x1d0] sm:$0xff]  ;;  %v4124_v1 = vld [vmem:[#allocation10 + $0x338] sm:$0xff] }
 0x43c   :  { %4274 = vmatpush.msrb.mxu0 %v4153_v47  ;;  %4237 = vmatmul.f32.vlgmr.msra.gmra.mxu2 %v5615_v27  ;;  %v3871_v47 = vld [vmem:[#allocation9 + $0x50] sm:$0xff] }
 0x43d   :  { %4286 = vmatpush.msrb.mxu1 %v4042_v54  ;;  %4316 = vmatpush.msrb.mxu2 %v4054_v5  ;;  %v3917_v54 = vld [vmem:[#allocation9 + $0x1c0] sm:$0xff]  ;;  %v4122_v5 = vld [vmem:[#allocation10 + $0x328] sm:$0xff] }
 0x43e   :  { %4275 = vmatpush.msrb.mxu0 %v4151_v29  ;;  %4336 = vmatpush.msrb.mxu3 %v4086_v6  ;;  %v3869_v29 = vld [vmem:[#allocation9 + $0x40] sm:$0xff]  ;;  %v4156_v6 = vld [vmem:[#allocation10 + $0x438] sm:$0xff] }
 0x43f   :  { %4287 = vmatpush.msrb.mxu1 %v4040_v45  ;;  %4197 = vmatmul.f32.vlgmr.msra.gmra.mxu0 %v5576_v63  ;;  %v3915_v45 = vld [vmem:[#allocation9 + $0x1b0] sm:$0xff] }
 0x440   :  { %4276 = vmatpush.msrb.mxu0 %v4149_v3  ;;  %4257 = vmatmul.f32.vlgmr.msra.gmra.mxu3 %v5751_v53  ;;  %v3867_v3 = vld [vmem:[#allocation9 + $0x30] sm:$0xff] }
 0x441   :  { %4288 = vmatpush.msrb.mxu1 %v4038_v24  ;;  %4381 = vmatpush.msra.mxu2 %v3891_v8  ;;  %v3913_v24 = vld [vmem:[#allocation9 + $0x1a0] sm:$0xff] }
 0x442   :  { %4341 = vmatpush.msra.mxu0 %v4148_v7  ;;  %4401 = vmatpush.msra.mxu3 %v3923_v9  ;;  %v3865_v7 = vld [vmem:[#allocation9 + $0x20] sm:$0xff]  ;;  %v4120_v9 = vld [vmem:[#allocation10 + $0x318] sm:$0xff] }
 0x443   :  { %4289 = vmatpush.msrb.mxu1 %v4036_v16  ;;  %4382 = vmatpush.msra.mxu2 %v3889_v22  ;;  %v3911_v16 = vld [vmem:[#allocation9 + $0x190] sm:$0xff]  ;;  %v3897_v8 = vld [vmem:[#allocation9 + $0x120] sm:$0xff]  ;;  %v4118_v22 = vld [vmem:[#allocation10 + $0x308] sm:$0xff] }
 0x444   :  { %4217 = vmatmul.f32.vlgmr.msra.gmra.mxu1 %v5748_v32  ;;  %4342 = vmatpush.msra.mxu0 %v4146_v20  ;;  %v3863_v20 = vld [vmem:[#allocation9 + $0x10] sm:$0xff] }
 0x445   :  { %4290 = vmatpush.msrb.mxu1 %v4034_v33  ;;  %4402 = vmatpush.msra.mxu3 %v3921_v23  ;;  %v3909_v33 = vld [vmem:[#allocation9 + $0x180] sm:$0xff]  ;;  %v4152_v23 = vld [vmem:[#allocation10 + $0x418] sm:$0xff] }
 0x446   :  { %4343 = vmatpush.msra.mxu0 %v4144_v18  ;;  %4383 = vmatpush.msra.mxu2 %v3887_v13  ;;  %v3893_v18 = vld [vmem:[#allocation9 + $0x100] sm:$0xff]  ;;  %v4019_v13 = vld [vmem:[#allocation9 + $0x4f0] sm:$0xff] }
 0x447   :  { %4291 = vmatpush.msrb.mxu1 %v4032_v46  ;;  %4403 = vmatpush.msra.mxu3 %v3919_v17  ;;  %v3907_v46 = vld [vmem:[#allocation9 + $0x170] sm:$0xff]  ;;  %v3892_v17 = vld [vmem:[#allocation9 + $0xf8] sm:$0xff] }
 0x448   :  { %4344 = vmatpush.msra.mxu0 %v4142_v61  ;;  %4384 = vmatpush.msra.mxu2 %v3885_v60  ;;  %v3953_v61 = vld [vmem:[#allocation9 + $0x2e0] sm:$0xff] }
 0x449   :  { %4292 = vmatpush.msrb.mxu1 %v4030_v62  ;;  %4404 = vmatpush.msra.mxu3 %v3917_v54  ;;  %v3905_v62 = vld [vmem:[#allocation9 + $0x160] sm:$0xff]  ;;  %v3890_v54 = vld [vmem:[#allocation9 + $0xe8] sm:$0xff] }
 0x44a   :  { %4277 = vmatmul.f32.vlgmr.msrb.gmra.mxu0 %v5753_v56  ;;  %4385 = vmatpush.msra.mxu2 %v3883_v43  ;;  %v4017_v60 = vld [vmem:[#allocation9 + $0x4e0] sm:$0xff]  ;;  %v4015_v43 = vld [vmem:[#allocation9 + $0x4d0] sm:$0xff] }
 0x44b   :  { %4293 = vmatpush.msrb.mxu1 %v4028_v48  ;;  %4345 = vmatpush.msra.mxu0 %v4140_v58  ;;  %v3903_v48 = vld [vmem:[#allocation9 + $0x150] sm:$0xff] }
 0x44c   :  { %4405 = vmatpush.msra.mxu3 %v3915_v45  ;;  %4386 = vmatpush.msra.mxu2 %v3881_v39  ;;  %v3951_v58 = vld [vmem:[#allocation9 + $0x2d0] sm:$0xff]  ;;  %v3888_v45 = vld [vmem:[#allocation9 + $0xd8] sm:$0xff]  ;;  %v4013_v39 = vld [vmem:[#allocation9 + $0x4c0] sm:$0xff] }
 0x44d   :  { %4294 = vmatpush.msrb.mxu1 %v4026_v0  ;;  %4346 = vmatpush.msra.mxu0 %v4138_v50  ;;  %v3901_v0 = vld [vmem:[#allocation9 + $0x140] sm:$0xff] }
 0x44e   :  { %4406 = vmatpush.msra.mxu3 %v3913_v24  ;;  %4387 = vmatpush.msra.mxu2 %v3879_v28  ;;  %v3949_v50 = vld [vmem:[#allocation9 + $0x2c0] sm:$0xff]  ;;  %v3886_v24 = vld [vmem:[#allocation9 + $0xc8] sm:$0xff]  ;;  %v3884_v28 = vld [vmem:[#allocation9 + $0xb8] sm:$0xff] }
 0x44f   :  { %4295 = vmatpush.msrb.mxu1 %v4024_v4  ;;  %4347 = vmatpush.msra.mxu0 %v4136_v35  ;;  %v3899_v4 = vld [vmem:[#allocation9 + $0x130] sm:$0xff] }
 0x450   :  { %4407 = vmatpush.msra.mxu3 %v3911_v16  ;;  %4388 = vmatpush.msra.mxu2 %v3877_v10  ;;  %v3947_v35 = vld [vmem:[#allocation9 + $0x2b0] sm:$0xff]  ;;  %v3945_v16 = vld [vmem:[#allocation9 + $0x2a0] sm:$0xff]  ;;  %v3882_v10 = vld [vmem:[#allocation9 + $0xa8] sm:$0xff] }
 0x451   :  { %4296 = vmatpush.msrb.mxu1 %v4022_v21  ;;  %4348 = vmatpush.msra.mxu0 %v4134_v34  ;;  %v4154_v21 = vld [vmem:[#allocation10 + $0x428] sm:$0xff]  ;;  %v3979_v34 = vld [vmem:[#allocation9 + $0x3b0] sm:$0xff] }
 0x452   :  { %4408 = vmatpush.msra.mxu3 %v3909_v33  ;;  %4389 = vmatpush.msra.mxu2 %v3875_v42  ;;  %v3943_v33 = vld [vmem:[#allocation9 + $0x290] sm:$0xff]  ;;  %v3880_v42 = vld [vmem:[#allocation9 + $0x98] sm:$0xff] }
 0x453   :  { %4361 = vmatpush.msra.mxu1 %v4180_v11  ;;  %4349 = vmatpush.msra.mxu0 %v4132_v19  ;;  %v3895_v11 = vld [vmem:[#allocation9 + $0x110] sm:$0xff]  ;;  %v3977_v19 = vld [vmem:[#allocation9 + $0x3a0] sm:$0xff] }
 0x454   :  { %4409 = vmatpush.msra.mxu3 %v3907_v46  ;;  %4390 = vmatpush.msra.mxu2 %v3873_v49  ;;  %v3941_v46 = vld [vmem:[#allocation9 + $0x280] sm:$0xff]  ;;  %v3939_v49 = vld [vmem:[#allocation9 + $0x270] sm:$0xff] }
 0x455   :  { %4362 = vmatpush.msra.mxu1 %v4178_v12  ;;  %4350 = vmatpush.msra.mxu0 %v4130_v57  ;;  %v3955_v12 = vld [vmem:[#allocation9 + $0x2f0] sm:$0xff]  ;;  %v4005_v57 = vld [vmem:[#allocation9 + $0x480] sm:$0xff] }
 0x456   :  { %4410 = vmatpush.msra.mxu3 %v3905_v62  ;;  %4391 = vmatpush.msra.mxu2 %v3871_v47  ;;  %v3973_v62 = vld [vmem:[#allocation9 + $0x380] sm:$0xff]  ;;  %v3971_v47 = vld [vmem:[#allocation9 + $0x370] sm:$0xff] }
 0x457   :  { %4363 = vmatpush.msra.mxu1 %v4176_v14  ;;  %4351 = vmatpush.msra.mxu0 %v4128_v41  ;;  %v3987_v14 = vld [vmem:[#allocation9 + $0x3f0] sm:$0xff] }
 0x458   :  { %4411 = vmatpush.msra.mxu3 %v3903_v48  ;;  %4392 = vmatpush.msra.mxu2 %v3869_v29  ;;  %v4003_v41 = vld [vmem:[#allocation9 + $0x470] sm:$0xff]  ;;  %v4001_v48 = vld [vmem:[#allocation9 + $0x460] sm:$0xff] }
 0x459   :  { %4364 = vmatpush.msra.mxu1 %v4174_v30  ;;  %4352 = vmatpush.msra.mxu0 %v4126_v44  ;;  %v3985_v30 = vld [vmem:[#allocation9 + $0x3e0] sm:$0xff]  ;;  %v3874_v44 = vld [vmem:[#allocation9 + $0x68] sm:$0xff] }
 0x45a   :  { %4412 = vmatpush.msra.mxu3 %v3901_v0  ;;  %4317 = vmatmul.f32.vlgmr.msrb.gmra.mxu2 %v5748_v32  ;;  %v3861_v32 = vld [vmem:[#allocation9] sm:$0xff]  ;;  %v3999_v0 = vld [vmem:[#allocation9 + $0x450] sm:$0xff] }
 0x45b   :  { %4365 = vmatpush.msra.mxu1 %v4172_v26  ;;  %4353 = vmatpush.msra.mxu0 %v4124_v1  ;;  %v3983_v26 = vld [vmem:[#allocation9 + $0x3d0] sm:$0xff]  ;;  %v3969_v29 = vld [vmem:[#allocation9 + $0x360] sm:$0xff]  ;;  %v3872_v1 = vld [vmem:[#allocation9 + $0x58] sm:$0xff] }
 0x45c   :  { %4393 = vmatpush.msra.mxu2 %v3867_v3  ;;  %4413 = vmatpush.msra.mxu3 %v3899_v4  ;;  %v3967_v3 = vld [vmem:[#allocation9 + $0x350] sm:$0xff]  ;;  %v3997_v4 = vld [vmem:[#allocation9 + $0x440] sm:$0xff] }
 0x45d   :  { %4366 = vmatpush.msra.mxu1 %v4170_v36  ;;  %4354 = vmatpush.msra.mxu0 %v4122_v5  ;;  %v3981_v36 = vld [vmem:[#allocation9 + $0x3c0] sm:$0xff]  ;;  %v3870_v5 = vld [vmem:[#allocation9 + $0x48] sm:$0xff] }
 0x45e   :  { %4337 = vmatmul.f32.vlgmr.msrb.gmra.mxu3 %v5615_v27  ;;  %4394 = vmatpush.msra.mxu2 %v3865_v7  ;;  %v4150_v27 = vld [vmem:[#allocation10 + $0x408] sm:$0xff]  ;;  %v3965_v7 = vld [vmem:[#allocation9 + $0x340] sm:$0xff] }
 0x45f   :  { %4367 = vmatpush.msra.mxu1 %v4168_v15  ;;  %4414 = vmatpush.msra.mxu3 %v3897_v8  ;;  %v4009_v15 = vld [vmem:[#allocation9 + $0x4a0] sm:$0xff]  ;;  %v3995_v8 = vld [vmem:[#allocation9 + $0x430] sm:$0xff] }
 0x460   :  { %4355 = vmatpush.msra.mxu0 %v4120_v9  ;;  %4395 = vmatpush.msra.mxu2 %v3863_v20  ;;  %v3868_v9 = vld [vmem:[#allocation9 + $0x38] sm:$0xff]  ;;  %v3963_v20 = vld [vmem:[#allocation9 + $0x330] sm:$0xff] }
 0x461   :  { %4368 = vmatpush.msra.mxu1 %v4166_v37  ;;  %4415 = vmatpush.msra.mxu3 %v3895_v11  ;;  %v4007_v37 = vld [vmem:[#allocation9 + $0x490] sm:$0xff]  ;;  %v3993_v11 = vld [vmem:[#allocation9 + $0x420] sm:$0xff] }
 0x462   :  { %4356 = vmatpush.msra.mxu0 %v4118_v22  ;;  %4396 = vmatpush.msra.mxu2 %v3861_v32  ;;  %v3866_v22 = vld [vmem:[#allocation9 + $0x28] sm:$0xff]  ;;  %v3961_v32 = vld [vmem:[#allocation9 + $0x320] sm:$0xff] }
 0x463   :  { %4369 = vmatpush.msra.mxu1 %v4164_v40  ;;  %4416 = vmatpush.msra.mxu3 %v3893_v18  ;;  %v3878_v40 = vld [vmem:[#allocation9 + $0x88] sm:$0xff]  ;;  %v3991_v18 = vld [vmem:[#allocation9 + $0x410] sm:$0xff] }
 0x464   :  { %4397 = vmatmul.f32.vlgmr.msra.gmra.mxu2 %v5746_v52  ;;  %4421 = vmatpush.msrb.mxu0 %v3955_v12  ;;  %v3864_v12 = vld [vmem:[#allocation9 + $0x18] sm:$0xff] }
 0x465   :  { %4370 = vmatpush.msra.mxu1 %v4162_v55  ;;  %4461 = vmatpush.msrb.mxu2 %v4019_v13  ;;  %v3937_v55 = vld [vmem:[#allocation9 + $0x260] sm:$0xff] }
 0x466   :  { %4481 = vmatpush.msrb.mxu3 %v3892_v17  ;;  %4297 = vmatmul.f32.vlgmr.msrb.gmra.mxu1 %v5576_v63  ;;  %v4011_v63 = vld [vmem:[#allocation9 + $0x4b0] sm:$0xff]  ;;  %v3925_v13 = vld [vmem:[#allocation9 + $0x200] sm:$0xff] }
 0x467   :  { %4371 = vmatpush.msra.mxu1 %v4160_v38  ;;  %4417 = vmatmul.f32.vlgmr.msra.gmra.mxu3 %v5747_v31  ;;  %v3935_v38 = vld [vmem:[#allocation9 + $0x250] sm:$0xff] }
 0x468   :  { %4422 = vmatpush.msrb.mxu0 %v3953_v61  ;;  %4462 = vmatpush.msrb.mxu2 %v4017_v60  ;;  %v3959_v17 = vld [vmem:[#allocation9 + $0x310] sm:$0xff]  ;;  %v3862_v61 = vld [vmem:[#allocation9 + $0x8] sm:$0xff]  ;;  %v3988_v60 = vld [vmem:[#allocation9 + $0x3f8] sm:$0xff] }
 0x469   :  { %4372 = vmatpush.msra.mxu1 %v4158_v2  ;;  %4482 = vmatpush.msrb.mxu3 %v3890_v54  ;;  %v3933_v2 = vld [vmem:[#allocation9 + $0x240] sm:$0xff] }
 0x46a   :  { %4423 = vmatpush.msrb.mxu0 %v3951_v58  ;;  %4463 = vmatpush.msrb.mxu2 %v4015_v43  ;;  %v3957_v54 = vld [vmem:[#allocation9 + $0x300] sm:$0xff]  ;;  %v4020_v58 = vld [vmem:[#allocation9 + $0x4f8] sm:$0xff] }
 0x46b   :  { %4373 = vmatpush.msra.mxu1 %v4156_v6  ;;  %4483 = vmatpush.msrb.mxu3 %v3888_v45  ;;  %v3931_v6 = vld [vmem:[#allocation9 + $0x230] sm:$0xff]  ;;  %v3956_v43 = vld [vmem:[#allocation9 + $0x2f8] sm:$0xff]  ;;  %v3986_v45 = vld [vmem:[#allocation9 + $0x3e8] sm:$0xff] }
 0x46c   :  { %4424 = vmatpush.msrb.mxu0 %v3949_v50  ;;  %4464 = vmatpush.msrb.mxu2 %v4013_v39  ;;  %v3920_v50 = vld [vmem:[#allocation9 + $0x1d8] sm:$0xff]  ;;  %v3954_v39 = vld [vmem:[#allocation9 + $0x2e8] sm:$0xff] }
 0x46d   :  { %4374 = vmatpush.msra.mxu1 %v4154_v21  ;;  %4484 = vmatpush.msrb.mxu3 %v3886_v24  ;;  %v3929_v21 = vld [vmem:[#allocation9 + $0x220] sm:$0xff]  ;;  %v3984_v24 = vld [vmem:[#allocation9 + $0x3d8] sm:$0xff] }
 0x46e   :  { %4357 = vmatmul.f32.vlgmr.msra.gmra.mxu0 %v5751_v53  ;;  %4465 = vmatpush.msrb.mxu2 %v4011_v63  ;;  %v3975_v53 = vld [vmem:[#allocation9 + $0x390] sm:$0xff]  ;;  %v3982_v63 = vld [vmem:[#allocation9 + $0x3c8] sm:$0xff] }
 0x46f   :  { %4375 = vmatpush.msra.mxu1 %v4152_v23  ;;  %4425 = vmatpush.msrb.mxu0 %v3947_v35  ;;  %v3927_v23 = vld [vmem:[#allocation9 + $0x210] sm:$0xff]  ;;  %v3918_v35 = vld [vmem:[#allocation9 + $0x1c8] sm:$0xff] }
 0x470   :  { %4485 = vmatpush.msrb.mxu3 %v3884_v28  ;;  %4466 = vmatpush.msrb.mxu2 %v4009_v15  ;;  %v3916_v28 = vld [vmem:[#allocation9 + $0x1b8] sm:$0xff] }
 0x471   :  { %4376 = vmatpush.msra.mxu1 %v4150_v27  ;;  %4426 = vmatpush.msrb.mxu0 %v3945_v16  ;;  %v3989_v27 = vld [vmem:[#allocation9 + $0x400] sm:$0xff]  ;;  %v4014_v16 = vld [vmem:[#allocation9 + $0x4c8] sm:$0xff]  ;;  %v3980_v15 = vld [vmem:[#allocation9 + $0x3b8] sm:$0xff] }
 0x472   :  { %4377 = vmatmul.f32.vlgmr.msra.gmra.mxu1 %v5753_v56  ;;  %4486 = vmatpush.msrb.mxu3 %v3882_v10  ;;  %v3876_v56 = vld [vmem:[#allocation9 + $0x78] sm:$0xff]  ;;  %v3914_v10 = vld [vmem:[#allocation9 + $0x1a8] sm:$0xff] }
 0x473   :  { %4441 = vmatpush.msrb.mxu1 %v3987_v14  ;;  %4427 = vmatpush.msrb.mxu0 %v3943_v33  ;;  %v3924_v14 = vld [vmem:[#allocation9 + $0x1f8] sm:$0xff] }
 0x474   :  { %4467 = vmatpush.msrb.mxu2 %v4007_v37  ;;  %4487 = vmatpush.msrb.mxu3 %v3880_v42  ;;  %v4012_v33 = vld [vmem:[#allocation9 + $0x4b8] sm:$0xff]  ;;  %v3978_v37 = vld [vmem:[#allocation9 + $0x3a8] sm:$0xff] }
 0x475   :  { %4442 = vmatpush.msrb.mxu1 %v3985_v30  ;;  %4428 = vmatpush.msrb.mxu0 %v3941_v46  ;;  %v3922_v30 = vld [vmem:[#allocation9 + $0x1e8] sm:$0xff]  ;;  %v3912_v42 = vld [vmem:[#allocation9 + $0x198] sm:$0xff] }
 0x476   :  { %4468 = vmatpush.msrb.mxu2 %v4005_v57  ;;  %4488 = vmatpush.msrb.mxu3 %v3878_v40  ;;  %v4010_v46 = vld [vmem:[#allocation9 + $0x4a8] sm:$0xff]  ;;  %v3976_v57 = vld [vmem:[#allocation9 + $0x398] sm:$0xff] }
 0x477   :  { %4443 = vmatpush.msrb.mxu1 %v3983_v26  ;;  %4429 = vmatpush.msrb.mxu0 %v3939_v49  ;;  %v4018_v26 = vld [vmem:[#allocation9 + $0x4e8] sm:$0xff]  ;;  %v4008_v49 = vld [vmem:[#allocation9 + $0x498] sm:$0xff] }
 0x478   :  { %4469 = vmatpush.msrb.mxu2 %v4003_v41  ;;  %4489 = vmatpush.msrb.mxu3 %v3876_v56  ;;  %v3910_v40 = vld [vmem:[#allocation9 + $0x188] sm:$0xff]  ;;  %v3908_v56 = vld [vmem:[#allocation9 + $0x178] sm:$0xff] }
 0x479   :  { %4444 = vmatpush.msrb.mxu1 %v3981_v36  ;;  %4430 = vmatpush.msrb.mxu0 %v3937_v55  ;;  %v4016_v36 = vld [vmem:[#allocation9 + $0x4d8] sm:$0xff]  ;;  %v3974_v41 = vld [vmem:[#allocation9 + $0x388] sm:$0xff] }
 0x47a   :  { %4470 = vmatpush.msrb.mxu2 %v4001_v48  ;;  %4490 = vmatpush.msrb.mxu3 %v3874_v44  ;;  %v4006_v55 = vld [vmem:[#allocation9 + $0x488] sm:$0xff]  ;;  %v3972_v48 = vld [vmem:[#allocation9 + $0x378] sm:$0xff] }
 0x47b   :  { %4445 = vmatpush.msrb.mxu1 %v3979_v34  ;;  %4431 = vmatpush.msrb.mxu0 %v3935_v38  ;;  %v3950_v34 = vld [vmem:[#allocation9 + $0x2c8] sm:$0xff]  ;;  %v4004_v38 = vld [vmem:[#allocation9 + $0x478] sm:$0xff] }
 0x47c   :  { %4471 = vmatpush.msrb.mxu2 %v3999_v0  ;;  %4491 = vmatpush.msrb.mxu3 %v3872_v1  ;;  %v3906_v44 = vld [vmem:[#allocation9 + $0x168] sm:$0xff]  ;;  %v3904_v1 = vld [vmem:[#allocation9 + $0x158] sm:$0xff] }
 0x47d   :  { %4446 = vmatpush.msrb.mxu1 %v3977_v19  ;;  %4432 = vmatpush.msrb.mxu0 %v3933_v2  ;;  %v3948_v19 = vld [vmem:[#allocation9 + $0x2b8] sm:$0xff]  ;;  %v3970_v0 = vld [vmem:[#allocation9 + $0x368] sm:$0xff] }
 0x47e   :  { %4472 = vmatpush.msrb.mxu2 %v3997_v4  ;;  %4492 = vmatpush.msrb.mxu3 %v3870_v5  ;;  %v4002_v2 = vld [vmem:[#allocation9 + $0x468] sm:$0xff]  ;;  %v3968_v4 = vld [vmem:[#allocation9 + $0x358] sm:$0xff] }
 0x47f   :  { %4447 = vmatpush.msrb.mxu1 %v3975_v53  ;;  %4433 = vmatpush.msrb.mxu0 %v3931_v6  ;;  %v3946_v53 = vld [vmem:[#allocation9 + $0x2a8] sm:$0xff]  ;;  %v4000_v6 = vld [vmem:[#allocation9 + $0x458] sm:$0xff] }
 0x480   :  { %4473 = vmatpush.msrb.mxu2 %v3995_v8  ;;  %4493 = vmatpush.msrb.mxu3 %v3868_v9  ;;  %v3902_v5 = vld [vmem:[#allocation9 + $0x148] sm:$0xff]  ;;  %v3900_v9 = vld [vmem:[#allocation9 + $0x138] sm:$0xff] }
 0x481   :  { %4448 = vmatpush.msrb.mxu1 %v3973_v62  ;;  %4434 = vmatpush.msrb.mxu0 %v3929_v21  ;;  %v3944_v62 = vld [vmem:[#allocation9 + $0x298] sm:$0xff]  ;;  %v3966_v8 = vld [vmem:[#allocation9 + $0x348] sm:$0xff] }
 0x482   :  { %4474 = vmatpush.msrb.mxu2 %v3993_v11  ;;  %4494 = vmatpush.msrb.mxu3 %v3866_v22  ;;  %v3998_v21 = vld [vmem:[#allocation9 + $0x448] sm:$0xff]  ;;  %v3964_v11 = vld [vmem:[#allocation9 + $0x338] sm:$0xff] }
 0x483   :  { %4449 = vmatpush.msrb.mxu1 %v3971_v47  ;;  %4435 = vmatpush.msrb.mxu0 %v3927_v23  ;;  %v3942_v47 = vld [vmem:[#allocation9 + $0x288] sm:$0xff]  ;;  %v3996_v23 = vld [vmem:[#allocation9 + $0x438] sm:$0xff] }
 0x484   :  { %4475 = vmatpush.msrb.mxu2 %v3991_v18  ;;  %4495 = vmatpush.msrb.mxu3 %v3864_v12  ;;  %v3898_v22 = vld [vmem:[#allocation9 + $0x128] sm:$0xff]  ;;  %v3896_v12 = vld [vmem:[#allocation9 + $0x118] sm:$0xff] }
 0x485   :  { %4450 = vmatpush.msrb.mxu1 %v3969_v29  ;;  %4436 = vmatpush.msrb.mxu0 %v3925_v13  ;;  %v3940_v29 = vld [vmem:[#allocation9 + $0x278] sm:$0xff]  ;;  %v3962_v18 = vld [vmem:[#allocation9 + $0x328] sm:$0xff] }
 0x486   :  { %4476 = vmatpush.msrb.mxu2 %v3989_v27  ;;  %4496 = vmatpush.msrb.mxu3 %v3862_v61  ;;  %v3994_v13 = vld [vmem:[#allocation9 + $0x428] sm:$0xff]  ;;  %v3960_v27 = vld [vmem:[#allocation9 + $0x318] sm:$0xff] }
 0x487   :  { %4451 = vmatpush.msrb.mxu1 %v3967_v3  ;;  %4437 = vmatmul.f32.vlgmr.msrb.gmra.mxu0 %v5749_v59  ;;  %v3938_v3 = vld [vmem:[#allocation9 + $0x268] sm:$0xff] }
 0x488   :  { %4477 = vmatmul.f32.vlgmr.msrb.gmra.mxu2 %v5752_v51  ;;  %4497 = vmatmul.f32.vlgmr.msrb.gmra.mxu3 %v5746_v52  ;;  %v3952_v52 = vld [vmem:[#allocation9 + $0x2d8] sm:$0xff]  ;;  %v3894_v61 = vld [vmem:[#allocation9 + $0x108] sm:$0xff] }
 0x489   :  { %4452 = vmatpush.msrb.mxu1 %v3965_v7  ;;  %4501 = vmatpush.msra.mxu0 %v3924_v14  ;;  %v3936_v7 = vld [vmem:[#allocation9 + $0x258] sm:$0xff] }
 0x48a   :  { %4541 = vmatpush.msra.mxu2 %v3988_v60  ;;  %4561 = vmatpush.msra.mxu3 %v4020_v58  ;;  %v3992_v14 = vld [vmem:[#allocation9 + $0x418] sm:$0xff]  ;;  %v3926_v58 = vld [vmem:[#allocation9 + $0x208] sm:$0xff] }
 0x48b   :  { %4453 = vmatpush.msrb.mxu1 %v3963_v20  ;;  %4502 = vmatpush.msra.mxu0 %v3922_v30  ;;  %v3934_v20 = vld [vmem:[#allocation9 + $0x248] sm:$0xff]  ;;  %v3928_v60 = vld [vmem:[#allocation9 + $0x218] sm:$0xff] }
 0x48c   :  { %4542 = vmatpush.msra.mxu2 %v3986_v45  ;;  %4562 = vmatpush.msra.mxu3 %v4018_v26  ;;  %v3990_v30 = vld [vmem:[#allocation9 + $0x408] sm:$0xff] }
 0x48d   :  { %4454 = vmatpush.msrb.mxu1 %v3961_v32  ;;  %4503 = vmatpush.msra.mxu0 %v3920_v50  ;;  %v3932_v32 = vld [vmem:[#allocation9 + $0x238] sm:$0xff] }
 0x48e   :  { %4543 = vmatpush.msra.mxu2 %v3984_v24  ;;  %4563 = vmatpush.msra.mxu3 %v4016_v36 }
 0x48f   :  { %4455 = vmatpush.msrb.mxu1 %v3959_v17  ;;  %4504 = vmatpush.msra.mxu0 %v3918_v35  ;;  %v3930_v17 = vld [vmem:[#allocation9 + $0x228] sm:$0xff] }
 0x490   :  { %4544 = vmatpush.msra.mxu2 %v3982_v63  ;;  %4564 = vmatpush.msra.mxu3 %v4014_v16 }
 0x491   :  { %4456 = vmatpush.msrb.mxu1 %v3957_v54  ;;  %4505 = vmatpush.msra.mxu0 %v3916_v28  ;;  %v3958_v54 = vld [vmem:[#allocation9 + $0x308] sm:$0xff] }
 0x492   :  { %4457 = vmatmul.f32.vlgmr.msrb.gmra.mxu1 %v5750_v25  ;;  %4545 = vmatpush.msra.mxu2 %v3980_v15 }
 0x493   :  { %4521 = vmatpush.msra.mxu1 %v3956_v43  ;;  %4506 = vmatpush.msra.mxu0 %v3914_v10 }
 0x494   :  { %4565 = vmatpush.msra.mxu3 %v4012_v33  ;;  %4546 = vmatpush.msra.mxu2 %v3978_v37 }
 0x495   :  { %4522 = vmatpush.msra.mxu1 %v3954_v39  ;;  %4507 = vmatpush.msra.mxu0 %v3912_v42 }
 0x496   :  { %4566 = vmatpush.msra.mxu3 %v4010_v46  ;;  %4547 = vmatpush.msra.mxu2 %v3976_v57 }
 0x497   :  { %4523 = vmatpush.msra.mxu1 %v3952_v52  ;;  %4508 = vmatpush.msra.mxu0 %v3910_v40 }
 0x498   :  { %4567 = vmatpush.msra.mxu3 %v4008_v49  ;;  %4548 = vmatpush.msra.mxu2 %v3974_v41 }
 0x499   :  { %4524 = vmatpush.msra.mxu1 %v3950_v34  ;;  %4509 = vmatpush.msra.mxu0 %v3908_v56 }
 0x49a   :  { %4568 = vmatpush.msra.mxu3 %v4006_v55  ;;  %4549 = vmatpush.msra.mxu2 %v3972_v48 }
 0x49b   :  { %4525 = vmatpush.msra.mxu1 %v3948_v19  ;;  %4510 = vmatpush.msra.mxu0 %v3906_v44 }
 0x49c   :  { %4569 = vmatpush.msra.mxu3 %v4004_v38  ;;  %4550 = vmatpush.msra.mxu2 %v3970_v0 }
 0x49d   :  { %4526 = vmatpush.msra.mxu1 %v3946_v53  ;;  %4511 = vmatpush.msra.mxu0 %v3904_v1 }
 0x49e   :  { %4570 = vmatpush.msra.mxu3 %v4002_v2  ;;  %4551 = vmatpush.msra.mxu2 %v3968_v4 }
 0x49f   :  { %4527 = vmatpush.msra.mxu1 %v3944_v62  ;;  %4512 = vmatpush.msra.mxu0 %v3902_v5 }
 0x4a0   :  { %4571 = vmatpush.msra.mxu3 %v4000_v6  ;;  %4552 = vmatpush.msra.mxu2 %v3966_v8 }
 0x4a1   :  { %4528 = vmatpush.msra.mxu1 %v3942_v47  ;;  %4513 = vmatpush.msra.mxu0 %v3900_v9 }
 0x4a2   :  { %4572 = vmatpush.msra.mxu3 %v3998_v21  ;;  %4553 = vmatpush.msra.mxu2 %v3964_v11 }
 0x4a3   :  { %4529 = vmatpush.msra.mxu1 %v3940_v29  ;;  %4514 = vmatpush.msra.mxu0 %v3898_v22 }
 0x4a4   :  { %4573 = vmatpush.msra.mxu3 %v3996_v23  ;;  %4554 = vmatpush.msra.mxu2 %v3962_v18 }
 0x4a5   :  { %4530 = vmatpush.msra.mxu1 %v3938_v3  ;;  %4515 = vmatpush.msra.mxu0 %v3896_v12 }
 0x4a6   :  { %4574 = vmatpush.msra.mxu3 %v3994_v13  ;;  %4555 = vmatpush.msra.mxu2 %v3960_v27 }
 0x4a7   :  { %4531 = vmatpush.msra.mxu1 %v3936_v7  ;;  %4516 = vmatpush.msra.mxu0 %v3894_v61 }
 0x4a8   :  { %4575 = vmatpush.msra.mxu3 %v3992_v14  ;;  %4556 = vmatpush.msra.mxu2 %v3958_v54 }
 0x4a9   :  { %4532 = vmatpush.msra.mxu1 %v3934_v20  ;;  %4517 = vmatmul.f32.vlgmr.msra.gmra.mxu0 %v5747_v31 }
 0x4aa   :  { %4557 = vmatmul.f32.vlgmr.msra.gmra.mxu2 %v5750_v25  ;;  %4576 = vmatpush.msra.mxu3 %v3990_v30 }
 0x4ab   :  { %4533 = vmatpush.msra.mxu1 %v3932_v32  ;;  %4577 = vmatmul.f32.vlgmr.msra.gmra.mxu3 %v5752_v51 }
 0x4ad   :  { %4534 = vmatpush.msra.mxu1 %v3930_v17 }
 0x4af   :  { %4535 = vmatpush.msra.mxu1 %v3928_v60 }
 0x4b1   :  { %4536 = vmatpush.msra.mxu1 %v3926_v58 }
 0x4b2   :  { %4537 = vmatmul.f32.vlgmr.msra.gmra.mxu1 %v5749_v59 }
 0x4bc   :  { %v4198_v43 = vpop.f32.mrf.mxu0 }
 0x4bf   :  { %v4238_v45 = vpop.f32.mrf.mxu2 }
 0x4c1   :  { %v4218_v50 = vpop.f32.mrf.mxu1 }
 0x4c2   :  { %v4219_v39 = vadd.f32 %v4218_v50, %v4198_v43 }
 0x4c3   :  { %v4258_v26 = vpop.f32.mrf.mxu3 }
 0x4c4   :  { %v4239_v36 = vadd.f32 %v4238_v45, %v4219_v39 }
 0x4c6   :  { %v4259_v28 = vadd.f32 %v4258_v26, %v4239_v36 }
 0x4c7   :  { %v4278_v35 = vpop.f32.mrf.mxu0 }
 0x4c8   :  { %v4279_v25 = vadd.f32 %v4278_v35, %v4259_v28 }
 0x4dd   :  { %v4318_v24 = vpop.f32.mrf.mxu2 }
 0x4e1   :  { %v4338_v63 = vpop.f32.mrf.mxu3 }
 0x4e3   :  { %v4298_v52 = vpop.f32.mrf.mxu1 }
 0x4e4   :  { %v4319_v53 = vadd.f32 %v4318_v24, %v4298_v52 }
 0x4e6   :  { %v4339_v57 = vadd.f32 %v4338_v63, %v4319_v53 }
 0x4e7   :  { %v4398_v16 = vpop.f32.mrf.mxu2 }
 0x4e8   :  { %v4399_v34 = vadd.f32 %v4398_v16, %v4279_v25 }
 0x4ea   :  { %v4418_v10 = vpop.f32.mrf.mxu3 }
 0x4eb   :  { %v4358_v31 = vpop.f32.mrf.mxu0  ;;  %v4419_v59 = vadd.f32 %v4418_v10, %v4399_v34 }
 0x4ec   :  { %v4359_v40 = vadd.f32 %v4358_v31, %v4339_v57 }
 0x4ef   :  { %v4378_v15 = vpop.f32.mrf.mxu1 }
 0x4f0   :  { %v4379_v62 = vadd.f32 %v4378_v15, %v4359_v40 }
 0x504   :  { %v4438_v33 = vpop.f32.mrf.mxu0 }
 0x505   :  { %v4439_v51 = vadd.f32 %v4438_v33, %v4419_v59 }
 0x50b   :  { %v4478_v42 = vpop.f32.mrf.mxu2  ;;  %v4498_v49 = vpop.f32.mrf.mxu3 }
 0x50c   :  { %v4499_v41 = vadd.f32 %v4498_v49, %v4379_v62 }
 0x50f   :  { %v4458_v19 = vpop.f32.mrf.mxu1 }
 0x510   :  { %v4459_v37 = vadd.f32 %v4458_v19, %v4439_v51 }
 0x512   :  { %v4479_v46 = vadd.f32 %v4478_v42, %v4459_v37 }
 0x514   :  { %4581 = vst [vmem:[%s5740_s7] sm:$0xff] %v4479_v46 }
 0x526   :  { %v4518_v56 = vpop.f32.mrf.mxu0 }
 0x527   :  { %v4519_v55 = vadd.f32 %v4518_v56, %v4499_v41 }
 0x52d   :  { %v4558_v44 = vpop.f32.mrf.mxu2 }
 0x52e   :  { %v4578_v29 = vpop.f32.mrf.mxu3 }
 0x52f   :  { %v4538_v47 = vpop.f32.mrf.mxu1 }
 0x530   :  { %v4539_v48 = vadd.f32 %v4538_v47, %v4519_v55 }
 0x532   :  { %v4559_v38 = vadd.f32 %v4558_v44, %v4539_v48 }
 0x534   :  { %v4579_v0 = vadd.f32 %v4578_v29, %v4559_v38 }
 0x536   :  { %4582 = vst [vmem:[%s5740_s7 + $0x8] sm:$0xff] %v4579_v0 }
 0x537   :  { %4587 = vsyncpa [#allocation3], 1 }
 0x538   :  { %4588 = vsyncpa [#allocation5], 1 }
 0x539   :  { %4589 = vsyncpa [#allocation8], 1 }
 0x53a   :  { %4590 = vsyncpa [#allocation11], 1 }

</bundles_post_ra>
